<compile_context>
chip_gen: v6e
topology: v6e:2x2x1
jax: 0.10.0
libtpu: 0.0.40
codegen_flags: <defaults>
</compile_context>

<pallas_src>
import functools

import jax
import jax.numpy as jnp
from jax.experimental import pallas as pl
from jax.experimental.pallas import tpu as pltpu

HALO = 5                     # 5 stacked 3x3 convs -> 5-row receptive halo/side
ACT_DTYPE = jnp.bfloat16     # resident activations / weights (accum stays f32)


def _shift_cols(a, direction):
    """Circular column shift by one: result[:, p] = a[:, p - direction].

    direction=+1 feeds the left-neighbour tap (out[p] += acc[p-1]), -1 the
    right-neighbour tap.  Wrapped columns are killed by the nf/nl edge masks,
    so circular semantics are fine.  Uses the XLU rotate on 128-dense lane
    dims, generic jnp.roll otherwise (unaligned toy widths).
    """
    n = a.shape[-1]
    shift = 1 if direction > 0 else n - 1
    if n % 128 == 0:
        return pltpu.roll(a, shift, 1)
    return jnp.roll(a, shift, axis=1)


def _make_rdb_kernel(H, W, TH, num_feat, num_grow_ch):
    """Builds the fused strip kernel body and the VMEM scratch shape."""
    C0, G = num_feat, num_grow_ch
    Ctot = C0 + 4 * G
    S = H // TH                      # number of row strips
    TW = TH * W                      # strip pixels
    LbW = (TH + 2 * HALO) * W        # strip + halo pixels per channel row
    HWHALO = HALO * W

    def conv3x3(buf, w_ref, b_ref, nf, nl, kin, cout, base, length):
        # One matmul per vertical tap ky over a lane-aligned window of the
        # shared buffer; the three kx taps are stacked on the weight M axis.
        acc = None
        for ky in range(3):
            start = base + (ky - 1) * W
            rhs = buf[0:kin, start:start + length]
            term = jnp.dot(w_ref[ky], rhs, preferred_element_type=jnp.float32)
            acc = term if acc is None else acc + term
        # Resolve kx on the (cout, length) output side: two rolls + edge masks.
        left = _shift_cols(acc[0:cout], +1) * nf[:, 0:length]
        mid = acc[cout:2 * cout]
        right = _shift_cols(acc[2 * cout:3 * cout], -1) * nl[:, 0:length]
        return mid + left + right + b_ref[...]

    def kernel(x_ref, edge_ref, w1, w2, w3, w4, w5,
               b1, b2, b3, b4, b5, o_ref, buf):
        strip = pl.program_id(1)

        # ---- stage x (dense-concat segment 0) + its 5-row halo into buf ----
        bstart = pl.multiple_of(strip * TW, TW)
        buf[0:C0, HWHALO:HWHALO + TW] = (
            x_ref[0, :, pl.ds(bstart, TW)].astype(ACT_DTYPE))

        @pl.when(strip == 0)                  # top halo lies outside the image
        def _():
            buf[0:C0, 0:HWHALO] = jnp.zeros((C0, HWHALO), ACT_DTYPE)

        @pl.when(strip > 0)
        def _():
            ts = pl.multiple_of((strip * TH - HALO) * W, W)
            buf[0:C0, 0:HWHALO] = (
                x_ref[0, :, pl.ds(ts, HWHALO)].astype(ACT_DTYPE))

        @pl.when(strip == S - 1)              # bottom halo outside the image
        def _():
            buf[0:C0, (TH + HALO) * W:LbW] = jnp.zeros((C0, HWHALO), ACT_DTYPE)

        @pl.when(strip < S - 1)
        def _():
            bs = pl.multiple_of((strip + 1) * TW, TW)
            buf[0:C0, (TH + HALO) * W:LbW] = (
                x_ref[0, :, pl.ds(bs, HWHALO)].astype(ACT_DTYPE))

        # Column-edge masks (periodic in W), sliced once per kernel body.
        nf = edge_ref[0:1, :]     # 0.0 on the first column of every image row
        nl = edge_ref[1:2, :]     # 0.0 on the last column of every image row

        # ---- conv1..conv4 (+ LeakyReLU): append each result to the shared
        # buffer, which *is* torch.cat((x, x1, ..., xk), dim=1).  Each conv's
        # halo shrinks by one row; halo rows that fall outside the real image
        # on the first/last strip are zeroed so they act as conv padding. ----
        for k, (w_ref, b_ref) in enumerate(((w1, b1), (w2, b2),
                                            (w3, b3), (w4, b4))):
            j = k + 1
            kin = C0 + k * G
            length = (TH + 2 * (HALO - j)) * W
            base = j * W
            y = conv3x3(buf, w_ref, b_ref, nf, nl, kin, G, base, length)
            y = jnp.where(y > 0, y, 0.2 * y)              # LeakyReLU(0.2)
            buf[kin:kin + G, base:base + length] = y.astype(ACT_DTYPE)

            hz = (HALO - j) * W

            @pl.when(strip == 0)
            def _():
                buf[kin:kin + G, base:HWHALO] = jnp.zeros((G, hz), ACT_DTYPE)

            @pl.when(strip == S - 1)
            def _():
                buf[kin:kin + G, (TH + HALO) * W:(TH + HALO) * W + hz] = (
                    jnp.zeros((G, hz), ACT_DTYPE))

        # ---- conv5 (no activation) + residual x5 * 0.2 + x (f32 x path) ----
        x5 = conv3x3(buf, w5, b5, nf, nl, Ctot, C0, HWHALO, TW)
        ostart = pl.multiple_of(strip * TW, TW)
        x_res = x_ref[0, :, pl.ds(ostart, TW)]
        o_ref[0] = (x5 * 0.2 + x_res).astype(o_ref.dtype)

    return kernel, (Ctot, LbW)


def prepare_rdb_params(params):
    """HWIO (3,3,Cin,Cout) weights / (Cout,) biases -> fused-kernel layout."""
    prepped = []
    for w, b in params:
        cin, cout = int(w.shape[2]), int(w.shape[3])
        # (3,3,Cin,Cout) -> (3_ky, 3_kx * Cout, Cin): kx taps stacked on M.
        wk = jnp.transpose(w, (0, 1, 3, 2)).reshape(3, 3 * cout, cin)
        prepped.append((wk.astype(ACT_DTYPE),
                        b.reshape(cout, 1).astype(jnp.float32)))
    return prepped


def _choose_strip_rows(H, W, c_total, budget_bytes=4 << 20):
    """Largest strip height whose bf16 scratch fits the budget."""
    cands = [d for d in range(1, H + 1)
             if H % d == 0 and (d >= HALO or d == H)]
    fitting = [d for d in cands
               if c_total * (d + 2 * HALO) * W * 2 <= budget_bytes]
    return max(fitting) if fitting else min(cands)


def residual_dense_block(x_nchw, params, *, strip_rows=None):
    """Fused forward pass matching PyTorch ResidualDenseBlock (NCHW in/out)."""
    N, C0, H, W = x_nchw.shape
    G = int(params[0][0].shape[-1])
    Ctot = C0 + 4 * G
    HW = H * W

    TH = strip_rows if strip_rows is not None else _choose_strip_rows(H, W, Ctot)
    assert H % TH == 0, "strip_rows must divide H"
    S = H // TH
    assert S == 1 or TH >= HALO, "strips must be at least HALO rows tall"
    TW = TH * W
    LbW = (TH + 2 * HALO) * W

    (w1, b1), (w2, b2), (w3, b3), (w4, b4), (w5, b5) = prepare_rdb_params(params)

    # Channels-first, spatially flattened input (free reshape, no transpose).
    x2d = x_nchw.reshape(N, C0, HW).astype(jnp.float32)

    # Edge masks: row 0 kills the left-neighbour tap on the first column of
    # each image row, row 1 kills the right-neighbour tap on the last column.
    col = jnp.arange(LbW, dtype=jnp.int32) % W
    edge = jnp.stack([(col != 0).astype(jnp.float32),
                      (col != W - 1).astype(jnp.float32)])       # (2, LbW)

    kernel, scratch_shape = _make_rdb_kernel(H, W, TH, C0, G)

    def _full(shape):
        nd = len(shape)
        return pl.BlockSpec(tuple(int(d) for d in shape),
                            lambda n, s, _nd=nd: (0,) * _nd)

    in_specs = [pl.BlockSpec((1, C0, HW), lambda n, s: (n, 0, 0)),
                _full(edge.shape)]
    in_specs += [_full(w.shape) for w in (w1, w2, w3, w4, w5)]
    in_specs += [_full(b.shape) for b in (b1, b2, b3, b4, b5)]
    out_spec = pl.BlockSpec((1, C0, TW), lambda n, s: (n, 0, s))

    cins = [C0 + k * G for k in range(5)]
    couts = [G] * 4 + [C0]
    rows = [TH + 2 * (HALO - j) for j in range(1, 6)]
    flops = 2 * 9 * N * S * W * sum(r * ci * co
                                    for r, ci, co in zip(rows, cins, couts))
    param_bytes = int(sum(w.size * 2 + b.size * 4 for w, b in
                          ((w1, b1), (w2, b2), (w3, b3), (w4, b4), (w5, b5))))
    bytes_accessed = int(4 * (x2d.size + N * C0 * HW) + 4 * edge.size
                         + param_bytes)

    # VMEM budget: persistent strip scratch + double-buffered in/out blocks
    # + params, with headroom; never below the default scoped limit.
    in_block = 4 * C0 * HW
    out_block = 4 * C0 * TW
    scratch_bytes = 2 * scratch_shape[0] * scratch_shape[1]
    budget = (scratch_bytes + 2 * in_block + 2 * out_block
              + param_bytes + 4 * int(edge.size))
    vmem_limit = int(min(max(2 * budget + (4 << 20), 32 << 20), 64 << 20))

    out = pl.pallas_call(
        kernel,
        out_shape=jax.ShapeDtypeStruct((N, C0, HW), jnp.float32),
        grid_spec=pltpu.PrefetchScalarGridSpec(
            num_scalar_prefetch=0,
            grid=(N, S),
            in_specs=in_specs,
            out_specs=out_spec,
            scratch_shapes=[pltpu.VMEM(scratch_shape, ACT_DTYPE)],
        ),
        compiler_params=pltpu.CompilerParams(
            dimension_semantics=("parallel", "parallel"),
            vmem_limit_bytes=vmem_limit),
        cost_estimate=pl.CostEstimate(flops=int(flops), transcendentals=0,
                                      bytes_accessed=bytes_accessed),
    )(x2d, edge, w1, w2, w3, w4, w5, b1, b2, b3, b4, b5)

    return out.reshape(N, C0, H, W)


def init_rdb_params(key, num_feat, num_grow_ch):
    """Kaiming-like init scaled by 0.1 (matches default_init_weights(..., 0.1))."""
    cins = [
        num_feat,
        num_feat + num_grow_ch,
        num_feat + 2 * num_grow_ch,
        num_feat + 3 * num_grow_ch,
        num_feat + 4 * num_grow_ch,
    ]
    couts = [num_grow_ch, num_grow_ch, num_grow_ch, num_grow_ch, num_feat]
    params = []
    keys = jax.random.split(key, 5)
    for k, cin, cout in zip(keys, cins, couts):
        std = 0.1 * jnp.sqrt(2.0 / (9.0 * cin))
        w = std * jax.random.normal(k, (3, 3, cin, cout), dtype=jnp.float32)
        bias = jnp.zeros((cout,), dtype=jnp.float32)
        params.append((w, bias))
    return params


def _reference(x_nchw, params):
    """Pure-JAX reference (lax conv) for correctness checking."""
    x = jnp.transpose(x_nchw, (0, 2, 3, 1)).astype(jnp.float32)

    def conv(inp, w, b):
        y = jax.lax.conv_general_dilated(
            inp, w, window_strides=(1, 1), padding="SAME",
            dimension_numbers=("NHWC", "HWIO", "NHWC"))
        return y + b[None, None, None, :]

    def lrelu(v):
        return jnp.where(v > 0, v, 0.2 * v)

    (w1, b1), (w2, b2), (w3, b3), (w4, b4), (w5, b5) = params
    x1 = lrelu(conv(x, w1, b1))
    x2 = lrelu(conv(jnp.concatenate((x, x1), -1), w2, b2))
    x3 = lrelu(conv(jnp.concatenate((x, x1, x2), -1), w3, b3))
    x4 = lrelu(conv(jnp.concatenate((x, x1, x2, x3), -1), w4, b4))
    x5 = conv(jnp.concatenate((x, x1, x2, x3, x4), -1), w5, b5)
    out = x5 * 0.2 + x
    return jnp.transpose(out, (0, 3, 1, 2))


if __name__ == "__main__":
    # Small, module-consistent shapes (module defaults are 64/32; this is a
    # scaled-down variant).  W=128 keeps every lane access 128-dense, and
    # strip_rows=8 exercises the strip/halo/boundary path (grid = (2, 2)).
    N, num_feat, num_grow_ch, H, W = 2, 16, 16, 16, 128

    key = jax.random.PRNGKey(0)
    k_x, k_p = jax.random.split(key)
    x = jax.random.normal(k_x, (N, num_feat, H, W), dtype=jnp.float32)  # NCHW
    params = init_rdb_params(k_p, num_feat, num_grow_ch)

    fwd = jax.jit(functools.partial(residual_dense_block, strip_rows=8))
    out = jax.block_until_ready(fwd(x, params))
    ref = jax.block_until_ready(_reference(x, params))

    assert out.shape == (N, num_feat, H, W)
    # bf16 weights/activations inside the kernel vs. the f32 reference.
    assert jnp.allclose(out, ref, atol=1e-2, rtol=1e-2), "mismatch vs JAX reference"

    print("KERNEL_OK")
</pallas_src>

<mosaic_0001>
module attributes {stable_mosaic.version = 11 : i64} {
  func.func @kernel(%arg0: i32, %arg1: i32, %arg2: memref<1x16x2048xf32, #tpu.memory_space<vmem>>, %arg3: memref<2x2304xf32, #tpu.memory_space<vmem>>, %arg4: memref<3x48x16xbf16, #tpu.memory_space<vmem>>, %arg5: memref<3x48x32xbf16, #tpu.memory_space<vmem>>, %arg6: memref<3x48x48xbf16, #tpu.memory_space<vmem>>, %arg7: memref<3x48x64xbf16, #tpu.memory_space<vmem>>, %arg8: memref<3x48x80xbf16, #tpu.memory_space<vmem>>, %arg9: memref<16x1xf32, #tpu.memory_space<vmem>>, %arg10: memref<16x1xf32, #tpu.memory_space<vmem>>, %arg11: memref<16x1xf32, #tpu.memory_space<vmem>>, %arg12: memref<16x1xf32, #tpu.memory_space<vmem>>, %arg13: memref<16x1xf32, #tpu.memory_space<vmem>>, %arg14: memref<1x16x1024xf32, #tpu.memory_space<vmem>>, %arg15: memref<80x2304xbf16, #tpu.memory_space<vmem>>) attributes {dimension_semantics = [#tpu.dimension_semantics<parallel>, #tpu.dimension_semantics<parallel>], iteration_bounds = array<i64: 2, 2>, scalar_prefetch = 0 : i64, scratch_operands = 1 : i64, tpu.core_type = #tpu.core_type<tc>, window_params = [{transform_indices = @transform_0, window_bounds = array<i64: 1, 16, 2048>}, {pipeline_mode = #tpu.pipeline_mode<synchronous>, transform_indices = @transform_1, window_bounds = array<i64: 2, 2304>}, {pipeline_mode = #tpu.pipeline_mode<synchronous>, transform_indices = @transform_2, window_bounds = array<i64: 3, 48, 16>}, {pipeline_mode = #tpu.pipeline_mode<synchronous>, transform_indices = @transform_3, window_bounds = array<i64: 3, 48, 32>}, {pipeline_mode = #tpu.pipeline_mode<synchronous>, transform_indices = @transform_4, window_bounds = array<i64: 3, 48, 48>}, {pipeline_mode = #tpu.pipeline_mode<synchronous>, transform_indices = @transform_5, window_bounds = array<i64: 3, 48, 64>}, {pipeline_mode = #tpu.pipeline_mode<synchronous>, transform_indices = @transform_6, window_bounds = array<i64: 3, 48, 80>}, {pipeline_mode = #tpu.pipeline_mode<synchronous>, transform_indices = @transform_7, window_bounds = array<i64: 16, 1>}, {pipeline_mode = #tpu.pipeline_mode<synchronous>, transform_indices = @transform_8, window_bounds = array<i64: 16, 1>}, {pipeline_mode = #tpu.pipeline_mode<synchronous>, transform_indices = @transform_9, window_bounds = array<i64: 16, 1>}, {pipeline_mode = #tpu.pipeline_mode<synchronous>, transform_indices = @transform_10, window_bounds = array<i64: 16, 1>}, {pipeline_mode = #tpu.pipeline_mode<synchronous>, transform_indices = @transform_11, window_bounds = array<i64: 16, 1>}, {transform_indices = @transform_12, window_bounds = array<i64: 1, 16, 1024>}]} {
    %c1024_i32 = arith.constant 1024 : i32
    %0 = arith.muli %arg1, %c1024_i32 : i32
    %1 = tpu.assume_multiple %0, 1024 : i32
    %c0 = arith.constant 0 : index
    %c0_0 = arith.constant 0 : index
    %2 = arith.index_cast %1 : i32 to index
    %3 = vector.load %arg2[%c0, %c0_0, %2] : memref<1x16x2048xf32, #tpu.memory_space<vmem>>, vector<1x16x1024xf32>
    %4 = vector.shape_cast %3 : vector<1x16x1024xf32> to vector<16x1024xf32>
    %5 = arith.truncf %4 : vector<16x1024xf32> to vector<16x1024xbf16>
    %c0_1 = arith.constant 0 : index
    %c640 = arith.constant 640 : index
    %6 = vector.load %arg15[%c0_1, %c640] : memref<80x2304xbf16, #tpu.memory_space<vmem>>, vector<16x1024xbf16>
    tpu.vector_store %arg15[%c0_1, %c640], %5 {strides = array<i32>} : memref<80x2304xbf16, #tpu.memory_space<vmem>>, vector<16x1024xbf16>,
    %c0_i32 = arith.constant 0 : i32
    %7 = arith.cmpi eq, %arg1, %c0_i32 : i32
    %8 = arith.extui %7 : i1 to i32
    %c0_i32_2 = arith.constant 0 : i32
    %9 = arith.cmpi ne, %8, %c0_i32_2 : i32
    scf.if %9 {
      %cst_144 = arith.constant 0.000000e+00 : bf16
      %234 = vector.broadcast %cst_144 : bf16 to vector<16x640xbf16>
      %c0_145 = arith.constant 0 : index
      %c0_146 = arith.constant 0 : index
      %235 = vector.load %arg15[%c0_145, %c0_146] : memref<80x2304xbf16, #tpu.memory_space<vmem>>, vector<16x640xbf16>
      tpu.vector_store %arg15[%c0_145, %c0_146], %234 {strides = array<i32>} : memref<80x2304xbf16, #tpu.memory_space<vmem>>, vector<16x640xbf16>,
    } else {
    }
    %c0_i32_3 = arith.constant 0 : i32
    %10 = arith.cmpi sgt, %arg1, %c0_i32_3 : i32
    %11 = arith.extui %10 : i1 to i32
    %c0_i32_4 = arith.constant 0 : i32
    %12 = arith.cmpi ne, %11, %c0_i32_4 : i32
    scf.if %12 {
      %c8_i32 = arith.constant 8 : i32
      %234 = arith.muli %arg1, %c8_i32 : i32
      %c5_i32 = arith.constant 5 : i32
      %235 = arith.subi %234, %c5_i32 : i32
      %c128_i32 = arith.constant 128 : i32
      %236 = arith.muli %235, %c128_i32 : i32
      %237 = tpu.assume_multiple %236, 128 : i32
      %c0_144 = arith.constant 0 : index
      %c0_145 = arith.constant 0 : index
      %238 = arith.index_cast %237 : i32 to index
      %239 = vector.load %arg2[%c0_144, %c0_145, %238] : memref<1x16x2048xf32, #tpu.memory_space<vmem>>, vector<1x16x640xf32>
      %240 = vector.shape_cast %239 : vector<1x16x640xf32> to vector<16x640xf32>
      %241 = arith.truncf %240 : vector<16x640xf32> to vector<16x640xbf16>
      %c0_146 = arith.constant 0 : index
      %c0_147 = arith.constant 0 : index
      %242 = vector.load %arg15[%c0_146, %c0_147] : memref<80x2304xbf16, #tpu.memory_space<vmem>>, vector<16x640xbf16>
      tpu.vector_store %arg15[%c0_146, %c0_147], %241 {strides = array<i32>} : memref<80x2304xbf16, #tpu.memory_space<vmem>>, vector<16x640xbf16>,
    } else {
    }
    %c1_i32 = arith.constant 1 : i32
    %13 = arith.cmpi eq, %arg1, %c1_i32 : i32
    %14 = arith.extui %13 : i1 to i32
    %c0_i32_5 = arith.constant 0 : i32
    %15 = arith.cmpi ne, %14, %c0_i32_5 : i32
    scf.if %15 {
      %cst_144 = arith.constant 0.000000e+00 : bf16
      %234 = vector.broadcast %cst_144 : bf16 to vector<16x640xbf16>
      %c0_145 = arith.constant 0 : index
      %c1664 = arith.constant 1664 : index
      %235 = vector.load %arg15[%c0_145, %c1664] : memref<80x2304xbf16, #tpu.memory_space<vmem>>, vector<16x640xbf16>
      tpu.vector_store %arg15[%c0_145, %c1664], %234 {strides = array<i32>} : memref<80x2304xbf16, #tpu.memory_space<vmem>>, vector<16x640xbf16>,
    } else {
    }
    %c1_i32_6 = arith.constant 1 : i32
    %16 = arith.cmpi slt, %arg1, %c1_i32_6 : i32
    %17 = arith.extui %16 : i1 to i32
    %c0_i32_7 = arith.constant 0 : i32
    %18 = arith.cmpi ne, %17, %c0_i32_7 : i32
    scf.if %18 {
      %c1_i32_144 = arith.constant 1 : i32
      %234 = arith.addi %arg1, %c1_i32_144 : i32
      %c1024_i32_145 = arith.constant 1024 : i32
      %235 = arith.muli %234, %c1024_i32_145 : i32
      %236 = tpu.assume_multiple %235, 1024 : i32
      %c0_146 = arith.constant 0 : index
      %c0_147 = arith.constant 0 : index
      %237 = arith.index_cast %236 : i32 to index
      %238 = vector.load %arg2[%c0_146, %c0_147, %237] : memref<1x16x2048xf32, #tpu.memory_space<vmem>>, vector<1x16x640xf32>
      %239 = vector.shape_cast %238 : vector<1x16x640xf32> to vector<16x640xf32>
      %240 = arith.truncf %239 : vector<16x640xf32> to vector<16x640xbf16>
      %c0_148 = arith.constant 0 : index
      %c1664 = arith.constant 1664 : index
      %241 = vector.load %arg15[%c0_148, %c1664] : memref<80x2304xbf16, #tpu.memory_space<vmem>>, vector<16x640xbf16>
      tpu.vector_store %arg15[%c0_148, %c1664], %240 {strides = array<i32>} : memref<80x2304xbf16, #tpu.memory_space<vmem>>, vector<16x640xbf16>,
    } else {
    }
    %c0_8 = arith.constant 0 : index
    %c0_9 = arith.constant 0 : index
    %19 = vector.load %arg3[%c0_8, %c0_9] : memref<2x2304xf32, #tpu.memory_space<vmem>>, vector<1x2304xf32>
    %c1 = arith.constant 1 : index
    %c0_10 = arith.constant 0 : index
    %20 = vector.load %arg3[%c1, %c0_10] : memref<2x2304xf32, #tpu.memory_space<vmem>>, vector<1x2304xf32>
    %c0_11 = arith.constant 0 : index
    %c0_12 = arith.constant 0 : index
    %21 = vector.load %arg15[%c0_11, %c0_12] : memref<80x2304xbf16, #tpu.memory_space<vmem>>, vector<16x2048xbf16>
    %c0_13 = arith.constant 0 : index
    %c0_14 = arith.constant 0 : index
    %c0_15 = arith.constant 0 : index
    %22 = vector.load %arg4[%c0_13, %c0_14, %c0_15] : memref<3x48x16xbf16, #tpu.memory_space<vmem>>, vector<1x48x16xbf16>
    %23 = vector.shape_cast %22 : vector<1x48x16xbf16> to vector<48x16xbf16>
    %cst = arith.constant dense<0.000000e+00> : vector<48x2048xf32>
    %24 = tpu.matmul %23, %21, %cst {dimension_numbers = #tpu.dot_dimension_numbers<[1], [0], [0], [1], [0, 0, 1, 1], [], []>} : vector<48x16xbf16>, vector<16x2048xbf16>, vector<48x2048xf32> -> vector<48x2048xf32>
    %c0_16 = arith.constant 0 : index
    %c128 = arith.constant 128 : index
    %25 = vector.load %arg15[%c0_16, %c128] : memref<80x2304xbf16, #tpu.memory_space<vmem>>, vector<16x2048xbf16>
    %c1_17 = arith.constant 1 : index
    %c0_18 = arith.constant 0 : index
    %c0_19 = arith.constant 0 : index
    %26 = vector.load %arg4[%c1_17, %c0_18, %c0_19] : memref<3x48x16xbf16, #tpu.memory_space<vmem>>, vector<1x48x16xbf16>
    %27 = vector.shape_cast %26 : vector<1x48x16xbf16> to vector<48x16xbf16>
    %cst_20 = arith.constant dense<0.000000e+00> : vector<48x2048xf32>
    %28 = tpu.matmul %27, %25, %cst_20 {dimension_numbers = #tpu.dot_dimension_numbers<[1], [0], [0], [1], [0, 0, 1, 1], [], []>} : vector<48x16xbf16>, vector<16x2048xbf16>, vector<48x2048xf32> -> vector<48x2048xf32>
    %29 = arith.addf %24, %28 : vector<48x2048xf32>
    %c0_21 = arith.constant 0 : index
    %c256 = arith.constant 256 : index
    %30 = vector.load %arg15[%c0_21, %c256] : memref<80x2304xbf16, #tpu.memory_space<vmem>>, vector<16x2048xbf16>
    %c2 = arith.constant 2 : index
    %c0_22 = arith.constant 0 : index
    %c0_23 = arith.constant 0 : index
    %31 = vector.load %arg4[%c2, %c0_22, %c0_23] : memref<3x48x16xbf16, #tpu.memory_space<vmem>>, vector<1x48x16xbf16>
    %32 = vector.shape_cast %31 : vector<1x48x16xbf16> to vector<48x16xbf16>
    %cst_24 = arith.constant dense<0.000000e+00> : vector<48x2048xf32>
    %33 = tpu.matmul %32, %30, %cst_24 {dimension_numbers = #tpu.dot_dimension_numbers<[1], [0], [0], [1], [0, 0, 1, 1], [], []>} : vector<48x16xbf16>, vector<16x2048xbf16>, vector<48x2048xf32> -> vector<48x2048xf32>
    %34 = arith.addf %29, %33 : vector<48x2048xf32>
    %35 = vector.extract_strided_slice %34 {offsets = [0, 0], sizes = [16, 2048], strides = [1, 1]} : vector<48x2048xf32> to vector<16x2048xf32>
    %c1_i32_25 = arith.constant 1 : i32
    %36 = tpu.dynamic_rotate %35 by %c1_i32_25 dim 1 : vector<16x2048xf32>, i32 -> vector<16x2048xf32>
    %37 = vector.extract_strided_slice %19 {offsets = [0, 0], sizes = [1, 2048], strides = [1, 1]} : vector<1x2304xf32> to vector<1x2048xf32>
    %38 = vector.broadcast %37 : vector<1x2048xf32> to vector<16x2048xf32>
    %39 = arith.mulf %36, %38 : vector<16x2048xf32>
    %40 = vector.extract_strided_slice %34 {offsets = [16, 0], sizes = [16, 2048], strides = [1, 1]} : vector<48x2048xf32> to vector<16x2048xf32>
    %41 = vector.extract_strided_slice %34 {offsets = [32, 0], sizes = [16, 2048], strides = [1, 1]} : vector<48x2048xf32> to vector<16x2048xf32>
    %c2047_i32 = arith.constant 2047 : i32
    %42 = tpu.dynamic_rotate %41 by %c2047_i32 dim 1 : vector<16x2048xf32>, i32 -> vector<16x2048xf32>
    %43 = vector.extract_strided_slice %20 {offsets = [0, 0], sizes = [1, 2048], strides = [1, 1]} : vector<1x2304xf32> to vector<1x2048xf32>
    %44 = vector.broadcast %43 : vector<1x2048xf32> to vector<16x2048xf32>
    %45 = arith.mulf %42, %44 : vector<16x2048xf32>
    %46 = arith.addf %40, %39 : vector<16x2048xf32>
    %47 = arith.addf %46, %45 : vector<16x2048xf32>
    %c0_26 = arith.constant 0 : index
    %c0_27 = arith.constant 0 : index
    %48 = vector.load %arg9[%c0_26, %c0_27] : memref<16x1xf32, #tpu.memory_space<vmem>>, vector<16x1xf32>
    %49 = vector.broadcast %48 : vector<16x1xf32> to vector<16x2048xf32>
    %50 = arith.addf %47, %49 : vector<16x2048xf32>
    %cst_28 = arith.constant 0.000000e+00 : f32
    %51 = vector.broadcast %cst_28 : f32 to vector<16x2048xf32>
    %52 = arith.cmpf ogt, %50, %51 : vector<16x2048xf32>
    %cst_29 = arith.constant 2.000000e-01 : f32
    %53 = vector.broadcast %cst_29 : f32 to vector<16x2048xf32>
    %54 = arith.mulf %53, %50 : vector<16x2048xf32>
    %55 = arith.select %52, %50, %54 : vector<16x2048xi1>, vector<16x2048xf32>
    %56 = arith.truncf %55 : vector<16x2048xf32> to vector<16x2048xbf16>
    %c16 = arith.constant 16 : index
    %c128_30 = arith.constant 128 : index
    %57 = vector.load %arg15[%c16, %c128_30] : memref<80x2304xbf16, #tpu.memory_space<vmem>>, vector<16x2048xbf16>
    tpu.vector_store %arg15[%c16, %c128_30], %56 {strides = array<i32>} : memref<80x2304xbf16, #tpu.memory_space<vmem>>, vector<16x2048xbf16>,
    %c0_i32_31 = arith.constant 0 : i32
    %58 = arith.cmpi eq, %arg1, %c0_i32_31 : i32
    %59 = arith.extui %58 : i1 to i32
    %c0_i32_32 = arith.constant 0 : i32
    %60 = arith.cmpi ne, %59, %c0_i32_32 : i32
    scf.if %60 {
      %cst_144 = arith.constant 0.000000e+00 : bf16
      %234 = vector.broadcast %cst_144 : bf16 to vector<16x512xbf16>
      %c16_145 = arith.constant 16 : index
      %c128_146 = arith.constant 128 : index
      %235 = vector.load %arg15[%c16_145, %c128_146] : memref<80x2304xbf16, #tpu.memory_space<vmem>>, vector<16x512xbf16>
      tpu.vector_store %arg15[%c16_145, %c128_146], %234 {strides = array<i32>} : memref<80x2304xbf16, #tpu.memory_space<vmem>>, vector<16x512xbf16>,
    } else {
    }
    %c1_i32_33 = arith.constant 1 : i32
    %61 = arith.cmpi eq, %arg1, %c1_i32_33 : i32
    %62 = arith.extui %61 : i1 to i32
    %c0_i32_34 = arith.constant 0 : i32
    %63 = arith.cmpi ne, %62, %c0_i32_34 : i32
    scf.if %63 {
      %cst_144 = arith.constant 0.000000e+00 : bf16
      %234 = vector.broadcast %cst_144 : bf16 to vector<16x512xbf16>
      %c16_145 = arith.constant 16 : index
      %c1664 = arith.constant 1664 : index
      %235 = vector.load %arg15[%c16_145, %c1664] : memref<80x2304xbf16, #tpu.memory_space<vmem>>, vector<16x512xbf16>
      tpu.vector_store %arg15[%c16_145, %c1664], %234 {strides = array<i32>} : memref<80x2304xbf16, #tpu.memory_space<vmem>>, vector<16x512xbf16>,
    } else {
    }
    %c0_35 = arith.constant 0 : index
    %c128_36 = arith.constant 128 : index
    %64 = vector.load %arg15[%c0_35, %c128_36] : memref<80x2304xbf16, #tpu.memory_space<vmem>>, vector<32x1792xbf16>
    %c0_37 = arith.constant 0 : index
    %c0_38 = arith.constant 0 : index
    %c0_39 = arith.constant 0 : index
    %65 = vector.load %arg5[%c0_37, %c0_38, %c0_39] : memref<3x48x32xbf16, #tpu.memory_space<vmem>>, vector<1x48x32xbf16>
    %66 = vector.shape_cast %65 : vector<1x48x32xbf16> to vector<48x32xbf16>
    %cst_40 = arith.constant dense<0.000000e+00> : vector<48x1792xf32>
    %67 = tpu.matmul %66, %64, %cst_40 {dimension_numbers = #tpu.dot_dimension_numbers<[1], [0], [0], [1], [0, 0, 1, 1], [], []>} : vector<48x32xbf16>, vector<32x1792xbf16>, vector<48x1792xf32> -> vector<48x1792xf32>
    %c0_41 = arith.constant 0 : index
    %c256_42 = arith.constant 256 : index
    %68 = vector.load %arg15[%c0_41, %c256_42] : memref<80x2304xbf16, #tpu.memory_space<vmem>>, vector<32x1792xbf16>
    %c1_43 = arith.constant 1 : index
    %c0_44 = arith.constant 0 : index
    %c0_45 = arith.constant 0 : index
    %69 = vector.load %arg5[%c1_43, %c0_44, %c0_45] : memref<3x48x32xbf16, #tpu.memory_space<vmem>>, vector<1x48x32xbf16>
    %70 = vector.shape_cast %69 : vector<1x48x32xbf16> to vector<48x32xbf16>
    %cst_46 = arith.constant dense<0.000000e+00> : vector<48x1792xf32>
    %71 = tpu.matmul %70, %68, %cst_46 {dimension_numbers = #tpu.dot_dimension_numbers<[1], [0], [0], [1], [0, 0, 1, 1], [], []>} : vector<48x32xbf16>, vector<32x1792xbf16>, vector<48x1792xf32> -> vector<48x1792xf32>
    %72 = arith.addf %67, %71 : vector<48x1792xf32>
    %c0_47 = arith.constant 0 : index
    %c384 = arith.constant 384 : index
    %73 = vector.load %arg15[%c0_47, %c384] : memref<80x2304xbf16, #tpu.memory_space<vmem>>, vector<32x1792xbf16>
    %c2_48 = arith.constant 2 : index
    %c0_49 = arith.constant 0 : index
    %c0_50 = arith.constant 0 : index
    %74 = vector.load %arg5[%c2_48, %c0_49, %c0_50] : memref<3x48x32xbf16, #tpu.memory_space<vmem>>, vector<1x48x32xbf16>
    %75 = vector.shape_cast %74 : vector<1x48x32xbf16> to vector<48x32xbf16>
    %cst_51 = arith.constant dense<0.000000e+00> : vector<48x1792xf32>
    %76 = tpu.matmul %75, %73, %cst_51 {dimension_numbers = #tpu.dot_dimension_numbers<[1], [0], [0], [1], [0, 0, 1, 1], [], []>} : vector<48x32xbf16>, vector<32x1792xbf16>, vector<48x1792xf32> -> vector<48x1792xf32>
    %77 = arith.addf %72, %76 : vector<48x1792xf32>
    %78 = vector.extract_strided_slice %77 {offsets = [0, 0], sizes = [16, 1792], strides = [1, 1]} : vector<48x1792xf32> to vector<16x1792xf32>
    %c1_i32_52 = arith.constant 1 : i32
    %79 = tpu.dynamic_rotate %78 by %c1_i32_52 dim 1 : vector<16x1792xf32>, i32 -> vector<16x1792xf32>
    %80 = vector.extract_strided_slice %19 {offsets = [0, 0], sizes = [1, 1792], strides = [1, 1]} : vector<1x2304xf32> to vector<1x1792xf32>
    %81 = vector.broadcast %80 : vector<1x1792xf32> to vector<16x1792xf32>
    %82 = arith.mulf %79, %81 : vector<16x1792xf32>
    %83 = vector.extract_strided_slice %77 {offsets = [16, 0], sizes = [16, 1792], strides = [1, 1]} : vector<48x1792xf32> to vector<16x1792xf32>
    %84 = vector.extract_strided_slice %77 {offsets = [32, 0], sizes = [16, 1792], strides = [1, 1]} : vector<48x1792xf32> to vector<16x1792xf32>
    %c1791_i32 = arith.constant 1791 : i32
    %85 = tpu.dynamic_rotate %84 by %c1791_i32 dim 1 : vector<16x1792xf32>, i32 -> vector<16x1792xf32>
    %86 = vector.extract_strided_slice %20 {offsets = [0, 0], sizes = [1, 1792], strides = [1, 1]} : vector<1x2304xf32> to vector<1x1792xf32>
    %87 = vector.broadcast %86 : vector<1x1792xf32> to vector<16x1792xf32>
    %88 = arith.mulf %85, %87 : vector<16x1792xf32>
    %89 = arith.addf %83, %82 : vector<16x1792xf32>
    %90 = arith.addf %89, %88 : vector<16x1792xf32>
    %c0_53 = arith.constant 0 : index
    %c0_54 = arith.constant 0 : index
    %91 = vector.load %arg10[%c0_53, %c0_54] : memref<16x1xf32, #tpu.memory_space<vmem>>, vector<16x1xf32>
    %92 = vector.broadcast %91 : vector<16x1xf32> to vector<16x1792xf32>
    %93 = arith.addf %90, %92 : vector<16x1792xf32>
    %cst_55 = arith.constant 0.000000e+00 : f32
    %94 = vector.broadcast %cst_55 : f32 to vector<16x1792xf32>
    %95 = arith.cmpf ogt, %93, %94 : vector<16x1792xf32>
    %cst_56 = arith.constant 2.000000e-01 : f32
    %96 = vector.broadcast %cst_56 : f32 to vector<16x1792xf32>
    %97 = arith.mulf %96, %93 : vector<16x1792xf32>
    %98 = arith.select %95, %93, %97 : vector<16x1792xi1>, vector<16x1792xf32>
    %99 = arith.truncf %98 : vector<16x1792xf32> to vector<16x1792xbf16>
    %c32 = arith.constant 32 : index
    %c256_57 = arith.constant 256 : index
    %100 = vector.load %arg15[%c32, %c256_57] : memref<80x2304xbf16, #tpu.memory_space<vmem>>, vector<16x1792xbf16>
    tpu.vector_store %arg15[%c32, %c256_57], %99 {strides = array<i32>} : memref<80x2304xbf16, #tpu.memory_space<vmem>>, vector<16x1792xbf16>,
    %c0_i32_58 = arith.constant 0 : i32
    %101 = arith.cmpi eq, %arg1, %c0_i32_58 : i32
    %102 = arith.extui %101 : i1 to i32
    %c0_i32_59 = arith.constant 0 : i32
    %103 = arith.cmpi ne, %102, %c0_i32_59 : i32
    scf.if %103 {
      %cst_144 = arith.constant 0.000000e+00 : bf16
      %234 = vector.broadcast %cst_144 : bf16 to vector<16x384xbf16>
      %c32_145 = arith.constant 32 : index
      %c256_146 = arith.constant 256 : index
      %235 = vector.load %arg15[%c32_145, %c256_146] : memref<80x2304xbf16, #tpu.memory_space<vmem>>, vector<16x384xbf16>
      tpu.vector_store %arg15[%c32_145, %c256_146], %234 {strides = array<i32>} : memref<80x2304xbf16, #tpu.memory_space<vmem>>, vector<16x384xbf16>,
    } else {
    }
    %c1_i32_60 = arith.constant 1 : i32
    %104 = arith.cmpi eq, %arg1, %c1_i32_60 : i32
    %105 = arith.extui %104 : i1 to i32
    %c0_i32_61 = arith.constant 0 : i32
    %106 = arith.cmpi ne, %105, %c0_i32_61 : i32
    scf.if %106 {
      %cst_144 = arith.constant 0.000000e+00 : bf16
      %234 = vector.broadcast %cst_144 : bf16 to vector<16x384xbf16>
      %c32_145 = arith.constant 32 : index
      %c1664 = arith.constant 1664 : index
      %235 = vector.load %arg15[%c32_145, %c1664] : memref<80x2304xbf16, #tpu.memory_space<vmem>>, vector<16x384xbf16>
      tpu.vector_store %arg15[%c32_145, %c1664], %234 {strides = array<i32>} : memref<80x2304xbf16, #tpu.memory_space<vmem>>, vector<16x384xbf16>,
    } else {
    }
    %c0_62 = arith.constant 0 : index
    %c256_63 = arith.constant 256 : index
    %107 = vector.load %arg15[%c0_62, %c256_63] : memref<80x2304xbf16, #tpu.memory_space<vmem>>, vector<48x1536xbf16>
    %c0_64 = arith.constant 0 : index
    %c0_65 = arith.constant 0 : index
    %c0_66 = arith.constant 0 : index
    %108 = vector.load %arg6[%c0_64, %c0_65, %c0_66] : memref<3x48x48xbf16, #tpu.memory_space<vmem>>, vector<1x48x48xbf16>
    %109 = vector.shape_cast %108 : vector<1x48x48xbf16> to vector<48x48xbf16>
    %cst_67 = arith.constant dense<0.000000e+00> : vector<48x1536xf32>
    %110 = tpu.matmul %109, %107, %cst_67 {dimension_numbers = #tpu.dot_dimension_numbers<[1], [0], [0], [1], [0, 0, 1, 1], [], []>} : vector<48x48xbf16>, vector<48x1536xbf16>, vector<48x1536xf32> -> vector<48x1536xf32>
    %c0_68 = arith.constant 0 : index
    %c384_69 = arith.constant 384 : index
    %111 = vector.load %arg15[%c0_68, %c384_69] : memref<80x2304xbf16, #tpu.memory_space<vmem>>, vector<48x1536xbf16>
    %c1_70 = arith.constant 1 : index
    %c0_71 = arith.constant 0 : index
    %c0_72 = arith.constant 0 : index
    %112 = vector.load %arg6[%c1_70, %c0_71, %c0_72] : memref<3x48x48xbf16, #tpu.memory_space<vmem>>, vector<1x48x48xbf16>
    %113 = vector.shape_cast %112 : vector<1x48x48xbf16> to vector<48x48xbf16>
    %cst_73 = arith.constant dense<0.000000e+00> : vector<48x1536xf32>
    %114 = tpu.matmul %113, %111, %cst_73 {dimension_numbers = #tpu.dot_dimension_numbers<[1], [0], [0], [1], [0, 0, 1, 1], [], []>} : vector<48x48xbf16>, vector<48x1536xbf16>, vector<48x1536xf32> -> vector<48x1536xf32>
    %115 = arith.addf %110, %114 : vector<48x1536xf32>
    %c0_74 = arith.constant 0 : index
    %c512 = arith.constant 512 : index
    %116 = vector.load %arg15[%c0_74, %c512] : memref<80x2304xbf16, #tpu.memory_space<vmem>>, vector<48x1536xbf16>
    %c2_75 = arith.constant 2 : index
    %c0_76 = arith.constant 0 : index
    %c0_77 = arith.constant 0 : index
    %117 = vector.load %arg6[%c2_75, %c0_76, %c0_77] : memref<3x48x48xbf16, #tpu.memory_space<vmem>>, vector<1x48x48xbf16>
    %118 = vector.shape_cast %117 : vector<1x48x48xbf16> to vector<48x48xbf16>
    %cst_78 = arith.constant dense<0.000000e+00> : vector<48x1536xf32>
    %119 = tpu.matmul %118, %116, %cst_78 {dimension_numbers = #tpu.dot_dimension_numbers<[1], [0], [0], [1], [0, 0, 1, 1], [], []>} : vector<48x48xbf16>, vector<48x1536xbf16>, vector<48x1536xf32> -> vector<48x1536xf32>
    %120 = arith.addf %115, %119 : vector<48x1536xf32>
    %121 = vector.extract_strided_slice %120 {offsets = [0, 0], sizes = [16, 1536], strides = [1, 1]} : vector<48x1536xf32> to vector<16x1536xf32>
    %c1_i32_79 = arith.constant 1 : i32
    %122 = tpu.dynamic_rotate %121 by %c1_i32_79 dim 1 : vector<16x1536xf32>, i32 -> vector<16x1536xf32>
    %123 = vector.extract_strided_slice %19 {offsets = [0, 0], sizes = [1, 1536], strides = [1, 1]} : vector<1x2304xf32> to vector<1x1536xf32>
    %124 = vector.broadcast %123 : vector<1x1536xf32> to vector<16x1536xf32>
    %125 = arith.mulf %122, %124 : vector<16x1536xf32>
    %126 = vector.extract_strided_slice %120 {offsets = [16, 0], sizes = [16, 1536], strides = [1, 1]} : vector<48x1536xf32> to vector<16x1536xf32>
    %127 = vector.extract_strided_slice %120 {offsets = [32, 0], sizes = [16, 1536], strides = [1, 1]} : vector<48x1536xf32> to vector<16x1536xf32>
    %c1535_i32 = arith.constant 1535 : i32
    %128 = tpu.dynamic_rotate %127 by %c1535_i32 dim 1 : vector<16x1536xf32>, i32 -> vector<16x1536xf32>
    %129 = vector.extract_strided_slice %20 {offsets = [0, 0], sizes = [1, 1536], strides = [1, 1]} : vector<1x2304xf32> to vector<1x1536xf32>
    %130 = vector.broadcast %129 : vector<1x1536xf32> to vector<16x1536xf32>
    %131 = arith.mulf %128, %130 : vector<16x1536xf32>
    %132 = arith.addf %126, %125 : vector<16x1536xf32>
    %133 = arith.addf %132, %131 : vector<16x1536xf32>
    %c0_80 = arith.constant 0 : index
    %c0_81 = arith.constant 0 : index
    %134 = vector.load %arg11[%c0_80, %c0_81] : memref<16x1xf32, #tpu.memory_space<vmem>>, vector<16x1xf32>
    %135 = vector.broadcast %134 : vector<16x1xf32> to vector<16x1536xf32>
    %136 = arith.addf %133, %135 : vector<16x1536xf32>
    %cst_82 = arith.constant 0.000000e+00 : f32
    %137 = vector.broadcast %cst_82 : f32 to vector<16x1536xf32>
    %138 = arith.cmpf ogt, %136, %137 : vector<16x1536xf32>
    %cst_83 = arith.constant 2.000000e-01 : f32
    %139 = vector.broadcast %cst_83 : f32 to vector<16x1536xf32>
    %140 = arith.mulf %139, %136 : vector<16x1536xf32>
    %141 = arith.select %138, %136, %140 : vector<16x1536xi1>, vector<16x1536xf32>
    %142 = arith.truncf %141 : vector<16x1536xf32> to vector<16x1536xbf16>
    %c48 = arith.constant 48 : index
    %c384_84 = arith.constant 384 : index
    %143 = vector.load %arg15[%c48, %c384_84] : memref<80x2304xbf16, #tpu.memory_space<vmem>>, vector<16x1536xbf16>
    tpu.vector_store %arg15[%c48, %c384_84], %142 {strides = array<i32>} : memref<80x2304xbf16, #tpu.memory_space<vmem>>, vector<16x1536xbf16>,
    %c0_i32_85 = arith.constant 0 : i32
    %144 = arith.cmpi eq, %arg1, %c0_i32_85 : i32
    %145 = arith.extui %144 : i1 to i32
    %c0_i32_86 = arith.constant 0 : i32
    %146 = arith.cmpi ne, %145, %c0_i32_86 : i32
    scf.if %146 {
      %cst_144 = arith.constant 0.000000e+00 : bf16
      %234 = vector.broadcast %cst_144 : bf16 to vector<16x256xbf16>
      %c48_145 = arith.constant 48 : index
      %c384_146 = arith.constant 384 : index
      %235 = vector.load %arg15[%c48_145, %c384_146] : memref<80x2304xbf16, #tpu.memory_space<vmem>>, vector<16x256xbf16>
      tpu.vector_store %arg15[%c48_145, %c384_146], %234 {strides = array<i32>} : memref<80x2304xbf16, #tpu.memory_space<vmem>>, vector<16x256xbf16>,
    } else {
    }
    %c1_i32_87 = arith.constant 1 : i32
    %147 = arith.cmpi eq, %arg1, %c1_i32_87 : i32
    %148 = arith.extui %147 : i1 to i32
    %c0_i32_88 = arith.constant 0 : i32
    %149 = arith.cmpi ne, %148, %c0_i32_88 : i32
    scf.if %149 {
      %cst_144 = arith.constant 0.000000e+00 : bf16
      %234 = vector.broadcast %cst_144 : bf16 to vector<16x256xbf16>
      %c48_145 = arith.constant 48 : index
      %c1664 = arith.constant 1664 : index
      %235 = vector.load %arg15[%c48_145, %c1664] : memref<80x2304xbf16, #tpu.memory_space<vmem>>, vector<16x256xbf16>
      tpu.vector_store %arg15[%c48_145, %c1664], %234 {strides = array<i32>} : memref<80x2304xbf16, #tpu.memory_space<vmem>>, vector<16x256xbf16>,
    } else {
    }
    %c0_89 = arith.constant 0 : index
    %c384_90 = arith.constant 384 : index
    %150 = vector.load %arg15[%c0_89, %c384_90] : memref<80x2304xbf16, #tpu.memory_space<vmem>>, vector<64x1280xbf16>
    %c0_91 = arith.constant 0 : index
    %c0_92 = arith.constant 0 : index
    %c0_93 = arith.constant 0 : index
    %151 = vector.load %arg7[%c0_91, %c0_92, %c0_93] : memref<3x48x64xbf16, #tpu.memory_space<vmem>>, vector<1x48x64xbf16>
    %152 = vector.shape_cast %151 : vector<1x48x64xbf16> to vector<48x64xbf16>
    %cst_94 = arith.constant dense<0.000000e+00> : vector<48x1280xf32>
    %153 = tpu.matmul %152, %150, %cst_94 {dimension_numbers = #tpu.dot_dimension_numbers<[1], [0], [0], [1], [0, 0, 1, 1], [], []>} : vector<48x64xbf16>, vector<64x1280xbf16>, vector<48x1280xf32> -> vector<48x1280xf32>
    %c0_95 = arith.constant 0 : index
    %c512_96 = arith.constant 512 : index
    %154 = vector.load %arg15[%c0_95, %c512_96] : memref<80x2304xbf16, #tpu.memory_space<vmem>>, vector<64x1280xbf16>
    %c1_97 = arith.constant 1 : index
    %c0_98 = arith.constant 0 : index
    %c0_99 = arith.constant 0 : index
    %155 = vector.load %arg7[%c1_97, %c0_98, %c0_99] : memref<3x48x64xbf16, #tpu.memory_space<vmem>>, vector<1x48x64xbf16>
    %156 = vector.shape_cast %155 : vector<1x48x64xbf16> to vector<48x64xbf16>
    %cst_100 = arith.constant dense<0.000000e+00> : vector<48x1280xf32>
    %157 = tpu.matmul %156, %154, %cst_100 {dimension_numbers = #tpu.dot_dimension_numbers<[1], [0], [0], [1], [0, 0, 1, 1], [], []>} : vector<48x64xbf16>, vector<64x1280xbf16>, vector<48x1280xf32> -> vector<48x1280xf32>
    %158 = arith.addf %153, %157 : vector<48x1280xf32>
    %c0_101 = arith.constant 0 : index
    %c640_102 = arith.constant 640 : index
    %159 = vector.load %arg15[%c0_101, %c640_102] : memref<80x2304xbf16, #tpu.memory_space<vmem>>, vector<64x1280xbf16>
    %c2_103 = arith.constant 2 : index
    %c0_104 = arith.constant 0 : index
    %c0_105 = arith.constant 0 : index
    %160 = vector.load %arg7[%c2_103, %c0_104, %c0_105] : memref<3x48x64xbf16, #tpu.memory_space<vmem>>, vector<1x48x64xbf16>
    %161 = vector.shape_cast %160 : vector<1x48x64xbf16> to vector<48x64xbf16>
    %cst_106 = arith.constant dense<0.000000e+00> : vector<48x1280xf32>
    %162 = tpu.matmul %161, %159, %cst_106 {dimension_numbers = #tpu.dot_dimension_numbers<[1], [0], [0], [1], [0, 0, 1, 1], [], []>} : vector<48x64xbf16>, vector<64x1280xbf16>, vector<48x1280xf32> -> vector<48x1280xf32>
    %163 = arith.addf %158, %162 : vector<48x1280xf32>
    %164 = vector.extract_strided_slice %163 {offsets = [0, 0], sizes = [16, 1280], strides = [1, 1]} : vector<48x1280xf32> to vector<16x1280xf32>
    %c1_i32_107 = arith.constant 1 : i32
    %165 = tpu.dynamic_rotate %164 by %c1_i32_107 dim 1 : vector<16x1280xf32>, i32 -> vector<16x1280xf32>
    %166 = vector.extract_strided_slice %19 {offsets = [0, 0], sizes = [1, 1280], strides = [1, 1]} : vector<1x2304xf32> to vector<1x1280xf32>
    %167 = vector.broadcast %166 : vector<1x1280xf32> to vector<16x1280xf32>
    %168 = arith.mulf %165, %167 : vector<16x1280xf32>
    %169 = vector.extract_strided_slice %163 {offsets = [16, 0], sizes = [16, 1280], strides = [1, 1]} : vector<48x1280xf32> to vector<16x1280xf32>
    %170 = vector.extract_strided_slice %163 {offsets = [32, 0], sizes = [16, 1280], strides = [1, 1]} : vector<48x1280xf32> to vector<16x1280xf32>
    %c1279_i32 = arith.constant 1279 : i32
    %171 = tpu.dynamic_rotate %170 by %c1279_i32 dim 1 : vector<16x1280xf32>, i32 -> vector<16x1280xf32>
    %172 = vector.extract_strided_slice %20 {offsets = [0, 0], sizes = [1, 1280], strides = [1, 1]} : vector<1x2304xf32> to vector<1x1280xf32>
    %173 = vector.broadcast %172 : vector<1x1280xf32> to vector<16x1280xf32>
    %174 = arith.mulf %171, %173 : vector<16x1280xf32>
    %175 = arith.addf %169, %168 : vector<16x1280xf32>
    %176 = arith.addf %175, %174 : vector<16x1280xf32>
    %c0_108 = arith.constant 0 : index
    %c0_109 = arith.constant 0 : index
    %177 = vector.load %arg12[%c0_108, %c0_109] : memref<16x1xf32, #tpu.memory_space<vmem>>, vector<16x1xf32>
    %178 = vector.broadcast %177 : vector<16x1xf32> to vector<16x1280xf32>
    %179 = arith.addf %176, %178 : vector<16x1280xf32>
    %cst_110 = arith.constant 0.000000e+00 : f32
    %180 = vector.broadcast %cst_110 : f32 to vector<16x1280xf32>
    %181 = arith.cmpf ogt, %179, %180 : vector<16x1280xf32>
    %cst_111 = arith.constant 2.000000e-01 : f32
    %182 = vector.broadcast %cst_111 : f32 to vector<16x1280xf32>
    %183 = arith.mulf %182, %179 : vector<16x1280xf32>
    %184 = arith.select %181, %179, %183 : vector<16x1280xi1>, vector<16x1280xf32>
    %185 = arith.truncf %184 : vector<16x1280xf32> to vector<16x1280xbf16>
    %c64 = arith.constant 64 : index
    %c512_112 = arith.constant 512 : index
    %186 = vector.load %arg15[%c64, %c512_112] : memref<80x2304xbf16, #tpu.memory_space<vmem>>, vector<16x1280xbf16>
    tpu.vector_store %arg15[%c64, %c512_112], %185 {strides = array<i32>} : memref<80x2304xbf16, #tpu.memory_space<vmem>>, vector<16x1280xbf16>,
    %c0_i32_113 = arith.constant 0 : i32
    %187 = arith.cmpi eq, %arg1, %c0_i32_113 : i32
    %188 = arith.extui %187 : i1 to i32
    %c0_i32_114 = arith.constant 0 : i32
    %189 = arith.cmpi ne, %188, %c0_i32_114 : i32
    scf.if %189 {
      %cst_144 = arith.constant 0.000000e+00 : bf16
      %234 = vector.broadcast %cst_144 : bf16 to vector<16x128xbf16>
      %c64_145 = arith.constant 64 : index
      %c512_146 = arith.constant 512 : index
      %235 = vector.load %arg15[%c64_145, %c512_146] : memref<80x2304xbf16, #tpu.memory_space<vmem>>, vector<16x128xbf16>
      tpu.vector_store %arg15[%c64_145, %c512_146], %234 {strides = array<i32>} : memref<80x2304xbf16, #tpu.memory_space<vmem>>, vector<16x128xbf16>,
    } else {
    }
    %c1_i32_115 = arith.constant 1 : i32
    %190 = arith.cmpi eq, %arg1, %c1_i32_115 : i32
    %191 = arith.extui %190 : i1 to i32
    %c0_i32_116 = arith.constant 0 : i32
    %192 = arith.cmpi ne, %191, %c0_i32_116 : i32
    scf.if %192 {
      %cst_144 = arith.constant 0.000000e+00 : bf16
      %234 = vector.broadcast %cst_144 : bf16 to vector<16x128xbf16>
      %c64_145 = arith.constant 64 : index
      %c1664 = arith.constant 1664 : index
      %235 = vector.load %arg15[%c64_145, %c1664] : memref<80x2304xbf16, #tpu.memory_space<vmem>>, vector<16x128xbf16>
      tpu.vector_store %arg15[%c64_145, %c1664], %234 {strides = array<i32>} : memref<80x2304xbf16, #tpu.memory_space<vmem>>, vector<16x128xbf16>,
    } else {
    }
    %c0_117 = arith.constant 0 : index
    %c512_118 = arith.constant 512 : index
    %193 = vector.load %arg15[%c0_117, %c512_118] : memref<80x2304xbf16, #tpu.memory_space<vmem>>, vector<80x1024xbf16>
    %c0_119 = arith.constant 0 : index
    %c0_120 = arith.constant 0 : index
    %c0_121 = arith.constant 0 : index
    %194 = vector.load %arg8[%c0_119, %c0_120, %c0_121] : memref<3x48x80xbf16, #tpu.memory_space<vmem>>, vector<1x48x80xbf16>
    %195 = vector.shape_cast %194 : vector<1x48x80xbf16> to vector<48x80xbf16>
    %cst_122 = arith.constant dense<0.000000e+00> : vector<48x1024xf32>
    %196 = tpu.matmul %195, %193, %cst_122 {dimension_numbers = #tpu.dot_dimension_numbers<[1], [0], [0], [1], [0, 0, 1, 1], [], []>} : vector<48x80xbf16>, vector<80x1024xbf16>, vector<48x1024xf32> -> vector<48x1024xf32>
    %c0_123 = arith.constant 0 : index
    %c640_124 = arith.constant 640 : index
    %197 = vector.load %arg15[%c0_123, %c640_124] : memref<80x2304xbf16, #tpu.memory_space<vmem>>, vector<80x1024xbf16>
    %c1_125 = arith.constant 1 : index
    %c0_126 = arith.constant 0 : index
    %c0_127 = arith.constant 0 : index
    %198 = vector.load %arg8[%c1_125, %c0_126, %c0_127] : memref<3x48x80xbf16, #tpu.memory_space<vmem>>, vector<1x48x80xbf16>
    %199 = vector.shape_cast %198 : vector<1x48x80xbf16> to vector<48x80xbf16>
    %cst_128 = arith.constant dense<0.000000e+00> : vector<48x1024xf32>
    %200 = tpu.matmul %199, %197, %cst_128 {dimension_numbers = #tpu.dot_dimension_numbers<[1], [0], [0], [1], [0, 0, 1, 1], [], []>} : vector<48x80xbf16>, vector<80x1024xbf16>, vector<48x1024xf32> -> vector<48x1024xf32>
    %201 = arith.addf %196, %200 : vector<48x1024xf32>
    %c0_129 = arith.constant 0 : index
    %c768 = arith.constant 768 : index
    %202 = vector.load %arg15[%c0_129, %c768] : memref<80x2304xbf16, #tpu.memory_space<vmem>>, vector<80x1024xbf16>
    %c2_130 = arith.constant 2 : index
    %c0_131 = arith.constant 0 : index
    %c0_132 = arith.constant 0 : index
    %203 = vector.load %arg8[%c2_130, %c0_131, %c0_132] : memref<3x48x80xbf16, #tpu.memory_space<vmem>>, vector<1x48x80xbf16>
    %204 = vector.shape_cast %203 : vector<1x48x80xbf16> to vector<48x80xbf16>
    %cst_133 = arith.constant dense<0.000000e+00> : vector<48x1024xf32>
    %205 = tpu.matmul %204, %202, %cst_133 {dimension_numbers = #tpu.dot_dimension_numbers<[1], [0], [0], [1], [0, 0, 1, 1], [], []>} : vector<48x80xbf16>, vector<80x1024xbf16>, vector<48x1024xf32> -> vector<48x1024xf32>
    %206 = arith.addf %201, %205 : vector<48x1024xf32>
    %207 = vector.extract_strided_slice %206 {offsets = [0, 0], sizes = [16, 1024], strides = [1, 1]} : vector<48x1024xf32> to vector<16x1024xf32>
    %c1_i32_134 = arith.constant 1 : i32
    %208 = tpu.dynamic_rotate %207 by %c1_i32_134 dim 1 : vector<16x1024xf32>, i32 -> vector<16x1024xf32>
    %209 = vector.extract_strided_slice %19 {offsets = [0, 0], sizes = [1, 1024], strides = [1, 1]} : vector<1x2304xf32> to vector<1x1024xf32>
    %210 = vector.broadcast %209 : vector<1x1024xf32> to vector<16x1024xf32>
    %211 = arith.mulf %208, %210 : vector<16x1024xf32>
    %212 = vector.extract_strided_slice %206 {offsets = [16, 0], sizes = [16, 1024], strides = [1, 1]} : vector<48x1024xf32> to vector<16x1024xf32>
    %213 = vector.extract_strided_slice %206 {offsets = [32, 0], sizes = [16, 1024], strides = [1, 1]} : vector<48x1024xf32> to vector<16x1024xf32>
    %c1023_i32 = arith.constant 1023 : i32
    %214 = tpu.dynamic_rotate %213 by %c1023_i32 dim 1 : vector<16x1024xf32>, i32 -> vector<16x1024xf32>
    %215 = vector.extract_strided_slice %20 {offsets = [0, 0], sizes = [1, 1024], strides = [1, 1]} : vector<1x2304xf32> to vector<1x1024xf32>
    %216 = vector.broadcast %215 : vector<1x1024xf32> to vector<16x1024xf32>
    %217 = arith.mulf %214, %216 : vector<16x1024xf32>
    %218 = arith.addf %212, %211 : vector<16x1024xf32>
    %219 = arith.addf %218, %217 : vector<16x1024xf32>
    %c0_135 = arith.constant 0 : index
    %c0_136 = arith.constant 0 : index
    %220 = vector.load %arg13[%c0_135, %c0_136] : memref<16x1xf32, #tpu.memory_space<vmem>>, vector<16x1xf32>
    %221 = vector.broadcast %220 : vector<16x1xf32> to vector<16x1024xf32>
    %222 = arith.addf %219, %221 : vector<16x1024xf32>
    %c1024_i32_137 = arith.constant 1024 : i32
    %223 = arith.muli %arg1, %c1024_i32_137 : i32
    %224 = tpu.assume_multiple %223, 1024 : i32
    %c0_138 = arith.constant 0 : index
    %c0_139 = arith.constant 0 : index
    %225 = arith.index_cast %224 : i32 to index
    %226 = vector.load %arg2[%c0_138, %c0_139, %225] : memref<1x16x2048xf32, #tpu.memory_space<vmem>>, vector<1x16x1024xf32>
    %227 = vector.shape_cast %226 : vector<1x16x1024xf32> to vector<16x1024xf32>
    %cst_140 = arith.constant 2.000000e-01 : f32
    %228 = vector.broadcast %cst_140 : f32 to vector<16x1024xf32>
    %229 = arith.mulf %222, %228 : vector<16x1024xf32>
    %230 = arith.addf %229, %227 : vector<16x1024xf32>
    %c0_141 = arith.constant 0 : index
    %c0_142 = arith.constant 0 : index
    %c0_143 = arith.constant 0 : index
    %231 = vector.load %arg14[%c0_141, %c0_142, %c0_143] : memref<1x16x1024xf32, #tpu.memory_space<vmem>>, vector<1x16x1024xf32>
    %232 = vector.shape_cast %231 : vector<1x16x1024xf32> to vector<16x1024xf32>
    %233 = vector.shape_cast %230 : vector<16x1024xf32> to vector<1x16x1024xf32>
    tpu.vector_store %arg14[%c0_141, %c0_142, %c0_143], %233 {strides = array<i32>} : memref<1x16x1024xf32, #tpu.memory_space<vmem>>, vector<1x16x1024xf32>,
    return
  }
  func.func @transform_0(%arg0: i32, %arg1: i32) -> (i32, i32, i32) {
    %c0_i32 = arith.constant 0 : i32
    %c0_i32_0 = arith.constant 0 : i32
    %c0_i32_1 = arith.constant 0 : i32
    return %arg0, %c0_i32, %c0_i32_0 : i32, i32, i32
  }
  func.func @transform_1(%arg0: i32, %arg1: i32) -> (i32, i32) {
    %c0_i32 = arith.constant 0 : i32
    %c0_i32_0 = arith.constant 0 : i32
    %c0_i32_1 = arith.constant 0 : i32
    return %c0_i32, %c0_i32_0 : i32, i32
  }
  func.func @transform_2(%arg0: i32, %arg1: i32) -> (i32, i32, i32) {
    %c0_i32 = arith.constant 0 : i32
    %c0_i32_0 = arith.constant 0 : i32
    %c0_i32_1 = arith.constant 0 : i32
    %c0_i32_2 = arith.constant 0 : i32
    return %c0_i32, %c0_i32_0, %c0_i32_1 : i32, i32, i32
  }
  func.func @transform_3(%arg0: i32, %arg1: i32) -> (i32, i32, i32) {
    %c0_i32 = arith.constant 0 : i32
    %c0_i32_0 = arith.constant 0 : i32
    %c0_i32_1 = arith.constant 0 : i32
    %c0_i32_2 = arith.constant 0 : i32
    return %c0_i32, %c0_i32_0, %c0_i32_1 : i32, i32, i32
  }
  func.func @transform_4(%arg0: i32, %arg1: i32) -> (i32, i32, i32) {
    %c0_i32 = arith.constant 0 : i32
    %c0_i32_0 = arith.constant 0 : i32
    %c0_i32_1 = arith.constant 0 : i32
    %c0_i32_2 = arith.constant 0 : i32
    return %c0_i32, %c0_i32_0, %c0_i32_1 : i32, i32, i32
  }
  func.func @transform_5(%arg0: i32, %arg1: i32) -> (i32, i32, i32) {
    %c0_i32 = arith.constant 0 : i32
    %c0_i32_0 = arith.constant 0 : i32
    %c0_i32_1 = arith.constant 0 : i32
    %c0_i32_2 = arith.constant 0 : i32
    return %c0_i32, %c0_i32_0, %c0_i32_1 : i32, i32, i32
  }
  func.func @transform_6(%arg0: i32, %arg1: i32) -> (i32, i32, i32) {
    %c0_i32 = arith.constant 0 : i32
    %c0_i32_0 = arith.constant 0 : i32
    %c0_i32_1 = arith.constant 0 : i32
    %c0_i32_2 = arith.constant 0 : i32
    return %c0_i32, %c0_i32_0, %c0_i32_1 : i32, i32, i32
  }
  func.func @transform_7(%arg0: i32, %arg1: i32) -> (i32, i32) {
    %c0_i32 = arith.constant 0 : i32
    %c0_i32_0 = arith.constant 0 : i32
    %c0_i32_1 = arith.constant 0 : i32
    return %c0_i32, %c0_i32_0 : i32, i32
  }
  func.func @transform_8(%arg0: i32, %arg1: i32) -> (i32, i32) {
    %c0_i32 = arith.constant 0 : i32
    %c0_i32_0 = arith.constant 0 : i32
    %c0_i32_1 = arith.constant 0 : i32
    return %c0_i32, %c0_i32_0 : i32, i32
  }
  func.func @transform_9(%arg0: i32, %arg1: i32) -> (i32, i32) {
    %c0_i32 = arith.constant 0 : i32
    %c0_i32_0 = arith.constant 0 : i32
    %c0_i32_1 = arith.constant 0 : i32
    return %c0_i32, %c0_i32_0 : i32, i32
  }
  func.func @transform_10(%arg0: i32, %arg1: i32) -> (i32, i32) {
    %c0_i32 = arith.constant 0 : i32
    %c0_i32_0 = arith.constant 0 : i32
    %c0_i32_1 = arith.constant 0 : i32
    return %c0_i32, %c0_i32_0 : i32, i32
  }
  func.func @transform_11(%arg0: i32, %arg1: i32) -> (i32, i32) {
    %c0_i32 = arith.constant 0 : i32
    %c0_i32_0 = arith.constant 0 : i32
    %c0_i32_1 = arith.constant 0 : i32
    return %c0_i32, %c0_i32_0 : i32, i32
  }
  func.func @transform_12(%arg0: i32, %arg1: i32) -> (i32, i32, i32) {
    %c0_i32 = arith.constant 0 : i32
    %c0_i32_0 = arith.constant 0 : i32
    return %arg0, %c0_i32, %arg1 : i32, i32, i32
  }
}

</mosaic_0001>

<bundles_post_ra>
// kernel: residual_dense_block.1
= control target key start
LH: loop header
LB: loop body
LE: loop exit
PB: predicated region body
PF: predicated region fallthrough
CT: control target
= control target key end

     0   :  { %s14308_s21 = smov 0   ;;  %s14310_s22 = smov 0   ;;  %s20334_s0 = inlined_call_operand.vmem [shape: f32[2,16,2048], index: 0, kind: input, shape index: {}]   ;;  %s20335_s1 = inlined_call_operand.vmem [shape: f32[2,2304], index: 1, kind: input, shape index: {}]   ;;  %s20336_s2 = inlined_call_operand.vmem [shape: bf16[3,48,16], index: 2, kind: input, shape index: {}]   ;;  %s20337_s3 = inlined_call_operand.vmem [shape: bf16[3,48,32], index: 3, kind: input, shape index: {}]   ;;  %s20338_s4 = inlined_call_operand.vmem [shape: bf16[3,48,48], index: 4, kind: input, shape index: {}]   ;;  %s20339_s5 = inlined_call_operand.vmem [shape: bf16[3,48,64], index: 5, kind: input, shape index: {}]   ;;  %s20340_s6 = inlined_call_operand.vmem [shape: bf16[3,48,80], index: 6, kind: input, shape index: {}]   ;;  %s20341_s7 = inlined_call_operand.vmem [shape: f32[16,1], index: 7, kind: input, shape index: {}]   ;;  %s20342_s8 = inlined_call_operand.vmem [shape: f32[16,1], index: 8, kind: input, shape index: {}]   ;;  %s20343_s9 = inlined_call_operand.vmem [shape: f32[16,1], index: 9, kind: input, shape index: {}]   ;;  %s20344_s10 = inlined_call_operand.vmem [shape: f32[16,1], index: 10, kind: input, shape index: {}]   ;;  %s20345_s11 = inlined_call_operand.vmem [shape: f32[16,1], index: 11, kind: input, shape index: {}]   ;;  %s20346_s12 = inlined_call_operand.vmem [shape: f32[2,16,2048], index: 12, kind: output, shape index: {}]  }
   0x1   :  { %s14312_s23 = smov 0   ;;  %s14314_s24 = smov 0  }
   0x2   :  { %s14316_s25 = smov 0   ;;  %s14318_s26 = smov 0  }
   0x3   :  { %s14320_s27 = smov 0  }
   0x4 LB: > { %20482 = sst [smem:[#allocation4_spill]] %s14220_s25  ;;  %s31_s28 = sadd.s32 1, %s14220_s25  ;;  %s14228_s27 = sphi %s14320_s27, %s22_s27   ;;  %s14224_s26 = sphi %s14318_s26, %s21697_s26   ;;  %s14220_s25 = sphi %s14316_s25, %s21696_s25   ;;  %s14216_s24 = sphi %s14314_s24, %s21695_s24   ;;  %s14212_s23 = sphi %s14312_s23, %s21694_s23   ;;  %s14208_s22 = sphi %s14310_s22, %s21699_s22   ;;  %s14204_s21 = sphi %s14308_s21, %s21698_s21  }
   0x5   : > { %20483 = sst [smem:[#allocation5_spill]] %s14224_s26  ;;  %p32_p0 = scmp.ge.s32.totalorder %s31_s28, 2 }
   0x6   : > { %s34_s29 = sadd.s32 1, %s14224_s26  ;;  %s12486_s30 = sadd.s32 4294967295, %s14228_s27  }
   0x7   : > { %p310_p1 = scmp.ne.s32.totalorder %s14208_s22, %s14204_s21  ;;  %s21701_s28 = smov (%p32_p0, %s31_s28), 0 }
   0x8   : > { %20484 = sst [smem:[#allocation6_spill]] %s21701_s28  ;;  %s21703_s29 = smov (!%p32_p0, %s34_s29), %s14224_s26 }
   0x9   : > { %s296_s13 = ssub.s32 %s14220_s25, %s21701_s28  ;;  %p311_p2 = scmp.eq.s32.totalorder %s12486_s30, 3 }
   0xa   : > { %p36_p3 = scmp.ge.s32.totalorder %s21703_s29, 2  ;;  %p12490_p4 = scmp.ge.s32.totalorder %s14228_s27, 1 }
   0xb   : > { %p14354_p5 = por %p311_p2, %p310_p1  ;;  %p376_p6 = scmp.lt.s32.totalorder %s14228_s27, 5 }
   0xc   : > { %s21705_s29 = smov (%p36_p3, %s21703_s29), 0  ;;  %s300_s17 = sadd.s32 1, %s14208_s22 }
   0xd   : > { %20486 = sst [smem:[#allocation7_spill]] %s21705_s29  ;;  %p377_p7 = pnand %p12490_p4, %p376_p6 }
   0xe   : > { %s295_s15 = ssub.s32 %s14224_s26, %s21705_s29 }
   0xf   : > { %s297_s16 = sor.u32 %s296_s13, %s295_s15  ;;  %380 = sbr.rel (%p377_p7) target bundleno = 3148 (0xc4c), region = 68 }
  0x10   : > { %p298_p8 = scmp.eq.s32.totalorder %s297_s16, 0 }
  0x12   : > { %s14365_s18 = scalar_select %p298_p8, %s14208_s22, %s300_s17  }
  0x14   : > { %s414_s19 = sand.u32 1, %s14204_s21   ;;  %p417_p9 = scmp.lt.s32.totalorder %s14216_s24, 1 }
  0x15   : > { %s14369_s20 = sshll.u32 %s414_s19, 7  ;;  %s12494_s30 = sshll.u32 %s14212_s23, 10 }
  0x16   : > { %s425_s28 = sshra.s32 %s12494_s30, 7  ;;  %s14400_s21 = scalar_lea.vmem [#allocation3], %s14369_s20 }
  0x17   : > { %s418_s25 = scalar_select %p417_p9, %s14216_s24, 1 }
  0x18   : > { %s12495_s29 = sshll.u32 %s425_s28, 3  ;;  %p12504_p10 = scmp.ne.s32.totalorder %s14212_s23, 0 }
  0x19   : > { %s13450_s13 = sshll.u32 %s418_s25, 8 }
  0x1a   : > { %s14378_s17 = scalar_lea.vmem %s20334_s0, %s13450_s13 }
  0x1b   : > { %s14381_s26 = scalar_lea.vmem %s14378_s17, %s12495_s29 }
  0x1c   : > { %v429_v0 = vld [vmem:[%s14381_s26] sm:$0xff]  ;;  %v430_v1 = vld [vmem:[%s14381_s26 + $0x8] sm:$0xff]  ;;  %v431_v2 = vld [vmem:[%s14381_s26 + $0x10] sm:$0xff] }
  0x1d   : > { %v13451_v3 = vpack.c.bf16 %v430_v1, %v429_v0  ;;  %v432_v4 = vld [vmem:[%s14381_s26 + $0x18] sm:$0xff]  ;;  %v433_v5 = vld [vmem:[%s14381_s26 + $0x20] sm:$0xff]  ;;  %v434_v6 = vld [vmem:[%s14381_s26 + $0x28] sm:$0xff] }
  0x1e   : > { %v13452_v7 = vpack.c.bf16 %v432_v4, %v431_v2  ;;  %v13453_v8 = vpack.c.bf16 %v434_v6, %v433_v5  ;;  %v435_v9 = vld [vmem:[%s14381_s26 + $0x30] sm:$0xff]  ;;  %v436_v10 = vld [vmem:[%s14381_s26 + $0x38] sm:$0xff]  ;;  %v437_v11 = vld [vmem:[%s14381_s26 + $0x80] sm:$0xff] }
  0x1f   : > { %493 = vst [vmem:[#allocation2 + $0x14] sm:$0xff] %v13451_v3  ;;  %v13454_v12 = vpack.c.bf16 %v436_v10, %v435_v9  ;;  %v438_v13 = vld [vmem:[%s14381_s26 + $0x88] sm:$0xff]  ;;  %v439_v14 = vld [vmem:[%s14381_s26 + $0x90] sm:$0xff]  ;;  %v440_v15 = vld [vmem:[%s14381_s26 + $0x98] sm:$0xff] }
  0x20   : > { %494 = vst [vmem:[#allocation2 + $0x1c] sm:$0xff] %v13452_v7  ;;  %495 = vst [vmem:[#allocation2 + $0x24] sm:$0xff] %v13453_v8  ;;  %v13455_v16 = vpack.c.bf16 %v438_v13, %v437_v11  ;;  %v13456_v17 = vpack.c.bf16 %v440_v15, %v439_v14  ;;  %v441_v18 = vld [vmem:[%s14381_s26 + $0xa0] sm:$0xff]  ;;  %v442_v19 = vld [vmem:[%s14381_s26 + $0xa8] sm:$0xff]  ;;  %504 = sbr.rel (%p12504_p10) target bundleno = 41 (0x29), region = 72 }
  0x21   : > { %v443_v20 = vld [vmem:[%s14381_s26 + $0xb0] sm:$0xff]  ;;  %496 = vst [vmem:[#allocation2 + $0x2c] sm:$0xff] %v13454_v12  ;;  %v13457_v21 = vpack.c.bf16 %v442_v19, %v441_v18  ;;  %v444_v22 = vld [vmem:[%s14381_s26 + $0xb8] sm:$0xff] }
  0x22   : > { %497 = vst [vmem:[#allocation2 + $0x5c] sm:$0xff] %v13455_v16  ;;  %498 = vst [vmem:[#allocation2 + $0x64] sm:$0xff] %v13456_v17  ;;  %v13458_v23 = vpack.c.bf16 %v444_v22, %v443_v20 }
  0x23   : > { %499 = vst [vmem:[#allocation2 + $0x6c] sm:$0xff] %v13457_v21 }
  0x24   : > { %500 = vst [vmem:[#allocation2 + $0x74] sm:$0xff] %v13458_v23 }
  0x25   : > { %v14230_v24 = vmov 0  }
  0x26   : > { %505 = vst [vmem:[#allocation2] sm:$0xff] %v14230_v24  ;;  %506 = vst [vmem:[#allocation2 + $0x8] sm:$0xff] %v14230_v24 }
  0x27   : > { %507 = vst [vmem:[#allocation2 + $0x10] sm:$0xf] %v14230_v24  ;;  %508 = vst [vmem:[#allocation2 + $0x48] sm:$0xff] %v14230_v24 }
  0x28   : > { %509 = vst [vmem:[#allocation2 + $0x50] sm:$0xff] %v14230_v24  ;;  %510 = vst [vmem:[#allocation2 + $0x58] sm:$0xf] %v14230_v24 }
  0x29 PF: > { %p12505_p11 = scmp.le.s32.totalorder %s14212_s23, 0 }
  0x2a   : > { %s12506_s25 = sshll.u32 (!%p12505_p11), %s14212_s23, 3 }
  0x2b   : > { %514 = sbr.rel (%p12505_p11) target bundleno = 55 (0x37), region = 76  ;;  %s12507_s28 = sadd.s32 (!%p12505_p11), 4294967291, %s12506_s25 }
  0x2c   : > { %s12508_s29 = sshll.u32 (!%p12505_p11), %s12507_s28, 7 }
  0x2d   : > { %s518_s19 = sshra.s32 (!%p12505_p11), %s12508_s29, 7 }
  0x2e   : > { %s12509_s20 = sshll.u32 (!%p12505_p11), %s518_s19, 3 }
  0x2f   : > { %s521_s13 = scalar_lea.vmem (!%p12505_p11), %s14378_s17, %s12509_s20 }
  0x30   : > { %v522_v25 = vld [vmem:[%s521_s13] sm:$0xff]  ;;  %v523_v26 = vld [vmem:[%s521_s13 + $0x8] sm:$0xff]  ;;  %v524_v27 = vld [vmem:[%s521_s13 + $0x10] sm:$0xff] }
  0x31   : > { %v13459_v28 = vpack.c.bf16 %v523_v26, %v522_v25  ;;  %v525_v29 = vld [vmem:[%s521_s13 + $0x18] sm:$0xff]  ;;  %v526_v30 = vld [vmem:[%s521_s13 + $0x20] sm:$0xff]  ;;  %v528_v34 = vld [vmem:[%s521_s13 + $0x88] sm:$0xff] }
  0x32   : > { %v527_v31 = vld [vmem:[%s521_s13 + $0x80] sm:$0xff]  ;;  %v13460_v32 = vpack.c.bf16 %v525_v29, %v524_v27  ;;  %v13461_v33 = vpack.c.bf16 %v526_v30, %v526_v30  ;;  %v529_v35 = vld [vmem:[%s521_s13 + $0x90] sm:$0xff]  ;;  %v530_v36 = vld [vmem:[%s521_s13 + $0x98] sm:$0xff] }
  0x33   : > { %564 = vst [vmem:[#allocation2] sm:$0xff] %v13459_v28  ;;  %v13462_v37 = vpack.c.bf16 %v528_v34, %v527_v31  ;;  %v13463_v38 = vpack.c.bf16 %v530_v36, %v529_v35  ;;  %v531_v39 = vld [vmem:[%s521_s13 + $0xa0] sm:$0xff] }
  0x34   : > { %565 = vst [vmem:[#allocation2 + $0x8] sm:$0xff] %v13460_v32  ;;  %566 = vst [vmem:[#allocation2 + $0x10] sm:$0xf] %v13461_v33  ;;  %v13464_v40 = vpack.c.bf16 %v531_v39, %v531_v39 }
  0x35   : > { %567 = vst [vmem:[#allocation2 + $0x48] sm:$0xff] %v13462_v37  ;;  %568 = vst [vmem:[#allocation2 + $0x50] sm:$0xff] %v13463_v38 }
  0x36   : > { %569 = vst [vmem:[#allocation2 + $0x58] sm:$0xf] %v13464_v40 }
  0x37 PF: > { %p12516_p12 = scmp.ne.s32.totalorder %s14212_s23, 1 }
  0x39   : > { %573 = sbr.rel (%p12516_p12) target bundleno = 66 (0x42), region = 80 }
  0x3e   : > { %v14231_v41 = vmov 0  }
  0x3f   : > { %574 = vst [vmem:[#allocation2 + $0x34] sm:$0xff] %v14231_v41  ;;  %575 = vst [vmem:[#allocation2 + $0x3c] sm:$0xff] %v14231_v41 }
  0x40   : > { %576 = vst [vmem:[#allocation2 + $0x44] sm:$0xf] %v14231_v41  ;;  %577 = vst [vmem:[#allocation2 + $0x7c] sm:$0xff] %v14231_v41 }
  0x41   : > { %578 = vst [vmem:[#allocation2 + $0x84] sm:$0xff] %v14231_v41  ;;  %579 = vst [vmem:[#allocation2 + $0x8c] sm:$0xf] %v14231_v41 }
  0x42 PF: > { %p12517_p13 = scmp.ge.s32.totalorder %s14212_s23, 1 }
  0x43   : > { %s13466_s15 = sadd.s32 (!%p12517_p13), 1024, %s12494_s30 }
  0x44   : > { %583 = sbr.rel (%p12517_p13) target bundleno = 80 (0x50), region = 84  ;;  %s586_s16 = sshra.s32 (!%p12517_p13), %s13466_s15, 7 }
  0x45   : > { %s12519_s25 = sshll.u32 (!%p12517_p13), %s586_s16, 3 }
  0x46   : > { %s589_s28 = scalar_lea.vmem (!%p12517_p13), %s14378_s17, %s12519_s25 }
  0x49   : > { %v590_v42 = vld [vmem:[%s589_s28] sm:$0xff]  ;;  %v591_v43 = vld [vmem:[%s589_s28 + $0x8] sm:$0xff]  ;;  %v592_v44 = vld [vmem:[%s589_s28 + $0x10] sm:$0xff] }
  0x4a   : > { %v13467_v45 = vpack.c.bf16 %v591_v43, %v590_v42  ;;  %v593_v46 = vld [vmem:[%s589_s28 + $0x18] sm:$0xff]  ;;  %v594_v47 = vld [vmem:[%s589_s28 + $0x20] sm:$0xff]  ;;  %v596_v51 = vld [vmem:[%s589_s28 + $0x88] sm:$0xff] }
  0x4b   : > { %v595_v48 = vld [vmem:[%s589_s28 + $0x80] sm:$0xff]  ;;  %v13468_v49 = vpack.c.bf16 %v593_v46, %v592_v44  ;;  %v13469_v50 = vpack.c.bf16 %v594_v47, %v594_v47  ;;  %v597_v52 = vld [vmem:[%s589_s28 + $0x90] sm:$0xff]  ;;  %v598_v53 = vld [vmem:[%s589_s28 + $0x98] sm:$0xff] }
  0x4c   : > { %632 = vst [vmem:[#allocation2 + $0x34] sm:$0xff] %v13467_v45  ;;  %v13470_v54 = vpack.c.bf16 %v596_v51, %v595_v48  ;;  %v13471_v55 = vpack.c.bf16 %v598_v53, %v597_v52  ;;  %v599_v56 = vld [vmem:[%s589_s28 + $0xa0] sm:$0xff] }
  0x4d   : > { %633 = vst [vmem:[#allocation2 + $0x3c] sm:$0xff] %v13468_v49  ;;  %634 = vst [vmem:[#allocation2 + $0x44] sm:$0xf] %v13469_v50  ;;  %v13472_v57 = vpack.c.bf16 %v599_v56, %v599_v56 }
  0x4e   : > { %635 = vst [vmem:[#allocation2 + $0x7c] sm:$0xff] %v13470_v54  ;;  %636 = vst [vmem:[#allocation2 + $0x84] sm:$0xff] %v13471_v55 }
  0x4f   : > { %637 = vst [vmem:[#allocation2 + $0x8c] sm:$0xf] %v13472_v57 }
  0x50 PF: > { %v13596_v58 = vld [vmem:[#allocation2 + $0x8] ss:$72 sps:$4 sm:$0xff]   ;;  %v20351_v60 = vmov 0   ;;  %v13600_v61 = vld [vmem:[#allocation2 + $0x4] ss:$72 sps:$4 sm:$0xff]   ;;  %v14421_v63 = vld [vmem:[%s20336_s2 + $0x18] sm:$0xff]  }
  0x51   : > { %v13598_v59 = vld [vmem:[#allocation2 + $0x10] ss:$72 sps:$4 sm:$0xff]   ;;  %827 = vmatprep.mubr.bf16.mxu0 %v20351_v60  ;;  %890 = vmatprep.mubr.bf16.mxu1 %v20351_v60  ;;  %v13601_v62 = vld [vmem:[#allocation2 + $0xc] ss:$72 sps:$4 sm:$0xff]   ;;  %vm785_vm0 = vcmask 130048   ;;  %v14433_v6 = vld [vmem:[%s20336_s2 + $0x20] sm:$0xff]  }
  0x52   : > { %809 = vmatprep.subr.bf16.mxu0 %v13596_v58  ;;  %13594 = vset.pattern.permute.xlu0 %v20351_v60  ;;  %v13603_v0 = vld [vmem:[#allocation2 + $0x14] ss:$72 sps:$4 sm:$0xff]   ;;  %v13605_v1 = vld [vmem:[#allocation2 + $0x18] ss:$72 sps:$4 sm:$0xff]   ;;  %v13613_v4 = vld [vmem:[#allocation2 + $0x28] ss:$72 sps:$4 sm:$0xff]  }
  0x53   : > { %872 = vmatprep.subr.bf16.mxu1 %v13598_v59  ;;  %13595 = vset.pattern.permute.xlu1 %v20351_v60  ;;  %v13606_v2 = vld [vmem:[#allocation2 + $0x1c] ss:$72 sps:$4 sm:$0xff]   ;;  %v13608_v3 = vld [vmem:[#allocation2 + $0x20] ss:$72 sps:$4 sm:$0xff]   ;;  %v13616_v5 = vld [vmem:[#allocation2 + $0x30] ss:$72 sps:$4 sm:$0xff]  }
  0x54   : > { %810 = vmatpush1.bf16.msra.mxu0 %v13600_v61  ;;  %873 = vmatpush1.bf16.msra.mxu1 %v13601_v62  ;;  %v13610_v7 = vld [vmem:[%s20336_s2 + $0x28] sm:$0xff]   ;;  %v14485_v18 = vld [vmem:[#allocation2 + $0x14] ss:$72 sps:$4 sm:$0xff]   ;;  %v13629_v20 = vld [vmem:[%s20336_s2] sm:$0xff]   ;;  %s14233_s25 = smov 1   ;;  %s14234_s28 = smov 127  }
  0x55   : > { %935 = vmatprep.subr.bf16.mxu0 %v13605_v1  ;;  %998 = vmatprep.subr.bf16.mxu1 %v13608_v3  ;;  %v13611_v8 = vld [vmem:[#allocation2 + $0x24] ss:$72 sps:$4 sm:$0xff]   ;;  %v13619_v10 = vld [vmem:[#allocation2 + $0x38] ss:$72 sps:$4 sm:$0xff]   ;;  %v13617_v12 = vld [vmem:[#allocation2 + $0x34] ss:$72 sps:$4 sm:$0xff]  }
  0x56   : > { %v13614_v9 = vld [vmem:[#allocation2 + $0x2c] ss:$72 sps:$4 sm:$0xff]   ;;  %v13622_v11 = vld [vmem:[#allocation2 + $0x40] ss:$72 sps:$4 sm:$0xff]   ;;  %v13620_v13 = vld [vmem:[#allocation2 + $0x3c] ss:$72 sps:$4 sm:$0xff]  }
  0x57   : > { %12554 = vmatmul.mubr.msk.bf16.vlgmr.msra.gmra.mxu0 %vm785_vm0, %v14421_v63  ;;  %12557 = vmatmul.mubr.msk.bf16.vlgmr.msra.gmra.mxu1 %vm785_vm0, %v14421_v63  ;;  %v13625_v14 = vld [vmem:[#allocation2 + $0x4] ss:$72 sps:$4 sm:$0xff]   ;;  %v13623_v16 = vld [vmem:[#allocation2] ss:$72 sps:$4 sm:$0xff]   ;;  %v13630_v21 = vld [vmem:[#allocation2 + $0x10] ss:$72 sps:$4 sm:$0xff]  }
  0x58   : > { %936 = vmatpush1.bf16.msra.mxu0 %v13603_v0  ;;  %999 = vmatpush1.bf16.msra.mxu1 %v13606_v2  ;;  %v14464_v15 = vld [vmem:[#allocation2 + $0xc] ss:$72 sps:$4 sm:$0xff]   ;;  %v14483_v17 = vld [vmem:[#allocation2 + $0x8] ss:$72 sps:$4 sm:$0xff]   ;;  %v14487_v19 = vld [vmem:[#allocation2 + $0x1c] ss:$72 sps:$4 sm:$0xff]  }
  0x59   : > { %837 = vmatprep.mubr.bf16.mxu0 %v20351_v60  ;;  %900 = vmatprep.mubr.bf16.mxu1 %v20351_v60  ;;  %v14511_v22 = vld [vmem:[#allocation2 + $0x18] ss:$72 sps:$4 sm:$0xff]   ;;  %v14513_v23 = vld [vmem:[#allocation2 + $0x24] ss:$72 sps:$4 sm:$0xff]   ;;  %v13637_v26 = vld [vmem:[%s20336_s2 + $0x10] sm:$0xff]  }
  0x5a   : > { %1061 = vmatprep.subr.bf16.mxu0 %v13613_v4  ;;  %1124 = vmatprep.subr.bf16.mxu1 %v13616_v5  ;;  %v14515_v24 = vld [vmem:[#allocation2 + $0x2c] ss:$72 sps:$4 sm:$0xff]   ;;  %v14538_v27 = vld [vmem:[#allocation2 + $0x20] ss:$72 sps:$4 sm:$0xff]   ;;  %v14544_v30 = vld [vmem:[#allocation2 + $0x3c] ss:$72 sps:$4 sm:$0xff]  }
  0x5b   : > { %v13636_v25 = vld [vmem:[%s20336_s2 + $0x8] sm:$0xff]   ;;  %v14542_v29 = vld [vmem:[#allocation2 + $0x34] ss:$72 sps:$4 sm:$0xff]   ;;  %v14562_v31 = vld [vmem:[#allocation2 + $0x30] ss:$72 sps:$4 sm:$0xff]  }
  0x5c   : > { %v14540_v28 = vld [vmem:[#allocation2 + $0x28] ss:$72 sps:$4 sm:$0xff]   ;;  %v14564_v32 = vld [vmem:[#allocation2 + $0x38] ss:$72 sps:$4 sm:$0xff]   ;;  %v13655_v61 = vld [vmem:[#allocation2 + $0x44] ss:$72 sps:$4 sm:$0xff]  }
  0x5d   : > { %v14600_v33 = vld [vmem:[%s20336_s2 + $0x30] sm:$0xff]   ;;  %v14627_v40 = vld [vmem:[%s20336_s2 + $0x38] sm:$0xff]   ;;  %v14654_v49 = vld [vmem:[%s20336_s2 + $0x40] sm:$0xff]  }
  0x5f   : > { %12555 = vmatmul.mubr.msk.bf16.gmra.mxu0 %vm785_vm0, %v14433_v6  ;;  %12558 = vmatmul.mubr.msk.bf16.gmra.mxu1 %vm785_vm0, %v14433_v6 }
  0x60   : > { %847 = vmatprep.mubr.bf16.mxu0 %v20351_v60  ;;  %910 = vmatprep.mubr.bf16.mxu1 %v20351_v60 }
  0x67   : > { %12556 = vmatmul.mubr.msk.bf16.gmra.mxu0 %vm785_vm0, %v13610_v7  ;;  %12559 = vmatmul.mubr.msk.bf16.gmra.mxu1 %vm785_vm0, %v13610_v7 }
  0x68   : > { %953 = vmatprep.mubr.bf16.mxu0 %v20351_v60  ;;  %1016 = vmatprep.mubr.bf16.mxu1 %v20351_v60 }
  0x6f   : > { %12560 = vmatmul.mubr.msk.bf16.vlgmr.msra.gmra.mxu0 %vm785_vm0, %v14421_v63  ;;  %12563 = vmatmul.mubr.msk.bf16.vlgmr.msra.gmra.mxu1 %vm785_vm0, %v14421_v63 }
  0x70   : > { %1062 = vmatpush1.bf16.msra.mxu0 %v13611_v8  ;;  %1125 = vmatpush1.bf16.msra.mxu1 %v13614_v9 }
  0x71   : > { %963 = vmatprep.mubr.bf16.mxu0 %v20351_v60  ;;  %1026 = vmatprep.mubr.bf16.mxu1 %v20351_v60 }
  0x72   : > { %1187 = vmatprep.subr.bf16.mxu0 %v13619_v10  ;;  %1250 = vmatprep.subr.bf16.mxu1 %v13622_v11 }
  0x77   : > { %12561 = vmatmul.mubr.msk.bf16.gmra.mxu0 %vm785_vm0, %v14433_v6  ;;  %12564 = vmatmul.mubr.msk.bf16.gmra.mxu1 %vm785_vm0, %v14433_v6 }
  0x78   : > { %973 = vmatprep.mubr.bf16.mxu0 %v20351_v60  ;;  %1036 = vmatprep.mubr.bf16.mxu1 %v20351_v60 }
  0x7f   : > { %12562 = vmatmul.mubr.msk.bf16.gmra.mxu0 %vm785_vm0, %v13610_v7  ;;  %12565 = vmatmul.mubr.msk.bf16.gmra.mxu1 %vm785_vm0, %v13610_v7 }
  0x80   : > { %1079 = vmatprep.mubr.bf16.mxu0 %v20351_v60  ;;  %1142 = vmatprep.mubr.bf16.mxu1 %v20351_v60 }
  0x87   : > { %12566 = vmatmul.mubr.msk.bf16.vlgmr.msra.gmra.mxu0 %vm785_vm0, %v14421_v63  ;;  %12569 = vmatmul.mubr.msk.bf16.vlgmr.msra.gmra.mxu1 %vm785_vm0, %v14421_v63 }
  0x88   : > { %1188 = vmatpush1.bf16.msra.mxu0 %v13617_v12  ;;  %1251 = vmatpush1.bf16.msra.mxu1 %v13620_v13 }
  0x89   : > { %1089 = vmatprep.mubr.bf16.mxu0 %v20351_v60  ;;  %1152 = vmatprep.mubr.bf16.mxu1 %v20351_v60 }
  0x8a   : > { %1417 = vmatprep.subr.bf16.mxu0 %v13625_v14  ;;  %1480 = vmatprep.subr.bf16.mxu1 %v14464_v15 }
  0x8f   : > { %12567 = vmatmul.mubr.msk.bf16.gmra.mxu0 %vm785_vm0, %v14433_v6  ;;  %12570 = vmatmul.mubr.msk.bf16.gmra.mxu1 %vm785_vm0, %v14433_v6 }
  0x90   : > { %1099 = vmatprep.mubr.bf16.mxu0 %v20351_v60  ;;  %1162 = vmatprep.mubr.bf16.mxu1 %v20351_v60 }
  0x97   : > { %12568 = vmatmul.mubr.msk.bf16.gmra.mxu0 %vm785_vm0, %v13610_v7  ;;  %12571 = vmatmul.mubr.msk.bf16.gmra.mxu1 %vm785_vm0, %v13610_v7 }
  0x98   : > { %1205 = vmatprep.mubr.bf16.mxu0 %v20351_v60  ;;  %1268 = vmatprep.mubr.bf16.mxu1 %v20351_v60 }
  0x9f   : > { %12572 = vmatmul.mubr.msk.bf16.vlgmr.msra.gmra.mxu0 %vm785_vm0, %v14421_v63  ;;  %12575 = vmatmul.mubr.msk.bf16.vlgmr.msra.gmra.mxu1 %vm785_vm0, %v14421_v63 }
  0xa0   : > { %1418 = vmatpush1.bf16.msra.mxu0 %v13623_v16  ;;  %1481 = vmatpush1.bf16.msra.mxu1 %v14483_v17 }
  0xa1   : > { %1215 = vmatprep.mubr.bf16.mxu0 %v20351_v60  ;;  %1278 = vmatprep.mubr.bf16.mxu1 %v20351_v60 }
  0xa2   : > { %1543 = vmatprep.subr.bf16.mxu0 %v14485_v18  ;;  %1606 = vmatprep.subr.bf16.mxu1 %v14487_v19 }
  0xa7   : > { %12573 = vmatmul.mubr.msk.bf16.gmra.mxu0 %vm785_vm0, %v14433_v6  ;;  %12576 = vmatmul.mubr.msk.bf16.gmra.mxu1 %vm785_vm0, %v14433_v6 }
  0xa8   : > { %1225 = vmatprep.mubr.bf16.mxu0 %v20351_v60  ;;  %1288 = vmatprep.mubr.bf16.mxu1 %v20351_v60 }
  0xaf   : > { %12574 = vmatmul.mubr.msk.bf16.gmra.mxu0 %vm785_vm0, %v13610_v7  ;;  %12577 = vmatmul.mubr.msk.bf16.gmra.mxu1 %vm785_vm0, %v13610_v7 }
  0xb0   : > { %1435 = vmatprep.mubr.bf16.mxu0 %v20351_v60  ;;  %1498 = vmatprep.mubr.bf16.mxu1 %v20351_v60 }
  0xb7   : > { %12597 = vmatmul.mubr.msk.bf16.vlgmr.msra.gmra.mxu0 %vm785_vm0, %v13629_v20  ;;  %12600 = vmatmul.mubr.msk.bf16.vlgmr.msra.gmra.mxu1 %vm785_vm0, %v13629_v20 }
  0xb8   : > { %1544 = vmatpush1.bf16.msra.mxu0 %v13630_v21  ;;  %1607 = vmatpush1.bf16.msra.mxu1 %v14511_v22 }
  0xb9   : > { %1445 = vmatprep.mubr.bf16.mxu0 %v20351_v60  ;;  %1508 = vmatprep.mubr.bf16.mxu1 %v20351_v60 }
  0xba   : > { %1669 = vmatprep.subr.bf16.mxu0 %v14513_v23  ;;  %1732 = vmatprep.subr.bf16.mxu1 %v14515_v24 }
  0xbf   : > { %12598 = vmatmul.mubr.msk.bf16.gmra.mxu0 %vm785_vm0, %v13636_v25  ;;  %12601 = vmatmul.mubr.msk.bf16.gmra.mxu1 %vm785_vm0, %v13636_v25 }
  0xc0   : > { %1455 = vmatprep.mubr.bf16.mxu0 %v20351_v60  ;;  %1518 = vmatprep.mubr.bf16.mxu1 %v20351_v60 }
  0xc7   : > { %12599 = vmatmul.mubr.msk.bf16.gmra.mxu0 %vm785_vm0, %v13637_v26  ;;  %12602 = vmatmul.mubr.msk.bf16.gmra.mxu1 %vm785_vm0, %v13637_v26 }
  0xc8   : > { %1561 = vmatprep.mubr.bf16.mxu0 %v20351_v60  ;;  %1624 = vmatprep.mubr.bf16.mxu1 %v20351_v60 }
  0xcf   : > { %12603 = vmatmul.mubr.msk.bf16.vlgmr.msra.gmra.mxu0 %vm785_vm0, %v13629_v20  ;;  %12606 = vmatmul.mubr.msk.bf16.vlgmr.msra.gmra.mxu1 %vm785_vm0, %v13629_v20 }
  0xd0   : > { %1670 = vmatpush1.bf16.msra.mxu0 %v14538_v27  ;;  %1733 = vmatpush1.bf16.msra.mxu1 %v14540_v28 }
  0xd1   : > { %1571 = vmatprep.mubr.bf16.mxu0 %v20351_v60  ;;  %1634 = vmatprep.mubr.bf16.mxu1 %v20351_v60 }
  0xd2   : > { %1795 = vmatprep.subr.bf16.mxu0 %v14542_v29  ;;  %1858 = vmatprep.subr.bf16.mxu1 %v14544_v30 }
  0xd7   : > { %12604 = vmatmul.mubr.msk.bf16.gmra.mxu0 %vm785_vm0, %v13636_v25  ;;  %12607 = vmatmul.mubr.msk.bf16.gmra.mxu1 %vm785_vm0, %v13636_v25 }
  0xd8   : > { %1581 = vmatprep.mubr.bf16.mxu0 %v20351_v60  ;;  %1644 = vmatprep.mubr.bf16.mxu1 %v20351_v60 }
  0xdf   : > { %12605 = vmatmul.mubr.msk.bf16.gmra.mxu0 %vm785_vm0, %v13637_v26  ;;  %12608 = vmatmul.mubr.msk.bf16.gmra.mxu1 %vm785_vm0, %v13637_v26 }
  0xe0   : > { %1687 = vmatprep.mubr.bf16.mxu0 %v20351_v60  ;;  %1750 = vmatprep.mubr.bf16.mxu1 %v20351_v60 }
  0xe7   : > { %12609 = vmatmul.mubr.msk.bf16.vlgmr.msra.gmra.mxu0 %vm785_vm0, %v13629_v20  ;;  %12612 = vmatmul.mubr.msk.bf16.vlgmr.msra.gmra.mxu1 %vm785_vm0, %v13629_v20 }
  0xe8   : > { %1796 = vmatpush1.bf16.msra.mxu0 %v14562_v31  ;;  %1859 = vmatpush1.bf16.msra.mxu1 %v14564_v32 }
  0xe9   : > { %1697 = vmatprep.mubr.bf16.mxu0 %v20351_v60  ;;  %1760 = vmatprep.mubr.bf16.mxu1 %v20351_v60 }
  0xea   : > { %2048 = vmatprep.subr.bf16.mxu0 %v14464_v15  ;;  %2111 = vmatprep.subr.bf16.mxu1 %v14485_v18 }
  0xef   : > { %12610 = vmatmul.mubr.msk.bf16.gmra.mxu0 %vm785_vm0, %v13636_v25  ;;  %12613 = vmatmul.mubr.msk.bf16.gmra.mxu1 %vm785_vm0, %v13636_v25 }
  0xf0   : > { %1707 = vmatprep.mubr.bf16.mxu0 %v20351_v60  ;;  %1770 = vmatprep.mubr.bf16.mxu1 %v20351_v60 }
  0xf7   : > { %12611 = vmatmul.mubr.msk.bf16.gmra.mxu0 %vm785_vm0, %v13637_v26  ;;  %12614 = vmatmul.mubr.msk.bf16.gmra.mxu1 %vm785_vm0, %v13637_v26 }
  0xf8   : > { %1813 = vmatprep.mubr.bf16.mxu0 %v20351_v60  ;;  %1876 = vmatprep.mubr.bf16.mxu1 %v20351_v60 }
  0xff   : > { %12615 = vmatmul.mubr.msk.bf16.vlgmr.msra.gmra.mxu0 %vm785_vm0, %v13629_v20  ;;  %12618 = vmatmul.mubr.msk.bf16.vlgmr.msra.gmra.mxu1 %vm785_vm0, %v13629_v20 }
 0x100   : > { %2049 = vmatpush1.bf16.msra.mxu0 %v14483_v17  ;;  %2112 = vmatpush1.bf16.msra.mxu1 %v13630_v21 }
 0x101   : > { %1823 = vmatprep.mubr.bf16.mxu0 %v20351_v60  ;;  %1886 = vmatprep.mubr.bf16.mxu1 %v20351_v60 }
 0x102   : > { %2174 = vmatprep.subr.bf16.mxu0 %v14487_v19  ;;  %2237 = vmatprep.subr.bf16.mxu1 %v14513_v23 }
 0x107   : > { %12616 = vmatmul.mubr.msk.bf16.gmra.mxu0 %vm785_vm0, %v13636_v25  ;;  %12619 = vmatmul.mubr.msk.bf16.gmra.mxu1 %vm785_vm0, %v13636_v25 }
 0x108   : > { %1833 = vmatprep.mubr.bf16.mxu0 %v20351_v60  ;;  %1896 = vmatprep.mubr.bf16.mxu1 %v20351_v60 }
 0x10f   : > { %12617 = vmatmul.mubr.msk.bf16.gmra.mxu0 %vm785_vm0, %v13637_v26  ;;  %12620 = vmatmul.mubr.msk.bf16.gmra.mxu1 %vm785_vm0, %v13637_v26 }
 0x110   : > { %2066 = vmatprep.mubr.bf16.mxu0 %v20351_v60  ;;  %2129 = vmatprep.mubr.bf16.mxu1 %v20351_v60 }
 0x117   : > { %v14602_v34 = vpop.f32.mrf.mxu0  ;;  %v14604_v35 = vpop.f32.mrf.mxu1  ;;  %12646 = vmatmul.mubr.msk.bf16.vlgmr.msra.gmra.mxu0 %vm785_vm0, %v14600_v33  ;;  %12649 = vmatmul.mubr.msk.bf16.vlgmr.msra.gmra.mxu1 %vm785_vm0, %v14600_v33 }
 0x118   : > { %2076 = vmatprep.mubr.bf16.mxu0 %v20351_v60  ;;  %2139 = vmatprep.mubr.bf16.mxu1 %v20351_v60 }
 0x119   : > { %v14612_v36 = vpop.f32.mrf.mxu0  ;;  %v14614_v37 = vpop.f32.mrf.mxu1  ;;  %2175 = vmatpush1.bf16.msra.mxu0 %v14511_v22  ;;  %2238 = vmatpush1.bf16.msra.mxu1 %v14538_v27  ;;  %v13653_v22 = vld [vmem:[#allocation2 + $0x40] ss:$72 sps:$4 sm:$0xff]  }
 0x11a   : > { %2300 = vmatprep.subr.bf16.mxu0 %v14515_v24  ;;  %2363 = vmatprep.subr.bf16.mxu1 %v14542_v29 }
 0x11b   : > { %v14620_v38 = vpop.f32.mrf.mxu0  ;;  %v14622_v39 = vpop.f32.mrf.mxu1 }
 0x11d   : > { %v14629_v41 = vpop.f32.mrf.mxu0  ;;  %v14631_v42 = vpop.f32.mrf.mxu1 }
 0x11f   : > { %v14633_v43 = vpop.f32.mrf.mxu0  ;;  %v14635_v44 = vpop.f32.mrf.mxu1  ;;  %12647 = vmatmul.mubr.msk.bf16.gmra.mxu0 %vm785_vm0, %v14627_v40  ;;  %12650 = vmatmul.mubr.msk.bf16.gmra.mxu1 %vm785_vm0, %v14627_v40 }
 0x120   : > { %2086 = vmatprep.mubr.bf16.mxu0 %v20351_v60  ;;  %2149 = vmatprep.mubr.bf16.mxu1 %v20351_v60 }
 0x121   : > { %v14643_v45 = vpop.f32.mrf.mxu0  ;;  %v14645_v46 = vpop.f32.mrf.mxu1 }
 0x123   : > { %v14647_v47 = vpop.f32.mrf.mxu0  ;;  %v14649_v48 = vpop.f32.mrf.mxu1 }
 0x125   : > { %v14656_v50 = vpop.f32.mrf.mxu0  ;;  %v14658_v51 = vpop.f32.mrf.mxu1 }
 0x127   : > { %v14660_v52 = vpop.f32.mrf.mxu0  ;;  %v14662_v53 = vpop.f32.mrf.mxu1  ;;  %12648 = vmatmul.mubr.msk.bf16.gmra.mxu0 %vm785_vm0, %v14654_v49  ;;  %12651 = vmatmul.mubr.msk.bf16.gmra.mxu1 %vm785_vm0, %v14654_v49 }
 0x128   : > { %2192 = vmatprep.mubr.bf16.mxu0 %v20351_v60  ;;  %2255 = vmatprep.mubr.bf16.mxu1 %v20351_v60 }
 0x129   : > { %v14670_v54 = vpop.f32.mrf.mxu0  ;;  %v14672_v55 = vpop.f32.mrf.mxu1 }
 0x12b   : > { %v14674_v56 = vpop.f32.mrf.mxu0  ;;  %v14676_v57 = vpop.f32.mrf.mxu1 }
 0x12d   : > { %v14678_v58 = vpop.f32.mrf.mxu0  ;;  %v14680_v59 = vpop.f32.mrf.mxu1 }
 0x12f   : > { %v14682_v62 = vpop.f32.mrf.mxu0  ;;  %v14684_v63 = vpop.f32.mrf.mxu1  ;;  %12652 = vmatmul.mubr.msk.bf16.vlgmr.msra.gmra.mxu0 %vm785_vm0, %v14600_v33  ;;  %12655 = vmatmul.mubr.msk.bf16.vlgmr.msra.gmra.mxu1 %vm785_vm0, %v14600_v33 }
 0x130   : > { %20487 = vst [vmem:[#allocation8_spill] sm:$0xff] %v14684_v63  ;;  %2202 = vmatprep.mubr.bf16.mxu0 %v20351_v60  ;;  %2265 = vmatprep.mubr.bf16.mxu1 %v20351_v60 }
 0x131   : > { %v14692_v0 = vpop.f32.mrf.mxu0  ;;  %v14694_v1 = vpop.f32.mrf.mxu1  ;;  %2301 = vmatpush1.bf16.msra.mxu0 %v14540_v28  ;;  %2364 = vmatpush1.bf16.msra.mxu1 %v14562_v31 }
 0x132   : > { %20488 = vst [vmem:[#allocation9_spill] sm:$0xff] %v14692_v0  ;;  %20489 = vst [vmem:[#allocation10_spill] sm:$0xff] %v14694_v1  ;;  %2426 = vmatprep.subr.bf16.mxu0 %v14544_v30  ;;  %2489 = vmatprep.subr.bf16.mxu1 %v13655_v61 }
 0x133   : > { %v14699_v2 = vpop.f32.mrf.mxu0  ;;  %v14701_v3 = vpop.f32.mrf.mxu1 }
 0x134   : > { %20490 = vst [vmem:[#allocation11_spill] sm:$0xff] %v14699_v2  ;;  %20491 = vst [vmem:[#allocation12_spill] sm:$0xff] %v14701_v3 }
 0x135   : > { %v14703_v4 = vpop.f32.mrf.mxu0  ;;  %v14705_v5 = vpop.f32.mrf.mxu1 }
 0x136   : > { %20492 = vst [vmem:[#allocation13_spill] sm:$0xff] %v14703_v4  ;;  %20493 = vst [vmem:[#allocation14_spill] sm:$0xff] %v14705_v5 }
 0x137   : > { %v14707_v6 = vpop.f32.mrf.mxu0  ;;  %v14709_v7 = vpop.f32.mrf.mxu1  ;;  %12653 = vmatmul.mubr.msk.bf16.gmra.mxu0 %vm785_vm0, %v14627_v40  ;;  %12656 = vmatmul.mubr.msk.bf16.gmra.mxu1 %vm785_vm0, %v14627_v40 }
 0x138   : > { %20494 = vst [vmem:[#allocation15_spill] sm:$0xff] %v14709_v7  ;;  %2212 = vmatprep.mubr.bf16.mxu0 %v20351_v60  ;;  %2275 = vmatprep.mubr.bf16.mxu1 %v20351_v60 }
 0x139   : > { %v14717_v8 = vpop.f32.mrf.mxu0  ;;  %v14719_v9 = vpop.f32.mrf.mxu1 }
 0x13a   : > { %20495 = vst [vmem:[#allocation16_spill] sm:$0xff] %v14717_v8  ;;  %20496 = vst [vmem:[#allocation17_spill] sm:$0xff] %v14719_v9 }
 0x13b   : > { %v14721_v10 = vpop.f32.mrf.mxu0  ;;  %v14723_v11 = vpop.f32.mrf.mxu1 }
 0x13c   : > { %20497 = vst [vmem:[#allocation18_spill] sm:$0xff] %v14721_v10  ;;  %20498 = vst [vmem:[#allocation19_spill] sm:$0xff] %v14723_v11 }
 0x13d   : > { %v14725_v12 = vpop.f32.mrf.mxu0  ;;  %v14727_v13 = vpop.f32.mrf.mxu1 }
 0x13e   : > { %20499 = vst [vmem:[#allocation20_spill] sm:$0xff] %v14725_v12  ;;  %20500 = vst [vmem:[#allocation21_spill] sm:$0xff] %v14727_v13 }
 0x13f   : > { %v14729_v14 = vpop.f32.mrf.mxu0  ;;  %v14731_v15 = vpop.f32.mrf.mxu1  ;;  %12654 = vmatmul.mubr.msk.bf16.gmra.mxu0 %vm785_vm0, %v14654_v49  ;;  %12657 = vmatmul.mubr.msk.bf16.gmra.mxu1 %vm785_vm0, %v14654_v49 }
 0x140   : > { %20501 = vst [vmem:[#allocation22_spill] sm:$0xff] %v14729_v14  ;;  %20502 = vst [vmem:[#allocation23_spill] sm:$0xff] %v14731_v15  ;;  %2318 = vmatprep.mubr.bf16.mxu0 %v20351_v60  ;;  %2381 = vmatprep.mubr.bf16.mxu1 %v20351_v60 }
 0x141   : > { %v14739_v16 = vpop.f32.mrf.mxu0  ;;  %v14741_v17 = vpop.f32.mrf.mxu1 }
 0x142   : > { %20503 = vst [vmem:[#allocation24_spill] sm:$0xff] %v14739_v16  ;;  %20504 = vst [vmem:[#allocation25_spill] sm:$0xff] %v14741_v17 }
 0x143   : > { %v14743_v18 = vpop.f32.mrf.mxu0  ;;  %v14745_v19 = vpop.f32.mrf.mxu1 }
 0x144   : > { %20505 = vst [vmem:[#allocation26_spill] sm:$0xff] %v14743_v18  ;;  %20506 = vst [vmem:[#allocation27_spill] sm:$0xff] %v14745_v19 }
 0x145   : > { %v14747_v20 = vpop.f32.mrf.mxu0  ;;  %v14749_v21 = vpop.f32.mrf.mxu1 }
 0x146   : > { %20507 = vst [vmem:[#allocation28_spill] sm:$0xff] %v14747_v20  ;;  %20508 = vst [vmem:[#allocation29_spill] sm:$0xff] %v14749_v21 }
 0x147   : > { %v14751_v23 = vpop.f32.mrf.mxu0  ;;  %v14753_v24 = vpop.f32.mrf.mxu1  ;;  %12658 = vmatmul.mubr.msk.bf16.vlgmr.msra.gmra.mxu0 %vm785_vm0, %v14600_v33  ;;  %12661 = vmatmul.mubr.msk.bf16.vlgmr.msra.gmra.mxu1 %vm785_vm0, %v14600_v33 }
 0x148   : > { %20509 = vst [vmem:[#allocation30_spill] sm:$0xff] %v14751_v23  ;;  %20510 = vst [vmem:[#allocation31_spill] sm:$0xff] %v14753_v24  ;;  %2328 = vmatprep.mubr.bf16.mxu0 %v20351_v60  ;;  %2391 = vmatprep.mubr.bf16.mxu1 %v20351_v60 }
 0x149   : > { %v14761_v25 = vpop.f32.mrf.mxu0  ;;  %v14763_v26 = vpop.f32.mrf.mxu1  ;;  %2427 = vmatpush1.bf16.msra.mxu0 %v14564_v32  ;;  %2490 = vmatpush1.bf16.msra.mxu1 %v13653_v22 }
 0x14a   : > { %20511 = vst [vmem:[#allocation32_spill] sm:$0xff] %v14761_v25  ;;  %20512 = vst [vmem:[#allocation33_spill] sm:$0xff] %v14763_v26 }
 0x14b   : > { %v14766_v27 = vpop.f32.mrf.mxu0  ;;  %v14768_v28 = vpop.f32.mrf.mxu1 }
 0x14c   : > { %20513 = vst [vmem:[#allocation34_spill] sm:$0xff] %v14766_v27  ;;  %20514 = vst [vmem:[#allocation35_spill] sm:$0xff] %v14768_v28 }
 0x14d   : > { %v14770_v29 = vpop.f32.mrf.mxu0  ;;  %v14772_v30 = vpop.f32.mrf.mxu1 }
 0x14e   : > { %20515 = vst [vmem:[#allocation36_spill] sm:$0xff] %v14770_v29  ;;  %20516 = vst [vmem:[#allocation37_spill] sm:$0xff] %v14772_v30 }
 0x14f   : > { %v14774_v31 = vpop.f32.mrf.mxu0  ;;  %v14776_v61 = vpop.f32.mrf.mxu1  ;;  %12659 = vmatmul.mubr.msk.bf16.gmra.mxu0 %vm785_vm0, %v14627_v40  ;;  %12662 = vmatmul.mubr.msk.bf16.gmra.mxu1 %vm785_vm0, %v14627_v40 }
 0x150   : > { %20517 = vst [vmem:[#allocation38_spill] sm:$0xff] %v14774_v31  ;;  %20518 = vst [vmem:[#allocation39_spill] sm:$0xff] %v14776_v61  ;;  %2338 = vmatprep.mubr.bf16.mxu0 %v20351_v60  ;;  %2401 = vmatprep.mubr.bf16.mxu1 %v20351_v60 }
 0x151   : > { %v14784_v32 = vpop.f32.mrf.mxu0  ;;  %v14786_v22 = vpop.f32.mrf.mxu1 }
 0x152   : > { %20519 = vst [vmem:[#allocation40_spill] sm:$0xff] %v14784_v32  ;;  %20520 = vst [vmem:[#allocation41_spill] sm:$0xff] %v14786_v22 }
 0x153   : > { %v14788_v29 = vpop.f32.mrf.mxu0  ;;  %v14790_v30 = vpop.f32.mrf.mxu1 }
 0x154   : > { %20521 = vst [vmem:[#allocation42_spill] sm:$0xff] %v14788_v29  ;;  %20522 = vst [vmem:[#allocation43_spill] sm:$0xff] %v14790_v30 }
 0x155   : > { %v14792_v26 = vpop.f32.mrf.mxu0  ;;  %v14794_v28 = vpop.f32.mrf.mxu1 }
 0x156   : > { %20523 = vst [vmem:[#allocation44_spill] sm:$0xff] %v14792_v26  ;;  %20524 = vst [vmem:[#allocation45_spill] sm:$0xff] %v14794_v28 }
 0x157   : > { %v14796_v25 = vpop.f32.mrf.mxu0  ;;  %v14798_v27 = vpop.f32.mrf.mxu1  ;;  %12660 = vmatmul.mubr.msk.bf16.gmra.mxu0 %vm785_vm0, %v14654_v49  ;;  %12663 = vmatmul.mubr.msk.bf16.gmra.mxu1 %vm785_vm0, %v14654_v49 }
 0x158   : > { %20525 = vst [vmem:[#allocation46_spill] sm:$0xff] %v14796_v25  ;;  %20526 = vst [vmem:[#allocation47_spill] sm:$0xff] %v14798_v27  ;;  %2444 = vmatprep.mubr.bf16.mxu0 %v20351_v60  ;;  %2507 = vmatprep.mubr.bf16.mxu1 %v20351_v60 }
 0x159   : > { %v14806_v24 = vpop.f32.mrf.mxu0  ;;  %v14808_v23 = vpop.f32.mrf.mxu1 }
 0x15a   : > { %20527 = vst [vmem:[#allocation48_spill] sm:$0xff] %v14806_v24  ;;  %20528 = vst [vmem:[#allocation49_spill] sm:$0xff] %v14808_v23 }
 0x15b   : > { %v14810_v21 = vpop.f32.mrf.mxu0  ;;  %v14812_v28 = vpop.f32.mrf.mxu1 }
 0x15c   : > { %20529 = vst [vmem:[#allocation50_spill] sm:$0xff] %v14810_v21  ;;  %20530 = vst [vmem:[#allocation51_spill] sm:$0xff] %v14812_v28 }
 0x15d   : > { %v14814_v25 = vpop.f32.mrf.mxu0  ;;  %v14816_v27 = vpop.f32.mrf.mxu1 }
 0x15e   : > { %20531 = vst [vmem:[#allocation52_spill] sm:$0xff] %v14814_v25  ;;  %20532 = vst [vmem:[#allocation53_spill] sm:$0xff] %v14816_v27 }
 0x15f   : > { %v14818_v26 = vpop.f32.mrf.mxu0  ;;  %v14820_v30 = vpop.f32.mrf.mxu1  ;;  %12664 = vmatmul.mubr.msk.bf16.vlgmr.msra.gmra.mxu0 %vm785_vm0, %v14600_v33  ;;  %12667 = vmatmul.mubr.msk.bf16.vlgmr.msra.gmra.mxu1 %vm785_vm0, %v14600_v33 }
 0x160   : > { %20533 = vst [vmem:[#allocation54_spill] sm:$0xff] %v14818_v26  ;;  %20534 = vst [vmem:[#allocation55_spill] sm:$0xff] %v14820_v30  ;;  %2454 = vmatprep.mubr.bf16.mxu0 %v20351_v60  ;;  %2517 = vmatprep.mubr.bf16.mxu1 %v20351_v60 }
 0x161   : > { %v14828_v23 = vpop.f32.mrf.mxu0  ;;  %v14830_v28 = vpop.f32.mrf.mxu1 }
 0x162   : > { %20535 = vst [vmem:[#allocation56_spill] sm:$0xff] %v14828_v23  ;;  %20536 = vst [vmem:[#allocation57_spill] sm:$0xff] %v14830_v28 }
 0x163   : > { %v14832_v25 = vpop.f32.mrf.mxu0  ;;  %v14834_v27 = vpop.f32.mrf.mxu1 }
 0x164   : > { %20537 = vst [vmem:[#allocation58_spill] sm:$0xff] %v14832_v25  ;;  %20538 = vst [vmem:[#allocation59_spill] sm:$0xff] %v14834_v27 }
 0x165   : > { %v14836_v26 = vpop.f32.mrf.mxu0  ;;  %v14838_v30 = vpop.f32.mrf.mxu1 }
 0x166   : > { %20539 = vst [vmem:[#allocation60_spill] sm:$0xff] %v14836_v26  ;;  %20540 = vst [vmem:[#allocation61_spill] sm:$0xff] %v14838_v30 }
 0x167   : > { %v14840_v24 = vpop.f32.mrf.mxu0  ;;  %v14842_v21 = vpop.f32.mrf.mxu1  ;;  %12665 = vmatmul.mubr.msk.bf16.gmra.mxu0 %vm785_vm0, %v14627_v40  ;;  %12668 = vmatmul.mubr.msk.bf16.gmra.mxu1 %vm785_vm0, %v14627_v40 }
 0x168   : > { %20541 = vst [vmem:[#allocation62_spill] sm:$0xff] %v14840_v24  ;;  %20542 = vst [vmem:[#allocation63_spill] sm:$0xff] %v14842_v21  ;;  %2464 = vmatprep.mubr.bf16.mxu0 %v20351_v60  ;;  %2527 = vmatprep.mubr.bf16.mxu1 %v20351_v60 }
 0x169   : > { %v14850_v33 = vpop.f32.mrf.mxu0  ;;  %v14852_v28 = vpop.f32.mrf.mxu1 }
 0x16a   : > { %20543 = vst [vmem:[#allocation64_spill] sm:$0xff] %v14850_v33  ;;  %20544 = vst [vmem:[#allocation65_spill] sm:$0xff] %v14852_v28 }
 0x16b   : > { %v14854_v26 = vpop.f32.mrf.mxu0  ;;  %v14856_v30 = vpop.f32.mrf.mxu1 }
 0x16c   : > { %20545 = vst [vmem:[#allocation66_spill] sm:$0xff] %v14854_v26  ;;  %20546 = vst [vmem:[#allocation67_spill] sm:$0xff] %v14856_v30 }
 0x16d   : > { %v14858_v27 = vpop.f32.mrf.mxu0  ;;  %v14860_v23 = vpop.f32.mrf.mxu1 }
 0x16e   : > { %20547 = vst [vmem:[#allocation68_spill] sm:$0xff] %v14858_v27  ;;  %20548 = vst [vmem:[#allocation69_spill] sm:$0xff] %v14860_v23 }
 0x16f   : > { %v14862_v25 = vpop.f32.mrf.mxu0  ;;  %v14864_v21 = vpop.f32.mrf.mxu1  ;;  %12666 = vmatmul.mubr.msk.bf16.gmra.mxu0 %vm785_vm0, %v14654_v49  ;;  %12669 = vmatmul.mubr.msk.bf16.gmra.mxu1 %vm785_vm0, %v14654_v49 }
 0x170   : > { %20549 = vst [vmem:[#allocation70_spill] sm:$0xff] %v14862_v25  ;;  %20550 = vst [vmem:[#allocation71_spill] sm:$0xff] %v14864_v21 }
 0x171   : > { %v14870_v40 = vpop.f32.mrf.mxu0  ;;  %v14872_v60 = vpop.f32.mrf.mxu1 }
 0x172   : > { %20551 = vst [vmem:[#allocation72_spill] sm:$0xff] %v14870_v40  ;;  %20552 = vst [vmem:[#allocation73_spill] sm:$0xff] %v14872_v60 }
 0x173   : > { %v14874_v26 = vpop.f32.mrf.mxu0  ;;  %v14876_v30 = vpop.f32.mrf.mxu1 }
 0x174   : > { %20553 = vst [vmem:[#allocation74_spill] sm:$0xff] %v14874_v26  ;;  %20554 = vst [vmem:[#allocation75_spill] sm:$0xff] %v14876_v30 }
 0x175   : > { %v14878_v27 = vpop.f32.mrf.mxu0  ;;  %v14880_v23 = vpop.f32.mrf.mxu1 }
 0x176   : > { %20555 = vst [vmem:[#allocation76_spill] sm:$0xff] %v14878_v27  ;;  %20556 = vst [vmem:[#allocation77_spill] sm:$0xff] %v14880_v23 }
 0x177   : > { %v14882_v25 = vpop.f32.mrf.mxu0  ;;  %v14884_v21 = vpop.f32.mrf.mxu1 }
 0x179   : > { %v14886_v28 = vpop.f32.mrf.mxu0  ;;  %v14888_v33 = vpop.f32.mrf.mxu1 }
 0x17b   : > { %v14890_v49 = vpop.f32.mrf.mxu0  ;;  %v14892_v40 = vpop.f32.mrf.mxu1 }
 0x17d   : > { %v14894_v60 = vpop.f32.mrf.mxu0  ;;  %v14896_v26 = vpop.f32.mrf.mxu1 }
 0x17f   : > { %v14898_v30 = vpop.f32.mrf.mxu0  ;;  %v14900_v27 = vpop.f32.mrf.mxu1 }
 0x181   : > { %v14902_v23 = vpop.f32.mrf.mxu0  ;;  %v14904_v24 = vpop.f32.mrf.mxu1 }
 0x183   : > { %v14906_v29 = vpop.f32.mrf.mxu0  ;;  %v14908_v20 = vpop.f32.mrf.mxu1 }
 0x185   : > { %v14910_v17 = vpop.f32.mrf.mxu0  ;;  %v14912_v22 = vpop.f32.mrf.mxu1 }
 0x187   : > { %v14914_v32 = vpop.f32.mrf.mxu0  ;;  %v14916_v61 = vpop.f32.mrf.mxu1 }
 0x189   : > { %v14918_v31 = vpop.f32.mrf.mxu0  ;;  %v14920_v19 = vpop.f32.mrf.mxu1 }
 0x18b   : > { %v14922_v16 = vpop.f32.mrf.mxu0  ;;  %v14924_v18 = vpop.f32.mrf.mxu1 }
 0x18d   : > { %v14926_v15 = vpop.f32.mrf.mxu0  ;;  %v14928_v14 = vpop.f32.mrf.mxu1 }
 0x18f   : > { %v14930_v5 = vpop.f32.mrf.mxu0  ;;  %v14932_v4 = vpop.f32.mrf.mxu1 }
 0x190   : > { %20557 = vst [vmem:[#allocation78_spill] sm:$0xff] %v14932_v4 }
 0x191   : > { %v14934_v1 = vpop.f32.mrf.mxu0  ;;  %v14936_v3 = vpop.f32.mrf.mxu1 }
 0x192   : > { %20558 = vst [vmem:[#allocation79_spill] sm:$0xff] %v14934_v1  ;;  %20559 = vst [vmem:[#allocation80_spill] sm:$0xff] %v14936_v3 }
 0x193   : > { %v14938_v0 = vpop.f32.mrf.mxu0  ;;  %v14940_v13 = vpop.f32.mrf.mxu1 }
 0x194   : > { %20560 = vst [vmem:[#allocation81_spill] sm:$0xff] %v14938_v0  ;;  %20561 = vst [vmem:[#allocation82_spill] sm:$0xff] %v14940_v13 }
 0x195   : > { %v14942_v12 = vpop.f32.mrf.mxu0  ;;  %v14944_v11 = vpop.f32.mrf.mxu1 }
 0x196   : > { %20562 = vst [vmem:[#allocation83_spill] sm:$0xff] %v14942_v12  ;;  %20563 = vst [vmem:[#allocation84_spill] sm:$0xff] %v14944_v11 }
 0x197   : > { %v14946_v10 = vpop.f32.mrf.mxu0  ;;  %v14948_v2 = vpop.f32.mrf.mxu1 }
 0x198   : > { %20564 = vst [vmem:[#allocation85_spill] sm:$0xff] %v14948_v2 }
 0x199   : > { %v14950_v63 = vpop.f32.mrf.mxu0  ;;  %v14952_v9 = vpop.f32.mrf.mxu1 }
 0x19a   : > { %20565 = vst [vmem:[#allocation86_spill] sm:$0xff] %v14950_v63  ;;  %20566 = vst [vmem:[#allocation87_spill] sm:$0xff] %v14952_v9 }
 0x19b   : > { %v14954_v4 = vpop.f32.mrf.mxu0  ;;  %v14956_v1 = vpop.f32.mrf.mxu1 }
 0x19c   : > { %20567 = vst [vmem:[#allocation88_spill] sm:$0xff] %v14954_v4  ;;  %20568 = vst [vmem:[#allocation89_spill] sm:$0xff] %v14956_v1 }
 0x19d   : > { %v14958_v3 = vpop.f32.mrf.mxu0  ;;  %v14960_v0 = vpop.f32.mrf.mxu1 }
 0x19e   : > { %20569 = vst [vmem:[#allocation90_spill] sm:$0xff] %v14958_v3  ;;  %20570 = vst [vmem:[#allocation91_spill] sm:$0xff] %v14960_v0 }
 0x19f   : > { %v14962_v13 = vpop.f32.mrf.mxu0  ;;  %v14964_v12 = vpop.f32.mrf.mxu1 }
 0x1a0   : > { %20571 = vst [vmem:[#allocation92_spill] sm:$0xff] %v14962_v13  ;;  %20572 = vst [vmem:[#allocation93_spill] sm:$0xff] %v14964_v12 }
 0x1a1   : > { %v14966_v11 = vpop.f32.mrf.mxu0  ;;  %v14968_v8 = vpop.f32.mrf.mxu1 }
 0x1a2   : > { %20573 = vst [vmem:[#allocation94_spill] sm:$0xff] %v14966_v11  ;;  %20574 = vst [vmem:[#allocation95_spill] sm:$0xff] %v14968_v8 }
 0x1a3   : > { %v14970_v2 = vpop.f32.mrf.mxu0  ;;  %v14972_v63 = vpop.f32.mrf.mxu1 }
 0x1a4   : > { %20575 = vst [vmem:[#allocation96_spill] sm:$0xff] %v14970_v2  ;;  %20576 = vst [vmem:[#allocation97_spill] sm:$0xff] %v14972_v63 }
 0x1a5   : > { %v14974_v9 = vpop.f32.mrf.mxu0  ;;  %v14976_v4 = vpop.f32.mrf.mxu1 }
 0x1a6   : > { %20577 = vst [vmem:[#allocation98_spill] sm:$0xff] %v14974_v9  ;;  %20578 = vst [vmem:[#allocation99_spill] sm:$0xff] %v14976_v4 }
 0x1a7   : > { %v14978_v1 = vpop.f32.mrf.mxu0  ;;  %v14980_v3 = vpop.f32.mrf.mxu1 }
 0x1a8   : > { %20579 = vst [vmem:[#allocation100_spill] sm:$0xff] %v14978_v1  ;;  %20580 = vst [vmem:[#allocation101_spill] sm:$0xff] %v14980_v3 }
 0x1a9   : > { %v14982_v0 = vpop.f32.mrf.mxu0  ;;  %v14984_v13 = vpop.f32.mrf.mxu1 }
 0x1aa   : > { %20581 = vst [vmem:[#allocation102_spill] sm:$0xff] %v14982_v0  ;;  %20582 = vst [vmem:[#allocation103_spill] sm:$0xff] %v14984_v13 }
 0x1ab   : > { %v14986_v12 = vpop.f32.mrf.mxu0  ;;  %v14988_v11 = vpop.f32.mrf.mxu1 }
 0x1ac   : > { %20583 = vst [vmem:[#allocation104_spill] sm:$0xff] %v14986_v12  ;;  %20584 = vst [vmem:[#allocation105_spill] sm:$0xff] %v14988_v11 }
 0x1ad   : > { %v14990_v8 = vpop.f32.mrf.mxu0  ;;  %v14992_v2 = vpop.f32.mrf.mxu1 }
 0x1ae   : > { %20585 = vst [vmem:[#allocation106_spill] sm:$0xff] %v14990_v8  ;;  %20586 = vst [vmem:[#allocation107_spill] sm:$0xff] %v14992_v2 }
 0x1af   : > { %v14994_v63 = vpop.f32.mrf.mxu0  ;;  %v14996_v9 = vpop.f32.mrf.mxu1 }
 0x1b0   : > { %20587 = vst [vmem:[#allocation108_spill] sm:$0xff] %v14994_v63  ;;  %20588 = vst [vmem:[#allocation109_spill] sm:$0xff] %v14996_v9 }
 0x1b1   : > { %v14998_v4 = vpop.f32.mrf.mxu0  ;;  %v15000_v1 = vpop.f32.mrf.mxu1 }
 0x1b2   : > { %20589 = vst [vmem:[#allocation110_spill] sm:$0xff] %v14998_v4  ;;  %20590 = vst [vmem:[#allocation111_spill] sm:$0xff] %v15000_v1 }
 0x1b3   : > { %v15002_v3 = vpop.f32.mrf.mxu0  ;;  %v15004_v0 = vpop.f32.mrf.mxu1 }
 0x1b4   : > { %20591 = vst [vmem:[#allocation112_spill] sm:$0xff] %v15002_v3  ;;  %20592 = vst [vmem:[#allocation113_spill] sm:$0xff] %v15004_v0 }
 0x1b5   : > { %v15006_v13 = vpop.f32.mrf.mxu0  ;;  %v15008_v12 = vpop.f32.mrf.mxu1 }
 0x1b6   : > { %20593 = vst [vmem:[#allocation114_spill] sm:$0xff] %v15006_v13  ;;  %20594 = vst [vmem:[#allocation115_spill] sm:$0xff] %v15008_v12 }
 0x1b7   : > { %v15010_v11 = vpop.f32.mrf.mxu0  ;;  %v15012_v8 = vpop.f32.mrf.mxu1 }
 0x1b8   : > { %20595 = vst [vmem:[#allocation116_spill] sm:$0xff] %v15010_v11  ;;  %20596 = vst [vmem:[#allocation117_spill] sm:$0xff] %v15012_v8 }
 0x1b9   : > { %v15014_v2 = vpop.f32.mrf.mxu0  ;;  %v15016_v63 = vpop.f32.mrf.mxu1 }
 0x1ba   : > { %20597 = vst [vmem:[#allocation118_spill] sm:$0xff] %v15014_v2  ;;  %20598 = vst [vmem:[#allocation119_spill] sm:$0xff] %v15016_v63 }
 0x1bb   : > { %v15018_v9 = vpop.f32.mrf.mxu0  ;;  %v15020_v4 = vpop.f32.mrf.mxu1 }
 0x1bc   : > { %20599 = vst [vmem:[#allocation120_spill] sm:$0xff] %v15018_v9  ;;  %20600 = vst [vmem:[#allocation121_spill] sm:$0xff] %v15020_v4 }
 0x1bd   : > { %v15022_v1 = vpop.f32.mrf.mxu0  ;;  %v15024_v3 = vpop.f32.mrf.mxu1 }
 0x1be   : > { %20601 = vst [vmem:[#allocation122_spill] sm:$0xff] %v15022_v1  ;;  %20602 = vst [vmem:[#allocation123_spill] sm:$0xff] %v15024_v3 }
 0x1bf   : > { %v15026_v0 = vpop.f32.mrf.mxu0  ;;  %v15028_v13 = vpop.f32.mrf.mxu1 }
 0x1c0   : > { %20603 = vst [vmem:[#allocation124_spill] sm:$0xff] %v15026_v0  ;;  %20604 = vst [vmem:[#allocation125_spill] sm:$0xff] %v15028_v13 }
 0x1c1   : > { %v15030_v12 = vpop.f32.mrf.mxu0  ;;  %v15032_v11 = vpop.f32.mrf.mxu1 }
 0x1c2   : > { %20605 = vst [vmem:[#allocation126_spill] sm:$0xff] %v15030_v12  ;;  %20606 = vst [vmem:[#allocation127_spill] sm:$0xff] %v15032_v11 }
 0x1c3   : > { %v15034_v8 = vpop.f32.mrf.mxu0  ;;  %v15036_v2 = vpop.f32.mrf.mxu1 }
 0x1c4   : > { %20607 = vst [vmem:[#allocation128_spill] sm:$0xff] %v15034_v8  ;;  %20608 = vst [vmem:[#allocation129_spill] sm:$0xff] %v15036_v2 }
 0x1c5   : > { %v15038_v63 = vpop.f32.mrf.mxu0  ;;  %v15040_v9 = vpop.f32.mrf.mxu1 }
 0x1c6   : > { %20609 = vst [vmem:[#allocation130_spill] sm:$0xff] %v15038_v63  ;;  %20610 = vst [vmem:[#allocation131_spill] sm:$0xff] %v15040_v9 }
 0x1c7   : > { %v15042_v4 = vpop.f32.mrf.mxu0  ;;  %v15044_v1 = vpop.f32.mrf.mxu1 }
 0x1c8   : > { %20611 = vst [vmem:[#allocation132_spill] sm:$0xff] %v15042_v4  ;;  %20612 = vst [vmem:[#allocation133_spill] sm:$0xff] %v15044_v1 }
 0x1c9   : > { %v15046_v3 = vpop.f32.mrf.mxu0  ;;  %v15048_v0 = vpop.f32.mrf.mxu1 }
 0x1ca   : > { %20613 = vst [vmem:[#allocation134_spill] sm:$0xff] %v15046_v3  ;;  %20614 = vst [vmem:[#allocation135_spill] sm:$0xff] %v15048_v0 }
 0x1cb   : > { %v15050_v13 = vpop.f32.mrf.mxu0  ;;  %v15052_v12 = vpop.f32.mrf.mxu1 }
 0x1cc   : > { %20615 = vst [vmem:[#allocation136_spill] sm:$0xff] %v15050_v13  ;;  %20616 = vst [vmem:[#allocation137_spill] sm:$0xff] %v15052_v12 }
 0x1cd   : > { %v15054_v11 = vpop.f32.mrf.mxu0  ;;  %v15056_v8 = vpop.f32.mrf.mxu1 }
 0x1ce   : > { %20617 = vst [vmem:[#allocation138_spill] sm:$0xff] %v15054_v11  ;;  %20618 = vst [vmem:[#allocation139_spill] sm:$0xff] %v15056_v8  ;;  %v1438_v11 = vadd.f32 %v14882_v25, %v14602_v34  ;;  %v1505_v34 = vadd.f32 %v14892_v40, %v14622_v39  ;;  %v1444_v39 = vadd.f32 %v14894_v60, %v14629_v41 }
 0x1cf   : > { %v15058_v2 = vpop.f32.mrf.mxu0  ;;  %v15060_v63 = vpop.f32.mrf.mxu1  ;;  %v1452_v60 = vadd.f32 %v14906_v29, %v14647_v47  ;;  %v1521_v40 = vadd.f32 %v14916_v61, %v14662_v53 }
 0x1d0   : > { %20619 = vst [vmem:[#allocation140_spill] sm:$0xff] %v15058_v2  ;;  %20620 = vst [vmem:[#allocation141_spill] sm:$0xff] %v15060_v63  ;;  %v1440_v63 = vadd.f32 %v14886_v28, %v14612_v36 }
 0x1d1   : > { %v15062_v9 = vpop.f32.mrf.mxu0  ;;  %v15064_v4 = vpop.f32.mrf.mxu1 }
 0x1d2   : > { %20621 = vst [vmem:[#allocation142_spill] sm:$0xff] %v15062_v9  ;;  %20622 = vst [vmem:[#allocation143_spill] sm:$0xff] %v15064_v4  ;;  %v1501_v4 = vadd.f32 %v14884_v21, %v14604_v35  ;;  %v1448_v35 = vadd.f32 %v14898_v30, %v14633_v43 }
 0x1d3   : > { %v15066_v1 = vpop.f32.mrf.mxu0  ;;  %v15068_v3 = vpop.f32.mrf.mxu1 }
 0x1d4   : > { %20623 = vst [vmem:[#allocation144_spill] sm:$0xff] %v15066_v1  ;;  %20624 = vst [vmem:[#allocation145_spill] sm:$0xff] %v15068_v3 }
 0x1d5   : > { %v15070_v0 = vpop.f32.mrf.mxu0  ;;  %v15072_v13 = vpop.f32.mrf.mxu1 }
 0x1d6   : > { %20625 = vst [vmem:[#allocation146_spill] sm:$0xff] %v15070_v0  ;;  %20626 = vst [vmem:[#allocation147_spill] sm:$0xff] %v15072_v13 }
 0x1d7   : > { %v2068_v8 = vpop.f32.mrf.mxu0  ;;  %v2131_v12 = vpop.f32.mrf.mxu1 }
 0x1d8   : > { %v2538_v2 = vadd.f32 %v2068_v8, %v1438_v11  ;;  %v2540_v25 = vadd.f32 %v2131_v12, %v1501_v4  ;;  %v1503_v8 = vadd.f32 %v14888_v33, %v14614_v37  ;;  %v1513_v37 = vadd.f32 %v14904_v24, %v14645_v46 }
 0x1d9   : > { %v2070_v9 = vpop.f32.mrf.mxu0  ;;  %v2133_v7 = vpop.f32.mrf.mxu1 }
 0x1da   : > { %v2539_v1 = vadd.f32 %v2070_v9, %v1440_v63  ;;  %2634 = vrot.lane.b32.xlu0 %v2538_v2, %s14233_s25  ;;  %v1511_v63 = vadd.f32 %v14900_v27, %v14635_v44  ;;  %v2541_v11 = vadd.f32 %v2133_v7, %v1503_v8  ;;  %v1442_v44 = vadd.f32 %v14890_v49, %v14620_v38 }
 0x1db   : > { %v2072_v0 = vpop.f32.mrf.mxu0  ;;  %v2135_v13 = vpop.f32.mrf.mxu1  ;;  %v1454_v38 = vadd.f32 %v14910_v17, %v14656_v50  ;;  %v1517_v27 = vadd.f32 %v14912_v22, %v14658_v51 }
 0x1dc   : > { %2638 = vrot.lane.b32.xlu1 %v2539_v1, %s14233_s25  ;;  %v2556_v2 = vadd.f32 %v2135_v13, %v1505_v34  ;;  %v1450_v1 = vadd.f32 %v14902_v23, %v14643_v45  ;;  %v1515_v13 = vadd.f32 %v14908_v20, %v14649_v48  ;;  %v1507_v23 = vadd.f32 %v14896_v26, %v14631_v42 }
 0x1dd   : > { %v2074_v3 = vpop.f32.mrf.mxu0  ;;  %v2137_v36 = vpop.f32.mrf.mxu1  ;;  %v2554_v28 = vadd.f32 %v2072_v0, %v1442_v44  ;;  %v1458_v42 = vadd.f32 %v14914_v32, %v14660_v52  ;;  %v1462_v52 = vadd.f32 %v14922_v16, %v14674_v56  ;;  %v1564_v44 = vadd.f32 %v14930_v5, %v14682_v62 }
 0x1de   : > { %2642 = vrot.lane.b32.xlu0 %v2540_v25, %s14233_s25  ;;  %v2555_v21 = vadd.f32 %v2074_v3, %v1444_v39  ;;  %v2557_v26 = vadd.f32 %v2137_v36, %v1507_v23 }
 0x1df   : > { %v2078_v4 = vpop.f32.mrf.mxu0  ;;  %v2141_v9 = vpop.f32.mrf.mxu1 }
 0x1e0   : > { %v15097_v12 = vadd.f32 %v2078_v4, %v1448_v35  ;;  %v15099_v43 = vadd.f32 %v2141_v9, %v1511_v63  ;;  %2644 = vrot.lane.b32.xlu1 %v2556_v2, %s14233_s25  ;;  %v1460_v35 = vadd.f32 %v14918_v31, %v14670_v54  ;;  %v1525_v63 = vadd.f32 %v14924_v18, %v14676_v57 }
 0x1e1   : > { %v2080_v41 = vpop.f32.mrf.mxu0  ;;  %v2143_v45 = vpop.f32.mrf.mxu1  ;;  %v1464_v54 = vadd.f32 %v14926_v15, %v14678_v58  ;;  %v1527_v9 = vadd.f32 %v14928_v14, %v14680_v59  ;;  %v20627_v58 = vld [vmem:[#allocation15_spill] sm:$0xff]  ;;  %v20628_v15 = vld [vmem:[#allocation85_spill] sm:$0xff] }
 0x1e2   : > { %v15108_v46 = vadd.f32 %v2080_v41, %v1450_v1  ;;  %v15110_v7 = vadd.f32 %v2143_v45, %v1513_v37  ;;  %2646 = vrot.lane.b32.xlu0 %v2541_v11, %s14233_s25  ;;  %v1523_v1 = vadd.f32 %v14920_v19, %v14672_v55  ;;  %v1574_v55 = vadd.f32 %v14946_v10, %v14707_v6  ;;  %v20630_v41 = vld [vmem:[#allocation86_spill] sm:$0xff]  ;;  %v20632_v59 = vld [vmem:[#allocation87_spill] sm:$0xff]  ;;  %v20633_v10 = vld [vmem:[#allocation8_spill] sm:$0xff] }
 0x1e3   : > { %v2082_v24 = vpop.f32.mrf.mxu0  ;;  %v2145_v47 = vpop.f32.mrf.mxu1  ;;  %v1637_v19 = vadd.f32 %v20628_v15, %v20627_v58  ;;  %v20648_v58 = vld [vmem:[#allocation82_spill] sm:$0xff] }
 0x1e4   : > { %v15119_v48 = vadd.f32 %v2082_v24, %v1452_v60  ;;  %v15121_v3 = vadd.f32 %v2145_v47, %v1515_v13  ;;  %2640 = vrot.lane.b32.xlu1 %v2555_v21, %s14233_s25  ;;  %v20629_v60 = vld [vmem:[#allocation16_spill] sm:$0xff]  ;;  %v20631_v13 = vld [vmem:[#allocation17_spill] sm:$0xff]  ;;  %v20634_v24 = vld [vmem:[#allocation78_spill] sm:$0xff] }
 0x1e5   : > { %v2084_v20 = vpop.f32.mrf.mxu0  ;;  %v2147_v29 = vpop.f32.mrf.mxu1  ;;  %v1576_v45 = vadd.f32 %v20630_v41, %v20629_v60  ;;  %v1639_v14 = vadd.f32 %v20632_v59, %v20631_v13  ;;  %v1627_v47 = vadd.f32 %v20634_v24, %v20633_v10 }
 0x1e6   : > { %v15126_v30 = vadd.f32 %v2084_v20, %v1454_v38  ;;  %v15128_v50 = vadd.f32 %v2147_v29, %v1517_v27  ;;  %2636 = vrot.lane.b32.xlu0 %v2554_v28, %s14233_s25  ;;  %v20635_v27 = vld [vmem:[#allocation11_spill] sm:$0xff]  ;;  %v20636_v28 = vld [vmem:[#allocation81_spill] sm:$0xff]  ;;  %v20637_v29 = vld [vmem:[#allocation18_spill] sm:$0xff] }
 0x1e7   : > { %v2088_v51 = vpop.f32.mrf.mxu0  ;;  %v2151_v0 = vpop.f32.mrf.mxu1  ;;  %v1568_v20 = vadd.f32 %v20636_v28, %v20635_v27 }
 0x1e8   : > { %v2602_v17 = vadd.f32 %v2088_v51, %v1458_v42  ;;  %2648 = vrot.lane.b32.xlu1 %v2557_v26, %s14233_s25  ;;  %v2604_v34 = vadd.f32 %v2151_v0, %v1521_v40  ;;  %v20638_v42 = vld [vmem:[#allocation88_spill] sm:$0xff] }
 0x1e9   : > { %v2090_v22 = vpop.f32.mrf.mxu0  ;;  %v2153_v33 = vpop.f32.mrf.mxu1  ;;  %v1578_v26 = vadd.f32 %v20638_v42, %v20637_v29  ;;  %v20654_v29 = vld [vmem:[#allocation84_spill] sm:$0xff] }
 0x1ea   : > { %2847 = vrot.lane.b32.xlu0 %v2602_v17, %s14234_s28  ;;  %v2603_v16 = vadd.f32 %v2090_v22, %v1460_v35  ;;  %v2605_v31 = vadd.f32 %v2153_v33, %v1523_v1  ;;  %v20639_v17 = vld [vmem:[#allocation19_spill] sm:$0xff]  ;;  %v20640_v22 = vld [vmem:[#allocation89_spill] sm:$0xff] }
 0x1eb   : > { %v2092_v32 = vpop.f32.mrf.mxu0  ;;  %v2155_v49 = vpop.f32.mrf.mxu1  ;;  %v1641_v33 = vadd.f32 %v20640_v22, %v20639_v17 }
 0x1ec   : > { %v2618_v25 = vadd.f32 %v2092_v32, %v1462_v52  ;;  %v2620_v61 = vadd.f32 %v2155_v49, %v1525_v63  ;;  %v20641_v32 = vld [vmem:[#allocation20_spill] sm:$0xff]  ;;  %v20642_v49 = vld [vmem:[#allocation90_spill] sm:$0xff] }
 0x1ed   : > { %v2094_v36 = vpop.f32.mrf.mxu0  ;;  %v2157_v8 = vpop.f32.mrf.mxu1 }
 0x1ee   : > { %2849 = vrot.lane.b32.xlu1 %v2618_v25, %s14234_s28  ;;  %2855 = vrot.lane.b32.xlu0 %v2604_v34, %s14234_s28  ;;  %v2619_v4 = vadd.f32 %v2094_v36, %v1464_v54  ;;  %v2621_v38 = vadd.f32 %v2157_v8, %v1527_v9  ;;  %v1580_v34 = vadd.f32 %v20642_v49, %v20641_v32  ;;  %v20643_v25 = vld [vmem:[#allocation21_spill] sm:$0xff]  ;;  %v20644_v36 = vld [vmem:[#allocation91_spill] sm:$0xff] }
 0x1ef   : > { %v2194_v53 = vpop.f32.mrf.mxu0  ;;  %v2257_v56 = vpop.f32.mrf.mxu1  ;;  %v1643_v8 = vadd.f32 %v20644_v36, %v20643_v25  ;;  %v20645_v54 = vld [vmem:[#allocation9_spill] sm:$0xff]  ;;  %v20657_v49 = vld [vmem:[#allocation23_spill] sm:$0xff]  ;;  %v20659_v36 = vld [vmem:[#allocation26_spill] sm:$0xff] }
 0x1f0   : > { %v2542_v62 = vadd.f32 %v2194_v53, %v1564_v44  ;;  %v2544_v53 = vadd.f32 %v2257_v56, %v1627_v47 }
 0x1f1   : > { %v2196_v2 = vpop.f32.mrf.mxu0  ;;  %v15143_v39 = vpop.f32.mrf.mxu1 }
 0x1f2   : > { %2857 = vrot.lane.b32.xlu1 %v2620_v61, %s14234_s28  ;;  %2851 = vrot.lane.b32.xlu0 %v2603_v16, %s14234_s28 }
 0x1f3   : > { %v2198_v57 = vpop.f32.mrf.mxu0  ;;  %v2261_v18 = vpop.f32.mrf.mxu1 }
 0x1f4   : > { %v2558_v16 = vadd.f32 %v2198_v57, %v1568_v20 }
 0x1f5   : > { %v2200_v37 = vpop.f32.mrf.mxu0  ;;  %v2263_v11 = vpop.f32.mrf.mxu1 }
 0x1f6   : > { %2853 = vrot.lane.b32.xlu1 %v2619_v4, %s14234_s28  ;;  %2859 = vrot.lane.b32.xlu0 %v2605_v31, %s14234_s28  ;;  %v20646_v31 = vld [vmem:[#allocation79_spill] sm:$0xff] }
 0x1f7   : > { %v2204_v21 = vpop.f32.mrf.mxu0  ;;  %v2267_v23 = vpop.f32.mrf.mxu1  ;;  %v1566_v4 = vadd.f32 %v20646_v31, %v20645_v54  ;;  %v20661_v54 = vld [vmem:[#allocation24_spill] sm:$0xff]  ;;  %v20662_v31 = vld [vmem:[#allocation94_spill] sm:$0xff] }
 0x1f8   : > { %v15165_v5 = vadd.f32 %v2204_v21, %v1574_v55  ;;  %v15167_v6 = vadd.f32 %v2267_v23, %v1637_v19  ;;  %v20647_v55 = vld [vmem:[#allocation12_spill] sm:$0xff] }
 0x1f9   : > { %v2206_v51 = vpop.f32.mrf.mxu0  ;;  %v2269_v0 = vpop.f32.mrf.mxu1  ;;  %v1631_v15 = vadd.f32 %v20648_v58, %v20647_v55  ;;  %v2543_v41 = vadd.f32 %v2196_v2, %v1566_v4  ;;  %v20650_v21 = vld [vmem:[#allocation80_spill] sm:$0xff]  ;;  %v1586_v4 = vadd.f32 %v20662_v31, %v20661_v54  ;;  %v20663_v55 = vld [vmem:[#allocation27_spill] sm:$0xff]  ;;  %v20664_v58 = vld [vmem:[#allocation97_spill] sm:$0xff] }
 0x1fa   : > { %v15177_v40 = vadd.f32 %v2206_v51, %v1576_v45  ;;  %v15179_v52 = vadd.f32 %v2269_v0, %v1639_v14  ;;  %2861 = vrot.lane.b32.xlu1 %v2621_v38, %s14234_s28  ;;  %2650 = vrot.lane.b32.xlu0 %v2542_v62, %s14233_s25  ;;  %v20649_v14 = vld [vmem:[#allocation10_spill] sm:$0xff]  ;;  %v20651_v38 = vld [vmem:[#allocation13_spill] sm:$0xff]  ;;  %v20652_v62 = vld [vmem:[#allocation83_spill] sm:$0xff] }
 0x1fb   : > { %v2208_v35 = vpop.f32.mrf.mxu0  ;;  %v2271_v63 = vpop.f32.mrf.mxu1  ;;  %v2560_v45 = vadd.f32 %v2261_v18, %v1631_v15  ;;  %v1629_v23 = vadd.f32 %v20650_v21, %v20649_v14  ;;  %v1570_v10 = vadd.f32 %v20652_v62, %v20651_v38  ;;  %v20653_v18 = vld [vmem:[#allocation14_spill] sm:$0xff]  ;;  %v20656_v51 = vld [vmem:[#allocation92_spill] sm:$0xff]  ;;  %v1651_v15 = vadd.f32 %v20664_v58, %v20663_v55  ;;  %v20667_v14 = vld [vmem:[#allocation39_spill] sm:$0xff] }
 0x1fc   : > { %v15187_v61 = vadd.f32 %v2208_v35, %v1578_v26  ;;  %v15189_v1 = vadd.f32 %v2271_v63, %v1641_v33  ;;  %v1633_v42 = vadd.f32 %v20654_v29, %v20653_v18  ;;  %v20655_v26 = vld [vmem:[#allocation22_spill] sm:$0xff]  ;;  %v20668_v21 = vld [vmem:[#allocation109_spill] sm:$0xff]  ;;  %v20679_v54 = vld [vmem:[#allocation43_spill] sm:$0xff] }
 0x1fd   : > { %v2210_v9 = vpop.f32.mrf.mxu0  ;;  %v2273_v44 = vpop.f32.mrf.mxu1  ;;  %v2545_v27 = vadd.f32 %v15143_v39, %v1629_v23  ;;  %v2559_v28 = vadd.f32 %v2200_v37, %v1570_v10  ;;  %v1584_v0 = vadd.f32 %v20656_v51, %v20655_v26  ;;  %v1763_v23 = vadd.f32 %v20668_v21, %v20667_v14  ;;  %v20670_v38 = vld [vmem:[#allocation110_spill] sm:$0xff]  ;;  %v20671_v10 = vld [vmem:[#allocation41_spill] sm:$0xff] }
 0x1fe   : > { %v15195_v19 = vadd.f32 %v2210_v9, %v1580_v34  ;;  %v15197_v60 = vadd.f32 %v2273_v44, %v1643_v8  ;;  %2652 = vrot.lane.b32.xlu1 %v2558_v16, %s14233_s25  ;;  %2658 = vrot.lane.b32.xlu0 %v2544_v53, %s14233_s25  ;;  %v2561_v33 = vadd.f32 %v2263_v11, %v1633_v42  ;;  %v20658_v34 = vld [vmem:[#allocation93_spill] sm:$0xff]  ;;  %v20660_v8 = vld [vmem:[#allocation96_spill] sm:$0xff]  ;;  %v20683_v58 = vld [vmem:[#allocation114_spill] sm:$0xff] }
 0x1ff   : > { %v2214_v56 = vpop.f32.mrf.mxu0  ;;  %v2277_v57 = vpop.f32.mrf.mxu1  ;;  %v1647_v25 = vadd.f32 %v20658_v34, %v20657_v49  ;;  %v1588_v35 = vadd.f32 %v20660_v8, %v20659_v36  ;;  %v20675_v49 = vld [vmem:[#allocation28_spill] sm:$0xff]  ;;  %v20676_v34 = vld [vmem:[#allocation98_spill] sm:$0xff]  ;;  %v20680_v31 = vld [vmem:[#allocation113_spill] sm:$0xff] }
 0x200   : > { %v2606_v32 = vadd.f32 %v2214_v56, %v1584_v0  ;;  %v20665_v56 = vld [vmem:[#allocation38_spill] sm:$0xff]  ;;  %v20673_v0 = vld [vmem:[#allocation25_spill] sm:$0xff]  ;;  %v20678_v8 = vld [vmem:[#allocation112_spill] sm:$0xff]  ;;  %v1767_v55 = vadd.f32 %v20680_v31, %v20679_v54 }
 0x201   : > { %v2216_v13 = vpop.f32.mrf.mxu0  ;;  %v2279_v59 = vpop.f32.mrf.mxu1  ;;  %v2608_v16 = vadd.f32 %v2277_v57, %v1647_v25  ;;  %v20669_v57 = vld [vmem:[#allocation40_spill] sm:$0xff]  ;;  %v1590_v25 = vadd.f32 %v20676_v34, %v20675_v49  ;;  %v20677_v36 = vld [vmem:[#allocation42_spill] sm:$0xff] }
 0x202   : > { %2660 = vrot.lane.b32.xlu1 %v2560_v45, %s14233_s25  ;;  %2654 = vrot.lane.b32.xlu0 %v2543_v41, %s14233_s25  ;;  %v20666_v41 = vld [vmem:[#allocation108_spill] sm:$0xff]  ;;  %v1702_v62 = vadd.f32 %v20670_v38, %v20669_v57  ;;  %v2607_v29 = vadd.f32 %v2216_v13, %v1586_v4 }
 0x203   : > { %v2218_v24 = vpop.f32.mrf.mxu0  ;;  %v2281_v47 = vpop.f32.mrf.mxu1  ;;  %v1700_v45 = vadd.f32 %v20666_v41, %v20665_v56  ;;  %v20682_v4 = vld [vmem:[#allocation44_spill] sm:$0xff]  ;;  %v20684_v56 = vld [vmem:[#allocation45_spill] sm:$0xff]  ;;  %v20685_v41 = vld [vmem:[#allocation115_spill] sm:$0xff] }
 0x204   : > { %v2622_v11 = vadd.f32 %v2218_v24, %v1588_v35  ;;  %v20672_v24 = vld [vmem:[#allocation111_spill] sm:$0xff]  ;;  %v2624_v42 = vadd.f32 %v2281_v47, %v1651_v15  ;;  %v1704_v35 = vadd.f32 %v20678_v8, %v20677_v36  ;;  %v1706_v15 = vadd.f32 %v20683_v58, %v20682_v4  ;;  %v20695_v54 = vld [vmem:[#allocation104_spill] sm:$0xff] }
 0x205   : > { %v2220_v20 = vpop.f32.mrf.mxu0  ;;  %v15208_v2 = vpop.f32.mrf.mxu1  ;;  %v20692_v8 = vld [vmem:[#allocation31_spill] sm:$0xff] }
 0x206   : > { %2656 = vrot.lane.b32.xlu1 %v2559_v28, %s14233_s25  ;;  %2662 = vrot.lane.b32.xlu0 %v2545_v27, %s14233_s25  ;;  %v1765_v27 = vadd.f32 %v20672_v24, %v20671_v10  ;;  %v2623_v57 = vadd.f32 %v2220_v20, %v1590_v25  ;;  %v20687_v10 = vld [vmem:[#allocation29_spill] sm:$0xff]  ;;  %v20688_v24 = vld [vmem:[#allocation99_spill] sm:$0xff] }
 0x207   : > { %v2320_v17 = vpop.f32.mrf.mxu0  ;;  %v15216_v22 = vpop.f32.mrf.mxu1 }
 0x209   : > { %v15218_v39 = vpop.f32.mrf.mxu0  ;;  %v15220_v37 = vpop.f32.mrf.mxu1 }
 0x20a   : > { %2664 = vrot.lane.b32.xlu1 %v2561_v33, %s14233_s25  ;;  %2863 = vrot.lane.b32.xlu0 %v2606_v32, %s14234_s28  ;;  %v20674_v33 = vld [vmem:[#allocation95_spill] sm:$0xff] }
 0x20b   : > { %v2324_v63 = vpop.f32.mrf.mxu0  ;;  %v15228_v53 = vpop.f32.mrf.mxu1  ;;  %v1649_v32 = vadd.f32 %v20674_v33, %v20673_v0 }
 0x20d   : > { %v15232_v9 = vpop.f32.mrf.mxu0  ;;  %v15234_v44 = vpop.f32.mrf.mxu1 }
 0x20e   : > { %2865 = vrot.lane.b32.xlu1 %v2622_v11, %s14234_s28  ;;  %2871 = vrot.lane.b32.xlu0 %v2608_v16, %s14234_s28 }
 0x20f   : > { %v2330_v28 = vpop.f32.mrf.mxu0  ;;  %v2393_v18 = vpop.f32.mrf.mxu1 }
 0x210   : > { %v15248_v26 = vadd.f32 %v2330_v28, %v1700_v45  ;;  %v15250_v51 = vadd.f32 %v2393_v18, %v1763_v23  ;;  %v1769_v45 = vadd.f32 %v20685_v41, %v20684_v56  ;;  %v2609_v23 = vadd.f32 %v2279_v59, %v1649_v32  ;;  %v20696_v56 = vld [vmem:[#allocation32_spill] sm:$0xff]  ;;  %v20697_v41 = vld [vmem:[#allocation102_spill] sm:$0xff] }
 0x211   : > { %v2332_v16 = vpop.f32.mrf.mxu0  ;;  %v2395_v11 = vpop.f32.mrf.mxu1 }
 0x212   : > { %v15260_v13 = vadd.f32 %v2332_v16, %v1702_v62  ;;  %v15262_v47 = vadd.f32 %v2395_v11, %v1765_v27  ;;  %2873 = vrot.lane.b32.xlu1 %v2624_v42, %s14234_s28  ;;  %2867 = vrot.lane.b32.xlu0 %v2607_v29, %s14234_s28  ;;  %v1653_v27 = vadd.f32 %v20688_v24, %v20687_v10  ;;  %v20689_v29 = vld [vmem:[#allocation30_spill] sm:$0xff]  ;;  %v20690_v42 = vld [vmem:[#allocation100_spill] sm:$0xff] }
 0x213   : > { %v2334_v14 = vpop.f32.mrf.mxu0  ;;  %v2397_v21 = vpop.f32.mrf.mxu1  ;;  %v1690_v0 = vadd.f32 %v20690_v42, %v20689_v29  ;;  %v20694_v11 = vld [vmem:[#allocation34_spill] sm:$0xff]  ;;  %v20702_v42 = vld [vmem:[#allocation36_spill] sm:$0xff] }
 0x214   : > { %20681 = vst [vmem:[#allocation15_spill] sm:$0xff] %v15262_v47  ;;  %v15270_v38 = vadd.f32 %v2334_v14, %v1704_v35  ;;  %v15272_v62 = vadd.f32 %v2397_v21, %v1767_v55  ;;  %v2625_v32 = vadd.f32 %v15208_v2, %v1653_v27  ;;  %v20693_v35 = vld [vmem:[#allocation101_spill] sm:$0xff]  ;;  %v1694_v31 = vadd.f32 %v20695_v54, %v20694_v11  ;;  %v20698_v14 = vld [vmem:[#allocation35_spill] sm:$0xff] }
 0x215   : > { %v2336_v28 = vpop.f32.mrf.mxu0  ;;  %v2399_v18 = vpop.f32.mrf.mxu1  ;;  %v2546_v34 = vadd.f32 %v2320_v17, %v1690_v0  ;;  %v1753_v16 = vadd.f32 %v20693_v35, %v20692_v8  ;;  %v20699_v21 = vld [vmem:[#allocation105_spill] sm:$0xff]  ;;  %v20703_v0 = vld [vmem:[#allocation106_spill] sm:$0xff] }
 0x216   : > { %20686 = vst [vmem:[#allocation85_spill] sm:$0xff] %v15272_v62  ;;  %v15278_v33 = vadd.f32 %v2336_v28, %v1706_v15  ;;  %v15280_v49 = vadd.f32 %v2399_v18, %v1769_v45  ;;  %2869 = vrot.lane.b32.xlu1 %v2623_v57, %s14234_s28  ;;  %2875 = vrot.lane.b32.xlu0 %v2609_v23, %s14234_s28  ;;  %v20700_v28 = vld [vmem:[#allocation33_spill] sm:$0xff]  ;;  %v20701_v18 = vld [vmem:[#allocation103_spill] sm:$0xff] }
 0x217   : > { %v2340_v59 = vpop.f32.mrf.mxu0  ;;  %v15284_v20 = vpop.f32.mrf.mxu1  ;;  %v2548_v2 = vadd.f32 %v15216_v22, %v1753_v16  ;;  %v2562_v17 = vadd.f32 %v2324_v63, %v1694_v31  ;;  %v1692_v45 = vadd.f32 %v20697_v41, %v20696_v56  ;;  %v1757_v23 = vadd.f32 %v20699_v21, %v20698_v14  ;;  %v20704_v35 = vld [vmem:[#allocation37_spill] sm:$0xff]  ;;  %v20705_v16 = vld [vmem:[#allocation107_spill] sm:$0xff]  ;;  %v20708_v41 = vld [vmem:[#allocation62_spill] sm:$0xff] }
 0x218   : > { %20691 = vst [vmem:[#allocation16_spill] sm:$0xff] %v15280_v49  ;;  %v1755_v29 = vadd.f32 %v20701_v18, %v20700_v28  ;;  %v1759_v11 = vadd.f32 %v20705_v16, %v20704_v35  ;;  %v20710_v21 = vld [vmem:[#allocation63_spill] sm:$0xff]  ;;  %v20714_v28 = vld [vmem:[#allocation65_spill] sm:$0xff] }
 0x219   : > { %v15287_v25 = vpop.f32.mrf.mxu0  ;;  %v15289_v36 = vpop.f32.mrf.mxu1  ;;  %v2547_v22 = vadd.f32 %v15218_v39, %v1692_v45  ;;  %v2564_v63 = vadd.f32 %v15228_v53, %v1757_v23  ;;  %v20709_v45 = vld [vmem:[#allocation132_spill] sm:$0xff]  ;;  %v20711_v23 = vld [vmem:[#allocation133_spill] sm:$0xff]  ;;  %v20715_v18 = vld [vmem:[#allocation135_spill] sm:$0xff] }
 0x21a   : > { %2877 = vrot.lane.b32.xlu1 %v2625_v32, %s14234_s28  ;;  %2666 = vrot.lane.b32.xlu0 %v2546_v34, %s14233_s25  ;;  %v1696_v32 = vadd.f32 %v20703_v0, %v20702_v42  ;;  %v2549_v39 = vadd.f32 %v15220_v37, %v1755_v29  ;;  %v1826_v14 = vadd.f32 %v20709_v45, %v20708_v41  ;;  %v20712_v37 = vld [vmem:[#allocation64_spill] sm:$0xff]  ;;  %v20718_v41 = vld [vmem:[#allocation117_spill] sm:$0xff]  ;;  %v20719_v45 = vld [vmem:[#allocation50_spill] sm:$0xff] }
 0x21b   : > { %v2344_v55 = vpop.f32.mrf.mxu0  ;;  %v15297_v4 = vpop.f32.mrf.mxu1  ;;  %v1891_v29 = vadd.f32 %v20715_v18, %v20714_v28  ;;  %v20723_v18 = vld [vmem:[#allocation67_spill] sm:$0xff]  ;;  %v20724_v47 = vld [vmem:[#allocation137_spill] sm:$0xff] }
 0x21c   : > { %v2563_v53 = vadd.f32 %v15232_v9, %v1696_v32  ;;  %v20713_v9 = vld [vmem:[#allocation134_spill] sm:$0xff]  ;;  %v2565_v32 = vadd.f32 %v15234_v44, %v1759_v11  ;;  %v1893_v62 = vadd.f32 %v20724_v47, %v20723_v18  ;;  %v20727_v11 = vld [vmem:[#allocation68_spill] sm:$0xff] }
 0x21d   : > { %v15300_v58 = vpop.f32.mrf.mxu0  ;;  %v15302_v15 = vpop.f32.mrf.mxu1 }
 0x21e   : > { %2668 = vrot.lane.b32.xlu1 %v2562_v17, %s14233_s25  ;;  %2674 = vrot.lane.b32.xlu0 %v2548_v2, %s14233_s25  ;;  %v20706_v2 = vld [vmem:[#allocation46_spill] sm:$0xff]  ;;  %v20707_v17 = vld [vmem:[#allocation116_spill] sm:$0xff] }
 0x21f   : > { %v15310_v57 = vpop.f32.mrf.mxu0  ;;  %v15312_v10 = vpop.f32.mrf.mxu1  ;;  %v1710_v56 = vadd.f32 %v20707_v17, %v20706_v2  ;;  %v20717_v17 = vld [vmem:[#allocation47_spill] sm:$0xff] }
 0x221   : > { %v15316_v24 = vpop.f32.mrf.mxu0  ;;  %v15318_v27 = vpop.f32.mrf.mxu1  ;;  %v2610_v35 = vadd.f32 %v2340_v59, %v1710_v56  ;;  %v20728_v56 = vld [vmem:[#allocation138_spill] sm:$0xff] }
 0x222   : > { %2676 = vrot.lane.b32.xlu1 %v2564_v63, %s14233_s25  ;;  %2670 = vrot.lane.b32.xlu0 %v2547_v22, %s14233_s25  ;;  %v1889_v22 = vadd.f32 %v20711_v23, %v20710_v21  ;;  %v1828_v63 = vadd.f32 %v20713_v9, %v20712_v37  ;;  %v20721_v23 = vld [vmem:[#allocation66_spill] sm:$0xff]  ;;  %v20722_v37 = vld [vmem:[#allocation136_spill] sm:$0xff] }
 0x223   : > { %v15326_v34 = vpop.f32.mrf.mxu0  ;;  %v15328_v8 = vpop.f32.mrf.mxu1  ;;  %v1830_v9 = vadd.f32 %v20722_v37, %v20721_v23  ;;  %v20734_v37 = vld [vmem:[#allocation51_spill] sm:$0xff] }
 0x225   : > { %v15334_v54 = vpop.f32.mrf.mxu0  ;;  %v15336_v31 = vpop.f32.mrf.mxu1 }
 0x226   : > { %2672 = vrot.lane.b32.xlu1 %v2563_v53, %s14233_s25  ;;  %2678 = vrot.lane.b32.xlu0 %v2549_v39, %s14233_s25  ;;  %v1773_v53 = vadd.f32 %v20718_v41, %v20717_v17  ;;  %v20720_v39 = vld [vmem:[#allocation120_spill] sm:$0xff] }
 0x227   : > { %v2456_v42 = vpop.f32.mrf.mxu0  ;;  %v2519_v0 = vpop.f32.mrf.mxu1  ;;  %v1714_v21 = vadd.f32 %v20720_v39, %v20719_v45 }
 0x228   : > { %v15351_v16 = vadd.f32 %v2456_v42, %v1826_v14  ;;  %v15353_v2 = vadd.f32 %v2519_v0, %v1889_v22  ;;  %v1832_v14 = vadd.f32 %v20728_v56, %v20727_v11  ;;  %v20729_v22 = vld [vmem:[#allocation69_spill] sm:$0xff]  ;;  %v20730_v42 = vld [vmem:[#allocation139_spill] sm:$0xff]  ;;  %v2612_v45 = vadd.f32 %v15284_v20, %v1773_v53 }
 0x229   : > { %v2458_v49 = vpop.f32.mrf.mxu0  ;;  %v2521_v28 = vpop.f32.mrf.mxu1  ;;  %v1895_v0 = vadd.f32 %v20730_v42, %v20729_v22  ;;  %v2626_v39 = vadd.f32 %v2344_v55, %v1714_v21  ;;  %v20738_v55 = vld [vmem:[#allocation49_spill] sm:$0xff]  ;;  %v20739_v53 = vld [vmem:[#allocation119_spill] sm:$0xff]  ;;  %v20741_v22 = vld [vmem:[#allocation122_spill] sm:$0xff] }
 0x22a   : > { %20716 = vst [vmem:[#allocation86_spill] sm:$0xff] %v15353_v2  ;;  %v15363_v44 = vadd.f32 %v2458_v49, %v1828_v63  ;;  %v15365_v59 = vadd.f32 %v2521_v28, %v1891_v29  ;;  %2680 = vrot.lane.b32.xlu1 %v2565_v32, %s14233_s25  ;;  %2879 = vrot.lane.b32.xlu0 %v2610_v35, %s14234_s28  ;;  %v20732_v63 = vld [vmem:[#allocation48_spill] sm:$0xff]  ;;  %v20733_v29 = vld [vmem:[#allocation118_spill] sm:$0xff]  ;;  %v20735_v28 = vld [vmem:[#allocation121_spill] sm:$0xff] }
 0x22b   : > { %v2460_v17 = vpop.f32.mrf.mxu0  ;;  %v2523_v41 = vpop.f32.mrf.mxu1  ;;  %v1712_v32 = vadd.f32 %v20733_v29, %v20732_v63  ;;  %v1777_v18 = vadd.f32 %v20735_v28, %v20734_v37  ;;  %v1775_v21 = vadd.f32 %v20739_v53, %v20738_v55  ;;  %v20749_v37 = vld [vmem:[#allocation128_spill] sm:$0xff]  ;;  %v20753_v53 = vld [vmem:[#allocation129_spill] sm:$0xff] }
 0x22c   : > { %20725 = vst [vmem:[#allocation17_spill] sm:$0xff] %v15363_v44  ;;  %20726 = vst [vmem:[#allocation87_spill] sm:$0xff] %v15365_v59  ;;  %v15374_v47 = vadd.f32 %v2460_v17, %v1830_v9  ;;  %v15376_v49 = vadd.f32 %v2523_v41, %v1893_v62  ;;  %v20740_v9 = vld [vmem:[#allocation52_spill] sm:$0xff]  ;;  %v20742_v17 = vld [vmem:[#allocation53_spill] sm:$0xff] }
 0x22d   : > { %v2462_v23 = vpop.f32.mrf.mxu0  ;;  %v2525_v35 = vpop.f32.mrf.mxu1  ;;  %v2611_v20 = vadd.f32 %v15287_v25, %v1712_v32  ;;  %v2628_v62 = vadd.f32 %v15297_v4, %v1777_v18  ;;  %v1716_v42 = vadd.f32 %v20741_v22, %v20740_v9  ;;  %v20743_v41 = vld [vmem:[#allocation123_spill] sm:$0xff]  ;;  %v20744_v25 = vld [vmem:[#allocation54_spill] sm:$0xff]  ;;  %v2698_v22 = vlaneseq }
 0x22e   : > { %20731 = vst [vmem:[#allocation8_spill] sm:$0xff] %v15376_v49  ;;  %v15382_v11 = vadd.f32 %v2462_v23, %v1832_v14  ;;  %v15384_v56 = vadd.f32 %v2525_v35, %v1895_v0  ;;  %2881 = vrot.lane.b32.xlu1 %v2626_v39, %s14234_s28  ;;  %2887 = vrot.lane.b32.xlu0 %v2612_v45, %s14234_s28  ;;  %v20745_v39 = vld [vmem:[#allocation124_spill] sm:$0xff]  ;;  %v20746_v32 = vld [vmem:[#allocation55_spill] sm:$0xff]  ;;  %v20747_v23 = vld [vmem:[#allocation125_spill] sm:$0xff] }
 0x22f   : > { %v2613_v14 = vadd.f32 %v15289_v36, %v1775_v21  ;;  %v2627_v0 = vadd.f32 %v15300_v58, %v1716_v42  ;;  %v1779_v45 = vadd.f32 %v20743_v41, %v20742_v17  ;;  %v1816_v4 = vadd.f32 %v20745_v39, %v20744_v25  ;;  %v20748_v36 = vld [vmem:[#allocation58_spill] sm:$0xff]  ;;  %v2466_v42 = vpop.f32.mrf.mxu0 }
 0x230   : > { %20736 = vst [vmem:[#allocation78_spill] sm:$0xff] %v15382_v11  ;;  %20737 = vst [vmem:[#allocation11_spill] sm:$0xff] %v15384_v56  ;;  %v1879_v35 = vadd.f32 %v20747_v23, %v20746_v32  ;;  %v1820_v58 = vadd.f32 %v20749_v37, %v20748_v36  ;;  %v20757_v17 = vld [vmem:[#allocation130_spill] sm:$0xff]  ;;  %v15430_v39 = vshrl.u32 %v2698_v22, 7  ;;  %v20761_v23 = vld [vmem:[#allocation140_spill] sm:$0xff] }
 0x231   : > { %v2629_v63 = vadd.f32 %v15302_v15, %v1779_v45  ;;  %v2550_v29 = vadd.f32 %v15310_v57, %v1816_v4  ;;  %v20752_v15 = vld [vmem:[#allocation59_spill] sm:$0xff]  ;;  %v20758_v4 = vld [vmem:[#allocation61_spill] sm:$0xff]  ;;  %v20760_v32 = vld [vmem:[#allocation70_spill] sm:$0xff] }
 0x232   : > { %2889 = vrot.lane.b32.xlu1 %v2628_v62, %s14234_s28  ;;  %2883 = vrot.lane.b32.xlu0 %v2611_v20, %s14234_s28  ;;  %v2552_v28 = vadd.f32 %v15312_v10, %v1879_v35  ;;  %v2566_v18 = vadd.f32 %v15326_v34, %v1820_v58  ;;  %v20750_v20 = vld [vmem:[#allocation56_spill] sm:$0xff]  ;;  %v20751_v62 = vld [vmem:[#allocation126_spill] sm:$0xff]  ;;  %v1883_v57 = vadd.f32 %v20753_v53, %v20752_v15  ;;  %v20755_v10 = vld [vmem:[#allocation127_spill] sm:$0xff] }
 0x233   : > { %v1818_v55 = vadd.f32 %v20751_v62, %v20750_v20  ;;  %v20756_v34 = vld [vmem:[#allocation60_spill] sm:$0xff]  ;;  %v1836_v35 = vadd.f32 %v20761_v23, %v20760_v32  ;;  %v20763_v20 = vld [vmem:[#allocation71_spill] sm:$0xff]  ;;  %v20764_v62 = vld [vmem:[#allocation141_spill] sm:$0xff] }
 0x234   : > { %v2568_v9 = vadd.f32 %v15328_v8, %v1883_v57  ;;  %v1822_v41 = vadd.f32 %v20757_v17, %v20756_v34  ;;  %v2468_v8 = vpop.f32.mrf.mxu0  ;;  %v20765_v15 = vld [vmem:[#allocation74_spill] sm:$0xff]  ;;  %v20766_v53 = vld [vmem:[#allocation144_spill] sm:$0xff] }
 0x235   : > { %v2551_v21 = vadd.f32 %v15316_v24, %v1818_v55  ;;  %v2529_v24 = vpop.f32.mrf.mxu1  ;;  %v2614_v37 = vadd.f32 %v2466_v42, %v1836_v35  ;;  %v1899_v55 = vadd.f32 %v20764_v62, %v20763_v20  ;;  %v1840_v57 = vadd.f32 %v20766_v53, %v20765_v15  ;;  %v20769_v34 = vld [vmem:[#allocation142_spill] sm:$0xff]  ;;  %v20776_v15 = vld [vmem:[#allocation76_spill] sm:$0xff] }
 0x236   : > { %2885 = vrot.lane.b32.xlu1 %v2627_v0, %s14234_s28  ;;  %2891 = vrot.lane.b32.xlu0 %v2613_v14, %s14234_s28  ;;  %v20754_v14 = vld [vmem:[#allocation57_spill] sm:$0xff]  ;;  %v2567_v25 = vadd.f32 %v15334_v54, %v1822_v41  ;;  %v15442_v54 = vsub.s32 1, %v15430_v39  ;;  %v20770_v41 = vld [vmem:[#allocation75_spill] sm:$0xff]  ;;  %v20777_v53 = vld [vmem:[#allocation146_spill] sm:$0xff] }
 0x237   : > { %v1881_v0 = vadd.f32 %v20755_v10, %v20754_v14  ;;  %v2531_v58 = vpop.f32.mrf.mxu1  ;;  %v15466_v10 = vsub.s32 3, %v15430_v39 }
 0x239   : > { %v2553_v45 = vadd.f32 %v15318_v27, %v1881_v0  ;;  %v15439_v27 = vand.u32 127, %v2698_v22  ;;  %v2533_v14 = vpop.f32.mrf.mxu1  ;;  %v20768_v0 = vld [vmem:[#allocation72_spill] sm:$0xff] }
 0x23a   : > { %2893 = vrot.lane.b32.xlu1 %v2629_v63, %s14234_s28  ;;  %2682 = vrot.lane.b32.xlu0 %v2550_v29, %s14233_s25  ;;  %v20759_v63 = vld [vmem:[#allocation131_spill] sm:$0xff]  ;;  %v1838_v17 = vadd.f32 %v20769_v34, %v20768_v0 }
 0x23b   : > { %v1885_v29 = vadd.f32 %v20759_v63, %v20758_v4  ;;  %20762 = vst [vmem:[#allocation81_spill] sm:$0xff] %v15439_v27  ;;  %vm20440_vm1 = vcmp.lt.s32.totalorder %v15439_v27, 1  ;;  %vm20439_vm2 = vcmp.lt.s32.totalorder %v15439_v27, 127 }
 0x23d   : > { %v2569_v36 = vadd.f32 %v15336_v31, %v1885_v29  ;;  %v15456_v31 = vsub.s32 2, %v15430_v39  ;;  %v2615_v29 = vadd.f32 %v2468_v8, %v1838_v17 }
 0x23e   : > { %2684 = vrot.lane.b32.xlu1 %v2566_v18, %s14233_s25  ;;  %2690 = vrot.lane.b32.xlu0 %v2552_v28, %s14233_s25  ;;  %v2470_v28 = vpop.f32.mrf.mxu0  ;;  %v15447_v18 = vld [vmem:[%s20335_s1] ss:$2 sm:$0xff] }
 0x23f   : > { %v15463_v42 = vrot.slane %v15447_v18, %v15442_v54  ;;  %v15476_v4 = vrot.slane %v15447_v18, %v15456_v31 }
 0x240   : > { %v2472_v20 = vpop.f32.mrf.mxu0 }
 0x241   : > { %20767 = vst [vmem:[#allocation18_spill] sm:$0xff] %v15463_v42  ;;  %20772 = vst [vmem:[#allocation88_spill] sm:$0xff] %v15476_v4 }
 0x242   : > { %2692 = vrot.lane.b32.xlu1 %v2568_v9, %s14233_s25  ;;  %2686 = vrot.lane.b32.xlu0 %v2551_v21, %s14233_s25  ;;  %v2616_v21 = vadd.f32 %v2529_v24, %v1899_v55  ;;  %v2630_v9 = vadd.f32 %v2470_v28, %v1840_v57  ;;  %v15488_v55 = vrot.slane %v15447_v18, %v15466_v10 }
 0x243   : > { %v1842_v57 = vadd.f32 %v20777_v53, %v20776_v15  ;;  %v3123_v15 = vld [vmem:[%s20341_s7 + $0x8] sm:$0xff] }
 0x244   : > { %20775 = vst [vmem:[#allocation19_spill] sm:$0xff] %v15488_v55 }
 0x245   : > { %v2631_v0 = vadd.f32 %v2472_v20, %v1842_v57 }
 0x246   : > { %2688 = vrot.lane.b32.xlu1 %v2567_v25, %s14233_s25  ;;  %2694 = vrot.lane.b32.xlu0 %v2553_v45, %s14233_s25  ;;  %v20771_v45 = vld [vmem:[#allocation145_spill] sm:$0xff] }
 0x247   : > { %v1903_v25 = vadd.f32 %v20771_v45, %v20770_v41  ;;  %v2535_v41 = vpop.f32.mrf.mxu1 }
 0x249   : > { %v2632_v32 = vadd.f32 %v2533_v14, %v1903_v25  ;;  %v20778_v25 = vld [vmem:[#allocation77_spill] sm:$0xff] }
 0x24a   : > { %2696 = vrot.lane.b32.xlu1 %v2569_v36, %s14233_s25  ;;  %2895 = vrot.lane.b32.xlu0 %v2614_v37, %s14234_s28  ;;  %v20773_v36 = vld [vmem:[#allocation73_spill] sm:$0xff]  ;;  %v20774_v37 = vld [vmem:[#allocation143_spill] sm:$0xff] }
 0x24b   : > { %v1901_v28 = vadd.f32 %v20774_v37, %v20773_v36 }
 0x24c   : > { %v15458_v22 = vpop.permute.xlu0 %2634 }
 0x24d   : > { %v2617_v14 = vadd.f32 %v2531_v58, %v1901_v28 }
 0x24e   : > { %2897 = vrot.lane.b32.xlu1 %v2630_v9, %s14234_s28  ;;  %v2639_v24 = vpop.permute.xlu1 %2638  ;;  %2903 = vrot.lane.b32.xlu0 %v2616_v21, %s14234_s28 }
 0x24f   : > { %v2729_v63 = vsel %vm20440_vm1, %v15458_v22, %v2639_v24 }
 0x250   : > { %v2816_v23 = vmul.f32 %v15463_v42, %v2729_v63  ;;  %v2643_v35 = vpop.permute.xlu0 %2642 }
 0x251   : > { %v2727_v62 = vsel %vm20440_vm1, %v2639_v24, %v2643_v35  ;;  %v20779_v24 = vld [vmem:[#allocation147_spill] sm:$0xff] }
 0x252   : > { %v3059_v8 = vadd.f32 %v2816_v23, %v15108_v46  ;;  %v2817_v21 = vmul.f32 %v15476_v4, %v2727_v62  ;;  %2905 = vrot.lane.b32.xlu1 %v2632_v32, %s14234_s28  ;;  %v2645_v9 = vpop.permute.xlu1 %2644  ;;  %2899 = vrot.lane.b32.xlu0 %v2615_v29, %s14234_s28  ;;  %v1905_v63 = vadd.f32 %v20779_v24, %v20778_v25 }
 0x254   : > { %v3060_v34 = vadd.f32 %v2817_v21, %v15099_v43  ;;  %v2647_v17 = vpop.permute.xlu0 %2646  ;;  %v3122_v43 = vld [vmem:[%s20341_s7] sm:$0xff]  ;;  %v2633_v29 = vadd.f32 %v2535_v41, %v1905_v63  ;;  %v15556_v63 = vsub.s32 4, %v15430_v39 }
 0x255   : > { %v2725_v45 = vsel %vm20440_vm1, %v2643_v35, %v2647_v17 }
 0x256   : > { %v2818_v46 = vmul.f32 %v15488_v55, %v2725_v45  ;;  %2901 = vrot.lane.b32.xlu1 %v2631_v0, %s14234_s28  ;;  %v2641_v32 = vpop.permute.xlu1 %2640  ;;  %2907 = vrot.lane.b32.xlu0 %v2617_v14, %s14234_s28  ;;  %v15536_v14 = vld [vmem:[%s20335_s1 + $0x1] ss:$2 sm:$0xff] }
 0x257   : > { %v2728_v58 = vsel %vm20440_vm1, %v2641_v32, %v2645_v9  ;;  %v15553_v24 = vrot.slane %v15536_v14, %v15456_v31 }
 0x258   : > { %v15510_v23 = vadd.f32 %v2818_v46, %v15110_v7  ;;  %v2833_v35 = vmul.f32 %v15476_v4, %v2728_v58  ;;  %v15513_v36 = vpop.permute.xlu0 %2636 }
 0x259   : > { %v2730_v37 = vsel %vm20440_vm1, %v15513_v36, %v2641_v32  ;;  %20783 = vst [vmem:[#allocation21_spill] sm:$0xff] %v15553_v24 }
 0x25a   : > { %v3076_v28 = vadd.f32 %v2833_v35, %v15121_v3  ;;  %v2832_v20 = vmul.f32 %v15463_v42, %v2730_v37  ;;  %2909 = vrot.lane.b32.xlu1 %v2633_v29, %s14234_s28  ;;  %v2649_v62 = vpop.permute.xlu1 %2648  ;;  %3126 = vperm.xlu0 %13594, %v3122_v43  }
 0x25b   : > { %v2726_v7 = vsel %vm20440_vm1, %v2645_v9, %v2649_v62 }
 0x25c   : > { %v3075_v53 = vadd.f32 %v2832_v20, %v15126_v30  ;;  %v2834_v57 = vmul.f32 %v15488_v55, %v2726_v7  ;;  %v15528_v21 = vpop.permute.xlu0 %2847  ;;  %v15543_v30 = vrot.slane %v15536_v14, %v15442_v54  ;;  %v15571_v20 = vrot.slane %v15447_v18, %v15556_v63 }
 0x25d   : > { %20780 = vst [vmem:[#allocation89_spill] sm:$0xff] %v15528_v21 }
 0x25e   : > { %v15531_v3 = vadd.f32 %v2834_v57, %v15128_v50  ;;  %3131 = vperm.xlu1 %13595, %v3123_v15   ;;  %20782 = vst [vmem:[#allocation90_spill] sm:$0xff] %v15543_v30  ;;  %20785 = vst [vmem:[#allocation9_spill] sm:$0xff] %v15571_v20 }
 0x260   : > { %v15538_v9 = vpop.permute.xlu1 %2849  ;;  %v2856_v0 = vpop.permute.xlu0 %2855 }
 0x261   : > { %20781 = vst [vmem:[#allocation20_spill] sm:$0xff] %v15538_v9 }
 0x264   : > { %v2858_v41 = vpop.permute.xlu1 %2857  ;;  %v15545_v45 = vpop.permute.xlu0 %2851 }
 0x265   : > { %v2938_v50 = vsel %vm20439_vm2, %v15545_v45, %v2856_v0 }
 0x266   : > { %v3027_v25 = vmul.f32 %v15543_v30, %v2938_v50 }
 0x268   : > { %v15558_v46 = vadd.f32 %v3059_v8, %v3027_v25  ;;  %v15560_v32 = vpop.permute.xlu1 %2853  ;;  %v2860_v58 = vpop.permute.xlu0 %2859 }
 0x269   : > { %v2939_v43 = vsel %vm20439_vm2, %v15560_v32, %v2858_v41  ;;  %v2936_v29 = vsel %vm20439_vm2, %v2856_v0, %v2860_v58 }
 0x26a   : > { %20784 = vst [vmem:[#allocation91_spill] sm:$0xff] %v15558_v46  ;;  %v3043_v35 = vmul.f32 %v15543_v30, %v2939_v43  ;;  %v3028_v37 = vmul.f32 %v15553_v24, %v2936_v29  ;;  %v15584_v29 = vsub.s32 5, %v15430_v39 }
 0x26c   : > { %v15573_v8 = vadd.f32 %v3075_v53, %v3043_v35  ;;  %v15575_v7 = vadd.f32 %v3060_v34, %v3028_v37  ;;  %v2862_v15 = vpop.permute.xlu1 %2861  ;;  %v2651_v57 = vpop.permute.xlu0 %2650  ;;  %v15587_v53 = vsub.s32 6, %v15430_v39 }
 0x26d   : > { %v2937_v50 = vsel %vm20439_vm2, %v2858_v41, %v2862_v15  ;;  %v2723_v0 = vsel %vm20440_vm1, %v2647_v17, %v2651_v57 }
 0x26e   : > { %20786 = vst [vmem:[#allocation79_spill] sm:$0xff] %v15573_v8  ;;  %20787 = vst [vmem:[#allocation12_spill] sm:$0xff] %v15575_v7  ;;  %v3044_v25 = vmul.f32 %v15553_v24, %v2937_v50  ;;  %v2819_v43 = vmul.f32 %v15571_v20, %v2723_v0  ;;  %v15597_v50 = vrot.slane %v15447_v18, %v15584_v29 }
 0x26f   : > { %v15601_v0 = vrot.slane %v15447_v18, %v15587_v53 }
 0x270   : > { %v15589_v34 = vadd.f32 %v3076_v28, %v3044_v25  ;;  %v3062_v35 = vadd.f32 %v2819_v43, %v15165_v5  ;;  %v2653_v37 = vpop.permute.xlu1 %2652  ;;  %v2659_v30 = vpop.permute.xlu0 %2658  ;;  %20789 = vst [vmem:[#allocation10_spill] sm:$0xff] %v15597_v50  ;;  %v15604_v28 = vsub.s32 7, %v15430_v39 }
 0x271   : > { %v2724_v41 = vsel %vm20440_vm1, %v2649_v62, %v2653_v37  ;;  %20790 = vst [vmem:[#allocation80_spill] sm:$0xff] %v15601_v0 }
 0x272   : > { %20788 = vst [vmem:[#allocation82_spill] sm:$0xff] %v15589_v34  ;;  %v2835_v17 = vmul.f32 %v15571_v20, %v2724_v41  ;;  %v15615_v55 = vrot.slane %v15447_v18, %v15604_v28 }
 0x274   : > { %v3078_v5 = vadd.f32 %v2835_v17, %v15187_v61  ;;  %v2661_v25 = vpop.permute.xlu1 %2660  ;;  %v2655_v43 = vpop.permute.xlu0 %2654  ;;  %20791 = vst [vmem:[#allocation13_spill] sm:$0xff] %v15615_v55 }
 0x275   : > { %v2719_v62 = vsel %vm20440_vm1, %v2655_v43, %v2659_v30  ;;  %v2721_v41 = vsel %vm20440_vm1, %v2651_v57, %v2655_v43 }
 0x276   : > { %v2820_v20 = vmul.f32 %v15597_v50, %v2721_v41  ;;  %v2821_v24 = vmul.f32 %v15601_v0, %v2719_v62 }
 0x278   : > { %v3063_v4 = vadd.f32 %v2820_v20, %v15177_v40  ;;  %v3064_v61 = vadd.f32 %v2821_v24, %v15167_v6  ;;  %v2657_v17 = vpop.permute.xlu1 %2656  ;;  %v2663_v42 = vpop.permute.xlu0 %2662  ;;  %v15630_v6 = vrot.slane %v15536_v14, %v15466_v10 }
 0x279   : > { %v2720_v34 = vsel %vm20440_vm1, %v2657_v17, %v2661_v25  ;;  %v2722_v57 = vsel %vm20440_vm1, %v2653_v37, %v2657_v17  ;;  %v2717_v43 = vsel %vm20440_vm1, %v2659_v30, %v2663_v42 }
 0x27a   : > { %v2836_v62 = vmul.f32 %v15597_v50, %v2722_v57  ;;  %v2837_v41 = vmul.f32 %v15601_v0, %v2720_v34  ;;  %v2822_v8 = vmul.f32 %v15615_v55, %v2717_v43  ;;  %20792 = vst [vmem:[#allocation83_spill] sm:$0xff] %v15630_v6 }
 0x27c   : > { %v3079_v40 = vadd.f32 %v2836_v62, %v15195_v19  ;;  %v3080_v24 = vadd.f32 %v2837_v41, %v15189_v1  ;;  %v3065_v20 = vadd.f32 %v2822_v8, %v15179_v52  ;;  %v2665_v37 = vpop.permute.xlu1 %2664  ;;  %v2864_v17 = vpop.permute.xlu0 %2863 }
 0x27d   : > { %v2718_v30 = vsel %vm20440_vm1, %v2661_v25, %v2665_v37  ;;  %v2934_v34 = vsel %vm20439_vm2, %v2860_v58, %v2864_v17  ;;  %v15650_v25 = vrot.slane %v15536_v14, %v15556_v63  ;;  %v15654_v58 = vrot.slane %v15536_v14, %v15584_v29 }
 0x27e   : > { %v2838_v57 = vmul.f32 %v15615_v55, %v2718_v30  ;;  %v3029_v43 = vmul.f32 %v15630_v6, %v2934_v34 }
 0x27f   : > { %20794 = vst [vmem:[#allocation84_spill] sm:$0xff] %v15650_v25  ;;  %20795 = vst [vmem:[#allocation22_spill] sm:$0xff] %v15654_v58 }
 0x280   : > { %v3081_v0 = vadd.f32 %v2838_v57, %v15197_v60  ;;  %v15643_v19 = vadd.f32 %v15510_v23, %v3029_v43  ;;  %v2866_v1 = vpop.permute.xlu1 %2865  ;;  %v2872_v62 = vpop.permute.xlu0 %2871  ;;  %v15667_v43 = vrot.slane %v15536_v14, %v15587_v53 }
 0x281   : > { %v2935_v52 = vsel %vm20439_vm2, %v2862_v15, %v2866_v1 }
 0x282   : > { %20793 = vst [vmem:[#allocation14_spill] sm:$0xff] %v15643_v19  ;;  %v3045_v8 = vmul.f32 %v15630_v6, %v2935_v52  ;;  %20797 = vst [vmem:[#allocation23_spill] sm:$0xff] %v15667_v43  ;;  %v15675_v52 = vsub.s32 0, %v15430_v39 }
 0x284   : > { %v15657_v60 = vadd.f32 %v15531_v3, %v3045_v8  ;;  %v2874_v23 = vpop.permute.xlu1 %2873  ;;  %v2868_v41 = vpop.permute.xlu0 %2867  ;;  %v15672_v3 = vld [vmem:[%s20335_s1 + $0x10] ss:$2 sm:$0xff] }
 0x285   : > { %v2930_v30 = vsel %vm20439_vm2, %v2868_v41, %v2872_v62  ;;  %v2932_v15 = vsel %vm20439_vm2, %v2864_v17, %v2868_v41  ;;  %v15804_v59 = vrot.slane %v15672_v3, %v15556_v63  ;;  %v15808_v49 = vrot.slane %v15672_v3, %v15584_v29 }
 0x286   : > { %20796 = vst [vmem:[#allocation92_spill] sm:$0xff] %v15657_v60  ;;  %v3030_v34 = vmul.f32 %v15650_v25, %v2932_v15  ;;  %v3031_v57 = vmul.f32 %v15654_v58, %v2930_v30 }
 0x287   : > { %20816 = vst [vmem:[#allocation98_spill] sm:$0xff] %v15804_v59  ;;  %20817 = vst [vmem:[#allocation42_spill] sm:$0xff] %v15808_v49 }
 0x288   : > { %v15677_v8 = vadd.f32 %v3062_v35, %v3030_v34  ;;  %v15679_v6 = vadd.f32 %v3063_v4, %v3031_v57  ;;  %v2870_v17 = vpop.permute.xlu1 %2869  ;;  %v2876_v41 = vpop.permute.xlu0 %2875  ;;  %v15692_v4 = vrot.slane %v15672_v3, %v15675_v52 }
 0x289   : > { %v2931_v30 = vsel %vm20439_vm2, %v2870_v17, %v2874_v23  ;;  %v2933_v15 = vsel %vm20439_vm2, %v2866_v1, %v2870_v17  ;;  %v2928_v55 = vsel %vm20439_vm2, %v2872_v62, %v2876_v41 }
 0x28a   : > { %20798 = vst [vmem:[#allocation93_spill] sm:$0xff] %v15677_v8  ;;  %20799 = vst [vmem:[#allocation26_spill] sm:$0xff] %v15679_v6  ;;  %v3046_v50 = vmul.f32 %v15650_v25, %v2933_v15  ;;  %v3047_v39 = vmul.f32 %v15654_v58, %v2931_v30  ;;  %v3032_v35 = vmul.f32 %v15667_v43, %v2928_v55 }
 0x28b   : > { %20800 = vst [vmem:[#allocation96_spill] sm:$0xff] %v15692_v4  ;;  %v15782_v8 = vrot.slane %v15672_v3, %v15456_v31 }
 0x28c   : > { %v15694_v34 = vadd.f32 %v3078_v5, %v3046_v50  ;;  %v15696_v57 = vadd.f32 %v3079_v40, %v3047_v39  ;;  %v15698_v60 = vadd.f32 %v3064_v61, %v3032_v35  ;;  %v2878_v1 = vpop.permute.xlu1 %2877  ;;  %v2667_v17 = vpop.permute.xlu0 %2666 }
 0x28d   : > { %v2929_v62 = vsel %vm20439_vm2, %v2874_v23, %v2878_v1  ;;  %v2715_v30 = vsel %vm20440_vm1, %v2663_v42, %v2667_v17  ;;  %20811 = vst [vmem:[#allocation41_spill] sm:$0xff] %v15782_v8 }
 0x28e   : > { %20801 = vst [vmem:[#allocation24_spill] sm:$0xff] %v15694_v34  ;;  %20802 = vst [vmem:[#allocation94_spill] sm:$0xff] %v15696_v57  ;;  %v3048_v55 = vmul.f32 %v15667_v43, %v2929_v62  ;;  %v2823_v15 = vmul.f32 %v15692_v4, %v2715_v30 }
 0x28f   : > { %20803 = vst [vmem:[#allocation27_spill] sm:$0xff] %v15698_v60 }
 0x290   : > { %v15706_v58 = vadd.f32 %v3080_v24, %v3048_v55  ;;  %v15709_v50 = vadd.f32 %v2823_v15, %v15248_v26  ;;  %v2669_v5 = vpop.permute.xlu1 %2668  ;;  %v2675_v61 = vpop.permute.xlu0 %2674  ;;  %v15721_v24 = vrot.slane %v15536_v14, %v15604_v28 }
 0x291   : > { %v2716_v40 = vsel %vm20440_vm1, %v2665_v37, %v2669_v5 }
 0x292   : > { %20804 = vst [vmem:[#allocation97_spill] sm:$0xff] %v15706_v58  ;;  %v2839_v39 = vmul.f32 %v15692_v4, %v2716_v40  ;;  %20805 = vst [vmem:[#allocation38_spill] sm:$0xff] %v15721_v24 }
 0x294   : > { %v15715_v23 = vadd.f32 %v2839_v39, %v15270_v38  ;;  %v2677_v42 = vpop.permute.xlu1 %2676  ;;  %v2671_v35 = vpop.permute.xlu0 %2670 }
 0x298   : > { %v2673_v62 = vpop.permute.xlu1 %2672  ;;  %v15717_v43 = vpop.permute.xlu0 %2678 }
 0x29c   : > { %v15723_v26 = vpop.permute.xlu1 %2680  ;;  %v15725_v30 = vpop.permute.xlu0 %2879 }
 0x29d   : > { %v2926_v37 = vsel %vm20439_vm2, %v2876_v41, %v15725_v30 }
 0x29e   : > { %v3033_v38 = vmul.f32 %v15721_v24, %v2926_v37 }
 0x2a0   : > { %v15731_v55 = vadd.f32 %v3065_v20, %v3033_v38  ;;  %v15733_v15 = vpop.permute.xlu1 %2881  ;;  %v15735_v40 = vpop.permute.xlu0 %2887 }
 0x2a1   : > { %v2927_v39 = vsel %vm20439_vm2, %v2878_v1, %v15733_v15 }
 0x2a2   : > { %20806 = vst [vmem:[#allocation108_spill] sm:$0xff] %v15731_v55  ;;  %v3049_v4 = vmul.f32 %v15721_v24, %v2927_v39  ;;  %v15766_v39 = vrot.slane %v15536_v14, %v15675_v52  ;;  %v15770_v24 = vrot.slane %v15672_v3, %v15442_v54  ;;  %v15786_v14 = vrot.slane %v15672_v3, %v15466_v10 }
 0x2a4   : > { %v15741_v25 = vadd.f32 %v3081_v0, %v3049_v4  ;;  %v2890_v58 = vpop.permute.xlu1 %2889  ;;  %v2884_v57 = vpop.permute.xlu0 %2883  ;;  %v15759_v0 = vrot.slane %v15447_v18, %v15675_v52  ;;  %v12528_v4 = vld [vmem:[%s20335_s1 + $0x11] ss:$2 sm:$0xff]  ;;  %20809 = vst [vmem:[#allocation40_spill] sm:$0xff] %v15766_v39  ;;  %20810 = vst [vmem:[#allocation110_spill] sm:$0xff] %v15770_v24  ;;  %v2940_v18 = vsel %vm20439_vm2, %v15528_v21, %v15545_v45 }
 0x2a5   : > { %20812 = vst [vmem:[#allocation111_spill] sm:$0xff] %v15786_v14  ;;  %v15793_v7 = vrot.slane %v12528_v4, %v15675_v52  ;;  %v15796_v46 = vrot.slane %v12528_v4, %v15442_v54  ;;  %v15799_v45 = vrot.slane %v12528_v4, %v15456_v31  ;;  %v15816_v54 = vrot.slane %v15672_v3, %v15604_v28 }
 0x2a6   : > { %20807 = vst [vmem:[#allocation39_spill] sm:$0xff] %v15741_v25  ;;  %20808 = vst [vmem:[#allocation109_spill] sm:$0xff] %v15759_v0  ;;  %v3026_v31 = vmul.f32 %v15766_v39, %v2940_v18  ;;  %v2711_v52 = vsel %vm20440_vm1, %v2671_v35, %v2675_v61  ;;  %v2712_v18 = vsel %vm20440_vm1, %v2673_v62, %v2677_v42 }
 0x2a7   : > { %20813 = vst [vmem:[#allocation25_spill] sm:$0xff] %v15793_v7  ;;  %20814 = vst [vmem:[#allocation95_spill] sm:$0xff] %v15796_v46  ;;  %v2825_v21 = vmul.f32 %v15782_v8, %v2711_v52  ;;  %v2922_v52 = vsel %vm20439_vm2, %v2884_v57, %v15735_v40 }
 0x2a8   : > { %v2886_v34 = vpop.permute.xlu1 %2885  ;;  %v15743_v41 = vpop.permute.xlu0 %2891  ;;  %20815 = vst [vmem:[#allocation28_spill] sm:$0xff] %v15799_v45  ;;  %20818 = vst [vmem:[#allocation112_spill] sm:$0xff] %v15816_v54  ;;  %v2714_v54 = vsel %vm20440_vm1, %v2669_v5, %v2673_v62  ;;  %v15851_v5 = vrot.slane %v12528_v4, %v15466_v10  ;;  %v15854_v62 = vrot.slane %v12528_v4, %v15556_v63 }
 0x2aa   : > { %20819 = vst [vmem:[#allocation43_spill] sm:$0xff] %v15851_v5  ;;  %20820 = vst [vmem:[#allocation113_spill] sm:$0xff] %v15854_v62 }
 0x2ac   : > { %v15745_v37 = vpop.permute.xlu1 %2893  ;;  %v15747_v20 = vpop.permute.xlu0 %2682 }
 0x2b0   : > { %v15749_v38 = vpop.permute.xlu1 %2684  ;;  %v15751_v55 = vpop.permute.xlu0 %2690 }
 0x2b4   : > { %v15753_v60 = vpop.permute.xlu1 %2692  ;;  %v15755_v1 = vpop.permute.xlu0 %2686 }
 0x2b8   : > { %v15772_v25 = vpop.permute.xlu1 %2688  ;;  %v15774_v6 = vpop.permute.xlu0 %2694 }
 0x2b9   : > { %v2731_v19 = vsel %vm20440_vm1, %v15774_v6, %v15458_v22  ;;  %v15812_v22 = vrot.slane %v15672_v3, %v15587_v53  ;;  %v2713_v3 = vsel %vm20440_vm1, %v2667_v17, %v2671_v35 }
 0x2ba   : > { %v2815_v56 = vmul.f32 %v15759_v0, %v2731_v19  ;;  %v2941_v19 = vsel %vm20439_vm2, %v15538_v9, %v15560_v32 }
 0x2bb   : > { %v3042_v9 = vmul.f32 %v15766_v39, %v2941_v19  ;;  %v2841_v19 = vmul.f32 %v15782_v8, %v2712_v18  ;;  %v2920_v18 = vsel %vm20439_vm2, %v15735_v40, %v15743_v41  ;;  %v3005_v40 = vrot.slane %v12528_v4, %v15587_v53 }
 0x2bc   : > { %v3058_v11 = vadd.f32 %v2815_v56, %v15097_v12  ;;  %v15826_v2 = vpop.permute.xlu1 %2696  ;;  %v15828_v44 = vpop.permute.xlu0 %2895  ;;  %v2709_v12 = vsel %vm20440_vm1, %v2675_v61, %v15717_v43  ;;  %v2710_v56 = vsel %vm20440_vm1, %v2677_v42, %v15723_v26  ;;  %v2824_v61 = vmul.f32 %v15770_v24, %v2713_v3 }
 0x2bd   : > { %v2732_v32 = vsel %vm20440_vm1, %v15826_v2, %v15513_v36  ;;  %v15857_v36 = vrot.slane %v12528_v4, %v15584_v29  ;;  %v2826_v10 = vmul.f32 %v15786_v14, %v2709_v12  ;;  %v2842_v63 = vmul.f32 %v15786_v14, %v2710_v56 }
 0x2be   : > { %v15846_v17 = vadd.f32 %v3058_v11, %v3026_v31  ;;  %v2831_v35 = vmul.f32 %v15759_v0, %v2732_v32  ;;  %v2840_v11 = vmul.f32 %v15770_v24, %v2714_v54  ;;  %v2924_v29 = vsel %vm20439_vm2, %v15725_v30, %v2884_v57 }
 0x2bf   : > { %20821 = vst [vmem:[#allocation44_spill] sm:$0xff] %v15857_v36  ;;  %v2923_v54 = vsel %vm20439_vm2, %v2886_v34, %v2890_v58  ;;  %v2921_v30 = vsel %vm20439_vm2, %v2890_v58, %v15745_v37  ;;  %v2707_v57 = vsel %vm20440_vm1, %v15717_v43, %v15747_v20  ;;  %v3009_v56 = vrot.slane %v12528_v4, %v15604_v28  ;;  %v20822_v28 = vld [vmem:[#allocation85_spill] sm:$0xff] }
 0x2c0   : > { %v3074_v42 = vadd.f32 %v2831_v35, %v15119_v48  ;;  %v2898_v31 = vpop.permute.xlu1 %2897  ;;  %v2904_v32 = vpop.permute.xlu0 %2903  ;;  %v2925_v48 = vsel %vm20439_vm2, %v15733_v15, %v2886_v34  ;;  %v3067_v34 = vadd.f32 %v2824_v61, %v15260_v13  ;;  %v3034_v15 = vmul.f32 %v15793_v7, %v2924_v29 }
 0x2c1   : > { %v3068_v58 = vadd.f32 %v2825_v21, %v15250_v51  ;;  %v3035_v35 = vmul.f32 %v15796_v46, %v2922_v52  ;;  %v3050_v43 = vmul.f32 %v15793_v7, %v2925_v48  ;;  %v3052_v13 = vmul.f32 %v15799_v45, %v2921_v30  ;;  %v20823_v51 = vld [vmem:[#allocation15_spill] sm:$0xff]  ;;  %v20824_v52 = vld [vmem:[#allocation16_spill] sm:$0xff] }
 0x2c2   : > { %v15877_v3 = vadd.f32 %v3074_v42, %v3042_v9  ;;  %v2708_v9 = vsel %vm20440_vm1, %v15723_v26, %v15749_v38  ;;  %v3051_v42 = vmul.f32 %v15796_v46, %v2923_v54  ;;  %v3036_v26 = vmul.f32 %v15799_v45, %v2920_v18 }
 0x2c3   : > { %v2827_v61 = vmul.f32 %v15804_v59, %v2707_v57  ;;  %v2843_v29 = vmul.f32 %v15804_v59, %v2708_v9  ;;  %v3083_v53 = vadd.f32 %v2840_v11, %v15278_v33  ;;  %v3084_v4 = vadd.f32 %v2841_v19, %v20822_v28 }
 0x2c4   : > { %v2906_v12 = vpop.permute.xlu1 %2905  ;;  %v2900_v14 = vpop.permute.xlu0 %2899  ;;  %v3069_v21 = vadd.f32 %v2826_v10, %v20823_v51  ;;  %v3085_v8 = vadd.f32 %v2842_v63, %v20824_v52  ;;  %v15911_v48 = vadd.f32 %v15709_v50, %v3034_v15  ;;  %v2703_v54 = vsel %vm20440_vm1, %v15755_v1, %v15751_v55 }
 0x2c5   : > { %v2705_v18 = vsel %vm20440_vm1, %v15747_v20, %v15755_v1  ;;  %v2706_v33 = vsel %vm20440_vm1, %v15749_v38, %v15772_v25  ;;  %v15925_v19 = vadd.f32 %v3067_v34, %v3035_v35  ;;  %v15928_v50 = vadd.f32 %v15715_v23, %v3050_v43 }
 0x2c6   : > { %v15930_v10 = vadd.f32 %v3083_v53, %v3051_v42  ;;  %v2704_v63 = vsel %vm20440_vm1, %v15772_v25, %v15753_v60  ;;  %v3100_v30 = vadd.f32 %v3068_v58, %v3036_v26  ;;  %v15936_v20 = vadd.f32 %v3084_v4, %v3052_v13  ;;  %v20826_v42 = vld [vmem:[#allocation20_spill] sm:$0xff] }
 0x2c7   : > { %v3070_v1 = vadd.f32 %v2827_v61, %v15351_v16  ;;  %v3086_v38 = vadd.f32 %v2843_v29, %v15374_v47  ;;  %v2828_v57 = vmul.f32 %v15808_v49, %v2705_v18  ;;  %v2829_v9 = vmul.f32 %v15812_v22, %v2703_v54  ;;  %v20828_v54 = vld [vmem:[#allocation17_spill] sm:$0xff] }
 0x2c8   : > { %v2902_v11 = vpop.permute.xlu1 %2901  ;;  %v2844_v23 = vmul.f32 %v15808_v49, %v2706_v33  ;;  %v2701_v34 = vsel %vm20440_vm1, %v15751_v55, %v15774_v6  ;;  %v2908_v15 = vpop.permute.xlu0 %2907  ;;  %v2845_v25 = vmul.f32 %v15812_v22, %v2704_v63  ;;  %v2702_v16 = vsel %vm20440_vm1, %v15753_v60, %v15826_v2  ;;  %v20825_v22 = vld [vmem:[#allocation89_spill] sm:$0xff]  ;;  %v20829_v33 = vld [vmem:[#allocation86_spill] sm:$0xff] }
 0x2c9   : > { %v2918_v47 = vsel %vm20439_vm2, %v15743_v41, %v15828_v44  ;;  %v2919_v58 = vsel %vm20439_vm2, %v15745_v37, %v2898_v31  ;;  %v2914_v6 = vsel %vm20439_vm2, %v2900_v14, %v2904_v32  ;;  %v2916_v55 = vsel %vm20439_vm2, %v15828_v44, %v2900_v14  ;;  %v20827_v14 = vld [vmem:[#allocation112_spill] sm:$0xff]  ;;  %v20830_v63 = vld [vmem:[#allocation78_spill] sm:$0xff] }
 0x2ca   : > { %v2915_v2 = vsel %vm20439_vm2, %v2902_v11, %v2906_v12  ;;  %v2917_v60 = vsel %vm20439_vm2, %v2898_v31, %v2902_v11  ;;  %v2912_v41 = vsel %vm20439_vm2, %v2904_v32, %v2908_v15  ;;  %v2942_v37 = vsel %vm20439_vm2, %v2908_v15, %v20825_v22  ;;  %v20831_v15 = vld [vmem:[#allocation8_spill] sm:$0xff] }
 0x2cb   : > { %v2830_v26 = vmul.f32 %v20827_v14, %v2701_v34  ;;  %v2846_v13 = vmul.f32 %v20827_v14, %v2702_v16  ;;  %v3037_v31 = vmul.f32 %v15851_v5, %v2918_v47  ;;  %v3053_v61 = vmul.f32 %v15851_v5, %v2919_v58  ;;  %v20832_v47 = vld [vmem:[#allocation87_spill] sm:$0xff]  ;;  %v20837_v14 = vld [vmem:[#allocation93_spill] sm:$0xff] }
 0x2cc   : > { %v2910_v35 = vpop.permute.xlu1 %2909  ;;  %v3038_v32 = vmul.f32 %v15854_v62, %v2916_v55  ;;  %v3039_v29 = vmul.f32 %v15857_v36, %v2914_v6  ;;  %v3054_v53 = vmul.f32 %v15854_v62, %v2917_v60  ;;  %v3040_v28 = vmul.f32 %v3005_v40, %v2912_v41 }
 0x2cd   : > { %v2913_v43 = vsel %vm20439_vm2, %v2906_v12, %v2910_v35  ;;  %v2943_v44 = vsel %vm20439_vm2, %v2910_v35, %v20826_v42  ;;  %v3055_v12 = vmul.f32 %v15857_v36, %v2915_v2  ;;  %v3041_v4 = vmul.f32 %v3009_v56, %v2942_v37  ;;  %v20833_v35 = vld [vmem:[#allocation11_spill] sm:$0xff] }
 0x2ce   : > { %v3056_v51 = vmul.f32 %v3005_v40, %v2913_v43  ;;  %v3057_v52 = vmul.f32 %v3009_v56, %v2943_v44  ;;  %v3071_v18 = vadd.f32 %v2828_v57, %v20828_v54  ;;  %v3072_v11 = vadd.f32 %v2829_v9, %v20829_v33  ;;  %v20834_v43 = vld [vmem:[#allocation91_spill] sm:$0xff]  ;;  %v20836_v44 = vld [vmem:[#allocation14_spill] sm:$0xff] }
 0x2cf   : > { %v3087_v34 = vadd.f32 %v2844_v23, %v20830_v63  ;;  %v3088_v16 = vadd.f32 %v2845_v25, %v20831_v15  ;;  %v3073_v58 = vadd.f32 %v2830_v26, %v20832_v47  ;;  %v3089_v6 = vadd.f32 %v2846_v13, %v20833_v35  ;;  %v20838_v26 = vld [vmem:[#allocation26_spill] sm:$0xff]  ;;  %v20841_v15 = vld [vmem:[#allocation79_spill] sm:$0xff] }
 0x2d0   : > { %v3101_v55 = vadd.f32 %v3069_v21, %v3037_v31  ;;  %v15992_v60 = vadd.f32 %v3085_v8, %v3053_v61  ;;  %v3102_v2 = vadd.f32 %v3070_v1, %v3038_v32  ;;  %v3103_v41 = vadd.f32 %v3071_v18, %v3039_v29  ;;  %v20835_v21 = vld [vmem:[#allocation12_spill] sm:$0xff]  ;;  %v20839_v31 = vld [vmem:[#allocation27_spill] sm:$0xff] }
 0x2d1   : > { %v15994_v22 = vadd.f32 %v3086_v38, %v3054_v53  ;;  %v15996_v40 = vadd.f32 %v3087_v34, %v3055_v12  ;;  %v3104_v56 = vadd.f32 %v3072_v11, %v3040_v28  ;;  %v3105_v57 = vadd.f32 %v3073_v58, %v3041_v4  ;;  %v20840_v32 = vld [vmem:[#allocation108_spill] sm:$0xff] }
 0x2d2   : > { %v15998_v9 = vadd.f32 %v3088_v16, %v3056_v51  ;;  %v16000_v23 = vadd.f32 %v3089_v6, %v3057_v52 }
 0x2d5   : > { %v3127_v25 = vpop.permute.xlu0 %3126 }
 0x2d6   : > { %v3134_v37 = vadd.f32 %v3127_v25, %v15846_v17  ;;  %v3135_v42 = vadd.f32 %v3127_v25, %v20834_v43  ;;  %v3136_v8 = vadd.f32 %v3127_v25, %v20835_v21  ;;  %v3137_v1 = vadd.f32 %v3127_v25, %v20836_v44 }
 0x2d7   : > { %v3138_v38 = vadd.f32 %v3127_v25, %v20837_v14  ;;  %v3139_v13 = vadd.f32 %v3127_v25, %v20838_v26  ;;  %v3140_v61 = vadd.f32 %v3127_v25, %v20839_v31  ;;  %v3141_v29 = vadd.f32 %v3127_v25, %v20840_v32 }
 0x2d8   : > { %v3142_v53 = vadd.f32 %v3127_v25, %v15911_v48  ;;  %v3143_v12 = vadd.f32 %v3127_v25, %v15925_v19  ;;  %v3144_v28 = vadd.f32 %v3127_v25, %v3100_v30  ;;  %v3145_v17 = vadd.f32 %v3127_v25, %v3101_v55 }
 0x2d9   : > { %v3146_v4 = vadd.f32 %v3127_v25, %v3102_v2  ;;  %v3147_v51 = vadd.f32 %v3127_v25, %v3103_v41  ;;  %v3148_v52 = vadd.f32 %v3127_v25, %v3104_v56  ;;  %v3149_v54 = vadd.f32 %v3127_v25, %v3105_v57  ;;  %v16012_v18 = vpop.permute.xlu1 %3131 }
 0x2da   : > { %vm3166_vm3 = vcmp.gt.f32.partialorder %v3134_v37, 0.0  ;;  %vm3167_vm4 = vcmp.gt.f32.partialorder %v3135_v42, 0.0  ;;  %vm3168_vm5 = vcmp.gt.f32.partialorder %v3136_v8, 0.0  ;;  %vm3169_vm6 = vcmp.gt.f32.partialorder %v3137_v1, 0.0 }
 0x2db   : > { %vm3170_vm7 = vcmp.gt.f32.partialorder %v3138_v38, 0.0  ;;  %vm3171_vm8 = vcmp.gt.f32.partialorder %v3139_v13, 0.0  ;;  %vm3172_vm9 = vcmp.gt.f32.partialorder %v3140_v61, 0.0  ;;  %vm3173_vm10 = vcmp.gt.f32.partialorder %v3141_v29, 0.0 }
 0x2dc   : > { %vm3174_vm11 = vcmp.gt.f32.partialorder %v3142_v53, 0.0  ;;  %vm3175_vm12 = vcmp.gt.f32.partialorder %v3143_v12, 0.0  ;;  %vm3176_vm13 = vcmp.gt.f32.partialorder %v3144_v28, 0.0  ;;  %vm3177_vm14 = vcmp.gt.f32.partialorder %v3145_v17, 0.0 }
 0x2dd   : > { %vm3178_vm15 = vcmp.gt.f32.partialorder %v3146_v4, 0.0  ;;  %vm3179_vm0 = vcmp.gt.f32.partialorder %v3147_v51, 0.0  ;;  %vm3180_vm2 = vcmp.gt.f32.partialorder %v3148_v52, 0.0  ;;  %vm3181_vm1 = vcmp.gt.f32.partialorder %v3149_v54, 0.0 }
 0x2de   : > { %v3198_v48 = vmul.f32 0.2, %v3134_v37  ;;  %v3199_v19 = vmul.f32 0.2, %v3135_v42  ;;  %v3200_v30 = vmul.f32 0.2, %v3136_v8  ;;  %v16016_v33 = vadd.f32 %v16012_v18, %v15877_v3 }
 0x2df   : > { %v3201_v11 = vmul.f32 0.2, %v3137_v1  ;;  %v3202_v63 = vmul.f32 0.2, %v3138_v38  ;;  %v3203_v34 = vmul.f32 0.2, %v3139_v13  ;;  %v16020_v16 = vadd.f32 %v16012_v18, %v20841_v15 }
 0x2e0   : > { %v3204_v47 = vmul.f32 0.2, %v3140_v61  ;;  %v3205_v58 = vmul.f32 0.2, %v3141_v29  ;;  %v3206_v35 = vmul.f32 0.2, %v3142_v53  ;;  %v3230_v6 = vsel %vm3166_vm3, %v3134_v37, %v3198_v48 }
 0x2e1   : > { %v3207_v55 = vmul.f32 0.2, %v3143_v12  ;;  %v3208_v2 = vmul.f32 0.2, %v3144_v28  ;;  %v3209_v41 = vmul.f32 0.2, %v3145_v17  ;;  %v3231_v56 = vsel %vm3167_vm4, %v3135_v42, %v3199_v19 }
 0x2e2   : > { %v3210_v57 = vmul.f32 0.2, %v3146_v4  ;;  %v3211_v3 = vmul.f32 0.2, %v3147_v51  ;;  %v3212_v25 = vmul.f32 0.2, %v3148_v52  ;;  %v3232_v43 = vsel %vm3168_vm5, %v3136_v8, %v3200_v30 }
 0x2e3   : > { %v3213_v21 = vmul.f32 0.2, %v3149_v54  ;;  %v3233_v44 = vsel %vm3169_vm6, %v3137_v1, %v3201_v11  ;;  %v3234_v14 = vsel %vm3170_vm7, %v3138_v38, %v3202_v63  ;;  %v3235_v26 = vsel %vm3171_vm8, %v3139_v13, %v3203_v34  ;;  %v20845_v15 = vld [vmem:[#allocation94_spill] sm:$0xff] }
 0x2e4   : > { %v3236_v31 = vsel %vm3172_vm9, %v3140_v61, %v3204_v47  ;;  %v3237_v37 = vsel %vm3173_vm10, %v3141_v29, %v3205_v58  ;;  %v3238_v32 = vsel %vm3174_vm11, %v3142_v53, %v3206_v35  ;;  %v3239_v42 = vsel %vm3175_vm12, %v3143_v12, %v3207_v55  ;;  %v20846_v58 = vld [vmem:[#allocation97_spill] sm:$0xff] }
 0x2e5   : > { %v3240_v48 = vsel %vm3176_vm13, %v3144_v28, %v3208_v2  ;;  %v3241_v19 = vsel %vm3177_vm14, %v3145_v17, %v3209_v41  ;;  %v3242_v8 = vsel %vm3178_vm15, %v3146_v4, %v3210_v57  ;;  %v3243_v1 = vsel %vm3179_vm0, %v3147_v51, %v3211_v3  ;;  %v20842_v28 = vld [vmem:[#allocation82_spill] sm:$0xff]  ;;  %v20843_v4 = vld [vmem:[#allocation92_spill] sm:$0xff] }
 0x2e6   : > { %v3244_v38 = vsel %vm3180_vm2, %v3148_v52, %v3212_v25  ;;  %v3245_v13 = vsel %vm3181_vm1, %v3149_v54, %v3213_v21  ;;  %v13473_v30 = vpack.c.bf16 %v3231_v56, %v3230_v6  ;;  %v13474_v61 = vpack.c.bf16 %v3233_v44, %v3232_v43  ;;  %v20844_v52 = vld [vmem:[#allocation24_spill] sm:$0xff]  ;;  %v20847_v6 = vld [vmem:[#allocation39_spill] sm:$0xff] }
 0x2e7   : > { %v13475_v11 = vpack.c.bf16 %v3235_v26, %v3234_v14  ;;  %v13476_v29 = vpack.c.bf16 %v3237_v37, %v3236_v31  ;;  %v13477_v63 = vpack.c.bf16 %v3239_v42, %v3238_v32  ;;  %v13478_v53 = vpack.c.bf16 %v3241_v19, %v3240_v48 }
 0x2e8   : > { %v13479_v34 = vpack.c.bf16 %v3243_v1, %v3242_v8  ;;  %v13480_v12 = vpack.c.bf16 %v3245_v13, %v3244_v38  ;;  %3358 = vst [vmem:[#allocation2 + $0x94] sm:$0xff] %v13473_v30  ;;  %3359 = vst [vmem:[#allocation2 + $0x9c] sm:$0xff] %v13474_v61  ;;  %v3152_v17 = vadd.f32 %v16012_v18, %v20842_v28  ;;  %vm3182_vm1 = vcmp.gt.f32.partialorder %v16016_v33, 0.0 }
 0x2e9   : > { %v3153_v51 = vadd.f32 %v16012_v18, %v20843_v4  ;;  %3360 = vst [vmem:[#allocation2 + $0xa4] sm:$0xff] %v13475_v11  ;;  %3361 = vst [vmem:[#allocation2 + $0xac] sm:$0xff] %v13476_v29  ;;  %v3154_v54 = vadd.f32 %v16012_v18, %v20844_v52  ;;  %v3155_v47 = vadd.f32 %v16012_v18, %v20845_v15  ;;  %vm3183_vm2 = vcmp.gt.f32.partialorder %v16020_v16, 0.0 }
 0x2ea   : > { %3362 = vst [vmem:[#allocation2 + $0xb4] sm:$0xff] %v13477_v63  ;;  %3363 = vst [vmem:[#allocation2 + $0xbc] sm:$0xff] %v13478_v53  ;;  %v3156_v35 = vadd.f32 %v16012_v18, %v20846_v58  ;;  %v3157_v55 = vadd.f32 %v16012_v18, %v20847_v6  ;;  %v3158_v2 = vadd.f32 %v16012_v18, %v15928_v50  ;;  %vm3184_vm3 = vcmp.gt.f32.partialorder %v3152_v17, 0.0 }
 0x2eb   : > { %3364 = vst [vmem:[#allocation2 + $0xc4] sm:$0xff] %v13479_v34  ;;  %3365 = vst [vmem:[#allocation2 + $0xcc] sm:$0xff] %v13480_v12  ;;  %v3159_v41 = vadd.f32 %v16012_v18, %v15930_v10  ;;  %v3160_v56 = vadd.f32 %v16012_v18, %v15936_v20  ;;  %v3161_v57 = vadd.f32 %v16012_v18, %v15992_v60  ;;  %vm3185_vm4 = vcmp.gt.f32.partialorder %v3153_v51, 0.0 }
 0x2ec   : > { %v3162_v3 = vadd.f32 %v16012_v18, %v15994_v22  ;;  %v3163_v25 = vadd.f32 %v16012_v18, %v15996_v40  ;;  %v3164_v43 = vadd.f32 %v16012_v18, %v15998_v9  ;;  %v3165_v50 = vadd.f32 %v16012_v18, %v16000_v23 }
 0x2ed   : > { %vm3186_vm5 = vcmp.gt.f32.partialorder %v3154_v54, 0.0  ;;  %vm3187_vm6 = vcmp.gt.f32.partialorder %v3155_v47, 0.0  ;;  %vm3188_vm7 = vcmp.gt.f32.partialorder %v3156_v35, 0.0  ;;  %vm3189_vm8 = vcmp.gt.f32.partialorder %v3157_v55, 0.0 }
 0x2ee   : > { %vm3190_vm9 = vcmp.gt.f32.partialorder %v3158_v2, 0.0  ;;  %vm3191_vm10 = vcmp.gt.f32.partialorder %v3159_v41, 0.0  ;;  %vm3192_vm11 = vcmp.gt.f32.partialorder %v3160_v56, 0.0  ;;  %vm3193_vm12 = vcmp.gt.f32.partialorder %v3161_v57, 0.0 }
 0x2ef   : > { %vm3194_vm13 = vcmp.gt.f32.partialorder %v3162_v3, 0.0  ;;  %vm3195_vm14 = vcmp.gt.f32.partialorder %v3163_v25, 0.0  ;;  %vm3196_vm15 = vcmp.gt.f32.partialorder %v3164_v43, 0.0  ;;  %vm3197_vm0 = vcmp.gt.f32.partialorder %v3165_v50, 0.0 }
 0x2f0   : > { %v3214_v10 = vmul.f32 0.2, %v16016_v33  ;;  %v3215_v20 = vmul.f32 0.2, %v16020_v16  ;;  %v3216_v60 = vmul.f32 0.2, %v3152_v17 }
 0x2f1   : > { %v3217_v22 = vmul.f32 0.2, %v3153_v51  ;;  %v3218_v40 = vmul.f32 0.2, %v3154_v54  ;;  %v3219_v9 = vmul.f32 0.2, %v3155_v47 }
 0x2f2   : > { %v3220_v23 = vmul.f32 0.2, %v3156_v35  ;;  %v3221_v18 = vmul.f32 0.2, %v3157_v55  ;;  %v3222_v21 = vmul.f32 0.2, %v3158_v2  ;;  %v3246_v44 = vsel %vm3182_vm1, %v16016_v33, %v3214_v10 }
 0x2f3   : > { %v3223_v14 = vmul.f32 0.2, %v3159_v41  ;;  %v3224_v26 = vmul.f32 0.2, %v3160_v56  ;;  %v3225_v31 = vmul.f32 0.2, %v3161_v57  ;;  %v3247_v37 = vsel %vm3183_vm2, %v16020_v16, %v3215_v20 }
 0x2f4   : > { %v3226_v32 = vmul.f32 0.2, %v3162_v3  ;;  %v3227_v42 = vmul.f32 0.2, %v3163_v25  ;;  %v3228_v48 = vmul.f32 0.2, %v3164_v43  ;;  %v3248_v19 = vsel %vm3184_vm3, %v3152_v17, %v3216_v60 }
 0x2f5   : > { %v3229_v8 = vmul.f32 0.2, %v3165_v50  ;;  %v3249_v1 = vsel %vm3185_vm4, %v3153_v51, %v3217_v22  ;;  %v3250_v38 = vsel %vm3186_vm5, %v3154_v54, %v3218_v40  ;;  %v3251_v13 = vsel %vm3187_vm6, %v3155_v47, %v3219_v9 }
 0x2f6   : > { %v3252_v33 = vsel %vm3188_vm7, %v3156_v35, %v3220_v23  ;;  %v3253_v30 = vsel %vm3189_vm8, %v3157_v55, %v3221_v18  ;;  %v3254_v61 = vsel %vm3190_vm9, %v3158_v2, %v3222_v21  ;;  %v3255_v16 = vsel %vm3191_vm10, %v3159_v41, %v3223_v14 }
 0x2f7   : > { %v3256_v11 = vsel %vm3192_vm11, %v3160_v56, %v3224_v26  ;;  %v3257_v29 = vsel %vm3193_vm12, %v3161_v57, %v3225_v31  ;;  %v3258_v63 = vsel %vm3194_vm13, %v3162_v3, %v3226_v32  ;;  %v3259_v53 = vsel %vm3195_vm14, %v3163_v25, %v3227_v42 }
 0x2f8   : > { %v3260_v34 = vsel %vm3196_vm15, %v3164_v43, %v3228_v48  ;;  %v3261_v12 = vsel %vm3197_vm0, %v3165_v50, %v3229_v8  ;;  %v13481_v28 = vpack.c.bf16 %v3247_v37, %v3246_v44  ;;  %v13482_v17 = vpack.c.bf16 %v3249_v1, %v3248_v19 }
 0x2f9   : > { %v13483_v4 = vpack.c.bf16 %v3251_v13, %v3250_v38  ;;  %v13484_v51 = vpack.c.bf16 %v3253_v30, %v3252_v33  ;;  %v13485_v52 = vpack.c.bf16 %v3255_v16, %v3254_v61  ;;  %v13486_v54 = vpack.c.bf16 %v3257_v29, %v3256_v11  ;;  %3376 = sbr.rel (%p12504_p10) target bundleno = 769 (0x301), region = 88 }
 0x2fa   : > { %v13487_v15 = vpack.c.bf16 %v3259_v53, %v3258_v63  ;;  %v13488_v47 = vpack.c.bf16 %v3261_v12, %v3260_v34  ;;  %3366 = vst [vmem:[#allocation2 + $0xdc] sm:$0xff] %v13481_v28  ;;  %3367 = vst [vmem:[#allocation2 + $0xe4] sm:$0xff] %v13482_v17 }
 0x2fb   : > { %3368 = vst [vmem:[#allocation2 + $0xec] sm:$0xff] %v13483_v4  ;;  %3369 = vst [vmem:[#allocation2 + $0xf4] sm:$0xff] %v13484_v51 }
 0x2fc   : > { %3370 = vst [vmem:[#allocation2 + $0xfc] sm:$0xff] %v13485_v52  ;;  %3371 = vst [vmem:[#allocation2 + $0x104] sm:$0xff] %v13486_v54 }
 0x2fd   : > { %3372 = vst [vmem:[#allocation2 + $0x10c] sm:$0xff] %v13487_v15  ;;  %3373 = vst [vmem:[#allocation2 + $0x114] sm:$0xff] %v13488_v47 }
 0x2fe   : > { %v14235_v58 = vmov 0  }
 0x2ff   : > { %3377 = vst [vmem:[#allocation2 + $0x94] sm:$0xff] %v14235_v58  ;;  %3378 = vst [vmem:[#allocation2 + $0x9c] sm:$0xff] %v14235_v58 }
 0x300   : > { %3379 = vst [vmem:[#allocation2 + $0xdc] sm:$0xff] %v14235_v58  ;;  %3380 = vst [vmem:[#allocation2 + $0xe4] sm:$0xff] %v14235_v58 }
 0x301 PF: > { %3383 = sbr.rel (%p12516_p12) target bundleno = 777 (0x309), region = 92 }
 0x306   : > { %v14236_v35 = vmov 0  }
 0x307   : > { %3384 = vst [vmem:[#allocation2 + $0xc4] sm:$0xff] %v14236_v35  ;;  %3385 = vst [vmem:[#allocation2 + $0xcc] sm:$0xff] %v14236_v35 }
 0x308   : > { %3386 = vst [vmem:[#allocation2 + $0x10c] sm:$0xff] %v14236_v35  ;;  %3387 = vst [vmem:[#allocation2 + $0x114] sm:$0xff] %v14236_v35 }
 0x309 PF: > { %v20848_v55 = vmov 0   ;;  %v13660_v2 = vld [vmem:[#allocation2 + $0xa4] ss:$72 sps:$4 sm:$0xff]   ;;  %v13666_v3 = vld [vmem:[#allocation2 + $0x14] ss:$72 sps:$4 sm:$0xff]   ;;  %vm3612_vm1 = vcmask 261120  }
 0x30a   : > { %v13658_v6 = vld [vmem:[#allocation2 + $0x9c] ss:$72 sps:$4 sm:$0xff]   ;;  %3654 = vmatprep.mubr.bf16.mxu0 %v20848_v55  ;;  %3717 = vmatprep.mubr.bf16.mxu1 %v20848_v55  ;;  %v13662_v41 = vld [vmem:[#allocation2 + $0x98] ss:$72 sps:$4 sm:$0xff]   ;;  %v13664_v57 = vld [vmem:[#allocation2 + $0xc] ss:$72 sps:$4 sm:$0xff]  }
 0x30b   : > { %13656 = vset.pattern.permute.xlu0 %v20848_v55  ;;  %13657 = vset.pattern.permute.xlu1 %v20848_v55  ;;  %v13663_v56 = vld [vmem:[#allocation2 + $0xa0] ss:$72 sps:$4 sm:$0xff]   ;;  %v13669_v43 = vld [vmem:[#allocation2 + $0x10] ss:$72 sps:$4 sm:$0xff]   ;;  %v13673_v20 = vld [vmem:[#allocation2 + $0xac] ss:$72 sps:$4 sm:$0xff]  }
 0x30c   : > { %3634 = vmatprep.subr.bf16.mxu0 %v13658_v6  ;;  %3697 = vmatprep.subr.bf16.mxu1 %v13660_v2  ;;  %v13668_v25 = vld [vmem:[#allocation2 + $0x8] ss:$72 sps:$4 sm:$0xff]   ;;  %v16101_v50 = vld [vmem:[%s20337_s3 + $0x18] sm:$0xff]   ;;  %v13684_v18 = vld [vmem:[#allocation2 + $0x24] ss:$72 sps:$4 sm:$0xff]  }
 0x30d   : > { %3635 = vmatpush1.bf16.msra.mxu0 %v13662_v41  ;;  %3698 = vmatpush1.bf16.msra.mxu1 %v13663_v56  ;;  %v13671_v10 = vld [vmem:[#allocation2 + $0xa8] ss:$72 sps:$4 sm:$0xff]   ;;  %v13676_v22 = vld [vmem:[#allocation2 + $0xb4] ss:$72 sps:$4 sm:$0xff]   ;;  %v13678_v9 = vld [vmem:[#allocation2 + $0x18] ss:$72 sps:$4 sm:$0xff]  }
 0x30e   : > { %3636 = vmatprep.subr.bf16.mxu0 %v13664_v57  ;;  %3699 = vmatprep.subr.bf16.mxu1 %v13666_v3  ;;  %v13674_v60 = vld [vmem:[#allocation2 + $0xb0] ss:$72 sps:$4 sm:$0xff]   ;;  %v13680_v40 = vld [vmem:[#allocation2 + $0x1c] ss:$72 sps:$4 sm:$0xff]   ;;  %v13682_v23 = vld [vmem:[#allocation2 + $0x20] ss:$72 sps:$4 sm:$0xff]  }
 0x30f   : > { %v13687_v21 = vld [vmem:[#allocation2 + $0xbc] ss:$72 sps:$4 sm:$0xff]   ;;  %v16123_v26 = vld [vmem:[%s20337_s3 + $0x28] sm:$0xff]   ;;  %v13685_v31 = vld [vmem:[#allocation2 + $0xb8] ss:$72 sps:$4 sm:$0xff]  }
 0x310   : > { %v16112_v44 = vld [vmem:[%s20337_s3 + $0x20] sm:$0xff]   ;;  %v13693_v32 = vld [vmem:[#allocation2 + $0x2c] ss:$72 sps:$4 sm:$0xff]   ;;  %v13691_v48 = vld [vmem:[#allocation2 + $0x28] ss:$72 sps:$4 sm:$0xff]  }
 0x311   : > { %3637 = vmatpush1.bf16.msra.mxu0 %v13668_v25  ;;  %3700 = vmatpush1.bf16.msra.mxu1 %v13669_v43  ;;  %v13690_v14 = vld [vmem:[#allocation2 + $0xc4] ss:$72 sps:$4 sm:$0xff]   ;;  %v13688_v37 = vld [vmem:[#allocation2 + $0xc0] ss:$72 sps:$4 sm:$0xff]   ;;  %v13696_v42 = vld [vmem:[#allocation2 + $0x34] ss:$72 sps:$4 sm:$0xff]  }
 0x312   : > { %3760 = vmatprep.subr.bf16.mxu0 %v13673_v20  ;;  %3823 = vmatprep.subr.bf16.mxu1 %v13676_v22  ;;  %v13694_v19 = vld [vmem:[#allocation2 + $0x30] ss:$72 sps:$4 sm:$0xff]   ;;  %v13699_v8 = vld [vmem:[#allocation2 + $0xcc] ss:$72 sps:$4 sm:$0xff]   ;;  %v13705_v33 = vld [vmem:[#allocation2 + $0x3c] ss:$72 sps:$4 sm:$0xff]  }
 0x313   : > { %v13702_v1 = vld [vmem:[#allocation2 + $0x98] ss:$72 sps:$4 sm:$0xff]   ;;  %v13697_v38 = vld [vmem:[#allocation2 + $0xc8] ss:$72 sps:$4 sm:$0xff]   ;;  %v13700_v13 = vld [vmem:[#allocation2 + $0x94] ss:$72 sps:$4 sm:$0xff]  }
 0x314   : > { %12725 = vmatmul.mubr.msk.bf16.vlgmr.msra.gmra.mxu0 %vm3612_vm1, %v16101_v50  ;;  %12728 = vmatmul.mubr.msk.bf16.vlgmr.msra.gmra.mxu1 %vm3612_vm1, %v16101_v50  ;;  %v13708_v30 = vld [vmem:[#allocation2 + $0x8] ss:$72 sps:$4 sm:$0xff]   ;;  %v13703_v61 = vld [vmem:[#allocation2 + $0x38] ss:$72 sps:$4 sm:$0xff]   ;;  %v13706_v16 = vld [vmem:[#allocation2 + $0x4] ss:$72 sps:$4 sm:$0xff]  }
 0x315   : > { %3761 = vmatpush1.bf16.msra.mxu0 %v13671_v10  ;;  %3824 = vmatpush1.bf16.msra.mxu1 %v13674_v60  ;;  %v16155_v11 = vld [vmem:[#allocation2 + $0xa0] ss:$72 sps:$4 sm:$0xff]   ;;  %v16178_v53 = vld [vmem:[#allocation2 + $0x9c] ss:$72 sps:$4 sm:$0xff]   ;;  %v16182_v12 = vld [vmem:[#allocation2 + $0x10] ss:$72 sps:$4 sm:$0xff]  }
 0x316   : > { %3664 = vmatprep.mubr.bf16.mxu0 %v20848_v55  ;;  %3727 = vmatprep.mubr.bf16.mxu1 %v20848_v55  ;;  %v16157_v29 = vld [vmem:[#allocation2 + $0xa8] ss:$72 sps:$4 sm:$0xff]   ;;  %v16176_v63 = vld [vmem:[%s20337_s3] sm:$0xff]   ;;  %v16192_v17 = vld [vmem:[#allocation2 + $0xc] ss:$72 sps:$4 sm:$0xff]  }
 0x317   : > { %3762 = vmatprep.subr.bf16.mxu0 %v13680_v40  ;;  %3825 = vmatprep.subr.bf16.mxu1 %v13684_v18  ;;  %v16180_v34 = vld [vmem:[#allocation2 + $0xa4] ss:$72 sps:$4 sm:$0xff]   ;;  %v16184_v28 = vld [vmem:[#allocation2 + $0x18] ss:$72 sps:$4 sm:$0xff]   ;;  %v16194_v4 = vld [vmem:[#allocation2 + $0x14] ss:$72 sps:$4 sm:$0xff]  }
 0x318   : > { %v16198_v51 = vld [vmem:[#allocation2 + $0xb0] ss:$72 sps:$4 sm:$0xff]   ;;  %v16207_v54 = vld [vmem:[%s20337_s3 + $0x8] sm:$0xff]   ;;  %v16232_v58 = vld [vmem:[#allocation2 + $0xb4] ss:$72 sps:$4 sm:$0xff]  }
 0x319   : > { %3763 = vmatpush1.bf16.msra.mxu0 %v13678_v9  ;;  %3826 = vmatpush1.bf16.msra.mxu1 %v13682_v23  ;;  %v16200_v52 = vld [vmem:[#allocation2 + $0xb8] ss:$72 sps:$4 sm:$0xff]   ;;  %v16222_v15 = vld [vmem:[%s20337_s3 + $0x10] sm:$0xff]   ;;  %v16244_v2 = vld [vmem:[#allocation2 + $0x1c] ss:$72 sps:$4 sm:$0xff]  }
 0x31a   : > { %3886 = vmatprep.subr.bf16.mxu0 %v13687_v21  ;;  %3949 = vmatprep.subr.bf16.mxu1 %v13690_v14  ;;  %v16230_v47 = vld [vmem:[#allocation2 + $0xac] ss:$72 sps:$4 sm:$0xff]   ;;  %v16234_v35 = vld [vmem:[#allocation2 + $0x20] ss:$72 sps:$4 sm:$0xff]   ;;  %v16272_v3 = vld [vmem:[#allocation2 + $0xbc] ss:$72 sps:$4 sm:$0xff]  }
 0x31b   : > { %v16236_v6 = vld [vmem:[#allocation2 + $0x28] ss:$72 sps:$4 sm:$0xff]   ;;  %v16246_v41 = vld [vmem:[#allocation2 + $0x24] ss:$72 sps:$4 sm:$0xff]   ;;  %v16288_v20 = vld [vmem:[#allocation2 + $0x34] ss:$72 sps:$4 sm:$0xff]  }
 0x31c   : > { %12726 = vmatmul.mubr.msk.bf16.gmra.mxu0 %vm3612_vm1, %v16112_v44  ;;  %12729 = vmatmul.mubr.msk.bf16.gmra.mxu1 %vm3612_vm1, %v16112_v44  ;;  %v16250_v56 = vld [vmem:[#allocation2 + $0xc0] ss:$72 sps:$4 sm:$0xff]   ;;  %v16274_v25 = vld [vmem:[#allocation2 + $0xc4] ss:$72 sps:$4 sm:$0xff]   ;;  %v16276_v43 = vld [vmem:[#allocation2 + $0x30] ss:$72 sps:$4 sm:$0xff]  }
 0x31d   : > { %3674 = vmatprep.mubr.bf16.mxu0 %v20848_v55  ;;  %3737 = vmatprep.mubr.bf16.mxu1 %v20848_v55  ;;  %v16252_v57 = vld [vmem:[#allocation2 + $0xc8] ss:$72 sps:$4 sm:$0xff]   ;;  %v16286_v10 = vld [vmem:[#allocation2 + $0x2c] ss:$72 sps:$4 sm:$0xff]   ;;  %v16354_v22 = vld [vmem:[%s20337_s3 + $0x38] sm:$0xff]  }
 0x31e   : > { %v16339_v60 = vld [vmem:[%s20337_s3 + $0x30] sm:$0xff]   ;;  %v16369_v40 = vld [vmem:[%s20337_s3 + $0x40] sm:$0xff]  }
 0x324   : > { %12727 = vmatmul.mubr.msk.bf16.gmra.mxu0 %vm3612_vm1, %v16123_v26  ;;  %12730 = vmatmul.mubr.msk.bf16.gmra.mxu1 %vm3612_vm1, %v16123_v26 }
 0x325   : > { %3780 = vmatprep.mubr.bf16.mxu0 %v20848_v55  ;;  %3843 = vmatprep.mubr.bf16.mxu1 %v20848_v55 }
 0x32c   : > { %12731 = vmatmul.mubr.msk.bf16.vlgmr.msra.gmra.mxu0 %vm3612_vm1, %v16101_v50  ;;  %12734 = vmatmul.mubr.msk.bf16.vlgmr.msra.gmra.mxu1 %vm3612_vm1, %v16101_v50 }
 0x32d   : > { %3887 = vmatpush1.bf16.msra.mxu0 %v13685_v31  ;;  %3950 = vmatpush1.bf16.msra.mxu1 %v13688_v37 }
 0x32e   : > { %3790 = vmatprep.mubr.bf16.mxu0 %v20848_v55  ;;  %3853 = vmatprep.mubr.bf16.mxu1 %v20848_v55 }
 0x32f   : > { %3888 = vmatprep.subr.bf16.mxu0 %v13693_v32  ;;  %3951 = vmatprep.subr.bf16.mxu1 %v13696_v42 }
 0x331   : > { %3889 = vmatpush1.bf16.msra.mxu0 %v13691_v48  ;;  %3952 = vmatpush1.bf16.msra.mxu1 %v13694_v19 }
 0x332   : > { %4012 = vmatprep.subr.bf16.mxu0 %v13699_v8  ;;  %4239 = vmatprep.subr.bf16.mxu1 %v13702_v1 }
 0x334   : > { %12732 = vmatmul.mubr.msk.bf16.gmra.mxu0 %vm3612_vm1, %v16112_v44  ;;  %12735 = vmatmul.mubr.msk.bf16.gmra.mxu1 %vm3612_vm1, %v16112_v44 }
 0x335   : > { %3800 = vmatprep.mubr.bf16.mxu0 %v20848_v55  ;;  %3863 = vmatprep.mubr.bf16.mxu1 %v20848_v55 }
 0x33c   : > { %12733 = vmatmul.mubr.msk.bf16.gmra.mxu0 %vm3612_vm1, %v16123_v26  ;;  %12736 = vmatmul.mubr.msk.bf16.gmra.mxu1 %vm3612_vm1, %v16123_v26 }
 0x33d   : > { %3906 = vmatprep.mubr.bf16.mxu0 %v20848_v55  ;;  %3969 = vmatprep.mubr.bf16.mxu1 %v20848_v55 }
 0x344   : > { %12737 = vmatmul.mubr.msk.bf16.vlgmr.msra.gmra.mxu0 %vm3612_vm1, %v16101_v50  ;;  %12740 = vmatmul.mubr.msk.bf16.vlgmr.msra.gmra.mxu1 %vm3612_vm1, %v16101_v50 }
 0x345   : > { %4013 = vmatpush1.bf16.msra.mxu0 %v13697_v38  ;;  %4240 = vmatpush1.bf16.msra.mxu1 %v13700_v13 }
 0x346   : > { %3916 = vmatprep.mubr.bf16.mxu0 %v20848_v55  ;;  %3979 = vmatprep.mubr.bf16.mxu1 %v20848_v55 }
 0x347   : > { %4014 = vmatprep.subr.bf16.mxu0 %v13705_v33  ;;  %4241 = vmatprep.subr.bf16.mxu1 %v13708_v30 }
 0x349   : > { %4015 = vmatpush1.bf16.msra.mxu0 %v13703_v61  ;;  %4242 = vmatpush1.bf16.msra.mxu1 %v13706_v16 }
 0x34a   : > { %4302 = vmatprep.subr.bf16.mxu0 %v16155_v11  ;;  %4365 = vmatprep.subr.bf16.mxu1 %v16157_v29 }
 0x34c   : > { %12738 = vmatmul.mubr.msk.bf16.gmra.mxu0 %vm3612_vm1, %v16112_v44  ;;  %12741 = vmatmul.mubr.msk.bf16.gmra.mxu1 %vm3612_vm1, %v16112_v44 }
 0x34d   : > { %3926 = vmatprep.mubr.bf16.mxu0 %v20848_v55  ;;  %3989 = vmatprep.mubr.bf16.mxu1 %v20848_v55 }
 0x354   : > { %12739 = vmatmul.mubr.msk.bf16.gmra.mxu0 %vm3612_vm1, %v16123_v26  ;;  %12742 = vmatmul.mubr.msk.bf16.gmra.mxu1 %vm3612_vm1, %v16123_v26 }
 0x355   : > { %4032 = vmatprep.mubr.bf16.mxu0 %v20848_v55  ;;  %4259 = vmatprep.mubr.bf16.mxu1 %v20848_v55 }
 0x35c   : > { %12743 = vmatmul.mubr.msk.bf16.vlgmr.msra.gmra.mxu0 %vm3612_vm1, %v16101_v50  ;;  %12777 = vmatmul.mubr.msk.bf16.vlgmr.msra.gmra.mxu1 %vm3612_vm1, %v16176_v63  ;;  %v16278_v50 = vld [vmem:[#allocation2 + $0x38] ss:$72 sps:$4 sm:$0xff]  }
 0x35d   : > { %4303 = vmatpush1.bf16.msra.mxu0 %v16178_v53  ;;  %4366 = vmatpush1.bf16.msra.mxu1 %v16180_v34 }
 0x35e   : > { %4042 = vmatprep.mubr.bf16.mxu0 %v20848_v55  ;;  %4269 = vmatprep.mubr.bf16.mxu1 %v20848_v55 }
 0x35f   : > { %4304 = vmatprep.subr.bf16.mxu0 %v16182_v12  ;;  %4367 = vmatprep.subr.bf16.mxu1 %v16184_v28 }
 0x361   : > { %4305 = vmatpush1.bf16.msra.mxu0 %v16192_v17  ;;  %4368 = vmatpush1.bf16.msra.mxu1 %v16194_v4 }
 0x362   : > { %4428 = vmatprep.subr.bf16.mxu0 %v16198_v51  ;;  %4491 = vmatprep.subr.bf16.mxu1 %v16200_v52 }
 0x364   : > { %12744 = vmatmul.mubr.msk.bf16.gmra.mxu0 %vm3612_vm1, %v16112_v44  ;;  %12778 = vmatmul.mubr.msk.bf16.gmra.mxu1 %vm3612_vm1, %v16207_v54  ;;  %v13753_v44 = vld [vmem:[#allocation2 + $0xd0] ss:$72 sps:$4 sm:$0xff]  }
 0x365   : > { %4052 = vmatprep.mubr.bf16.mxu0 %v20848_v55  ;;  %4279 = vmatprep.mubr.bf16.mxu1 %v20848_v55 }
 0x36c   : > { %12745 = vmatmul.mubr.msk.bf16.gmra.mxu0 %vm3612_vm1, %v16123_v26  ;;  %12779 = vmatmul.mubr.msk.bf16.gmra.mxu1 %vm3612_vm1, %v16222_v15 }
 0x36d   : > { %4322 = vmatprep.mubr.bf16.mxu0 %v20848_v55  ;;  %4385 = vmatprep.mubr.bf16.mxu1 %v20848_v55 }
 0x374   : > { %12780 = vmatmul.mubr.msk.bf16.vlgmr.msra.gmra.mxu0 %vm3612_vm1, %v16176_v63  ;;  %12783 = vmatmul.mubr.msk.bf16.vlgmr.msra.gmra.mxu1 %vm3612_vm1, %v16176_v63 }
 0x375   : > { %4429 = vmatpush1.bf16.msra.mxu0 %v16230_v47  ;;  %4492 = vmatpush1.bf16.msra.mxu1 %v16232_v58 }
 0x376   : > { %4332 = vmatprep.mubr.bf16.mxu0 %v20848_v55  ;;  %4395 = vmatprep.mubr.bf16.mxu1 %v20848_v55 }
 0x377   : > { %4430 = vmatprep.subr.bf16.mxu0 %v16234_v35  ;;  %4493 = vmatprep.subr.bf16.mxu1 %v16236_v6 }
 0x379   : > { %4431 = vmatpush1.bf16.msra.mxu0 %v16244_v2  ;;  %4494 = vmatpush1.bf16.msra.mxu1 %v16246_v41 }
 0x37a   : > { %4554 = vmatprep.subr.bf16.mxu0 %v16250_v56  ;;  %4617 = vmatprep.subr.bf16.mxu1 %v16252_v57 }
 0x37c   : > { %12781 = vmatmul.mubr.msk.bf16.gmra.mxu0 %vm3612_vm1, %v16207_v54  ;;  %12784 = vmatmul.mubr.msk.bf16.gmra.mxu1 %vm3612_vm1, %v16207_v54 }
 0x37d   : > { %4342 = vmatprep.mubr.bf16.mxu0 %v20848_v55  ;;  %4405 = vmatprep.mubr.bf16.mxu1 %v20848_v55 }
 0x384   : > { %12782 = vmatmul.mubr.msk.bf16.gmra.mxu0 %vm3612_vm1, %v16222_v15  ;;  %12785 = vmatmul.mubr.msk.bf16.gmra.mxu1 %vm3612_vm1, %v16222_v15 }
 0x385   : > { %4448 = vmatprep.mubr.bf16.mxu0 %v20848_v55  ;;  %4511 = vmatprep.mubr.bf16.mxu1 %v20848_v55 }
 0x38c   : > { %12786 = vmatmul.mubr.msk.bf16.vlgmr.msra.gmra.mxu0 %vm3612_vm1, %v16176_v63  ;;  %12789 = vmatmul.mubr.msk.bf16.vlgmr.msra.gmra.mxu1 %vm3612_vm1, %v16176_v63 }
 0x38d   : > { %4555 = vmatpush1.bf16.msra.mxu0 %v16272_v3  ;;  %4618 = vmatpush1.bf16.msra.mxu1 %v16274_v25 }
 0x38e   : > { %4458 = vmatprep.mubr.bf16.mxu0 %v20848_v55  ;;  %4521 = vmatprep.mubr.bf16.mxu1 %v20848_v55 }
 0x38f   : > { %4556 = vmatprep.subr.bf16.mxu0 %v16276_v43  ;;  %4619 = vmatprep.subr.bf16.mxu1 %v16278_v50 }
 0x391   : > { %4557 = vmatpush1.bf16.msra.mxu0 %v16286_v10  ;;  %4620 = vmatpush1.bf16.msra.mxu1 %v16288_v20 }
 0x392   : > { %4879 = vmatprep.subr.bf16.mxu0 %v16155_v11  ;;  %4942 = vmatprep.subr.bf16.mxu1 %v16157_v29 }
 0x394   : > { %12787 = vmatmul.mubr.msk.bf16.gmra.mxu0 %vm3612_vm1, %v16207_v54  ;;  %12790 = vmatmul.mubr.msk.bf16.gmra.mxu1 %vm3612_vm1, %v16207_v54 }
 0x395   : > { %4468 = vmatprep.mubr.bf16.mxu0 %v20848_v55  ;;  %4531 = vmatprep.mubr.bf16.mxu1 %v20848_v55 }
 0x39c   : > { %12788 = vmatmul.mubr.msk.bf16.gmra.mxu0 %vm3612_vm1, %v16222_v15  ;;  %12791 = vmatmul.mubr.msk.bf16.gmra.mxu1 %vm3612_vm1, %v16222_v15 }
 0x39d   : > { %4574 = vmatprep.mubr.bf16.mxu0 %v20848_v55  ;;  %4637 = vmatprep.mubr.bf16.mxu1 %v20848_v55 }
 0x3a4   : > { %12792 = vmatmul.mubr.msk.bf16.vlgmr.msra.gmra.mxu0 %vm3612_vm1, %v16176_v63  ;;  %12795 = vmatmul.mubr.msk.bf16.vlgmr.msra.gmra.mxu1 %vm3612_vm1, %v16176_v63 }
 0x3a5   : > { %4880 = vmatpush1.bf16.msra.mxu0 %v16178_v53  ;;  %4943 = vmatpush1.bf16.msra.mxu1 %v16180_v34  ;;  %v13751_v34 = vld [vmem:[#allocation2 + $0xcc] ss:$72 sps:$4 sm:$0xff]  }
 0x3a6   : > { %4584 = vmatprep.mubr.bf16.mxu0 %v20848_v55  ;;  %4647 = vmatprep.mubr.bf16.mxu1 %v20848_v55 }
 0x3a7   : > { %4881 = vmatprep.subr.bf16.mxu0 %v16182_v12  ;;  %4944 = vmatprep.subr.bf16.mxu1 %v16184_v28  ;;  %v13756_v12 = vld [vmem:[#allocation2 + $0x40] ss:$72 sps:$4 sm:$0xff]  }
 0x3a9   : > { %4882 = vmatpush1.bf16.msra.mxu0 %v16192_v17  ;;  %4945 = vmatpush1.bf16.msra.mxu1 %v16194_v4 }
 0x3aa   : > { %5005 = vmatprep.subr.bf16.mxu0 %v16198_v51  ;;  %5068 = vmatprep.subr.bf16.mxu1 %v16200_v52  ;;  %v13754_v52 = vld [vmem:[#allocation2 + $0x3c] ss:$72 sps:$4 sm:$0xff]  }
 0x3ac   : > { %12793 = vmatmul.mubr.msk.bf16.gmra.mxu0 %vm3612_vm1, %v16207_v54  ;;  %12796 = vmatmul.mubr.msk.bf16.gmra.mxu1 %vm3612_vm1, %v16207_v54 }
 0x3ad   : > { %4594 = vmatprep.mubr.bf16.mxu0 %v20848_v55  ;;  %4657 = vmatprep.mubr.bf16.mxu1 %v20848_v55 }
 0x3b4   : > { %12794 = vmatmul.mubr.msk.bf16.gmra.mxu0 %vm3612_vm1, %v16222_v15  ;;  %12797 = vmatmul.mubr.msk.bf16.gmra.mxu1 %vm3612_vm1, %v16222_v15 }
 0x3b5   : > { %4899 = vmatprep.mubr.bf16.mxu0 %v20848_v55  ;;  %4962 = vmatprep.mubr.bf16.mxu1 %v20848_v55 }
 0x3bc   : > { %12835 = vmatmul.mubr.msk.bf16.vlgmr.msra.gmra.mxu0 %vm3612_vm1, %v16339_v60  ;;  %12838 = vmatmul.mubr.msk.bf16.vlgmr.msra.gmra.mxu1 %vm3612_vm1, %v16339_v60 }
 0x3bd   : > { %4909 = vmatprep.mubr.bf16.mxu0 %v20848_v55  ;;  %4972 = vmatprep.mubr.bf16.mxu1 %v20848_v55 }
 0x3be   : > { %5006 = vmatpush1.bf16.msra.mxu0 %v16230_v47  ;;  %5069 = vmatpush1.bf16.msra.mxu1 %v16232_v58 }
 0x3bf   : > { %5007 = vmatprep.subr.bf16.mxu0 %v16234_v35  ;;  %5070 = vmatprep.subr.bf16.mxu1 %v16236_v6 }
 0x3c2   : > { %5008 = vmatpush1.bf16.msra.mxu0 %v16244_v2  ;;  %5071 = vmatpush1.bf16.msra.mxu1 %v16246_v41 }
 0x3c3   : > { %5131 = vmatprep.subr.bf16.mxu0 %v16250_v56  ;;  %5194 = vmatprep.subr.bf16.mxu1 %v16252_v57 }
 0x3c4   : > { %12836 = vmatmul.mubr.msk.bf16.gmra.mxu0 %vm3612_vm1, %v16354_v22  ;;  %12839 = vmatmul.mubr.msk.bf16.gmra.mxu1 %vm3612_vm1, %v16354_v22 }
 0x3c5   : > { %4919 = vmatprep.mubr.bf16.mxu0 %v20848_v55  ;;  %4982 = vmatprep.mubr.bf16.mxu1 %v20848_v55 }
 0x3cc   : > { %12837 = vmatmul.mubr.msk.bf16.gmra.mxu0 %vm3612_vm1, %v16369_v40  ;;  %12840 = vmatmul.mubr.msk.bf16.gmra.mxu1 %vm3612_vm1, %v16369_v40 }
 0x3cd   : > { %5025 = vmatprep.mubr.bf16.mxu0 %v20848_v55  ;;  %5088 = vmatprep.mubr.bf16.mxu1 %v20848_v55 }
 0x3d4   : > { %v16377_v9 = vpop.f32.mrf.mxu0  ;;  %v16379_v23 = vpop.f32.mrf.mxu1  ;;  %12841 = vmatmul.mubr.msk.bf16.vlgmr.msra.gmra.mxu0 %vm3612_vm1, %v16339_v60  ;;  %12844 = vmatmul.mubr.msk.bf16.vlgmr.msra.gmra.mxu1 %vm3612_vm1, %v16339_v60 }
 0x3d5   : > { %5035 = vmatprep.mubr.bf16.mxu0 %v20848_v55  ;;  %5098 = vmatprep.mubr.bf16.mxu1 %v20848_v55 }
 0x3d6   : > { %v16387_v18 = vpop.f32.mrf.mxu0  ;;  %v16389_v21 = vpop.f32.mrf.mxu1  ;;  %5132 = vmatpush1.bf16.msra.mxu0 %v16272_v3  ;;  %5195 = vmatpush1.bf16.msra.mxu1 %v16274_v25 }
 0x3d7   : > { %5133 = vmatprep.subr.bf16.mxu0 %v16276_v43  ;;  %5196 = vmatprep.subr.bf16.mxu1 %v16278_v50 }
 0x3d8   : > { %v16395_v14 = vpop.f32.mrf.mxu0  ;;  %v16397_v26 = vpop.f32.mrf.mxu1 }
 0x3da   : > { %v16399_v31 = vpop.f32.mrf.mxu0  ;;  %v16401_v37 = vpop.f32.mrf.mxu1  ;;  %5134 = vmatpush1.bf16.msra.mxu0 %v16286_v10  ;;  %5197 = vmatpush1.bf16.msra.mxu1 %v16288_v20 }
 0x3db   : > { %5257 = vmatprep.subr.bf16.mxu0 %v13753_v44 }
 0x3dc   : > { %v16405_v32 = vpop.f32.mrf.mxu0  ;;  %v16407_v42 = vpop.f32.mrf.mxu1  ;;  %12842 = vmatmul.mubr.msk.bf16.gmra.mxu0 %vm3612_vm1, %v16354_v22  ;;  %12845 = vmatmul.mubr.msk.bf16.gmra.mxu1 %vm3612_vm1, %v16354_v22 }
 0x3dd   : > { %5045 = vmatprep.mubr.bf16.mxu0 %v20848_v55  ;;  %5108 = vmatprep.mubr.bf16.mxu1 %v20848_v55 }
 0x3de   : > { %v16415_v48 = vpop.f32.mrf.mxu0  ;;  %v16417_v19 = vpop.f32.mrf.mxu1 }
 0x3e0   : > { %v16419_v8 = vpop.f32.mrf.mxu0  ;;  %v16421_v1 = vpop.f32.mrf.mxu1 }
 0x3e2   : > { %v16423_v38 = vpop.f32.mrf.mxu0  ;;  %v16425_v13 = vpop.f32.mrf.mxu1 }
 0x3e4   : > { %v16427_v33 = vpop.f32.mrf.mxu0  ;;  %v16429_v30 = vpop.f32.mrf.mxu1  ;;  %12843 = vmatmul.mubr.msk.bf16.gmra.mxu0 %vm3612_vm1, %v16369_v40  ;;  %12846 = vmatmul.mubr.msk.bf16.gmra.mxu1 %vm3612_vm1, %v16369_v40 }
 0x3e5   : > { %5151 = vmatprep.mubr.bf16.mxu0 %v20848_v55  ;;  %5214 = vmatprep.mubr.bf16.mxu1 %v20848_v55 }
 0x3e6   : > { %v16437_v61 = vpop.f32.mrf.mxu0  ;;  %v16439_v16 = vpop.f32.mrf.mxu1 }
 0x3e8   : > { %v16441_v11 = vpop.f32.mrf.mxu0  ;;  %v16443_v29 = vpop.f32.mrf.mxu1 }
 0x3ea   : > { %v16445_v63 = vpop.f32.mrf.mxu0  ;;  %v16447_v53 = vpop.f32.mrf.mxu1 }
 0x3ec   : > { %v16449_v28 = vpop.f32.mrf.mxu0  ;;  %v16451_v17 = vpop.f32.mrf.mxu1  ;;  %12847 = vmatmul.mubr.msk.bf16.vlgmr.msra.gmra.mxu0 %vm3612_vm1, %v16339_v60  ;;  %12850 = vmatmul.mubr.msk.bf16.vlgmr.msra.gmra.mxu1 %vm3612_vm1, %v16339_v60 }
 0x3ed   : > { %20849 = vst [vmem:[#allocation114_spill] sm:$0xff] %v16451_v17  ;;  %5161 = vmatprep.mubr.bf16.mxu0 %v20848_v55  ;;  %5224 = vmatprep.mubr.bf16.mxu1 %v20848_v55 }
 0x3ee   : > { %v16459_v4 = vpop.f32.mrf.mxu0  ;;  %v16461_v51 = vpop.f32.mrf.mxu1  ;;  %5258 = vmatpush1.bf16.msra.mxu0 %v13751_v34 }
 0x3ef   : > { %20850 = vst [vmem:[#allocation45_spill] sm:$0xff] %v16459_v4  ;;  %20851 = vst [vmem:[#allocation115_spill] sm:$0xff] %v16461_v51  ;;  %5259 = vmatprep.subr.bf16.mxu0 %v13756_v12 }
 0x3f0   : > { %v16463_v54 = vpop.f32.mrf.mxu0  ;;  %v16465_v15 = vpop.f32.mrf.mxu1 }
 0x3f1   : > { %20852 = vst [vmem:[#allocation29_spill] sm:$0xff] %v16463_v54  ;;  %20853 = vst [vmem:[#allocation99_spill] sm:$0xff] %v16465_v15 }
 0x3f2   : > { %v16467_v47 = vpop.f32.mrf.mxu0  ;;  %v16469_v58 = vpop.f32.mrf.mxu1  ;;  %5260 = vmatpush1.bf16.msra.mxu0 %v13754_v52 }
 0x3f3   : > { %20854 = vst [vmem:[#allocation30_spill] sm:$0xff] %v16467_v47  ;;  %20855 = vst [vmem:[#allocation100_spill] sm:$0xff] %v16469_v58 }
 0x3f4   : > { %v16471_v35 = vpop.f32.mrf.mxu0  ;;  %v16473_v6 = vpop.f32.mrf.mxu1  ;;  %12848 = vmatmul.mubr.msk.bf16.gmra.mxu0 %vm3612_vm1, %v16354_v22  ;;  %12851 = vmatmul.mubr.msk.bf16.gmra.mxu1 %vm3612_vm1, %v16354_v22 }
 0x3f5   : > { %20856 = vst [vmem:[#allocation31_spill] sm:$0xff] %v16473_v6  ;;  %5171 = vmatprep.mubr.bf16.mxu0 %v20848_v55  ;;  %5234 = vmatprep.mubr.bf16.mxu1 %v20848_v55 }
 0x3f6   : > { %v16481_v2 = vpop.f32.mrf.mxu0  ;;  %v16483_v41 = vpop.f32.mrf.mxu1 }
 0x3f7   : > { %20857 = vst [vmem:[#allocation101_spill] sm:$0xff] %v16481_v2  ;;  %20858 = vst [vmem:[#allocation34_spill] sm:$0xff] %v16483_v41 }
 0x3f8   : > { %v16485_v56 = vpop.f32.mrf.mxu0  ;;  %v16487_v57 = vpop.f32.mrf.mxu1 }
 0x3f9   : > { %20859 = vst [vmem:[#allocation104_spill] sm:$0xff] %v16485_v56  ;;  %20860 = vst [vmem:[#allocation32_spill] sm:$0xff] %v16487_v57 }
 0x3fa   : > { %v16489_v3 = vpop.f32.mrf.mxu0  ;;  %v16491_v25 = vpop.f32.mrf.mxu1 }
 0x3fb   : > { %20861 = vst [vmem:[#allocation102_spill] sm:$0xff] %v16489_v3  ;;  %20862 = vst [vmem:[#allocation35_spill] sm:$0xff] %v16491_v25 }
 0x3fc   : > { %v16493_v43 = vpop.f32.mrf.mxu0  ;;  %v16495_v50 = vpop.f32.mrf.mxu1  ;;  %12849 = vmatmul.mubr.msk.bf16.gmra.mxu0 %vm3612_vm1, %v16369_v40  ;;  %12852 = vmatmul.mubr.msk.bf16.gmra.mxu1 %vm3612_vm1, %v16369_v40 }
 0x3fd   : > { %20863 = vst [vmem:[#allocation105_spill] sm:$0xff] %v16493_v43  ;;  %20864 = vst [vmem:[#allocation33_spill] sm:$0xff] %v16495_v50  ;;  %5277 = vmatprep.mubr.bf16.mxu0 %v20848_v55 }
 0x3fe   : > { %v16502_v10 = vpop.f32.mrf.mxu0  ;;  %v16504_v20 = vpop.f32.mrf.mxu1 }
 0x3ff   : > { %20865 = vst [vmem:[#allocation103_spill] sm:$0xff] %v16502_v10  ;;  %20866 = vst [vmem:[#allocation36_spill] sm:$0xff] %v16504_v20 }
 0x400   : > { %v16506_v44 = vpop.f32.mrf.mxu0  ;;  %v16508_v34 = vpop.f32.mrf.mxu1 }
 0x401   : > { %20867 = vst [vmem:[#allocation106_spill] sm:$0xff] %v16506_v44  ;;  %20868 = vst [vmem:[#allocation37_spill] sm:$0xff] %v16508_v34 }
 0x402   : > { %v16510_v12 = vpop.f32.mrf.mxu0  ;;  %v16512_v52 = vpop.f32.mrf.mxu1 }
 0x403   : > { %20869 = vst [vmem:[#allocation107_spill] sm:$0xff] %v16510_v12  ;;  %20870 = vst [vmem:[#allocation46_spill] sm:$0xff] %v16512_v52 }
 0x404   : > { %v16514_v36 = vpop.f32.mrf.mxu0  ;;  %v16516_v62 = vpop.f32.mrf.mxu1  ;;  %12853 = vmatmul.mubr.msk.bf16.vlgmr.msra.gmra.mxu0 %vm3612_vm1, %v16339_v60 }
 0x405   : > { %20871 = vst [vmem:[#allocation116_spill] sm:$0xff] %v16514_v36  ;;  %20872 = vst [vmem:[#allocation62_spill] sm:$0xff] %v16516_v62  ;;  %5287 = vmatprep.mubr.bf16.mxu0 %v20848_v55 }
 0x406   : > { %v16521_v5 = vpop.f32.mrf.mxu0  ;;  %v16523_v45 = vpop.f32.mrf.mxu1 }
 0x407   : > { %20873 = vst [vmem:[#allocation132_spill] sm:$0xff] %v16521_v5  ;;  %20874 = vst [vmem:[#allocation63_spill] sm:$0xff] %v16523_v45 }
 0x408   : > { %v16525_v49 = vpop.f32.mrf.mxu0  ;;  %v16527_v59 = vpop.f32.mrf.mxu1 }
 0x409   : > { %20875 = vst [vmem:[#allocation133_spill] sm:$0xff] %v16525_v49  ;;  %20876 = vst [vmem:[#allocation64_spill] sm:$0xff] %v16527_v59 }
 0x40a   : > { %v16529_v46 = vpop.f32.mrf.mxu0  ;;  %v16531_v7 = vpop.f32.mrf.mxu1 }
 0x40b   : > { %20877 = vst [vmem:[#allocation134_spill] sm:$0xff] %v16529_v46  ;;  %20878 = vst [vmem:[#allocation65_spill] sm:$0xff] %v16531_v7 }
 0x40c   : > { %v16533_v24 = vpop.f32.mrf.mxu0  ;;  %v16535_v0 = vpop.f32.mrf.mxu1  ;;  %12854 = vmatmul.mubr.msk.bf16.gmra.mxu0 %vm3612_vm1, %v16354_v22 }
 0x40d   : > { %20879 = vst [vmem:[#allocation135_spill] sm:$0xff] %v16533_v24  ;;  %20880 = vst [vmem:[#allocation47_spill] sm:$0xff] %v16535_v0  ;;  %5297 = vmatprep.mubr.bf16.mxu0 %v20848_v55 }
 0x40e   : > { %v16540_v60 = vpop.f32.mrf.mxu0  ;;  %v16542_v39 = vpop.f32.mrf.mxu1 }
 0x40f   : > { %20881 = vst [vmem:[#allocation117_spill] sm:$0xff] %v16540_v60  ;;  %20882 = vst [vmem:[#allocation50_spill] sm:$0xff] %v16542_v39 }
 0x410   : > { %v16544_v27 = vpop.f32.mrf.mxu0  ;;  %v16546_v45 = vpop.f32.mrf.mxu1 }
 0x411   : > { %20883 = vst [vmem:[#allocation120_spill] sm:$0xff] %v16544_v27  ;;  %20884 = vst [vmem:[#allocation66_spill] sm:$0xff] %v16546_v45 }
 0x412   : > { %v16548_v46 = vpop.f32.mrf.mxu0  ;;  %v16550_v7 = vpop.f32.mrf.mxu1 }
 0x413   : > { %20885 = vst [vmem:[#allocation136_spill] sm:$0xff] %v16548_v46  ;;  %20886 = vst [vmem:[#allocation67_spill] sm:$0xff] %v16550_v7 }
 0x414   : > { %v16552_v59 = vpop.f32.mrf.mxu0  ;;  %v16554_v5 = vpop.f32.mrf.mxu1  ;;  %12855 = vmatmul.mubr.msk.bf16.gmra.mxu0 %vm3612_vm1, %v16369_v40 }
 0x415   : > { %20887 = vst [vmem:[#allocation137_spill] sm:$0xff] %v16552_v59  ;;  %20888 = vst [vmem:[#allocation68_spill] sm:$0xff] %v16554_v5 }
 0x416   : > { %v16558_v55 = vpop.f32.mrf.mxu0  ;;  %v16560_v22 = vpop.f32.mrf.mxu1 }
 0x417   : > { %20889 = vst [vmem:[#allocation138_spill] sm:$0xff] %v16558_v55  ;;  %20890 = vst [vmem:[#allocation69_spill] sm:$0xff] %v16560_v22 }
 0x418   : > { %v16562_v62 = vpop.f32.mrf.mxu0  ;;  %v16564_v49 = vpop.f32.mrf.mxu1 }
 0x419   : > { %20891 = vst [vmem:[#allocation139_spill] sm:$0xff] %v16562_v62  ;;  %20892 = vst [vmem:[#allocation48_spill] sm:$0xff] %v16564_v49 }
 0x41a   : > { %v16566_v52 = vpop.f32.mrf.mxu0  ;;  %v16568_v36 = vpop.f32.mrf.mxu1 }
 0x41b   : > { %20893 = vst [vmem:[#allocation118_spill] sm:$0xff] %v16566_v52  ;;  %20894 = vst [vmem:[#allocation51_spill] sm:$0xff] %v16568_v36 }
 0x41c   : > { %v16570_v7 = vpop.f32.mrf.mxu0  ;;  %v16572_v59 = vpop.f32.mrf.mxu1 }
 0x41d   : > { %20895 = vst [vmem:[#allocation121_spill] sm:$0xff] %v16570_v7 }
 0x41e   : > { %v16574_v5 = vpop.f32.mrf.mxu0  ;;  %v16576_v46 = vpop.f32.mrf.mxu1 }
 0x41f   : > { %20896 = vst [vmem:[#allocation49_spill] sm:$0xff] %v16574_v5 }
 0x420   : > { %v16578_v40 = vpop.f32.mrf.mxu0  ;;  %v16580_v55 = vpop.f32.mrf.mxu1 }
 0x421   : > { %20897 = vst [vmem:[#allocation119_spill] sm:$0xff] %v16578_v40 }
 0x422   : > { %v16582_v22 = vpop.f32.mrf.mxu0  ;;  %v16584_v62 = vpop.f32.mrf.mxu1 }
 0x423   : > { %20898 = vst [vmem:[#allocation52_spill] sm:$0xff] %v16582_v22 }
 0x424   : > { %v16586_v49 = vpop.f32.mrf.mxu0  ;;  %v16588_v52 = vpop.f32.mrf.mxu1 }
 0x425   : > { %20899 = vst [vmem:[#allocation122_spill] sm:$0xff] %v16586_v49 }
 0x426   : > { %v16590_v36 = vpop.f32.mrf.mxu0  ;;  %v16592_v7 = vpop.f32.mrf.mxu1 }
 0x427   : > { %20900 = vst [vmem:[#allocation53_spill] sm:$0xff] %v16590_v36 }
 0x428   : > { %v16594_v45 = vpop.f32.mrf.mxu0  ;;  %v16596_v5 = vpop.f32.mrf.mxu1 }
 0x429   : > { %20901 = vst [vmem:[#allocation123_spill] sm:$0xff] %v16594_v45 }
 0x42a   : > { %v16598_v20 = vpop.f32.mrf.mxu0  ;;  %v16600_v40 = vpop.f32.mrf.mxu1 }
 0x42b   : > { %20902 = vst [vmem:[#allocation54_spill] sm:$0xff] %v16598_v20 }
 0x42c   : > { %v16602_v27 = vpop.f32.mrf.mxu0  ;;  %v16604_v22 = vpop.f32.mrf.mxu1 }
 0x42d   : > { %20903 = vst [vmem:[#allocation124_spill] sm:$0xff] %v16602_v27 }
 0x42e   : > { %v16606_v12 = vpop.f32.mrf.mxu0  ;;  %v16608_v49 = vpop.f32.mrf.mxu1 }
 0x42f   : > { %20904 = vst [vmem:[#allocation55_spill] sm:$0xff] %v16606_v12 }
 0x430   : > { %v16610_v39 = vpop.f32.mrf.mxu0  ;;  %v16612_v36 = vpop.f32.mrf.mxu1 }
 0x431   : > { %20905 = vst [vmem:[#allocation125_spill] sm:$0xff] %v16610_v39 }
 0x432   : > { %v16614_v60 = vpop.f32.mrf.mxu0  ;;  %v16616_v45 = vpop.f32.mrf.mxu1 }
 0x433   : > { %20906 = vst [vmem:[#allocation58_spill] sm:$0xff] %v16614_v60 }
 0x434   : > { %v16618_v0 = vpop.f32.mrf.mxu0  ;;  %v16620_v20 = vpop.f32.mrf.mxu1 }
 0x436   : > { %v16622_v34 = vpop.f32.mrf.mxu0  ;;  %v16624_v27 = vpop.f32.mrf.mxu1 }
 0x437   : > { %20907 = vst [vmem:[#allocation128_spill] sm:$0xff] %v16624_v27 }
 0x438   : > { %v16626_v24 = vpop.f32.mrf.mxu0  ;;  %v16628_v12 = vpop.f32.mrf.mxu1 }
 0x439   : > { %20908 = vst [vmem:[#allocation56_spill] sm:$0xff] %v16628_v12 }
 0x43a   : > { %v16630_v10 = vpop.f32.mrf.mxu0  ;;  %v16632_v39 = vpop.f32.mrf.mxu1 }
 0x43b   : > { %20909 = vst [vmem:[#allocation126_spill] sm:$0xff] %v16632_v39 }
 0x43c   : > { %v16634_v50 = vpop.f32.mrf.mxu0  ;;  %v16636_v60 = vpop.f32.mrf.mxu1 }
 0x43e   : > { %v16638_v44 = vpop.f32.mrf.mxu0  ;;  %v16640_v58 = vpop.f32.mrf.mxu1 }
 0x43f   : > { %20910 = vst [vmem:[#allocation59_spill] sm:$0xff] %v16640_v58 }
 0x440   : > { %v16642_v43 = vpop.f32.mrf.mxu0  ;;  %v16644_v51 = vpop.f32.mrf.mxu1 }
 0x441   : > { %20911 = vst [vmem:[#allocation129_spill] sm:$0xff] %v16644_v51 }
 0x442   : > { %v16646_v47 = vpop.f32.mrf.mxu0  ;;  %v16648_v15 = vpop.f32.mrf.mxu1 }
 0x443   : > { %20912 = vst [vmem:[#allocation57_spill] sm:$0xff] %v16648_v15 }
 0x444   : > { %v16650_v27 = vpop.f32.mrf.mxu0  ;;  %v16652_v4 = vpop.f32.mrf.mxu1 }
 0x445   : > { %20913 = vst [vmem:[#allocation127_spill] sm:$0xff] %v16652_v4 }
 0x446   : > { %v16654_v39 = vpop.f32.mrf.mxu0  ;;  %v16656_v25 = vpop.f32.mrf.mxu1 }
 0x447   : > { %20914 = vst [vmem:[#allocation60_spill] sm:$0xff] %v16656_v25 }
 0x448   : > { %v16658_v3 = vpop.f32.mrf.mxu0  ;;  %v16660_v57 = vpop.f32.mrf.mxu1 }
 0x449   : > { %20915 = vst [vmem:[#allocation130_spill] sm:$0xff] %v16660_v57 }
 0x44a   : > { %v16662_v17 = vpop.f32.mrf.mxu0  ;;  %v16664_v56 = vpop.f32.mrf.mxu1 }
 0x44b   : > { %20916 = vst [vmem:[#allocation61_spill] sm:$0xff] %v16662_v17  ;;  %20917 = vst [vmem:[#allocation131_spill] sm:$0xff] %v16664_v56 }
 0x44c   : > { %v16666_v51 = vpop.f32.mrf.mxu0  ;;  %v16668_v12 = vpop.f32.mrf.mxu1 }
 0x44d   : > { %20918 = vst [vmem:[#allocation70_spill] sm:$0xff] %v16666_v51  ;;  %20919 = vst [vmem:[#allocation140_spill] sm:$0xff] %v16668_v12 }
 0x44e   : > { %v16670_v15 = vpop.f32.mrf.mxu0  ;;  %v16672_v54 = vpop.f32.mrf.mxu1 }
 0x44f   : > { %20920 = vst [vmem:[#allocation71_spill] sm:$0xff] %v16670_v15  ;;  %20921 = vst [vmem:[#allocation141_spill] sm:$0xff] %v16672_v54 }
 0x450   : > { %v16674_v4 = vpop.f32.mrf.mxu0  ;;  %v16676_v41 = vpop.f32.mrf.mxu1 }
 0x451   : > { %20922 = vst [vmem:[#allocation74_spill] sm:$0xff] %v16674_v4  ;;  %20923 = vst [vmem:[#allocation144_spill] sm:$0xff] %v16676_v41 }
 0x452   : > { %v16678_v25 = vpop.f32.mrf.mxu0  ;;  %v16680_v58 = vpop.f32.mrf.mxu1 }
 0x453   : > { %20924 = vst [vmem:[#allocation72_spill] sm:$0xff] %v16678_v25  ;;  %20925 = vst [vmem:[#allocation142_spill] sm:$0xff] %v16680_v58 }
 0x454   : > { %v16682_v57 = vpop.f32.mrf.mxu0  ;;  %v16684_v2 = vpop.f32.mrf.mxu1 }
 0x455   : > { %20926 = vst [vmem:[#allocation75_spill] sm:$0xff] %v16682_v57  ;;  %20927 = vst [vmem:[#allocation145_spill] sm:$0xff] %v16684_v2 }
 0x456   : > { %v16686_v56 = vpop.f32.mrf.mxu0  ;;  %v16688_v51 = vpop.f32.mrf.mxu1 }
 0x457   : > { %20928 = vst [vmem:[#allocation73_spill] sm:$0xff] %v16686_v56  ;;  %20929 = vst [vmem:[#allocation143_spill] sm:$0xff] %v16688_v51 }
 0x458   : > { %v16690_v12 = vpop.f32.mrf.mxu0  ;;  %v16692_v15 = vpop.f32.mrf.mxu1 }
 0x459   : > { %20930 = vst [vmem:[#allocation76_spill] sm:$0xff] %v16690_v12  ;;  %20931 = vst [vmem:[#allocation146_spill] sm:$0xff] %v16692_v15 }
 0x45a   : > { %v16694_v54 = vpop.f32.mrf.mxu0  ;;  %v16696_v4 = vpop.f32.mrf.mxu1 }
 0x45b   : > { %20932 = vst [vmem:[#allocation77_spill] sm:$0xff] %v16694_v54  ;;  %20933 = vst [vmem:[#allocation147_spill] sm:$0xff] %v16696_v4 }
 0x45c   : > { %v16698_v41 = vpop.f32.mrf.mxu0  ;;  %v16700_v25 = vpop.f32.mrf.mxu1 }
 0x45d   : > { %20934 = vst [vmem:[#allocation85_spill] sm:$0xff] %v16698_v41  ;;  %20935 = vst [vmem:[#allocation15_spill] sm:$0xff] %v16700_v25 }
 0x45e   : > { %v16702_v58 = vpop.f32.mrf.mxu0  ;;  %v16704_v57 = vpop.f32.mrf.mxu1 }
 0x45f   : > { %20936 = vst [vmem:[#allocation16_spill] sm:$0xff] %v16702_v58  ;;  %20937 = vst [vmem:[#allocation89_spill] sm:$0xff] %v16704_v57 }
 0x460   : > { %v16706_v2 = vpop.f32.mrf.mxu0  ;;  %v16708_v56 = vpop.f32.mrf.mxu1 }
 0x461   : > { %20938 = vst [vmem:[#allocation20_spill] sm:$0xff] %v16706_v2  ;;  %20939 = vst [vmem:[#allocation112_spill] sm:$0xff] %v16708_v56 }
 0x462   : > { %v16710_v51 = vpop.f32.mrf.mxu0  ;;  %v16712_v12 = vpop.f32.mrf.mxu1 }
 0x463   : > { %20940 = vst [vmem:[#allocation17_spill] sm:$0xff] %v16710_v51  ;;  %20941 = vst [vmem:[#allocation86_spill] sm:$0xff] %v16712_v12 }
 0x464   : > { %v16714_v15 = vpop.f32.mrf.mxu0  ;;  %v16716_v54 = vpop.f32.mrf.mxu1 }
 0x465   : > { %20942 = vst [vmem:[#allocation78_spill] sm:$0xff] %v16714_v15  ;;  %20943 = vst [vmem:[#allocation8_spill] sm:$0xff] %v16716_v54 }
 0x466   : > { %v16718_v4 = vpop.f32.mrf.mxu0  ;;  %v16720_v41 = vpop.f32.mrf.mxu1 }
 0x467   : > { %20944 = vst [vmem:[#allocation87_spill] sm:$0xff] %v16718_v4  ;;  %20945 = vst [vmem:[#allocation11_spill] sm:$0xff] %v16720_v41 }
 0x468   : > { %v16722_v25 = vpop.f32.mrf.mxu0  ;;  %v16724_v58 = vpop.f32.mrf.mxu1 }
 0x469   : > { %20946 = vst [vmem:[#allocation91_spill] sm:$0xff] %v16722_v25  ;;  %20947 = vst [vmem:[#allocation12_spill] sm:$0xff] %v16724_v58 }
 0x46a   : > { %v16726_v57 = vpop.f32.mrf.mxu0  ;;  %v16728_v2 = vpop.f32.mrf.mxu1 }
 0x46b   : > { %20948 = vst [vmem:[#allocation14_spill] sm:$0xff] %v16726_v57  ;;  %20949 = vst [vmem:[#allocation93_spill] sm:$0xff] %v16728_v2 }
 0x46c   : > { %v16730_v56 = vpop.f32.mrf.mxu0  ;;  %v16732_v51 = vpop.f32.mrf.mxu1 }
 0x46d   : > { %20950 = vst [vmem:[#allocation26_spill] sm:$0xff] %v16730_v56  ;;  %20951 = vst [vmem:[#allocation27_spill] sm:$0xff] %v16732_v51 }
 0x46e   : > { %v16734_v12 = vpop.f32.mrf.mxu0  ;;  %v16736_v15 = vpop.f32.mrf.mxu1 }
 0x46f   : > { %20952 = vst [vmem:[#allocation108_spill] sm:$0xff] %v16734_v12  ;;  %20953 = vst [vmem:[#allocation79_spill] sm:$0xff] %v16736_v15 }
 0x470   : > { %v16738_v54 = vpop.f32.mrf.mxu0  ;;  %v16740_v4 = vpop.f32.mrf.mxu1 }
 0x471   : > { %20954 = vst [vmem:[#allocation82_spill] sm:$0xff] %v16738_v54  ;;  %20955 = vst [vmem:[#allocation92_spill] sm:$0xff] %v16740_v4  ;;  %v4262_v4 = vadd.f32 %v16572_v59, %v16377_v9 }
 0x472   : > { %v16742_v41 = vpop.f32.mrf.mxu0  ;;  %v16744_v25 = vpop.f32.mrf.mxu1 }
 0x473   : > { %20956 = vst [vmem:[#allocation24_spill] sm:$0xff] %v16742_v41  ;;  %20957 = vst [vmem:[#allocation94_spill] sm:$0xff] %v16744_v25 }
 0x474   : > { %v16746_v58 = vpop.f32.mrf.mxu0  ;;  %v16748_v57 = vpop.f32.mrf.mxu1 }
 0x475   : > { %20958 = vst [vmem:[#allocation97_spill] sm:$0xff] %v16746_v58  ;;  %20959 = vst [vmem:[#allocation39_spill] sm:$0xff] %v16748_v57  ;;  %v4264_v57 = vadd.f32 %v16576_v46, %v16387_v18  ;;  %v4272_v46 = vadd.f32 %v16588_v52, %v16405_v32  ;;  %v4327_v18 = vadd.f32 %v16622_v34, %v16389_v21 }
 0x476   : > { %v16750_v2 = vpop.f32.mrf.mxu0  ;;  %v16752_v56 = vpop.f32.mrf.mxu1  ;;  %v4337_v32 = vadd.f32 %v16638_v44, %v16417_v19  ;;  %v4286_v52 = vadd.f32 %v16612_v36, %v16441_v11 }
 0x477   : > { %20960 = vst [vmem:[#allocation148_spill] sm:$0xff] %v16750_v2  ;;  %20961 = vst [vmem:[#allocation149_spill] sm:$0xff] %v16752_v56  ;;  %v4325_v56 = vadd.f32 %v16618_v0, %v16379_v23  ;;  %v4335_v0 = vadd.f32 %v16634_v50, %v16407_v42  ;;  %v4266_v42 = vadd.f32 %v16580_v55, %v16395_v14 }
 0x478   : > { %v16754_v51 = vpop.f32.mrf.mxu0  ;;  %v16756_v12 = vpop.f32.mrf.mxu1  ;;  %v4331_v14 = vadd.f32 %v16630_v10, %v16401_v37 }
 0x479   : > { %20962 = vst [vmem:[#allocation150_spill] sm:$0xff] %v16754_v51  ;;  %20963 = vst [vmem:[#allocation151_spill] sm:$0xff] %v16756_v12 }
 0x47a   : > { %v16758_v15 = vpop.f32.mrf.mxu0  ;;  %v16760_v54 = vpop.f32.mrf.mxu1 }
 0x47b   : > { %20964 = vst [vmem:[#allocation152_spill] sm:$0xff] %v16758_v15  ;;  %20965 = vst [vmem:[#allocation153_spill] sm:$0xff] %v16760_v54  ;;  %v4329_v54 = vadd.f32 %v16626_v24, %v16397_v26  ;;  %v4268_v24 = vadd.f32 %v16584_v62, %v16399_v31  ;;  %v4274_v26 = vadd.f32 %v16592_v7, %v16415_v48 }
 0x47c   : > { %v4901_v25 = vpop.f32.mrf.mxu0  ;;  %v4964_v41 = vpop.f32.mrf.mxu1  ;;  %v4276_v62 = vadd.f32 %v16596_v5, %v16419_v8  ;;  %v4339_v48 = vadd.f32 %v16642_v43, %v16421_v1  ;;  %v4341_v8 = vadd.f32 %v16646_v47, %v16425_v13 }
 0x47d   : > { %v5308_v58 = vadd.f32 %v4901_v25, %v4262_v4  ;;  %v5310_v59 = vadd.f32 %v4964_v41, %v4325_v56 }
 0x47e   : > { %v4903_v2 = vpop.f32.mrf.mxu0  ;;  %v4966_v6 = vpop.f32.mrf.mxu1 }
 0x47f   : > { %5392 = vrot.lane.b32.xlu0 %v5308_v58, %s14233_s25  ;;  %v5309_v12 = vadd.f32 %v4903_v2, %v4264_v57  ;;  %v5311_v2 = vadd.f32 %v4966_v6, %v4327_v18  ;;  %v4278_v6 = vadd.f32 %v16600_v40, %v16423_v38  ;;  %v4282_v38 = vadd.f32 %v16604_v22, %v16427_v33 }
 0x480   : > { %v4905_v15 = vpop.f32.mrf.mxu0  ;;  %v4968_v51 = vpop.f32.mrf.mxu1  ;;  %v4345_v33 = vadd.f32 %v16650_v27, %v16429_v30  ;;  %v4349_v18 = vadd.f32 %v16658_v3, %v16443_v29 }
 0x481   : > { %5396 = vrot.lane.b32.xlu1 %v5309_v12, %s14233_s25  ;;  %v5324_v23 = vadd.f32 %v4968_v51, %v4329_v54  ;;  %v5322_v57 = vadd.f32 %v4905_v15, %v4266_v42 }
 0x482   : > { %v4907_v9 = vpop.f32.mrf.mxu0  ;;  %v4970_v17 = vpop.f32.mrf.mxu1 }
 0x483   : > { %5400 = vrot.lane.b32.xlu0 %v5310_v59, %s14233_s25  ;;  %v5323_v51 = vadd.f32 %v4907_v9, %v4268_v24  ;;  %v5325_v44 = vadd.f32 %v4970_v17, %v4331_v14  ;;  %v4288_v24 = vadd.f32 %v16616_v45, %v16445_v63  ;;  %v20966_v45 = vld [vmem:[#allocation61_spill] sm:$0xff] }
 0x484   : > { %v4911_v4 = vpop.f32.mrf.mxu0  ;;  %v4974_v58 = vpop.f32.mrf.mxu1  ;;  %v4351_v63 = vadd.f32 %v20966_v45, %v16447_v53 }
 0x485   : > { %v16785_v41 = vadd.f32 %v4911_v4, %v4272_v46  ;;  %v16787_v21 = vadd.f32 %v4974_v58, %v4335_v0  ;;  %5402 = vrot.lane.b32.xlu1 %v5324_v23, %s14233_s25  ;;  %v4284_v46 = vadd.f32 %v16608_v49, %v16437_v61  ;;  %v4347_v49 = vadd.f32 %v16654_v39, %v16439_v16  ;;  %v20967_v39 = vld [vmem:[#allocation31_spill] sm:$0xff] }
 0x486   : > { %v4913_v31 = vpop.f32.mrf.mxu0  ;;  %v4976_v7 = vpop.f32.mrf.mxu1  ;;  %v4388_v4 = vadd.f32 %v16620_v20, %v16449_v28  ;;  %v20968_v16 = vld [vmem:[#allocation75_spill] sm:$0xff]  ;;  %v20972_v28 = vld [vmem:[#allocation73_spill] sm:$0xff] }
 0x487   : > { %v16796_v19 = vadd.f32 %v4913_v31, %v4274_v26  ;;  %v16798_v54 = vadd.f32 %v4976_v7, %v4337_v32  ;;  %5404 = vrot.lane.b32.xlu0 %v5311_v2, %s14233_s25  ;;  %v4398_v2 = vadd.f32 %v16636_v60, %v16471_v35  ;;  %v4461_v42 = vadd.f32 %v20968_v16, %v20967_v39  ;;  %v20970_v31 = vld [vmem:[#allocation59_spill] sm:$0xff]  ;;  %v20988_v39 = vld [vmem:[#allocation74_spill] sm:$0xff] }
 0x488   : > { %v4915_v56 = vpop.f32.mrf.mxu0  ;;  %v4978_v5 = vpop.f32.mrf.mxu1 }
 0x489   : > { %v16807_v1 = vadd.f32 %v4915_v56, %v4276_v62  ;;  %v16809_v25 = vadd.f32 %v4978_v5, %v4339_v48  ;;  %5398 = vrot.lane.b32.xlu1 %v5323_v51, %s14233_s25  ;;  %v20969_v62 = vld [vmem:[#allocation101_spill] sm:$0xff]  ;;  %v20971_v48 = vld [vmem:[#allocation34_spill] sm:$0xff]  ;;  %v20974_v5 = vld [vmem:[#allocation56_spill] sm:$0xff] }
 0x48a   : > { %v4917_v43 = vpop.f32.mrf.mxu0  ;;  %v4980_v50 = vpop.f32.mrf.mxu1  ;;  %v4400_v7 = vadd.f32 %v20970_v31, %v20969_v62  ;;  %v4463_v20 = vadd.f32 %v20972_v28, %v20971_v48  ;;  %v20973_v56 = vld [vmem:[#allocation29_spill] sm:$0xff] }
 0x48b   : > { %v16814_v34 = vadd.f32 %v4917_v43, %v4278_v6  ;;  %v16816_v37 = vadd.f32 %v4980_v50, %v4341_v8  ;;  %5394 = vrot.lane.b32.xlu0 %v5322_v57, %s14233_s25  ;;  %v4392_v8 = vadd.f32 %v20974_v5, %v20973_v56  ;;  %v20975_v57 = vld [vmem:[#allocation104_spill] sm:$0xff]  ;;  %v20976_v43 = vld [vmem:[#allocation129_spill] sm:$0xff] }
 0x48c   : > { %v4921_v13 = vpop.f32.mrf.mxu0  ;;  %v4984_v15 = vpop.f32.mrf.mxu1  ;;  %v4402_v50 = vadd.f32 %v20976_v43, %v20975_v57 }
 0x48d   : > { %v5364_v47 = vadd.f32 %v4921_v13, %v4282_v38  ;;  %5406 = vrot.lane.b32.xlu1 %v5325_v44, %s14233_s25  ;;  %v5366_v22 = vadd.f32 %v4984_v15, %v4345_v33  ;;  %v20977_v38 = vld [vmem:[#allocation114_spill] sm:$0xff] }
 0x48e   : > { %v4923_v10 = vpop.f32.mrf.mxu0  ;;  %v4986_v12 = vpop.f32.mrf.mxu1  ;;  %v20978_v44 = vld [vmem:[#allocation70_spill] sm:$0xff] }
 0x48f   : > { %5504 = vrot.lane.b32.xlu0 %v5364_v47, %s14234_s28  ;;  %v5365_v30 = vadd.f32 %v4923_v10, %v4284_v46  ;;  %v5367_v3 = vadd.f32 %v4986_v12, %v4347_v49  ;;  %v4451_v13 = vadd.f32 %v20978_v44, %v20977_v38  ;;  %v20979_v10 = vld [vmem:[#allocation32_spill] sm:$0xff]  ;;  %v20994_v38 = vld [vmem:[#allocation127_spill] sm:$0xff] }
 0x490   : > { %v4925_v17 = vpop.f32.mrf.mxu0  ;;  %v4988_v55 = vpop.f32.mrf.mxu1  ;;  %v20980_v12 = vld [vmem:[#allocation76_spill] sm:$0xff] }
 0x491   : > { %v5378_v40 = vadd.f32 %v4925_v17, %v4286_v52  ;;  %v5380_v11 = vadd.f32 %v4988_v55, %v4349_v18  ;;  %v4465_v52 = vadd.f32 %v20980_v12, %v20979_v10  ;;  %v20981_v55 = vld [vmem:[#allocation102_spill] sm:$0xff] }
 0x492   : > { %v4927_v59 = vpop.f32.mrf.mxu0  ;;  %v4990_v9 = vpop.f32.mrf.mxu1 }
 0x493   : > { %5506 = vrot.lane.b32.xlu1 %v5378_v40, %s14234_s28  ;;  %5512 = vrot.lane.b32.xlu0 %v5366_v22, %s14234_s28  ;;  %v5379_v26 = vadd.f32 %v4927_v59, %v4288_v24  ;;  %v5381_v14 = vadd.f32 %v4990_v9, %v4351_v63  ;;  %v20982_v22 = vld [vmem:[#allocation57_spill] sm:$0xff]  ;;  %v20983_v59 = vld [vmem:[#allocation35_spill] sm:$0xff] }
 0x494   : > { %v5027_v36 = vpop.f32.mrf.mxu0  ;;  %v5090_v27 = vpop.f32.mrf.mxu1  ;;  %v4404_v40 = vadd.f32 %v20982_v22, %v20981_v55  ;;  %v20984_v9 = vld [vmem:[#allocation77_spill] sm:$0xff]  ;;  %v20987_v63 = vld [vmem:[#allocation99_spill] sm:$0xff] }
 0x495   : > { %v5312_v35 = vadd.f32 %v5027_v36, %v4388_v4  ;;  %v4467_v46 = vadd.f32 %v20984_v9, %v20983_v59  ;;  %v4455_v16 = vadd.f32 %v20988_v39, %v20987_v63  ;;  %v20999_v9 = vld [vmem:[#allocation33_spill] sm:$0xff]  ;;  %v21003_v63 = vld [vmem:[#allocation135_spill] sm:$0xff] }
 0x496   : > { %v5029_v0 = vpop.f32.mrf.mxu0  ;;  %v16831_v23 = vpop.f32.mrf.mxu1  ;;  %v21004_v39 = vld [vmem:[#allocation145_spill] sm:$0xff] }
 0x497   : > { %5514 = vrot.lane.b32.xlu1 %v5380_v11, %s14234_s28  ;;  %5508 = vrot.lane.b32.xlu0 %v5365_v30, %s14234_s28  ;;  %v5314_v30 = vadd.f32 %v5090_v27, %v4451_v13  ;;  %v20995_v13 = vld [vmem:[#allocation100_spill] sm:$0xff] }
 0x498   : > { %v5031_v61 = vpop.f32.mrf.mxu0  ;;  %v5094_v29 = vpop.f32.mrf.mxu1 }
 0x499   : > { %v5326_v11 = vadd.f32 %v5031_v61, %v4392_v8 }
 0x49a   : > { %v5033_v58 = vpop.f32.mrf.mxu0  ;;  %v5096_v32 = vpop.f32.mrf.mxu1 }
 0x49b   : > { %5510 = vrot.lane.b32.xlu1 %v5379_v26, %s14234_s28  ;;  %5516 = vrot.lane.b32.xlu0 %v5367_v3, %s14234_s28  ;;  %v20985_v3 = vld [vmem:[#allocation45_spill] sm:$0xff]  ;;  %v20986_v26 = vld [vmem:[#allocation128_spill] sm:$0xff] }
 0x49c   : > { %v5037_v51 = vpop.f32.mrf.mxu0  ;;  %v5100_v6 = vpop.f32.mrf.mxu1  ;;  %v4390_v4 = vadd.f32 %v20986_v26, %v20985_v3  ;;  %v21001_v3 = vld [vmem:[#allocation103_spill] sm:$0xff]  ;;  %v21002_v26 = vld [vmem:[#allocation60_spill] sm:$0xff] }
 0x49d   : > { %v16853_v60 = vadd.f32 %v5037_v51, %v4398_v2  ;;  %v16855_v53 = vadd.f32 %v5100_v6, %v4461_v42  ;;  %v20990_v51 = vld [vmem:[#allocation126_spill] sm:$0xff] }
 0x49e   : > { %v5039_v15 = vpop.f32.mrf.mxu0  ;;  %v5102_v47 = vpop.f32.mrf.mxu1  ;;  %v5313_v31 = vadd.f32 %v5029_v0, %v4390_v4  ;;  %v4410_v4 = vadd.f32 %v21002_v26, %v21001_v3  ;;  %v21019_v3 = vld [vmem:[#allocation66_spill] sm:$0xff] }
 0x49f   : > { %v16865_v33 = vadd.f32 %v5039_v15, %v4400_v7  ;;  %v16867_v17 = vadd.f32 %v5102_v47, %v4463_v20  ;;  %5518 = vrot.lane.b32.xlu1 %v5381_v14, %s14234_s28  ;;  %5408 = vrot.lane.b32.xlu0 %v5312_v35, %s14233_s25  ;;  %v5328_v7 = vadd.f32 %v5094_v29, %v4455_v16  ;;  %v20989_v20 = vld [vmem:[#allocation30_spill] sm:$0xff]  ;;  %v20991_v14 = vld [vmem:[#allocation115_spill] sm:$0xff]  ;;  %v20993_v29 = vld [vmem:[#allocation105_spill] sm:$0xff] }
 0x4a0   : > { %v5041_v18 = vpop.f32.mrf.mxu0  ;;  %v5104_v36 = vpop.f32.mrf.mxu1  ;;  %v4394_v6 = vadd.f32 %v20990_v51, %v20989_v20  ;;  %v20992_v35 = vld [vmem:[#allocation71_spill] sm:$0xff]  ;;  %v4408_v44 = vadd.f32 %v20994_v38, %v20993_v29  ;;  %v20996_v15 = vld [vmem:[#allocation72_spill] sm:$0xff]  ;;  %v4524_v16 = vadd.f32 %v21004_v39, %v21003_v63  ;;  %v21008_v51 = vld [vmem:[#allocation26_spill] sm:$0xff] }
 0x4a1   : > { %v16875_v24 = vadd.f32 %v5041_v18, %v4402_v50  ;;  %v16877_v49 = vadd.f32 %v5104_v36, %v4465_v52  ;;  %v4453_v56 = vadd.f32 %v20992_v35, %v20991_v14  ;;  %v4457_v47 = vadd.f32 %v20996_v15, %v20995_v13  ;;  %v21007_v20 = vld [vmem:[#allocation47_spill] sm:$0xff]  ;;  %v21020_v26 = vld [vmem:[#allocation82_spill] sm:$0xff] }
 0x4a2   : > { %v5043_v2 = vpop.f32.mrf.mxu0  ;;  %v5106_v45 = vpop.f32.mrf.mxu1  ;;  %v5327_v43 = vadd.f32 %v5033_v58, %v4394_v6  ;;  %v20997_v58 = vld [vmem:[#allocation106_spill] sm:$0xff]  ;;  %v4587_v6 = vadd.f32 %v21008_v51, %v21007_v20  ;;  %v21010_v14 = vld [vmem:[#allocation143_spill] sm:$0xff]  ;;  %v4591_v63 = vadd.f32 %v21020_v26, %v21019_v3 }
 0x4a3   : > { %v16883_v42 = vadd.f32 %v5043_v2, %v4404_v40  ;;  %v16885_v62 = vadd.f32 %v5106_v45, %v4467_v46  ;;  %5410 = vrot.lane.b32.xlu1 %v5326_v11, %s14233_s25  ;;  %5416 = vrot.lane.b32.xlu0 %v5314_v30, %s14233_s25  ;;  %v5315_v57 = vadd.f32 %v16831_v23, %v4453_v56  ;;  %v20998_v40 = vld [vmem:[#allocation130_spill] sm:$0xff]  ;;  %v21000_v46 = vld [vmem:[#allocation85_spill] sm:$0xff]  ;;  %v21022_v39 = vld [vmem:[#allocation147_spill] sm:$0xff] }
 0x4a4   : > { %v5047_v27 = vpop.f32.mrf.mxu0  ;;  %v5110_v61 = vpop.f32.mrf.mxu1  ;;  %v5329_v52 = vadd.f32 %v5096_v32, %v4457_v47  ;;  %v4412_v59 = vadd.f32 %v20998_v40, %v20997_v58  ;;  %v4471_v18 = vadd.f32 %v21000_v46, %v20999_v9  ;;  %v21011_v56 = vld [vmem:[#allocation50_spill] sm:$0xff]  ;;  %v21013_v47 = vld [vmem:[#allocation107_spill] sm:$0xff]  ;;  %v21015_v58 = vld [vmem:[#allocation120_spill] sm:$0xff] }
 0x4a5   : > { %v5368_v55 = vadd.f32 %v5047_v27, %v4408_v44  ;;  %v21005_v27 = vld [vmem:[#allocation37_spill] sm:$0xff]  ;;  %v21016_v40 = vld [vmem:[#allocation146_spill] sm:$0xff]  ;;  %v21017_v9 = vld [vmem:[#allocation36_spill] sm:$0xff] }
 0x4a6   : > { %v5049_v48 = vpop.f32.mrf.mxu0  ;;  %v5112_v28 = vpop.f32.mrf.mxu1  ;;  %v5370_v11 = vadd.f32 %v5110_v61, %v4471_v18  ;;  %v21009_v61 = vld [vmem:[#allocation117_spill] sm:$0xff]  ;;  %v21018_v46 = vld [vmem:[#allocation16_spill] sm:$0xff] }
 0x4a7   : > { %5418 = vrot.lane.b32.xlu1 %v5328_v7, %s14233_s25  ;;  %5412 = vrot.lane.b32.xlu0 %v5313_v31, %s14233_s25  ;;  %v21006_v31 = vld [vmem:[#allocation20_spill] sm:$0xff]  ;;  %v4526_v35 = vadd.f32 %v21010_v14, %v21009_v61  ;;  %v5369_v38 = vadd.f32 %v5049_v48, %v4410_v4  ;;  %v4473_v18 = vadd.f32 %v21018_v46, %v21017_v9 }
 0x4a8   : > { %v5051_v5 = vpop.f32.mrf.mxu0  ;;  %v5114_v8 = vpop.f32.mrf.mxu1  ;;  %v4475_v7 = vadd.f32 %v21006_v31, %v21005_v27  ;;  %v21021_v4 = vld [vmem:[#allocation136_spill] sm:$0xff]  ;;  %v21023_v27 = vld [vmem:[#allocation67_spill] sm:$0xff] }
 0x4a9   : > { %v5382_v32 = vadd.f32 %v5051_v5, %v4412_v59  ;;  %v21012_v5 = vld [vmem:[#allocation108_spill] sm:$0xff]  ;;  %v4528_v59 = vadd.f32 %v21016_v40, %v21015_v58 }
 0x4aa   : > { %v5053_v50 = vpop.f32.mrf.mxu0  ;;  %v5116_v0 = vpop.f32.mrf.mxu1  ;;  %v5384_v44 = vadd.f32 %v5114_v8, %v4475_v7  ;;  %v21024_v31 = vld [vmem:[#allocation24_spill] sm:$0xff] }
 0x4ab   : > { %5414 = vrot.lane.b32.xlu1 %v5327_v43, %s14233_s25  ;;  %5420 = vrot.lane.b32.xlu0 %v5315_v57, %s14233_s25  ;;  %v4589_v57 = vadd.f32 %v21012_v5, %v21011_v56  ;;  %v4593_v7 = vadd.f32 %v21024_v31, %v21023_v27  ;;  %v21025_v56 = vld [vmem:[#allocation116_spill] sm:$0xff]  ;;  %v21036_v27 = vld [vmem:[#allocation91_spill] sm:$0xff] }
 0x4ac   : > { %v5153_v10 = vpop.f32.mrf.mxu0  ;;  %v16902_v12 = vpop.f32.mrf.mxu1  ;;  %v21026_v5 = vld [vmem:[#allocation140_spill] sm:$0xff] }
 0x4ad   : > { %v21030_v9 = vld [vmem:[#allocation144_spill] sm:$0xff] }
 0x4ae   : > { %v16904_v22 = vpop.f32.mrf.mxu0  ;;  %v16906_v23 = vpop.f32.mrf.mxu1 }
 0x4af   : > { %5422 = vrot.lane.b32.xlu1 %v5329_v52, %s14233_s25  ;;  %5520 = vrot.lane.b32.xlu0 %v5368_v55, %s14234_s28  ;;  %v21014_v52 = vld [vmem:[#allocation131_spill] sm:$0xff] }
 0x4b0   : > { %v5157_v36 = vpop.f32.mrf.mxu0  ;;  %v16914_v30 = vpop.f32.mrf.mxu1  ;;  %v4414_v55 = vadd.f32 %v21014_v52, %v21013_v47 }
 0x4b2   : > { %v16918_v2 = vpop.f32.mrf.mxu0  ;;  %v16920_v45 = vpop.f32.mrf.mxu1  ;;  %v5383_v61 = vadd.f32 %v5053_v50, %v4414_v55 }
 0x4b3   : > { %5522 = vrot.lane.b32.xlu1 %v5382_v32, %s14234_s28  ;;  %5528 = vrot.lane.b32.xlu0 %v5370_v11, %s14234_s28 }
 0x4b4   : > { %v5163_v43 = vpop.f32.mrf.mxu0  ;;  %v5226_v29 = vpop.f32.mrf.mxu1 }
 0x4b5   : > { %v16934_v13 = vadd.f32 %v5163_v43, %v4524_v16  ;;  %v16936_v15 = vadd.f32 %v5226_v29, %v4587_v6  ;;  %v4530_v16 = vadd.f32 %v21022_v39, %v21021_v4  ;;  %v5371_v6 = vadd.f32 %v5112_v28, %v4473_v18  ;;  %v21031_v18 = vld [vmem:[#allocation62_spill] sm:$0xff]  ;;  %v21033_v39 = vld [vmem:[#allocation132_spill] sm:$0xff] }
 0x4b6   : > { %v5165_v11 = vpop.f32.mrf.mxu0  ;;  %v5228_v32 = vpop.f32.mrf.mxu1 }
 0x4b7   : > { %v16946_v48 = vadd.f32 %v5165_v11, %v4526_v35  ;;  %v16948_v8 = vadd.f32 %v5228_v32, %v4589_v57  ;;  %5530 = vrot.lane.b32.xlu1 %v5384_v44, %s14234_s28  ;;  %5524 = vrot.lane.b32.xlu0 %v5369_v38, %s14234_s28  ;;  %v4514_v57 = vadd.f32 %v21026_v5, %v21025_v56  ;;  %v21027_v38 = vld [vmem:[#allocation46_spill] sm:$0xff]  ;;  %v21028_v44 = vld [vmem:[#allocation17_spill] sm:$0xff]  ;;  %v21039_v56 = vld [vmem:[#allocation63_spill] sm:$0xff] }
 0x4b8   : > { %v5167_v20 = vpop.f32.mrf.mxu0  ;;  %v5230_v51 = vpop.f32.mrf.mxu1  ;;  %v4477_v47 = vadd.f32 %v21028_v44, %v21027_v38  ;;  %v21032_v11 = vld [vmem:[#allocation78_spill] sm:$0xff]  ;;  %v21040_v5 = vld [vmem:[#allocation87_spill] sm:$0xff] }
 0x4b9   : > { %v16956_v14 = vadd.f32 %v5167_v20, %v4528_v59  ;;  %v16958_v35 = vadd.f32 %v5230_v51, %v4591_v63  ;;  %v5316_v55 = vadd.f32 %v5153_v10, %v4514_v57  ;;  %v21029_v59 = vld [vmem:[#allocation133_spill] sm:$0xff]  ;;  %v4577_v32 = vadd.f32 %v21032_v11, %v21031_v18  ;;  %v21035_v10 = vld [vmem:[#allocation64_spill] sm:$0xff]  ;;  %v21046_v18 = vld [vmem:[#allocation27_spill] sm:$0xff] }
 0x4ba   : > { %v5169_v43 = vpop.f32.mrf.mxu0  ;;  %v5232_v29 = vpop.f32.mrf.mxu1  ;;  %v5385_v50 = vadd.f32 %v5116_v0, %v4477_v47  ;;  %v4518_v46 = vadd.f32 %v21030_v9, %v21029_v59  ;;  %v4581_v31 = vadd.f32 %v21036_v27, %v21035_v10  ;;  %v4579_v57 = vadd.f32 %v21040_v5, %v21039_v56  ;;  %v21041_v47 = vld [vmem:[#allocation137_spill] sm:$0xff]  ;;  %v21044_v59 = vld [vmem:[#allocation14_spill] sm:$0xff]  ;;  %v21050_v10 = vld [vmem:[#allocation112_spill] sm:$0xff] }
 0x4bb   : > { %v16964_v52 = vadd.f32 %v5169_v43, %v4530_v16  ;;  %v16966_v58 = vadd.f32 %v5232_v29, %v4593_v7  ;;  %5526 = vrot.lane.b32.xlu1 %v5383_v61, %s14234_s28  ;;  %5532 = vrot.lane.b32.xlu0 %v5371_v6, %s14234_s28  ;;  %v5318_v26 = vadd.f32 %v16902_v12, %v4577_v32  ;;  %v21034_v16 = vld [vmem:[#allocation141_spill] sm:$0xff]  ;;  %v21037_v61 = vld [vmem:[#allocation134_spill] sm:$0xff] }
 0x4bc   : > { %v5173_v28 = vpop.f32.mrf.mxu0  ;;  %v5330_v63 = vadd.f32 %v5157_v36, %v4518_v46  ;;  %v4516_v0 = vadd.f32 %v21034_v16, %v21033_v39  ;;  %v5332_v51 = vadd.f32 %v16914_v30, %v4581_v31  ;;  %v21038_v12 = vld [vmem:[#allocation142_spill] sm:$0xff]  ;;  %v5319_v29 = vadd.f32 %v16906_v23, %v4579_v57  ;;  %v5236_v44 = vpop.f32.mrf.mxu1  ;;  %v21042_v30 = vld [vmem:[#allocation15_spill] sm:$0xff]  ;;  %v21054_v56 = vld [vmem:[#allocation97_spill] sm:$0xff] }
 0x4bd   : > { %v4520_v36 = vadd.f32 %v21038_v12, %v21037_v61  ;;  %v21045_v46 = vld [vmem:[#allocation122_spill] sm:$0xff]  ;;  %v21048_v23 = vld [vmem:[#allocation79_spill] sm:$0xff]  ;;  %v21052_v61 = vld [vmem:[#allocation92_spill] sm:$0xff] }
 0x4be   : > { %v5175_v40 = vpop.f32.mrf.mxu0  ;;  %v5317_v20 = vadd.f32 %v16904_v22, %v4516_v0  ;;  %v4650_v11 = vadd.f32 %v21046_v18, %v21045_v46  ;;  %v21049_v0 = vld [vmem:[#allocation139_spill] sm:$0xff]  ;;  %v5238_v31 = vpop.f32.mrf.mxu1  ;;  %v21059_v46 = vld [vmem:[#allocation89_spill] sm:$0xff] }
 0x4bf   : > { %5534 = vrot.lane.b32.xlu1 %v5385_v50, %s14234_s28  ;;  %5424 = vrot.lane.b32.xlu0 %v5316_v55, %s14233_s25  ;;  %v5331_v38 = vadd.f32 %v16918_v2, %v4520_v36  ;;  %v4534_v50 = vadd.f32 %v21042_v30, %v21041_v47  ;;  %v21043_v55 = vld [vmem:[#allocation65_spill] sm:$0xff]  ;;  %v4538_v27 = vadd.f32 %v21050_v10, %v21049_v0  ;;  %v21053_v36 = vld [vmem:[#allocation68_spill] sm:$0xff] }
 0x4c0   : > { %v5177_v3 = vpop.f32.mrf.mxu0  ;;  %v4583_v9 = vadd.f32 %v21044_v59, %v21043_v55  ;;  %v4597_v5 = vadd.f32 %v21054_v56, %v21053_v36  ;;  %v5240_v55 = vpop.f32.mrf.mxu1  ;;  %v21065_v0 = vld [vmem:[#allocation69_spill] sm:$0xff]  ;;  %v21066_v10 = vld [vmem:[#allocation148_spill] sm:$0xff] }
 0x4c1   : > { %v5372_v39 = vadd.f32 %v5173_v28, %v4534_v50  ;;  %v21056_v28 = vld [vmem:[#allocation54_spill] sm:$0xff]  ;;  %v5386_v30 = vadd.f32 %v5177_v3, %v4538_v27  ;;  %v4599_v27 = vadd.f32 %v21066_v10, %v21065_v0  ;;  %v21068_v36 = vld [vmem:[#allocation8_spill] sm:$0xff]  ;;  %v21079_v0 = vld [vmem:[#allocation55_spill] sm:$0xff] }
 0x4c2   : > { %v5179_v4 = vpop.f32.mrf.mxu0  ;;  %v5333_v2 = vadd.f32 %v16920_v45, %v4583_v9  ;;  %v5374_v47 = vadd.f32 %v5236_v44, %v4597_v5  ;;  %v21058_v9 = vld [vmem:[#allocation138_spill] sm:$0xff]  ;;  %v21069_v5 = vld [vmem:[#allocation51_spill] sm:$0xff]  ;;  %v21080_v10 = vld [vmem:[#allocation149_spill] sm:$0xff] }
 0x4c3   : > { %5426 = vrot.lane.b32.xlu1 %v5330_v63, %s14233_s25  ;;  %5432 = vrot.lane.b32.xlu0 %v5318_v26, %s14233_s25  ;;  %v21047_v26 = vld [vmem:[#allocation53_spill] sm:$0xff]  ;;  %v4536_v18 = vadd.f32 %v21059_v46, %v21058_v9  ;;  %v21063_v44 = vld [vmem:[#allocation118_spill] sm:$0xff] }
 0x4c4   : > { %v5279_v7 = vpop.f32.mrf.mxu0  ;;  %v4652_v63 = vadd.f32 %v21048_v23, %v21047_v26  ;;  %v21064_v3 = vld [vmem:[#allocation86_spill] sm:$0xff] }
 0x4c6   : > { %v5281_v6 = vpop.f32.mrf.mxu0 }
 0x4c7   : > { %5434 = vrot.lane.b32.xlu1 %v5332_v51, %s14233_s25  ;;  %5428 = vrot.lane.b32.xlu0 %v5317_v20, %s14233_s25  ;;  %v21051_v51 = vld [vmem:[#allocation123_spill] sm:$0xff] }
 0x4c8   : > { %v5283_v43 = vpop.f32.mrf.mxu0  ;;  %v4654_v12 = vadd.f32 %v21052_v61, %v21051_v51  ;;  %v5242_v61 = vpop.f32.mrf.mxu1 }
 0x4ca   : > { %v5285_v22 = vpop.f32.mrf.mxu0 }
 0x4cb   : > { %5430 = vrot.lane.b32.xlu1 %v5331_v38, %s14233_s25  ;;  %5436 = vrot.lane.b32.xlu0 %v5319_v29, %s14233_s25  ;;  %v21057_v29 = vld [vmem:[#allocation94_spill] sm:$0xff] }
 0x4cc   : > { %v5289_v32 = vpop.f32.mrf.mxu0  ;;  %v4656_v38 = vadd.f32 %v21057_v29, %v21056_v28 }
 0x4cd   : > { %v17004_v16 = vadd.f32 %v5289_v32, %v4650_v11  ;;  %v21060_v11 = vld [vmem:[#allocation48_spill] sm:$0xff]  ;;  %v21061_v32 = vld [vmem:[#allocation150_spill] sm:$0xff] }
 0x4ce   : > { %v5291_v20 = vpop.f32.mrf.mxu0  ;;  %v4601_v26 = vadd.f32 %v21061_v32, %v21060_v11  ;;  %v21075_v11 = vld [vmem:[#allocation52_spill] sm:$0xff]  ;;  %v21076_v32 = vld [vmem:[#allocation93_spill] sm:$0xff] }
 0x4cf   : > { %v17012_v57 = vadd.f32 %v5291_v20, %v4652_v63  ;;  %5438 = vrot.lane.b32.xlu1 %v5333_v2, %s14233_s25  ;;  %5536 = vrot.lane.b32.xlu0 %v5372_v39, %s14234_s28  ;;  %v5373_v63 = vadd.f32 %v5175_v40, %v4536_v18  ;;  %v4540_v39 = vadd.f32 %v21064_v3, %v21063_v44 }
 0x4d0   : > { %v5293_v45 = vpop.f32.mrf.mxu0  ;;  %v5388_v2 = vadd.f32 %v5240_v55, %v4601_v26  ;;  %v5375_v20 = vadd.f32 %v5238_v31, %v4599_v27  ;;  %v21074_v31 = vld [vmem:[#allocation12_spill] sm:$0xff]  ;;  %v4646_v26 = vadd.f32 %v21076_v32, %v21075_v11  ;;  %v4662_v27 = vadd.f32 %v21080_v10, %v21079_v0 }
 0x4d1   : > { %21055 = vst [vmem:[#allocation61_spill] sm:$0xff] %v17012_v57  ;;  %v17018_v50 = vadd.f32 %v5293_v45, %v4654_v12  ;;  %v5387_v51 = vadd.f32 %v5179_v4, %v4540_v39  ;;  %v21067_v12 = vld [vmem:[#allocation121_spill] sm:$0xff]  ;;  %v21070_v45 = vld [vmem:[#allocation152_spill] sm:$0xff] }
 0x4d2   : > { %v5295_v59 = vpop.f32.mrf.mxu0  ;;  %v4640_v56 = vadd.f32 %v21068_v36, %v21067_v12  ;;  %v4603_v40 = vadd.f32 %v21070_v45, %v21069_v5  ;;  %v5335_v44 = vadd.f32 %v5285_v22, %v4646_v26  ;;  %v21083_v36 = vld [vmem:[#allocation58_spill] sm:$0xff]  ;;  %v21132_v57 = vld [vmem:[#allocation40_spill] sm:$0xff] }
 0x4d3   : > { %v17024_v23 = vadd.f32 %v5295_v59, %v4656_v38  ;;  %5538 = vrot.lane.b32.xlu1 %v5386_v30, %s14234_s28  ;;  %5544 = vrot.lane.b32.xlu0 %v5374_v47, %s14234_s28  ;;  %v21071_v47 = vld [vmem:[#allocation49_spill] sm:$0xff]  ;;  %v21072_v30 = vld [vmem:[#allocation11_spill] sm:$0xff]  ;;  %v5672_v22 = vld [vmem:[%s20342_s8] sm:$0xff] }
 0x4d4   : > { %v5389_v28 = vadd.f32 %v5242_v61, %v4603_v40  ;;  %v5320_v29 = vadd.f32 %v5279_v7, %v4640_v56  ;;  %v5299_v38 = vpop.f32.mrf.mxu0  ;;  %v4642_v55 = vadd.f32 %v21072_v30, %v21071_v47  ;;  %v21073_v59 = vld [vmem:[#allocation119_spill] sm:$0xff]  ;;  %v21084_v56 = vld [vmem:[#allocation153_spill] sm:$0xff]  ;;  %v21087_v30 = vld [vmem:[#allocation18_spill] sm:$0xff] }
 0x4d5   : > { %21062 = vst [vmem:[#allocation31_spill] sm:$0xff] %v17024_v23  ;;  %v4644_v4 = vadd.f32 %v21074_v31, %v21073_v59  ;;  %v4666_v5 = vadd.f32 %v21084_v56, %v21083_v36  ;;  %v5673_v40 = vld [vmem:[%s20342_s8 + $0x8] sm:$0xff] }
 0x4d6   : > { %v5321_v9 = vadd.f32 %v5281_v6, %v4642_v55  ;;  %v5301_v18 = vpop.f32.mrf.mxu0  ;;  %v21082_v6 = vld [vmem:[#allocation151_spill] sm:$0xff] }
 0x4d7   : > { %5546 = vrot.lane.b32.xlu1 %v5388_v2, %s14234_s28  ;;  %5540 = vrot.lane.b32.xlu0 %v5373_v63, %s14234_s28  ;;  %v5334_v46 = vadd.f32 %v5283_v43, %v4644_v4  ;;  %v21077_v63 = vld [vmem:[#allocation124_spill] sm:$0xff]  ;;  %v21078_v2 = vld [vmem:[#allocation39_spill] sm:$0xff] }
 0x4d8   : > { %v4660_v7 = vadd.f32 %v21078_v2, %v21077_v63  ;;  %v5303_v39 = vpop.f32.mrf.mxu0  ;;  %v21091_v63 = vld [vmem:[#allocation19_spill] sm:$0xff] }
 0x4da   : > { %v5376_v3 = vadd.f32 %v5299_v38, %v4660_v7  ;;  %v5305_v12 = vpop.f32.mrf.mxu0  ;;  %v21085_v38 = vld [vmem:[#allocation81_spill] sm:$0xff] }
 0x4db   : > { %5542 = vrot.lane.b32.xlu1 %v5387_v51, %s14234_s28  ;;  %5548 = vrot.lane.b32.xlu0 %v5375_v20, %s14234_s28  ;;  %v21081_v20 = vld [vmem:[#allocation125_spill] sm:$0xff]  ;;  %v5377_v51 = vadd.f32 %v5301_v18, %v4662_v27  ;;  %v5391_v45 = vadd.f32 %v5305_v12, %v4666_v5  ;;  %vm21086_vm2 = vcmp.lt.s32.totalorder %v21085_v38, 1  ;;  %vm21095_vm8 = vcmp.lt.s32.totalorder %v21085_v38, 127  ;;  %v21096_v5 = vld [vmem:[#allocation90_spill] sm:$0xff]  ;;  %v21174_v38 = vld [vmem:[#allocation44_spill] sm:$0xff] }
 0x4dc   : > { %v4664_v43 = vadd.f32 %v21082_v6, %v21081_v20  ;;  %vm21088_vm3 = vmmov %vm21086_vm2 }
 0x4dd   : > { %vm21090_vm4 = vmmov %vm21086_vm2 }
 0x4de   : > { %v5390_v61 = vadd.f32 %v5303_v39, %v4664_v43  ;;  %vm21092_vm5 = vmmov %vm21086_vm2 }
 0x4df   : > { %5550 = vrot.lane.b32.xlu1 %v5389_v28, %s14234_s28  ;;  %5440 = vrot.lane.b32.xlu0 %v5320_v29, %s14233_s25  ;;  %vm21093_vm6 = vmmov %vm21086_vm2 }
 0x4e0   : > { %vm21094_vm7 = vmmov %vm21086_vm2 }
 0x4e1   : > { %vm21098_vm9 = vmmov %vm21095_vm8 }
 0x4e2   : > { %vm21099_vm10 = vmmov %vm21095_vm8 }
 0x4e3   : > { %5442 = vrot.lane.b32.xlu1 %v5334_v46, %s14233_s25  ;;  %5444 = vrot.lane.b32.xlu0 %v5321_v9, %s14233_s25  ;;  %v21089_v9 = vld [vmem:[#allocation88_spill] sm:$0xff]  ;;  %vm21103_vm11 = vmmov %vm21095_vm8 }
 0x4e4   : > { %vm21104_vm12 = vmmov %vm21086_vm2 }
 0x4e5   : > { %vm21107_vm13 = vmmov %vm21086_vm2 }
 0x4e6   : > { %vm21108_vm14 = vmmov %vm21086_vm2 }
 0x4e7   : > { %5446 = vrot.lane.b32.xlu1 %v5335_v44, %s14233_s25  ;;  %5552 = vrot.lane.b32.xlu0 %v5376_v3, %s14234_s28  ;;  %vm21109_vm15 = vmmov %vm21086_vm2 }
 0x4e8   : > { %vm21112_vm0 = vmmov %vm21086_vm2 }
 0x4e9   : > { %vm21113_vm1 = vmmov %vm21112_vm0 }
 0x4eb   : > { %5554 = vrot.lane.b32.xlu1 %v5390_v61, %s14234_s28  ;;  %5556 = vrot.lane.b32.xlu0 %v5377_v51, %s14234_s28 }
 0x4ef   : > { %5558 = vrot.lane.b32.xlu1 %v5391_v45, %s14234_s28  ;;  %5676 = vperm.xlu0 %13656, %v5672_v22  }
 0x4f1   : > { %v17069_v28 = vpop.permute.xlu0 %5392 }
 0x4f3   : > { %5681 = vperm.xlu1 %13657, %v5673_v40   ;;  %v5397_v29 = vpop.permute.xlu1 %5396 }
 0x4f4   : > { %v5472_v47 = vsel %vm21086_vm2, %v17069_v28, %v5397_v29  ;;  %vm21114_vm2 = vmmov %vm21112_vm0 }
 0x4f5   : > { %v5477_v55 = vmul.f32 %v5472_v47, %v21087_v30  ;;  %v5401_v59 = vpop.permute.xlu0 %5400 }
 0x4f6   : > { %v5470_v31 = vsel %vm21088_vm3, %v5397_v29, %v5401_v59  ;;  %vm21116_vm3 = vmmov %vm21112_vm0 }
 0x4f7   : > { %v5617_v4 = vadd.f32 %v5477_v55, %v16796_v19  ;;  %v5478_v46 = vmul.f32 %v5470_v31, %v21089_v9  ;;  %v5403_v18 = vpop.permute.xlu1 %5402 }
 0x4f9   : > { %v5618_v11 = vadd.f32 %v5478_v46, %v16787_v21  ;;  %v5405_v32 = vpop.permute.xlu0 %5404 }
 0x4fa   : > { %v5468_v26 = vsel %vm21090_vm4, %v5401_v59, %v5405_v32  ;;  %vm21117_vm4 = vmmov %vm21095_vm8 }
 0x4fb   : > { %v5479_v2 = vmul.f32 %v5468_v26, %v21091_v63  ;;  %v5399_v7 = vpop.permute.xlu1 %5398 }
 0x4fc   : > { %v5471_v44 = vsel %vm21092_vm5, %v5399_v7, %v5403_v18  ;;  %vm21120_vm5 = vmmov %vm21117_vm4 }
 0x4fd   : > { %v17086_v3 = vadd.f32 %v5479_v2, %v16798_v54  ;;  %v5492_v19 = vmul.f32 %v5471_v44, %v21089_v9  ;;  %v17089_v39 = vpop.permute.xlu0 %5394 }
 0x4fe   : > { %v5473_v21 = vsel %vm21093_vm6, %v17089_v39, %v5399_v7  ;;  %vm21122_vm6 = vmmov %vm21117_vm4 }
 0x4ff   : > { %v5632_v0 = vadd.f32 %v5492_v19, %v16809_v25  ;;  %v5491_v10 = vmul.f32 %v5473_v21, %v21087_v30  ;;  %v5407_v27 = vpop.permute.xlu1 %5406  ;;  %v21100_v30 = vld [vmem:[#allocation21_spill] sm:$0xff] }
 0x500   : > { %v5469_v20 = vsel %vm21094_vm7, %v5403_v18, %v5407_v27  ;;  %vm21123_vm7 = vmmov %vm21117_vm4 }
 0x501   : > { %v5631_v6 = vadd.f32 %v5491_v10, %v16814_v34  ;;  %v5493_v54 = vmul.f32 %v5469_v20, %v21091_v63  ;;  %v17100_v43 = vpop.permute.xlu0 %5504  ;;  %v21105_v63 = vld [vmem:[#allocation9_spill] sm:$0xff] }
 0x503   : > { %v5633_v51 = vadd.f32 %v5493_v54, %v16816_v37 }
 0x505   : > { %v17103_v61 = vpop.permute.xlu1 %5506  ;;  %v5513_v12 = vpop.permute.xlu0 %5512 }
 0x509   : > { %v5515_v36 = vpop.permute.xlu1 %5514  ;;  %v17105_v56 = vpop.permute.xlu0 %5508 }
 0x50a   : > { %v5582_v25 = vsel %vm21095_vm8, %v17105_v56, %v5513_v12  ;;  %vm21124_vm8 = vmmov %vm21117_vm4 }
 0x50b   : > { %v5589_v22 = vmul.f32 %v5582_v25, %v21096_v5 }
 0x50d   : > { %v17111_v45 = vadd.f32 %v5617_v4, %v5589_v22  ;;  %v17113_v34 = vpop.permute.xlu1 %5510  ;;  %v5517_v40 = vpop.permute.xlu0 %5516 }
 0x50e   : > { %v5583_v37 = vsel %vm21098_vm9, %v17113_v34, %v5515_v36  ;;  %v5580_v29 = vsel %vm21099_vm10, %v5513_v12, %v5517_v40  ;;  %vm21125_vm9 = vmmov %vm21117_vm4 }
 0x50f   : > { %21097 = vst [vmem:[#allocation75_spill] sm:$0xff] %v17111_v45  ;;  %v5603_v47 = vmul.f32 %v5583_v37, %v21096_v5  ;;  %v5590_v55 = vmul.f32 %v5580_v29, %v21100_v30  ;;  %vm21126_vm10 = vmmov %vm21117_vm4 }
 0x511   : > { %v17122_v59 = vadd.f32 %v5631_v6, %v5603_v47  ;;  %v17124_v31 = vadd.f32 %v5618_v11, %v5590_v55  ;;  %v5519_v4 = vpop.permute.xlu1 %5518  ;;  %v5409_v9 = vpop.permute.xlu0 %5408 }
 0x512   : > { %v5581_v46 = vsel %vm21103_vm11, %v5515_v36, %v5519_v4  ;;  %v5466_v18 = vsel %vm21104_vm12, %v5405_v32, %v5409_v9  ;;  %v21111_v36 = vld [vmem:[#allocation80_spill] sm:$0xff]  ;;  %vm21127_vm11 = vmmov %vm21117_vm4 }
 0x513   : > { %21101 = vst [vmem:[#allocation101_spill] sm:$0xff] %v17122_v59  ;;  %21102 = vst [vmem:[#allocation59_spill] sm:$0xff] %v17124_v31  ;;  %v5604_v26 = vmul.f32 %v5581_v46, %v21100_v30  ;;  %v5480_v2 = vmul.f32 %v5466_v18, %v21105_v63 }
 0x514   : > { %vm21130_vm12 = vmmov %vm21117_vm4 }
 0x515   : > { %v17132_v7 = vadd.f32 %v5632_v0, %v5604_v26  ;;  %v17135_v44 = vadd.f32 %v5480_v2, %v16853_v60  ;;  %v5411_v19 = vpop.permute.xlu1 %5410  ;;  %v5417_v11 = vpop.permute.xlu0 %5416  ;;  %v21110_v60 = vld [vmem:[#allocation10_spill] sm:$0xff] }
 0x516   : > { %v5467_v21 = vsel %vm21107_vm13, %v5407_v27, %v5411_v19  ;;  %vm21131_vm13 = vmmov %vm21117_vm4 }
 0x517   : > { %21106 = vst [vmem:[#allocation34_spill] sm:$0xff] %v17132_v7  ;;  %v5494_v10 = vmul.f32 %v5467_v21, %v21105_v63  ;;  %v21118_v21 = vld [vmem:[#allocation83_spill] sm:$0xff] }
 0x519   : > { %v17141_v20 = vadd.f32 %v5494_v10, %v16875_v24  ;;  %v5419_v32 = vpop.permute.xlu1 %5418  ;;  %v5413_v6 = vpop.permute.xlu0 %5412 }
 0x51a   : > { %v5462_v54 = vsel %vm21108_vm14, %v5413_v6, %v5417_v11  ;;  %v5464_v0 = vsel %vm21109_vm15, %v5409_v9, %v5413_v6  ;;  %vm21133_vm14 = vmmov %vm21112_vm0 }
 0x51b   : > { %v5481_v12 = vmul.f32 %v5464_v0, %v21110_v60  ;;  %v5482_v25 = vmul.f32 %v5462_v54, %v21111_v36  ;;  %vm21134_vm15 = vmmov %vm21112_vm0 }
 0x51d   : > { %v17150_v5 = vadd.f32 %v5481_v12, %v16865_v33  ;;  %v17153_v27 = vadd.f32 %v5482_v25, %v16855_v53  ;;  %v5415_v24 = vpop.permute.xlu1 %5414  ;;  %v5421_v22 = vpop.permute.xlu0 %5420  ;;  %v21115_v33 = vld [vmem:[#allocation13_spill] sm:$0xff] }
 0x51e   : > { %v5463_v37 = vsel %vm21112_vm0, %v5415_v24, %v5419_v32  ;;  %v5465_v29 = vsel %vm21113_vm1, %v5411_v19, %v5415_v24  ;;  %v5460_v47 = vsel %vm21114_vm2, %v5417_v11, %v5421_v22  ;;  %vm21138_vm1 = vmmov %vm21112_vm0 }
 0x51f   : > { %v5495_v30 = vmul.f32 %v5465_v29, %v21110_v60  ;;  %v5496_v55 = vmul.f32 %v5463_v37, %v21111_v36  ;;  %v5483_v9 = vmul.f32 %v5460_v47, %v21115_v33  ;;  %vm21140_vm2 = vmmov %vm21112_vm0 }
 0x521   : > { %v5635_v53 = vadd.f32 %v5495_v30, %v16883_v42  ;;  %v17166_v46 = vadd.f32 %v5496_v55, %v16877_v49  ;;  %v17169_v18 = vadd.f32 %v5483_v9, %v16867_v17  ;;  %v5423_v26 = vpop.permute.xlu1 %5422  ;;  %v5521_v63 = vpop.permute.xlu0 %5520 }
 0x522   : > { %v5461_v2 = vsel %vm21116_vm3, %v5419_v32, %v5423_v26  ;;  %v5578_v19 = vsel %vm21117_vm4, %v5517_v40, %v5521_v63  ;;  %vm21141_vm3 = vmmov %vm21112_vm0 }
 0x523   : > { %v5497_v11 = vmul.f32 %v5461_v2, %v21115_v33  ;;  %v5591_v10 = vmul.f32 %v5578_v19, %v21118_v21  ;;  %vm21142_vm4 = vmmov %vm21112_vm0 }
 0x525   : > { %v17178_v42 = vadd.f32 %v5497_v11, %v16885_v62  ;;  %v17181_v49 = vadd.f32 %v17086_v3, %v5591_v10  ;;  %v5523_v17 = vpop.permute.xlu1 %5522  ;;  %v5529_v6 = vpop.permute.xlu0 %5528 }
 0x526   : > { %v5579_v54 = vsel %vm21120_vm5, %v5519_v4, %v5523_v17  ;;  %vm21143_vm5 = vmmov %vm21112_vm0 }
 0x527   : > { %21119 = vst [vmem:[#allocation73_spill] sm:$0xff] %v17181_v49  ;;  %v5605_v32 = vmul.f32 %v5579_v54, %v21118_v21 }
 0x529   : > { %v17186_v0 = vadd.f32 %v5633_v51, %v5605_v32  ;;  %v5531_v40 = vpop.permute.xlu1 %5530  ;;  %v5525_v60 = vpop.permute.xlu0 %5524 }
 0x52a   : > { %v5574_v19 = vsel %vm21122_vm6, %v5525_v60, %v5529_v6  ;;  %v5576_v11 = vsel %vm21123_vm7, %v5521_v63, %v5525_v60  ;;  %v5585_v63 = vsel %vm21127_vm11, %v17103_v61, %v17113_v34  ;;  %v21128_v60 = vld [vmem:[#allocation84_spill] sm:$0xff]  ;;  %vm21144_vm6 = vmmov %vm21112_vm0 }
 0x52b   : > { %21121 = vst [vmem:[#allocation29_spill] sm:$0xff] %v17186_v0  ;;  %v5584_v0 = vsel %vm21126_vm10, %v17100_v43, %v17105_v56  ;;  %v5592_v7 = vmul.f32 %v5576_v11, %v21128_v60  ;;  %v5602_v11 = vmul.f32 %v5585_v63, %v21132_v57  ;;  %v21139_v63 = vld [vmem:[#allocation96_spill] sm:$0xff]  ;;  %vm21152_vm10 = vmmov %vm21123_vm7 }
 0x52c   : > { %v5588_v34 = vmul.f32 %v5584_v0, %v21132_v57  ;;  %vm21153_vm11 = vmmov %vm21123_vm7 }
 0x52d   : > { %v5527_v12 = vpop.permute.xlu1 %5526  ;;  %v5533_v36 = vpop.permute.xlu0 %5532 }
 0x52e   : > { %v5577_v21 = vsel %vm21124_vm8, %v5523_v17, %v5527_v12  ;;  %v5575_v32 = vsel %vm21125_vm9, %v5527_v12, %v5531_v40  ;;  %v21129_v17 = vld [vmem:[#allocation22_spill] sm:$0xff]  ;;  %v5572_v12 = vsel %vm21130_vm12, %v5529_v6, %v5533_v36  ;;  %vm21148_vm8 = vmmov %vm21123_vm7 }
 0x52f   : > { %v5593_v59 = vmul.f32 %v5574_v19, %v21129_v17  ;;  %v5606_v49 = vmul.f32 %v5577_v21, %v21128_v60  ;;  %v5607_v31 = vmul.f32 %v5575_v32, %v21129_v17  ;;  %v17241_v32 = vadd.f32 %v17135_v44, %v5592_v7  ;;  %vm21150_vm9 = vmmov %vm21112_vm0 }
 0x530   : > { %vm21154_vm12 = vmmov %vm21123_vm7 }
 0x531   : > { %v5535_v25 = vpop.permute.xlu1 %5534  ;;  %v5425_v24 = vpop.permute.xlu0 %5424  ;;  %v17244_v6 = vadd.f32 %v17150_v5, %v5593_v59  ;;  %v17247_v60 = vadd.f32 %v17141_v20, %v5606_v49  ;;  %v17250_v0 = vadd.f32 %v5635_v53, %v5607_v31 }
 0x532   : > { %v5573_v56 = vsel %vm21131_vm13, %v5531_v40, %v5535_v25  ;;  %v5458_v19 = vsel %vm21133_vm14, %v5421_v22, %v5425_v24  ;;  %v21136_v40 = vld [vmem:[#allocation23_spill] sm:$0xff]  ;;  %vm21155_vm13 = vmmov %vm21123_vm7 }
 0x533   : > { %21135 = vst [vmem:[#allocation56_spill] sm:$0xff] %v17247_v60  ;;  %v5594_v17 = vmul.f32 %v5572_v12, %v21136_v40  ;;  %21137 = vst [vmem:[#allocation104_spill] sm:$0xff] %v17250_v0  ;;  %v5608_v57 = vmul.f32 %v5573_v56, %v21136_v40  ;;  %v5484_v59 = vmul.f32 %v5458_v19, %v21139_v63  ;;  %v21146_v56 = vld [vmem:[#allocation110_spill] sm:$0xff] }
 0x534   : > { %vm21158_vm14 = vmmov %vm21123_vm7 }
 0x535   : > { %v5427_v62 = vpop.permute.xlu1 %5426  ;;  %v5433_v37 = vpop.permute.xlu0 %5432  ;;  %v17285_v40 = vadd.f32 %v17166_v46, %v5608_v57 }
 0x536   : > { %v5459_v21 = vsel %vm21134_vm15, %v5423_v26, %v5427_v62  ;;  %vm21159_vm15 = vmmov %vm21112_vm0 }
 0x537   : > { %v5498_v5 = vmul.f32 %v5459_v21, %v21139_v63 }
 0x539   : > { %v5435_v29 = vpop.permute.xlu1 %5434  ;;  %v5429_v3 = vpop.permute.xlu0 %5428 }
 0x53a   : > { %v5454_v22 = vsel %vm21112_vm0, %v5429_v3, %v5433_v37  ;;  %v5456_v26 = vsel %vm21138_vm1, %v5425_v24, %v5429_v3  ;;  %v21145_v3 = vld [vmem:[#allocation109_spill] sm:$0xff]  ;;  %vm21160_vm1 = vmmov %vm21112_vm0 }
 0x53b   : > { %v5485_v19 = vmul.f32 %v5456_v26, %v21146_v56 }
 0x53d   : > { %v5431_v47 = vpop.permute.xlu1 %5430  ;;  %v17188_v30 = vpop.permute.xlu0 %5436 }
 0x53e   : > { %v5457_v20 = vsel %vm21140_vm2, %v5427_v62, %v5431_v47  ;;  %v5455_v53 = vsel %vm21142_vm4, %v5431_v47, %v5435_v29  ;;  %v5452_v49 = vsel %vm21143_vm5, %v5433_v37, %v17188_v30  ;;  %v21147_v62 = vld [vmem:[#allocation41_spill] sm:$0xff]  ;;  %v17282_v37 = vadd.f32 %v17153_v27, %v5594_v17  ;;  %v21151_v17 = vld [vmem:[#allocation38_spill] sm:$0xff]  ;;  %vm21161_vm2 = vmmov %vm21112_vm0 }
 0x53f   : > { %v5486_v21 = vmul.f32 %v5454_v22, %v21147_v62  ;;  %v5500_v22 = vmul.f32 %v5455_v53, %v21147_v62  ;;  %v5638_v53 = vadd.f32 %v5498_v5, %v16956_v14  ;;  %v21169_v62 = vld [vmem:[#allocation98_spill] sm:$0xff] }
 0x541   : > { %v17190_v55 = vpop.permute.xlu1 %5438  ;;  %v17192_v4 = vpop.permute.xlu0 %5536 }
 0x542   : > { %v5453_v24 = vsel %vm21144_vm6, %v5435_v29, %v17190_v55  ;;  %v5499_v29 = vmul.f32 %v5457_v20, %v21146_v56  ;;  %v5624_v20 = vadd.f32 %v5484_v59, %v16934_v13  ;;  %v5640_v59 = vadd.f32 %v5500_v22, %v16958_v35  ;;  %v21157_v56 = vld [vmem:[#allocation95_spill] sm:$0xff] }
 0x545   : > { %v17194_v33 = vpop.permute.xlu1 %5538  ;;  %v17196_v51 = vpop.permute.xlu0 %5544 }
 0x546   : > { %v5571_v47 = vsel %vm21148_vm8, %v5535_v25, %v17194_v33 }
 0x547   : > { %v5609_v46 = vmul.f32 %v5571_v47, %v21151_v17 }
 0x549   : > { %v17198_v9 = vpop.permute.xlu1 %5546  ;;  %v17200_v2 = vpop.permute.xlu0 %5540 }
 0x54d   : > { %v17208_v10 = vpop.permute.xlu1 %5542  ;;  %v17210_v54 = vpop.permute.xlu0 %5548 }
 0x54e   : > { %v5569_v13 = vsel %vm21154_vm12, %v17194_v33, %v17208_v10  ;;  %v5567_v33 = vsel %vm21155_vm13, %v17208_v10, %v17198_v9 }
 0x551   : > { %v17228_v45 = vpop.permute.xlu1 %5550  ;;  %v17230_v23 = vpop.permute.xlu0 %5440 }
 0x555   : > { %v5443_v7 = vpop.permute.xlu1 %5442  ;;  %v5445_v44 = vpop.permute.xlu0 %5444 }
 0x556   : > { %v5474_v31 = vsel %vm21141_vm3, %v5445_v44, %v17069_v28  ;;  %v5570_v28 = vsel %vm21123_vm7, %v5533_v36, %v17192_v4  ;;  %v5451_v10 = vsel %vm21112_vm0, %v17190_v55, %v5443_v7  ;;  %vm21162_vm3 = vmmov %vm21123_vm7 }
 0x557   : > { %v5476_v12 = vmul.f32 %v5474_v31, %v21145_v3  ;;  %v21149_v31 = vld [vmem:[#allocation111_spill] sm:$0xff]  ;;  %v5595_v60 = vmul.f32 %v5570_v28, %v21151_v17  ;;  %vm21163_vm4 = vmmov %vm21162_vm3  ;;  %v21170_v28 = vld [vmem:[#allocation42_spill] sm:$0xff] }
 0x558   : > { %v5487_v0 = vmul.f32 %v5452_v49, %v21149_v31  ;;  %v5501_v36 = vmul.f32 %v5453_v24, %v21149_v31  ;;  %v5625_v49 = vadd.f32 %v5485_v19, %v16946_v48  ;;  %v5626_v24 = vadd.f32 %v5486_v21, %v16936_v15  ;;  %vm21164_vm5 = vmmov %vm21162_vm3 }
 0x559   : > { %v5616_v26 = vadd.f32 %v5476_v12, %v16785_v41  ;;  %v5447_v63 = vpop.permute.xlu1 %5446  ;;  %v5553_v27 = vpop.permute.xlu0 %5552  ;;  %v5639_v15 = vadd.f32 %v5499_v29, %v16964_v52  ;;  %v5651_v12 = vadd.f32 %v17169_v18, %v5595_v60  ;;  %v5565_v19 = vsel %vm21162_vm3, %v17198_v9, %v17228_v45  ;;  %vm21165_vm6 = vmmov %vm21162_vm3  ;;  %v21171_v29 = vld [vmem:[#allocation28_spill] sm:$0xff] }
 0x55a   : > { %v5475_v25 = vsel %vm21150_vm9, %v5447_v63, %v17089_v39  ;;  %v5566_v39 = vsel %vm21152_vm10, %v17200_v2, %v17196_v51  ;;  %v5627_v5 = vadd.f32 %v5487_v0, %v16948_v8  ;;  %v5449_v60 = vsel %vm21161_vm2, %v5443_v7, %v5447_v63  ;;  %vm21166_vm7 = vmmov %vm21162_vm3 }
 0x55b   : > { %v17297_v57 = vadd.f32 %v5616_v26, %v5588_v34  ;;  %v5490_v41 = vmul.f32 %v5475_v25, %v21145_v3  ;;  %v5568_v34 = vsel %vm21153_vm11, %v17192_v4, %v17200_v2  ;;  %v5641_v3 = vadd.f32 %v5501_v36, %v16966_v58  ;;  %v21156_v2 = vld [vmem:[#allocation25_spill] sm:$0xff]  ;;  %vm21167_vm8 = vmmov %vm21162_vm3 }
 0x55c   : > { %v17323_v4 = vadd.f32 %v17178_v42, %v5609_v46  ;;  %v5596_v52 = vmul.f32 %v5568_v34, %v21156_v2  ;;  %v5597_v35 = vmul.f32 %v5566_v39, %v21157_v56  ;;  %v5610_v8 = vmul.f32 %v5569_v13, %v21156_v2  ;;  %vm21168_vm9 = vmmov %vm21162_vm3  ;;  %v21173_v36 = vld [vmem:[#allocation113_spill] sm:$0xff]  ;;  %v21176_v2 = vld [vmem:[#allocation31_spill] sm:$0xff] }
 0x55d   : > { %v5630_v14 = vadd.f32 %v5490_v41, %v16807_v1  ;;  %v5555_v48 = vpop.permute.xlu1 %5554  ;;  %v5564_v58 = vsel %vm21158_vm14, %v17196_v51, %v17210_v54  ;;  %v5557_v18 = vpop.permute.xlu0 %5556  ;;  %v5450_v42 = vsel %vm21159_vm15, %v17188_v30, %v17230_v23  ;;  %v5611_v51 = vmul.f32 %v5567_v33, %v21157_v56 }
 0x55e   : > { %v5562_v30 = vsel %vm21163_vm4, %v17210_v54, %v5553_v27  ;;  %v5563_v55 = vsel %vm21164_vm5, %v17228_v45, %v5555_v48  ;;  %v5586_v7 = vsel %vm21166_vm7, %v5557_v18, %v17100_v43  ;;  %v5488_v54 = vmul.f32 %v5450_v42, %v21169_v62  ;;  %v21172_v43 = vld [vmem:[#allocation43_spill] sm:$0xff] }
 0x55f   : > { %v17329_v1 = vadd.f32 %v5630_v14, %v5602_v11  ;;  %v5448_v11 = vsel %vm21160_vm1, %v17230_v23, %v5445_v44  ;;  %v5560_v23 = vsel %vm21165_vm6, %v5553_v27, %v5557_v18  ;;  %v5502_v21 = vmul.f32 %v5451_v10, %v21169_v62 }
 0x560   : > { %v5489_v45 = vmul.f32 %v5448_v11, %v21170_v28  ;;  %v5503_v47 = vmul.f32 %v5449_v60, %v21170_v28  ;;  %v5598_v26 = vmul.f32 %v5564_v58, %v21171_v29  ;;  %v5612_v63 = vmul.f32 %v5565_v19, %v21171_v29  ;;  %v21179_v60 = vld [vmem:[#allocation73_spill] sm:$0xff] }
 0x561   : > { %v5559_v0 = vpop.permute.xlu1 %5558  ;;  %v5599_v22 = vmul.f32 %v5562_v30, %v21172_v43  ;;  %v5613_v31 = vmul.f32 %v5563_v55, %v21172_v43  ;;  %v5600_v25 = vmul.f32 %v5560_v23, %v21173_v36  ;;  %v5652_v46 = vadd.f32 %v5624_v20, %v5596_v52 }
 0x562   : > { %v5561_v44 = vsel %vm21167_vm8, %v5555_v48, %v5559_v0  ;;  %v5587_v9 = vsel %vm21168_vm9, %v5559_v0, %v17103_v61  ;;  %v5601_v61 = vmul.f32 %v5586_v7, %v21174_v38  ;;  %v5653_v41 = vadd.f32 %v5625_v49, %v5597_v35  ;;  %v21175_v48 = vld [vmem:[#allocation61_spill] sm:$0xff] }
 0x563   : > { %v5614_v27 = vmul.f32 %v5561_v44, %v21173_v36  ;;  %v5615_v17 = vmul.f32 %v5587_v9, %v21174_v38  ;;  %v17383_v39 = vadd.f32 %v5638_v53, %v5610_v8  ;;  %v17385_v34 = vadd.f32 %v5639_v15, %v5611_v51  ;;  %v21178_v8 = vld [vmem:[#allocation59_spill] sm:$0xff] }
 0x564   : > { %v5628_v13 = vadd.f32 %v5488_v54, %v17004_v16  ;;  %v5642_v14 = vadd.f32 %v5502_v21, %v17018_v50  ;;  %v5629_v33 = vadd.f32 %v5489_v45, %v21175_v48  ;;  %v5643_v56 = vadd.f32 %v5503_v47, %v21176_v2  ;;  %v21177_v50 = vld [vmem:[#allocation75_spill] sm:$0xff]  ;;  %v21180_v54 = vld [vmem:[#allocation101_spill] sm:$0xff] }
 0x565   : > { %v5654_v58 = vadd.f32 %v5626_v24, %v5598_v26  ;;  %v17391_v18 = vadd.f32 %v5640_v59, %v5612_v63  ;;  %v5655_v42 = vadd.f32 %v5627_v5, %v5599_v22  ;;  %v17393_v10 = vadd.f32 %v5641_v3, %v5613_v31 }
 0x566   : > { %v5656_v20 = vadd.f32 %v5628_v13, %v5600_v25  ;;  %v5657_v49 = vadd.f32 %v5629_v33, %v5601_v61  ;;  %v17395_v53 = vadd.f32 %v5642_v14, %v5614_v27  ;;  %v17397_v15 = vadd.f32 %v5643_v56, %v5615_v17 }
 0x56a   : > { %v5677_v52 = vpop.permute.xlu0 %5676 }
 0x56b   : > { %v5684_v16 = vadd.f32 %v5677_v52, %v17297_v57  ;;  %v5685_v35 = vadd.f32 %v5677_v52, %v21177_v50  ;;  %v5686_v11 = vadd.f32 %v5677_v52, %v21178_v8  ;;  %v5687_v24 = vadd.f32 %v5677_v52, %v21179_v60 }
 0x56c   : > { %v5688_v59 = vadd.f32 %v5677_v52, %v17241_v32  ;;  %v5689_v5 = vadd.f32 %v5677_v52, %v17244_v6  ;;  %v5690_v3 = vadd.f32 %v5677_v52, %v17282_v37  ;;  %v5691_v0 = vadd.f32 %v5677_v52, %v5651_v12 }
 0x56d   : > { %v5692_v51 = vadd.f32 %v5677_v52, %v5652_v46  ;;  %v5693_v19 = vadd.f32 %v5677_v52, %v5653_v41  ;;  %v5694_v30 = vadd.f32 %v5677_v52, %v5654_v58  ;;  %v5695_v55 = vadd.f32 %v5677_v52, %v5655_v42 }
 0x56e   : > { %v5696_v23 = vadd.f32 %v5677_v52, %v5656_v20  ;;  %v5697_v7 = vadd.f32 %v5677_v52, %v5657_v49  ;;  %vm5712_vm10 = vcmp.gt.f32.partialorder %v5684_v16, 0.0  ;;  %vm5713_vm11 = vcmp.gt.f32.partialorder %v5685_v35, 0.0  ;;  %v17406_v57 = vpop.permute.xlu1 %5681 }
 0x56f   : > { %vm5714_vm12 = vcmp.gt.f32.partialorder %v5686_v11, 0.0  ;;  %vm5715_vm13 = vcmp.gt.f32.partialorder %v5687_v24, 0.0  ;;  %vm5716_vm14 = vcmp.gt.f32.partialorder %v5688_v59, 0.0  ;;  %vm5717_vm15 = vcmp.gt.f32.partialorder %v5689_v5, 0.0 }
 0x570   : > { %vm5718_vm0 = vcmp.gt.f32.partialorder %v5690_v3, 0.0  ;;  %vm5719_vm1 = vcmp.gt.f32.partialorder %v5691_v0, 0.0  ;;  %vm5720_vm2 = vcmp.gt.f32.partialorder %v5692_v51, 0.0  ;;  %vm5721_vm3 = vcmp.gt.f32.partialorder %v5693_v19, 0.0 }
 0x571   : > { %vm5722_vm4 = vcmp.gt.f32.partialorder %v5694_v30, 0.0  ;;  %vm5723_vm5 = vcmp.gt.f32.partialorder %v5695_v55, 0.0  ;;  %vm5724_vm6 = vcmp.gt.f32.partialorder %v5696_v23, 0.0  ;;  %vm5725_vm7 = vcmp.gt.f32.partialorder %v5697_v7, 0.0 }
 0x572   : > { %v5740_v32 = vmul.f32 0.2, %v5684_v16  ;;  %v5741_v6 = vmul.f32 0.2, %v5685_v35  ;;  %v5742_v37 = vmul.f32 0.2, %v5686_v11  ;;  %v17410_v12 = vadd.f32 %v17406_v57, %v17329_v1 }
 0x573   : > { %v5743_v44 = vmul.f32 0.2, %v5687_v24  ;;  %v5744_v9 = vmul.f32 0.2, %v5688_v59  ;;  %v5745_v62 = vmul.f32 0.2, %v5689_v5  ;;  %v17414_v21 = vadd.f32 %v17406_v57, %v21180_v54 }
 0x574   : > { %v5746_v28 = vmul.f32 0.2, %v5690_v3  ;;  %v5747_v45 = vmul.f32 0.2, %v5691_v0  ;;  %v5748_v47 = vmul.f32 0.2, %v5692_v51  ;;  %v5768_v29 = vsel %vm5712_vm10, %v5684_v16, %v5740_v32 }
 0x575   : > { %v5749_v26 = vmul.f32 0.2, %v5693_v19  ;;  %v5750_v63 = vmul.f32 0.2, %v5694_v30  ;;  %v5751_v43 = vmul.f32 0.2, %v5695_v55  ;;  %v5769_v22 = vsel %vm5713_vm11, %v5685_v35, %v5741_v6 }
 0x576   : > { %v5752_v31 = vmul.f32 0.2, %v5696_v23  ;;  %v5753_v1 = vmul.f32 0.2, %v5697_v7  ;;  %v5770_v36 = vsel %vm5714_vm12, %v5686_v11, %v5742_v37  ;;  %v5771_v25 = vsel %vm5715_vm13, %v5687_v24, %v5743_v44  ;;  %v21181_v16 = vld [vmem:[#allocation34_spill] sm:$0xff]  ;;  %v21182_v35 = vld [vmem:[#allocation29_spill] sm:$0xff] }
 0x577   : > { %v5772_v38 = vsel %vm5716_vm14, %v5688_v59, %v5744_v9  ;;  %v5773_v61 = vsel %vm5717_vm15, %v5689_v5, %v5745_v62  ;;  %v5774_v27 = vsel %vm5718_vm0, %v5690_v3, %v5746_v28  ;;  %v5775_v17 = vsel %vm5719_vm1, %v5691_v0, %v5747_v45  ;;  %v21183_v11 = vld [vmem:[#allocation56_spill] sm:$0xff] }
 0x578   : > { %v5776_v46 = vsel %vm5720_vm2, %v5692_v51, %v5748_v47  ;;  %v5777_v41 = vsel %vm5721_vm3, %v5693_v19, %v5749_v26  ;;  %v5778_v13 = vsel %vm5722_vm4, %v5694_v30, %v5750_v63  ;;  %v5779_v14 = vsel %vm5723_vm5, %v5695_v55, %v5751_v43  ;;  %v21184_v24 = vld [vmem:[#allocation104_spill] sm:$0xff] }
 0x579   : > { %v5780_v48 = vsel %vm5724_vm6, %v5696_v23, %v5752_v31  ;;  %v5781_v33 = vsel %vm5725_vm7, %v5697_v7, %v5753_v1  ;;  %v13489_v2 = vpack.c.bf16 %v5769_v22, %v5768_v29  ;;  %v13490_v56 = vpack.c.bf16 %v5771_v25, %v5770_v36 }
 0x57a   : > { %v13491_v58 = vpack.c.bf16 %v5773_v61, %v5772_v38  ;;  %v13492_v42 = vpack.c.bf16 %v5775_v17, %v5774_v27  ;;  %v13493_v20 = vpack.c.bf16 %v5777_v41, %v5776_v46  ;;  %v13494_v49 = vpack.c.bf16 %v5779_v14, %v5778_v13 }
 0x57b   : > { %v13495_v52 = vpack.c.bf16 %v5781_v33, %v5780_v48  ;;  %5880 = vst [vmem:[#allocation2 + $0x128] sm:$0xff] %v13489_v2  ;;  %5881 = vst [vmem:[#allocation2 + $0x130] sm:$0xff] %v13490_v56  ;;  %v5700_v50 = vadd.f32 %v17406_v57, %v21181_v16  ;;  %v5701_v8 = vadd.f32 %v17406_v57, %v21182_v35  ;;  %vm5726_vm8 = vcmp.gt.f32.partialorder %v17410_v12, 0.0 }
 0x57c   : > { %v5702_v60 = vadd.f32 %v17406_v57, %v21183_v11  ;;  %5882 = vst [vmem:[#allocation2 + $0x138] sm:$0xff] %v13491_v58  ;;  %5883 = vst [vmem:[#allocation2 + $0x140] sm:$0xff] %v13492_v42  ;;  %v5703_v59 = vadd.f32 %v17406_v57, %v21184_v24  ;;  %v5704_v5 = vadd.f32 %v17406_v57, %v17285_v40  ;;  %vm5727_vm9 = vcmp.gt.f32.partialorder %v17414_v21, 0.0 }
 0x57d   : > { %5884 = vst [vmem:[#allocation2 + $0x148] sm:$0xff] %v13493_v20  ;;  %5885 = vst [vmem:[#allocation2 + $0x150] sm:$0xff] %v13494_v49  ;;  %v5705_v3 = vadd.f32 %v17406_v57, %v17323_v4  ;;  %v5706_v0 = vadd.f32 %v17406_v57, %v17383_v39  ;;  %v5707_v51 = vadd.f32 %v17406_v57, %v17385_v34  ;;  %vm5728_vm10 = vcmp.gt.f32.partialorder %v5700_v50, 0.0 }
 0x57e   : > { %5886 = vst [vmem:[#allocation2 + $0x158] sm:$0xff] %v13495_v52  ;;  %v5708_v19 = vadd.f32 %v17406_v57, %v17391_v18  ;;  %v5709_v30 = vadd.f32 %v17406_v57, %v17393_v10  ;;  %v5710_v55 = vadd.f32 %v17406_v57, %v17395_v53  ;;  %v5711_v40 = vadd.f32 %v17406_v57, %v17397_v15 }
 0x57f   : > { %vm5729_vm11 = vcmp.gt.f32.partialorder %v5701_v8, 0.0  ;;  %vm5730_vm12 = vcmp.gt.f32.partialorder %v5702_v60, 0.0  ;;  %vm5731_vm13 = vcmp.gt.f32.partialorder %v5703_v59, 0.0  ;;  %vm5732_vm14 = vcmp.gt.f32.partialorder %v5704_v5, 0.0 }
 0x580   : > { %vm5733_vm15 = vcmp.gt.f32.partialorder %v5705_v3, 0.0  ;;  %vm5734_vm0 = vcmp.gt.f32.partialorder %v5706_v0, 0.0  ;;  %vm5735_vm1 = vcmp.gt.f32.partialorder %v5707_v51, 0.0  ;;  %vm5736_vm2 = vcmp.gt.f32.partialorder %v5708_v19, 0.0 }
 0x581   : > { %vm5737_vm3 = vcmp.gt.f32.partialorder %v5709_v30, 0.0  ;;  %vm5738_vm4 = vcmp.gt.f32.partialorder %v5710_v55, 0.0  ;;  %vm5739_vm5 = vcmp.gt.f32.partialorder %v5711_v40, 0.0  ;;  %v5754_v4 = vmul.f32 0.2, %v17410_v12 }
 0x582   : > { %v5755_v39 = vmul.f32 0.2, %v17414_v21  ;;  %v5756_v34 = vmul.f32 0.2, %v5700_v50  ;;  %v5757_v18 = vmul.f32 0.2, %v5701_v8 }
 0x583   : > { %v5758_v10 = vmul.f32 0.2, %v5702_v60  ;;  %v5759_v53 = vmul.f32 0.2, %v5703_v59  ;;  %v5760_v15 = vmul.f32 0.2, %v5704_v5  ;;  %v5782_v23 = vsel %vm5726_vm8, %v17410_v12, %v5754_v4 }
 0x584   : > { %v5761_v7 = vmul.f32 0.2, %v5705_v3  ;;  %v5762_v57 = vmul.f32 0.2, %v5706_v0  ;;  %v5763_v32 = vmul.f32 0.2, %v5707_v51  ;;  %v5783_v6 = vsel %vm5727_vm9, %v17414_v21, %v5755_v39 }
 0x585   : > { %v5764_v37 = vmul.f32 0.2, %v5708_v19  ;;  %v5765_v44 = vmul.f32 0.2, %v5709_v30  ;;  %v5766_v9 = vmul.f32 0.2, %v5710_v55  ;;  %v5784_v62 = vsel %vm5728_vm10, %v5700_v50, %v5756_v34 }
 0x586   : > { %v5767_v54 = vmul.f32 0.2, %v5711_v40  ;;  %v5785_v28 = vsel %vm5729_vm11, %v5701_v8, %v5757_v18  ;;  %v5786_v45 = vsel %vm5730_vm12, %v5702_v60, %v5758_v10  ;;  %v5787_v47 = vsel %vm5731_vm13, %v5703_v59, %v5759_v53 }
 0x587   : > { %v5788_v12 = vsel %vm5732_vm14, %v5704_v5, %v5760_v15  ;;  %v5789_v29 = vsel %vm5733_vm15, %v5705_v3, %v5761_v7  ;;  %v5790_v26 = vsel %vm5734_vm0, %v5706_v0, %v5762_v57  ;;  %v5791_v21 = vsel %vm5735_vm1, %v5707_v51, %v5763_v32 }
 0x588   : > { %v5792_v63 = vsel %vm5736_vm2, %v5708_v19, %v5764_v37  ;;  %v5793_v43 = vsel %vm5737_vm3, %v5709_v30, %v5765_v44  ;;  %v5794_v22 = vsel %vm5738_vm4, %v5710_v55, %v5766_v9  ;;  %v5795_v31 = vsel %vm5739_vm5, %v5711_v40, %v5767_v54 }
 0x589   : > { %v13496_v1 = vpack.c.bf16 %v5783_v6, %v5782_v23  ;;  %v13497_v36 = vpack.c.bf16 %v5785_v28, %v5784_v62  ;;  %v13498_v25 = vpack.c.bf16 %v5787_v47, %v5786_v45  ;;  %v13499_v38 = vpack.c.bf16 %v5789_v29, %v5788_v12 }
 0x58a   : > { %v13500_v61 = vpack.c.bf16 %v5791_v21, %v5790_v26  ;;  %v13501_v27 = vpack.c.bf16 %v5793_v43, %v5792_v63  ;;  %v13502_v17 = vpack.c.bf16 %v5795_v31, %v5794_v22  ;;  %5896 = sbr.rel (%p12504_p10) target bundleno = 1426 (0x592), region = 96 }
 0x58b   : > { %5887 = vst [vmem:[#allocation2 + $0x170] sm:$0xff] %v13496_v1  ;;  %5888 = vst [vmem:[#allocation2 + $0x178] sm:$0xff] %v13497_v36 }
 0x58c   : > { %5889 = vst [vmem:[#allocation2 + $0x180] sm:$0xff] %v13498_v25  ;;  %5890 = vst [vmem:[#allocation2 + $0x188] sm:$0xff] %v13499_v38 }
 0x58d   : > { %5891 = vst [vmem:[#allocation2 + $0x190] sm:$0xff] %v13500_v61  ;;  %5892 = vst [vmem:[#allocation2 + $0x198] sm:$0xff] %v13501_v27 }
 0x58e   : > { %5893 = vst [vmem:[#allocation2 + $0x1a0] sm:$0xff] %v13502_v17 }
 0x58f   : > { %v14237_v46 = vmov 0  }
 0x590   : > { %5897 = vst [vmem:[#allocation2 + $0x128] sm:$0xff] %v14237_v46  ;;  %5898 = vst [vmem:[#allocation2 + $0x130] sm:$0xf] %v14237_v46 }
 0x591   : > { %5899 = vst [vmem:[#allocation2 + $0x170] sm:$0xff] %v14237_v46  ;;  %5900 = vst [vmem:[#allocation2 + $0x178] sm:$0xf] %v14237_v46 }
 0x592 PF: > { %5903 = sbr.rel (%p12516_p12) target bundleno = 1434 (0x59a), region = 100 }
 0x597   : > { %v14238_v41 = vmov 0  }
 0x598   : > { %5904 = vst [vmem:[#allocation2 + $0x154] sm:$0xff] %v14238_v41  ;;  %5905 = vst [vmem:[#allocation2 + $0x15c] sm:$0xf] %v14238_v41 }
 0x599   : > { %5906 = vst [vmem:[#allocation2 + $0x19c] sm:$0xff] %v14238_v41  ;;  %5907 = vst [vmem:[#allocation2 + $0x1a4] sm:$0xf] %v14238_v41 }
 0x59a PF: > { %v21185_v14 = vmov 0   ;;  %v13761_v48 = vld [vmem:[#allocation2 + $0x138] ss:$72 sps:$4 sm:$0xff]   ;;  %v13764_v2 = vld [vmem:[#allocation2 + $0x134] ss:$72 sps:$4 sm:$0xff]   ;;  %vm6188_vm6 = vcmask 392192  }
 0x59b   : > { %v13759_v13 = vld [vmem:[#allocation2 + $0x130] ss:$72 sps:$4 sm:$0xff]   ;;  %6230 = vmatprep.mubr.bf16.mxu1 %v21185_v14  ;;  %6293 = vmatprep.mubr.bf16.mxu0 %v21185_v14  ;;  %v13763_v33 = vld [vmem:[#allocation2 + $0x12c] ss:$72 sps:$4 sm:$0xff]   ;;  %v13765_v56 = vld [vmem:[#allocation2 + $0xa0] ss:$72 sps:$4 sm:$0xff]  }
 0x59c   : > { %13757 = vset.pattern.permute.xlu0 %v21185_v14  ;;  %13758 = vset.pattern.permute.xlu1 %v21185_v14  ;;  %v13767_v58 = vld [vmem:[#allocation2 + $0xa8] ss:$72 sps:$4 sm:$0xff]   ;;  %v13769_v42 = vld [vmem:[#allocation2 + $0x9c] ss:$72 sps:$4 sm:$0xff]   ;;  %v13773_v52 = vld [vmem:[#allocation2 + $0x18] ss:$72 sps:$4 sm:$0xff]  }
 0x59d   : > { %6208 = vmatprep.subr.bf16.mxu1 %v13759_v13  ;;  %6271 = vmatprep.subr.bf16.mxu0 %v13761_v48  ;;  %v13770_v20 = vld [vmem:[#allocation2 + $0xa4] ss:$72 sps:$4 sm:$0xff]   ;;  %v13771_v49 = vld [vmem:[#allocation2 + $0x10] ss:$72 sps:$4 sm:$0xff]   ;;  %v13776_v50 = vld [vmem:[#allocation2 + $0x14] ss:$72 sps:$4 sm:$0xff]  }
 0x59e   : > { %6209 = vmatpush1.bf16.msra.mxu1 %v13763_v33  ;;  %6272 = vmatpush1.bf16.msra.mxu0 %v13764_v2  ;;  %v13775_v16 = vld [vmem:[#allocation2 + $0xc] ss:$72 sps:$4 sm:$0xff]   ;;  %v17487_v35 = vld [vmem:[%s20338_s4 + $0x18] sm:$0xff]   ;;  %v13780_v8 = vld [vmem:[#allocation2 + $0x140] ss:$72 sps:$4 sm:$0xff]  }
 0x59f   : > { %6210 = vmatprep.subr.bf16.mxu1 %v13765_v56  ;;  %6273 = vmatprep.subr.bf16.mxu0 %v13767_v58  ;;  %v13778_v11 = vld [vmem:[#allocation2 + $0x13c] ss:$72 sps:$4 sm:$0xff]   ;;  %v13783_v60 = vld [vmem:[#allocation2 + $0x148] ss:$72 sps:$4 sm:$0xff]   ;;  %v13785_v59 = vld [vmem:[#allocation2 + $0xac] ss:$72 sps:$4 sm:$0xff]  }
 0x5a0   : > { %v13781_v24 = vld [vmem:[#allocation2 + $0x144] ss:$72 sps:$4 sm:$0xff]   ;;  %v13787_v5 = vld [vmem:[#allocation2 + $0xb0] ss:$72 sps:$4 sm:$0xff]   ;;  %v13788_v0 = vld [vmem:[#allocation2 + $0xb4] ss:$72 sps:$4 sm:$0xff]  }
 0x5a1   : > { %v13790_v3 = vld [vmem:[#allocation2 + $0xb8] ss:$72 sps:$4 sm:$0xff]   ;;  %v13797_v19 = vld [vmem:[#allocation2 + $0x28] ss:$72 sps:$4 sm:$0xff]   ;;  %v13792_v55 = vld [vmem:[#allocation2 + $0x1c] ss:$72 sps:$4 sm:$0xff]  }
 0x5a2   : > { %6211 = vmatpush1.bf16.msra.mxu1 %v13769_v42  ;;  %6274 = vmatpush1.bf16.msra.mxu0 %v13770_v20  ;;  %v13794_v51 = vld [vmem:[#allocation2 + $0x20] ss:$72 sps:$4 sm:$0xff]   ;;  %v13795_v40 = vld [vmem:[#allocation2 + $0x24] ss:$72 sps:$4 sm:$0xff]   ;;  %v13800_v4 = vld [vmem:[#allocation2 + $0x150] ss:$72 sps:$4 sm:$0xff]  }
 0x5a3   : > { %6212 = vmatprep.subr.bf16.mxu1 %v13771_v49  ;;  %6275 = vmatprep.subr.bf16.mxu0 %v13773_v52  ;;  %v17498_v30 = vld [vmem:[%s20338_s4 + $0x20] sm:$0xff]   ;;  %v17509_v34 = vld [vmem:[%s20338_s4 + $0x28] sm:$0xff]   ;;  %v13801_v10 = vld [vmem:[#allocation2 + $0x154] ss:$72 sps:$4 sm:$0xff]  }
 0x5a4   : > { %v13803_v39 = vld [vmem:[#allocation2 + $0x158] ss:$72 sps:$4 sm:$0xff]   ;;  %v13798_v18 = vld [vmem:[#allocation2 + $0x14c] ss:$72 sps:$4 sm:$0xff]   ;;  %v13809_v15 = vld [vmem:[#allocation2 + $0xc8] ss:$72 sps:$4 sm:$0xff]  }
 0x5a5   : > { %v13806_v53 = vld [vmem:[#allocation2 + $0xc0] ss:$72 sps:$4 sm:$0xff]   ;;  %v13804_v23 = vld [vmem:[#allocation2 + $0xbc] ss:$72 sps:$4 sm:$0xff]   ;;  %v13812_v57 = vld [vmem:[#allocation2 + $0x30] ss:$72 sps:$4 sm:$0xff]  }
 0x5a6   : > { %6213 = vmatpush1.bf16.msra.mxu1 %v13775_v16  ;;  %6276 = vmatpush1.bf16.msra.mxu0 %v13776_v50  ;;  %v13807_v7 = vld [vmem:[#allocation2 + $0xc4] ss:$72 sps:$4 sm:$0xff]   ;;  %v13815_v32 = vld [vmem:[#allocation2 + $0x38] ss:$72 sps:$4 sm:$0xff]   ;;  %v13813_v37 = vld [vmem:[#allocation2 + $0x34] ss:$72 sps:$4 sm:$0xff]  }
 0x5a7   : > { %6334 = vmatprep.subr.bf16.mxu1 %v13780_v8  ;;  %6397 = vmatprep.subr.bf16.mxu0 %v13783_v60  ;;  %v13810_v6 = vld [vmem:[#allocation2 + $0x2c] ss:$72 sps:$4 sm:$0xff]   ;;  %v13816_v62 = vld [vmem:[#allocation2 + $0x128] ss:$72 sps:$4 sm:$0xff]   ;;  %v13824_v28 = vld [vmem:[#allocation2 + $0x9c] ss:$72 sps:$4 sm:$0xff]  }
 0x5a8   : > { %v13818_v44 = vld [vmem:[#allocation2 + $0x12c] ss:$72 sps:$4 sm:$0xff]   ;;  %v17538_v54 = vld [vmem:[#allocation2 + $0x130] ss:$72 sps:$4 sm:$0xff]   ;;  %v17547_v12 = vld [vmem:[#allocation2 + $0xa0] ss:$72 sps:$4 sm:$0xff]  }
 0x5a9   : > { %12917 = vmatmul.mubr.msk.bf16.vlgmr.msra.gmra.mxu1 %vm6188_vm6, %v17487_v35  ;;  %12920 = vmatmul.mubr.msk.bf16.vlgmr.msra.gmra.mxu0 %vm6188_vm6, %v17487_v35  ;;  %v17523_v9 = vld [vmem:[#allocation2 + $0x134] ss:$72 sps:$4 sm:$0xff]   ;;  %v17540_v45 = vld [vmem:[#allocation2 + $0xa4] ss:$72 sps:$4 sm:$0xff]   ;;  %v13822_v47 = vld [vmem:[#allocation2 + $0x98] ss:$72 sps:$4 sm:$0xff]  }
 0x5aa   : > { %6335 = vmatpush1.bf16.msra.mxu1 %v13778_v11  ;;  %6398 = vmatpush1.bf16.msra.mxu0 %v13781_v24  ;;  %v13830_v29 = vld [vmem:[#allocation2 + $0xc] ss:$72 sps:$4 sm:$0xff]   ;;  %v13828_v21 = vld [vmem:[#allocation2 + $0x8] ss:$72 sps:$4 sm:$0xff]   ;;  %v17558_v43 = vld [vmem:[#allocation2 + $0x13c] ss:$72 sps:$4 sm:$0xff]  }
 0x5ab   : > { %6240 = vmatprep.mubr.bf16.mxu1 %v21185_v14  ;;  %6303 = vmatprep.mubr.bf16.mxu0 %v21185_v14  ;;  %v17551_v26 = vld [vmem:[#allocation2 + $0x14] ss:$72 sps:$4 sm:$0xff]   ;;  %v17555_v63 = vld [vmem:[#allocation2 + $0x10] ss:$72 sps:$4 sm:$0xff]   ;;  %v17560_v22 = vld [vmem:[#allocation2 + $0x144] ss:$72 sps:$4 sm:$0xff]  }
 0x5ac   : > { %6336 = vmatprep.subr.bf16.mxu1 %v13787_v5  ;;  %6399 = vmatprep.subr.bf16.mxu0 %v13790_v3  ;;  %v17580_v31 = vld [vmem:[%s20338_s4] sm:$0xff]   ;;  %v17586_v25 = vld [vmem:[#allocation2 + $0xac] ss:$72 sps:$4 sm:$0xff]   ;;  %v17596_v61 = vld [vmem:[#allocation2 + $0xa8] ss:$72 sps:$4 sm:$0xff]  }
 0x5ad   : > { %v17582_v1 = vld [vmem:[#allocation2 + $0x138] ss:$72 sps:$4 sm:$0xff]   ;;  %v17588_v38 = vld [vmem:[#allocation2 + $0xb4] ss:$72 sps:$4 sm:$0xff]   ;;  %v17604_v46 = vld [vmem:[#allocation2 + $0x24] ss:$72 sps:$4 sm:$0xff]  }
 0x5ae   : > { %6337 = vmatpush1.bf16.msra.mxu1 %v13785_v59  ;;  %6400 = vmatpush1.bf16.msra.mxu0 %v13788_v0  ;;  %v17584_v36 = vld [vmem:[#allocation2 + $0x140] ss:$72 sps:$4 sm:$0xff]   ;;  %v17598_v27 = vld [vmem:[#allocation2 + $0xb0] ss:$72 sps:$4 sm:$0xff]   ;;  %v17602_v17 = vld [vmem:[#allocation2 + $0x1c] ss:$72 sps:$4 sm:$0xff]  }
 0x5af   : > { %6338 = vmatprep.subr.bf16.mxu1 %v13794_v51  ;;  %6401 = vmatprep.subr.bf16.mxu0 %v13797_v19  ;;  %v17611_v41 = vld [vmem:[%s20338_s4 + $0x8] sm:$0xff]   ;;  %v17615_v13 = vld [vmem:[#allocation2 + $0x18] ss:$72 sps:$4 sm:$0xff]   ;;  %v17623_v2 = vld [vmem:[#allocation2 + $0x154] ss:$72 sps:$4 sm:$0xff]  }
 0x5b0   : > { %v17618_v48 = vld [vmem:[#allocation2 + $0x20] ss:$72 sps:$4 sm:$0xff]   ;;  %v17621_v33 = vld [vmem:[#allocation2 + $0x14c] ss:$72 sps:$4 sm:$0xff]   ;;  %v17644_v42 = vld [vmem:[#allocation2 + $0x150] ss:$72 sps:$4 sm:$0xff]  }
 0x5b1   : > { %12918 = vmatmul.mubr.msk.bf16.gmra.mxu1 %vm6188_vm6, %v17498_v30  ;;  %12921 = vmatmul.mubr.msk.bf16.gmra.mxu0 %vm6188_vm6, %v17498_v30  ;;  %v13848_v56 = vld [vmem:[%s20338_s4 + $0x10] sm:$0xff]   ;;  %v17646_v20 = vld [vmem:[#allocation2 + $0xbc] ss:$72 sps:$4 sm:$0xff]   ;;  %v13861_v52 = vld [vmem:[#allocation2 + $0xb8] ss:$72 sps:$4 sm:$0xff]  }
 0x5b2   : > { %6250 = vmatprep.mubr.bf16.mxu1 %v21185_v14  ;;  %6313 = vmatprep.mubr.bf16.mxu0 %v21185_v14  ;;  %v17642_v58 = vld [vmem:[#allocation2 + $0x148] ss:$72 sps:$4 sm:$0xff]   ;;  %v17648_v49 = vld [vmem:[#allocation2 + $0xc4] ss:$72 sps:$4 sm:$0xff]   ;;  %v13874_v24 = vld [vmem:[%s20338_s4 + $0x38] sm:$0xff]  }
 0x5b3   : > { %6339 = vmatpush1.bf16.msra.mxu1 %v13792_v55  ;;  %6402 = vmatpush1.bf16.msra.mxu0 %v13795_v40  ;;  %v17656_v16 = vld [vmem:[#allocation2 + $0xc0] ss:$72 sps:$4 sm:$0xff]   ;;  %v13869_v50 = vld [vmem:[#allocation2 + $0x2c] ss:$72 sps:$4 sm:$0xff]   ;;  %v17665_v11 = vld [vmem:[#allocation2 + $0x30] ss:$72 sps:$4 sm:$0xff]  }
 0x5b4   : > { %6460 = vmatprep.subr.bf16.mxu1 %v13800_v4  ;;  %6523 = vmatprep.subr.bf16.mxu0 %v13803_v39  ;;  %v13867_v8 = vld [vmem:[#allocation2 + $0x28] ss:$72 sps:$4 sm:$0xff]   ;;  %v13878_v59 = vld [vmem:[#allocation2 + $0x15c] ss:$72 sps:$4 sm:$0xff]   ;;  %v13876_v3 = vld [vmem:[#allocation2 + $0x158] ss:$72 sps:$4 sm:$0xff]  }
 0x5b5   : > { %v13873_v60 = vld [vmem:[%s20338_s4 + $0x30] sm:$0xff]   ;;  %v13875_v5 = vld [vmem:[%s20338_s4 + $0x40] sm:$0xff]  }
 0x5b6   : > { %v13881_v0 = vld [vmem:[#allocation2 + $0xcc] ss:$72 sps:$4 sm:$0xff]   ;;  %v13879_v51 = vld [vmem:[#allocation2 + $0xc8] ss:$72 sps:$4 sm:$0xff]   ;;  %v13884_v19 = vld [vmem:[#allocation2 + $0x3c] ss:$72 sps:$4 sm:$0xff]  }
 0x5b9   : > { %12919 = vmatmul.mubr.msk.bf16.gmra.mxu1 %vm6188_vm6, %v17509_v34  ;;  %12922 = vmatmul.mubr.msk.bf16.gmra.mxu0 %vm6188_vm6, %v17509_v34 }
 0x5ba   : > { %6356 = vmatprep.mubr.bf16.mxu1 %v21185_v14  ;;  %6419 = vmatprep.mubr.bf16.mxu0 %v21185_v14 }
 0x5c1   : > { %12923 = vmatmul.mubr.msk.bf16.vlgmr.msra.gmra.mxu1 %vm6188_vm6, %v17487_v35  ;;  %12926 = vmatmul.mubr.msk.bf16.vlgmr.msra.gmra.mxu0 %vm6188_vm6, %v17487_v35 }
 0x5c2   : > { %6461 = vmatpush1.bf16.msra.mxu1 %v13798_v18  ;;  %6524 = vmatpush1.bf16.msra.mxu0 %v13801_v10 }
 0x5c3   : > { %6366 = vmatprep.mubr.bf16.mxu1 %v21185_v14  ;;  %6429 = vmatprep.mubr.bf16.mxu0 %v21185_v14 }
 0x5c4   : > { %6462 = vmatprep.subr.bf16.mxu1 %v13806_v53  ;;  %6525 = vmatprep.subr.bf16.mxu0 %v13809_v15 }
 0x5c6   : > { %6463 = vmatpush1.bf16.msra.mxu1 %v13804_v23  ;;  %6526 = vmatpush1.bf16.msra.mxu0 %v13807_v7 }
 0x5c7   : > { %6464 = vmatprep.subr.bf16.mxu1 %v13812_v57  ;;  %6527 = vmatprep.subr.bf16.mxu0 %v13815_v32 }
 0x5c9   : > { %12924 = vmatmul.mubr.msk.bf16.gmra.mxu1 %vm6188_vm6, %v17498_v30  ;;  %12927 = vmatmul.mubr.msk.bf16.gmra.mxu0 %vm6188_vm6, %v17498_v30 }
 0x5ca   : > { %6376 = vmatprep.mubr.bf16.mxu1 %v21185_v14  ;;  %6439 = vmatprep.mubr.bf16.mxu0 %v21185_v14 }
 0x5cb   : > { %6465 = vmatpush1.bf16.msra.mxu1 %v13810_v6  ;;  %6528 = vmatpush1.bf16.msra.mxu0 %v13813_v37 }
 0x5cc   : > { %6790 = vmatprep.subr.bf16.mxu1 %v13818_v44  ;;  %6853 = vmatprep.subr.bf16.mxu0 %v17523_v9 }
 0x5d1   : > { %12925 = vmatmul.mubr.msk.bf16.gmra.mxu1 %vm6188_vm6, %v17509_v34  ;;  %12928 = vmatmul.mubr.msk.bf16.gmra.mxu0 %vm6188_vm6, %v17509_v34 }
 0x5d2   : > { %6482 = vmatprep.mubr.bf16.mxu1 %v21185_v14  ;;  %6545 = vmatprep.mubr.bf16.mxu0 %v21185_v14 }
 0x5d9   : > { %12929 = vmatmul.mubr.msk.bf16.vlgmr.msra.gmra.mxu1 %vm6188_vm6, %v17487_v35  ;;  %12932 = vmatmul.mubr.msk.bf16.vlgmr.msra.gmra.mxu0 %vm6188_vm6, %v17487_v35  ;;  %v17660_v35 = vld [vmem:[#allocation2 + $0x34] ss:$72 sps:$4 sm:$0xff]  }
 0x5da   : > { %6791 = vmatpush1.bf16.msra.mxu1 %v13816_v62  ;;  %6854 = vmatpush1.bf16.msra.mxu0 %v17538_v54 }
 0x5db   : > { %6492 = vmatprep.mubr.bf16.mxu1 %v21185_v14  ;;  %6555 = vmatprep.mubr.bf16.mxu0 %v21185_v14 }
 0x5dc   : > { %6792 = vmatprep.subr.bf16.mxu1 %v13824_v28  ;;  %6855 = vmatprep.subr.bf16.mxu0 %v17540_v45 }
 0x5de   : > { %6793 = vmatpush1.bf16.msra.mxu1 %v13822_v47  ;;  %6856 = vmatpush1.bf16.msra.mxu0 %v17547_v12 }
 0x5df   : > { %6794 = vmatprep.subr.bf16.mxu1 %v13830_v29  ;;  %6857 = vmatprep.subr.bf16.mxu0 %v17551_v26 }
 0x5e1   : > { %12930 = vmatmul.mubr.msk.bf16.gmra.mxu1 %vm6188_vm6, %v17498_v30  ;;  %12933 = vmatmul.mubr.msk.bf16.gmra.mxu0 %vm6188_vm6, %v17498_v30  ;;  %v13882_v30 = vld [vmem:[#allocation2 + $0x38] ss:$72 sps:$4 sm:$0xff]  }
 0x5e2   : > { %6502 = vmatprep.mubr.bf16.mxu1 %v21185_v14  ;;  %6565 = vmatprep.mubr.bf16.mxu0 %v21185_v14 }
 0x5e3   : > { %6795 = vmatpush1.bf16.msra.mxu1 %v13828_v21  ;;  %6858 = vmatpush1.bf16.msra.mxu0 %v17555_v63 }
 0x5e4   : > { %6916 = vmatprep.subr.bf16.mxu1 %v17558_v43  ;;  %6979 = vmatprep.subr.bf16.mxu0 %v17560_v22 }
 0x5e9   : > { %12931 = vmatmul.mubr.msk.bf16.gmra.mxu1 %vm6188_vm6, %v17509_v34  ;;  %12934 = vmatmul.mubr.msk.bf16.gmra.mxu0 %vm6188_vm6, %v17509_v34 }
 0x5ea   : > { %6812 = vmatprep.mubr.bf16.mxu1 %v21185_v14  ;;  %6875 = vmatprep.mubr.bf16.mxu0 %v21185_v14 }
 0x5f1   : > { %12974 = vmatmul.mubr.msk.bf16.vlgmr.msra.gmra.mxu1 %vm6188_vm6, %v17580_v31  ;;  %12977 = vmatmul.mubr.msk.bf16.vlgmr.msra.gmra.mxu0 %vm6188_vm6, %v17580_v31 }
 0x5f2   : > { %6917 = vmatpush1.bf16.msra.mxu1 %v17582_v1  ;;  %6980 = vmatpush1.bf16.msra.mxu0 %v17584_v36 }
 0x5f3   : > { %6822 = vmatprep.mubr.bf16.mxu1 %v21185_v14  ;;  %6885 = vmatprep.mubr.bf16.mxu0 %v21185_v14 }
 0x5f4   : > { %6918 = vmatprep.subr.bf16.mxu1 %v17586_v25  ;;  %6981 = vmatprep.subr.bf16.mxu0 %v17588_v38 }
 0x5f6   : > { %6919 = vmatpush1.bf16.msra.mxu1 %v17596_v61  ;;  %6982 = vmatpush1.bf16.msra.mxu0 %v17598_v27 }
 0x5f7   : > { %6920 = vmatprep.subr.bf16.mxu1 %v17602_v17  ;;  %6983 = vmatprep.subr.bf16.mxu0 %v17604_v46 }
 0x5f9   : > { %12975 = vmatmul.mubr.msk.bf16.gmra.mxu1 %vm6188_vm6, %v17611_v41  ;;  %12978 = vmatmul.mubr.msk.bf16.gmra.mxu0 %vm6188_vm6, %v17611_v41 }
 0x5fa   : > { %6832 = vmatprep.mubr.bf16.mxu1 %v21185_v14  ;;  %6895 = vmatprep.mubr.bf16.mxu0 %v21185_v14 }
 0x5fb   : > { %6921 = vmatpush1.bf16.msra.mxu1 %v17615_v13  ;;  %6984 = vmatpush1.bf16.msra.mxu0 %v17618_v48 }
 0x5fc   : > { %7042 = vmatprep.subr.bf16.mxu1 %v17621_v33  ;;  %7105 = vmatprep.subr.bf16.mxu0 %v17623_v2 }
 0x601   : > { %12976 = vmatmul.mubr.msk.bf16.gmra.mxu1 %vm6188_vm6, %v13848_v56  ;;  %12979 = vmatmul.mubr.msk.bf16.gmra.mxu0 %vm6188_vm6, %v13848_v56 }
 0x602   : > { %6938 = vmatprep.mubr.bf16.mxu1 %v21185_v14  ;;  %7001 = vmatprep.mubr.bf16.mxu0 %v21185_v14 }
 0x609   : > { %12980 = vmatmul.mubr.msk.bf16.vlgmr.msra.gmra.mxu1 %vm6188_vm6, %v17580_v31  ;;  %12983 = vmatmul.mubr.msk.bf16.vlgmr.msra.gmra.mxu0 %vm6188_vm6, %v17580_v31 }
 0x60a   : > { %7043 = vmatpush1.bf16.msra.mxu1 %v17642_v58  ;;  %7106 = vmatpush1.bf16.msra.mxu0 %v17644_v42 }
 0x60b   : > { %6948 = vmatprep.mubr.bf16.mxu1 %v21185_v14  ;;  %7011 = vmatprep.mubr.bf16.mxu0 %v21185_v14 }
 0x60c   : > { %7044 = vmatprep.subr.bf16.mxu1 %v17646_v20  ;;  %7107 = vmatprep.subr.bf16.mxu0 %v17648_v49 }
 0x60e   : > { %7045 = vmatpush1.bf16.msra.mxu1 %v13861_v52  ;;  %7108 = vmatpush1.bf16.msra.mxu0 %v17656_v16 }
 0x60f   : > { %7046 = vmatprep.subr.bf16.mxu1 %v13869_v50  ;;  %7109 = vmatprep.subr.bf16.mxu0 %v17660_v35 }
 0x611   : > { %12981 = vmatmul.mubr.msk.bf16.gmra.mxu1 %vm6188_vm6, %v17611_v41  ;;  %12984 = vmatmul.mubr.msk.bf16.gmra.mxu0 %vm6188_vm6, %v17611_v41 }
 0x612   : > { %6958 = vmatprep.mubr.bf16.mxu1 %v21185_v14  ;;  %7021 = vmatprep.mubr.bf16.mxu0 %v21185_v14 }
 0x613   : > { %7047 = vmatpush1.bf16.msra.mxu1 %v13867_v8  ;;  %7110 = vmatpush1.bf16.msra.mxu0 %v17665_v11 }
 0x614   : > { %7415 = vmatprep.subr.bf16.mxu1 %v17523_v9  ;;  %7478 = vmatprep.subr.bf16.mxu0 %v17558_v43 }
 0x619   : > { %12982 = vmatmul.mubr.msk.bf16.gmra.mxu1 %vm6188_vm6, %v13848_v56  ;;  %12985 = vmatmul.mubr.msk.bf16.gmra.mxu0 %vm6188_vm6, %v13848_v56 }
 0x61a   : > { %7064 = vmatprep.mubr.bf16.mxu1 %v21185_v14  ;;  %7127 = vmatprep.mubr.bf16.mxu0 %v21185_v14 }
 0x621   : > { %12986 = vmatmul.mubr.msk.bf16.vlgmr.msra.gmra.mxu1 %vm6188_vm6, %v17580_v31  ;;  %12989 = vmatmul.mubr.msk.bf16.vlgmr.msra.gmra.mxu0 %vm6188_vm6, %v17580_v31 }
 0x622   : > { %7416 = vmatpush1.bf16.msra.mxu1 %v17538_v54  ;;  %7479 = vmatpush1.bf16.msra.mxu0 %v17582_v1 }
 0x623   : > { %7074 = vmatprep.mubr.bf16.mxu1 %v21185_v14  ;;  %7137 = vmatprep.mubr.bf16.mxu0 %v21185_v14 }
 0x624   : > { %7417 = vmatprep.subr.bf16.mxu1 %v17540_v45  ;;  %7480 = vmatprep.subr.bf16.mxu0 %v17586_v25 }
 0x626   : > { %7418 = vmatpush1.bf16.msra.mxu1 %v17547_v12  ;;  %7481 = vmatpush1.bf16.msra.mxu0 %v17596_v61 }
 0x627   : > { %7419 = vmatprep.subr.bf16.mxu1 %v17551_v26  ;;  %7482 = vmatprep.subr.bf16.mxu0 %v17602_v17 }
 0x629   : > { %12987 = vmatmul.mubr.msk.bf16.gmra.mxu1 %vm6188_vm6, %v17611_v41  ;;  %12990 = vmatmul.mubr.msk.bf16.gmra.mxu0 %vm6188_vm6, %v17611_v41 }
 0x62a   : > { %7084 = vmatprep.mubr.bf16.mxu1 %v21185_v14  ;;  %7147 = vmatprep.mubr.bf16.mxu0 %v21185_v14 }
 0x62b   : > { %7420 = vmatpush1.bf16.msra.mxu1 %v17555_v63  ;;  %7483 = vmatpush1.bf16.msra.mxu0 %v17615_v13 }
 0x62c   : > { %7541 = vmatprep.subr.bf16.mxu1 %v17560_v22  ;;  %7604 = vmatprep.subr.bf16.mxu0 %v17621_v33 }
 0x631   : > { %12988 = vmatmul.mubr.msk.bf16.gmra.mxu1 %vm6188_vm6, %v13848_v56  ;;  %12991 = vmatmul.mubr.msk.bf16.gmra.mxu0 %vm6188_vm6, %v13848_v56 }
 0x632   : > { %7437 = vmatprep.mubr.bf16.mxu1 %v21185_v14  ;;  %7500 = vmatprep.mubr.bf16.mxu0 %v21185_v14 }
 0x639   : > { %13037 = vmatmul.mubr.msk.bf16.vlgmr.msra.gmra.mxu1 %vm6188_vm6, %v13873_v60  ;;  %13040 = vmatmul.mubr.msk.bf16.vlgmr.msra.gmra.mxu0 %vm6188_vm6, %v13873_v60 }
 0x63a   : > { %7447 = vmatprep.mubr.bf16.mxu1 %v21185_v14  ;;  %7510 = vmatprep.mubr.bf16.mxu0 %v21185_v14 }
 0x63b   : > { %7542 = vmatpush1.bf16.msra.mxu1 %v17584_v36  ;;  %7605 = vmatpush1.bf16.msra.mxu0 %v17642_v58 }
 0x63c   : > { %7543 = vmatprep.subr.bf16.mxu1 %v17588_v38  ;;  %7606 = vmatprep.subr.bf16.mxu0 %v17646_v20 }
 0x63f   : > { %7544 = vmatpush1.bf16.msra.mxu1 %v17598_v27  ;;  %7607 = vmatpush1.bf16.msra.mxu0 %v13861_v52 }
 0x640   : > { %7545 = vmatprep.subr.bf16.mxu1 %v17604_v46  ;;  %7608 = vmatprep.subr.bf16.mxu0 %v13869_v50 }
 0x641   : > { %13038 = vmatmul.mubr.msk.bf16.gmra.mxu1 %vm6188_vm6, %v13874_v24  ;;  %13041 = vmatmul.mubr.msk.bf16.gmra.mxu0 %vm6188_vm6, %v13874_v24 }
 0x642   : > { %7457 = vmatprep.mubr.bf16.mxu1 %v21185_v14  ;;  %7520 = vmatprep.mubr.bf16.mxu0 %v21185_v14 }
 0x643   : > { %7546 = vmatpush1.bf16.msra.mxu1 %v17618_v48  ;;  %7609 = vmatpush1.bf16.msra.mxu0 %v13867_v8 }
 0x644   : > { %7667 = vmatprep.subr.bf16.mxu1 %v17623_v2  ;;  %7730 = vmatprep.subr.bf16.mxu0 %v13878_v59 }
 0x649   : > { %13039 = vmatmul.mubr.msk.bf16.gmra.mxu1 %vm6188_vm6, %v13875_v5  ;;  %13042 = vmatmul.mubr.msk.bf16.gmra.mxu0 %vm6188_vm6, %v13875_v5 }
 0x64a   : > { %7563 = vmatprep.mubr.bf16.mxu1 %v21185_v14  ;;  %7626 = vmatprep.mubr.bf16.mxu0 %v21185_v14 }
 0x651   : > { %13043 = vmatmul.mubr.msk.bf16.vlgmr.msra.gmra.mxu1 %vm6188_vm6, %v13873_v60  ;;  %13046 = vmatmul.mubr.msk.bf16.vlgmr.msra.gmra.mxu0 %vm6188_vm6, %v13873_v60 }
 0x652   : > { %7573 = vmatprep.mubr.bf16.mxu1 %v21185_v14  ;;  %7636 = vmatprep.mubr.bf16.mxu0 %v21185_v14 }
 0x653   : > { %7668 = vmatpush1.bf16.msra.mxu1 %v17644_v42  ;;  %7731 = vmatpush1.bf16.msra.mxu0 %v13876_v3 }
 0x654   : > { %7669 = vmatprep.subr.bf16.mxu1 %v17648_v49  ;;  %7732 = vmatprep.subr.bf16.mxu0 %v13881_v0 }
 0x657   : > { %7670 = vmatpush1.bf16.msra.mxu1 %v17656_v16  ;;  %7733 = vmatpush1.bf16.msra.mxu0 %v13879_v51 }
 0x658   : > { %7671 = vmatprep.subr.bf16.mxu1 %v17660_v35  ;;  %7734 = vmatprep.subr.bf16.mxu0 %v13884_v19 }
 0x659   : > { %13044 = vmatmul.mubr.msk.bf16.gmra.mxu1 %vm6188_vm6, %v13874_v24  ;;  %13047 = vmatmul.mubr.msk.bf16.gmra.mxu0 %vm6188_vm6, %v13874_v24 }
 0x65a   : > { %7583 = vmatprep.mubr.bf16.mxu1 %v21185_v14  ;;  %7646 = vmatprep.mubr.bf16.mxu0 %v21185_v14 }
 0x65b   : > { %7672 = vmatpush1.bf16.msra.mxu1 %v17665_v11  ;;  %7735 = vmatpush1.bf16.msra.mxu0 %v13882_v30 }
 0x661   : > { %13045 = vmatmul.mubr.msk.bf16.gmra.mxu1 %vm6188_vm6, %v13875_v5  ;;  %13048 = vmatmul.mubr.msk.bf16.gmra.mxu0 %vm6188_vm6, %v13875_v5 }
 0x662   : > { %7689 = vmatprep.mubr.bf16.mxu1 %v21185_v14  ;;  %7752 = vmatprep.mubr.bf16.mxu0 %v21185_v14 }
 0x669   : > { %v17755_v55 = vpop.f32.mrf.mxu1  ;;  %v17757_v40 = vpop.f32.mrf.mxu0  ;;  %13049 = vmatmul.mubr.msk.bf16.vlgmr.msra.gmra.mxu1 %vm6188_vm6, %v13873_v60  ;;  %13052 = vmatmul.mubr.msk.bf16.vlgmr.msra.gmra.mxu0 %vm6188_vm6, %v13873_v60 }
 0x66a   : > { %7699 = vmatprep.mubr.bf16.mxu1 %v21185_v14  ;;  %7762 = vmatprep.mubr.bf16.mxu0 %v21185_v14 }
 0x66b   : > { %v17763_v4 = vpop.f32.mrf.mxu1  ;;  %v17765_v39 = vpop.f32.mrf.mxu0 }
 0x66d   : > { %v17767_v34 = vpop.f32.mrf.mxu1  ;;  %v17769_v18 = vpop.f32.mrf.mxu0 }
 0x66f   : > { %v17771_v10 = vpop.f32.mrf.mxu1  ;;  %v17773_v53 = vpop.f32.mrf.mxu0 }
 0x671   : > { %v17775_v15 = vpop.f32.mrf.mxu1  ;;  %v17777_v23 = vpop.f32.mrf.mxu0  ;;  %13050 = vmatmul.mubr.msk.bf16.gmra.mxu1 %vm6188_vm6, %v13874_v24  ;;  %13053 = vmatmul.mubr.msk.bf16.gmra.mxu0 %vm6188_vm6, %v13874_v24 }
 0x672   : > { %7709 = vmatprep.mubr.bf16.mxu1 %v21185_v14  ;;  %7772 = vmatprep.mubr.bf16.mxu0 %v21185_v14 }
 0x673   : > { %v17783_v7 = vpop.f32.mrf.mxu1  ;;  %v17785_v57 = vpop.f32.mrf.mxu0 }
 0x675   : > { %v17787_v32 = vpop.f32.mrf.mxu1  ;;  %v17789_v6 = vpop.f32.mrf.mxu0 }
 0x677   : > { %v17791_v37 = vpop.f32.mrf.mxu1  ;;  %v17793_v44 = vpop.f32.mrf.mxu0 }
 0x679   : > { %v17795_v9 = vpop.f32.mrf.mxu1  ;;  %v17797_v62 = vpop.f32.mrf.mxu0  ;;  %13051 = vmatmul.mubr.msk.bf16.gmra.mxu1 %vm6188_vm6, %v13875_v5  ;;  %13054 = vmatmul.mubr.msk.bf16.gmra.mxu0 %vm6188_vm6, %v13875_v5 }
 0x67b   : > { %v17801_v14 = vpop.f32.mrf.mxu1  ;;  %v17803_v54 = vpop.f32.mrf.mxu0 }
 0x67d   : > { %v17805_v28 = vpop.f32.mrf.mxu1  ;;  %v17807_v45 = vpop.f32.mrf.mxu0 }
 0x67f   : > { %v17809_v47 = vpop.f32.mrf.mxu1  ;;  %v17811_v12 = vpop.f32.mrf.mxu0 }
 0x681   : > { %v17813_v29 = vpop.f32.mrf.mxu1  ;;  %v17815_v26 = vpop.f32.mrf.mxu0 }
 0x682   : > { %21186 = vst [vmem:[#allocation129_spill] sm:$0xff] %v17815_v26 }
 0x683   : > { %v17817_v21 = vpop.f32.mrf.mxu1  ;;  %v17819_v63 = vpop.f32.mrf.mxu0 }
 0x684   : > { %21187 = vst [vmem:[#allocation114_spill] sm:$0xff] %v17817_v21  ;;  %21188 = vst [vmem:[#allocation70_spill] sm:$0xff] %v17819_v63 }
 0x685   : > { %v17821_v43 = vpop.f32.mrf.mxu1  ;;  %v17823_v22 = vpop.f32.mrf.mxu0 }
 0x686   : > { %21189 = vst [vmem:[#allocation32_spill] sm:$0xff] %v17821_v43  ;;  %21190 = vst [vmem:[#allocation76_spill] sm:$0xff] %v17823_v22 }
 0x687   : > { %v17825_v31 = vpop.f32.mrf.mxu1  ;;  %v17827_v1 = vpop.f32.mrf.mxu0 }
 0x688   : > { %21191 = vst [vmem:[#allocation102_spill] sm:$0xff] %v17825_v31  ;;  %21192 = vst [vmem:[#allocation57_spill] sm:$0xff] %v17827_v1 }
 0x689   : > { %v17829_v36 = vpop.f32.mrf.mxu1  ;;  %v17831_v25 = vpop.f32.mrf.mxu0 }
 0x68a   : > { %21193 = vst [vmem:[#allocation35_spill] sm:$0xff] %v17831_v25 }
 0x68b   : > { %v17833_v38 = vpop.f32.mrf.mxu1  ;;  %v17835_v61 = vpop.f32.mrf.mxu0 }
 0x68c   : > { %21194 = vst [vmem:[#allocation77_spill] sm:$0xff] %v17833_v38  ;;  %21195 = vst [vmem:[#allocation45_spill] sm:$0xff] %v17835_v61 }
 0x68d   : > { %v17837_v27 = vpop.f32.mrf.mxu1  ;;  %v17839_v17 = vpop.f32.mrf.mxu0 }
 0x68e   : > { %21196 = vst [vmem:[#allocation128_spill] sm:$0xff] %v17837_v27  ;;  %21197 = vst [vmem:[#allocation99_spill] sm:$0xff] %v17839_v17 }
 0x68f   : > { %v17841_v46 = vpop.f32.mrf.mxu1  ;;  %v17843_v41 = vpop.f32.mrf.mxu0 }
 0x690   : > { %21198 = vst [vmem:[#allocation74_spill] sm:$0xff] %v17841_v46  ;;  %21199 = vst [vmem:[#allocation30_spill] sm:$0xff] %v17843_v41 }
 0x691   : > { %v17845_v13 = vpop.f32.mrf.mxu1  ;;  %v17847_v48 = vpop.f32.mrf.mxu0 }
 0x692   : > { %21200 = vst [vmem:[#allocation126_spill] sm:$0xff] %v17845_v13  ;;  %21201 = vst [vmem:[#allocation115_spill] sm:$0xff] %v17847_v48 }
 0x693   : > { %v17849_v33 = vpop.f32.mrf.mxu1  ;;  %v17851_v2 = vpop.f32.mrf.mxu0 }
 0x694   : > { %21202 = vst [vmem:[#allocation71_spill] sm:$0xff] %v17849_v33  ;;  %21203 = vst [vmem:[#allocation105_spill] sm:$0xff] %v17851_v2 }
 0x695   : > { %v17853_v56 = vpop.f32.mrf.mxu1  ;;  %v17855_v58 = vpop.f32.mrf.mxu0 }
 0x696   : > { %21204 = vst [vmem:[#allocation127_spill] sm:$0xff] %v17853_v56  ;;  %21205 = vst [vmem:[#allocation100_spill] sm:$0xff] %v17855_v58 }
 0x697   : > { %v17857_v42 = vpop.f32.mrf.mxu1  ;;  %v17859_v20 = vpop.f32.mrf.mxu0 }
 0x698   : > { %21206 = vst [vmem:[#allocation72_spill] sm:$0xff] %v17857_v42  ;;  %21207 = vst [vmem:[#allocation106_spill] sm:$0xff] %v17859_v20 }
 0x699   : > { %v17861_v49 = vpop.f32.mrf.mxu1  ;;  %v17863_v52 = vpop.f32.mrf.mxu0 }
 0x69a   : > { %21208 = vst [vmem:[#allocation130_spill] sm:$0xff] %v17861_v49  ;;  %21209 = vst [vmem:[#allocation33_spill] sm:$0xff] %v17863_v52 }
 0x69b   : > { %v17865_v16 = vpop.f32.mrf.mxu1  ;;  %v17867_v50 = vpop.f32.mrf.mxu0 }
 0x69c   : > { %21210 = vst [vmem:[#allocation85_spill] sm:$0xff] %v17865_v16  ;;  %21211 = vst [vmem:[#allocation103_spill] sm:$0xff] %v17867_v50 }
 0x69d   : > { %v17869_v35 = vpop.f32.mrf.mxu1  ;;  %v17871_v8 = vpop.f32.mrf.mxu0 }
 0x69e   : > { %21212 = vst [vmem:[#allocation60_spill] sm:$0xff] %v17869_v35  ;;  %21213 = vst [vmem:[#allocation135_spill] sm:$0xff] %v17871_v8 }
 0x69f   : > { %v17873_v11 = vpop.f32.mrf.mxu1  ;;  %v17875_v60 = vpop.f32.mrf.mxu0 }
 0x6a0   : > { %21214 = vst [vmem:[#allocation145_spill] sm:$0xff] %v17873_v11  ;;  %21215 = vst [vmem:[#allocation37_spill] sm:$0xff] %v17875_v60 }
 0x6a1   : > { %v17877_v24 = vpop.f32.mrf.mxu1  ;;  %v17879_v59 = vpop.f32.mrf.mxu0 }
 0x6a2   : > { %21216 = vst [vmem:[#allocation20_spill] sm:$0xff] %v17877_v24  ;;  %21217 = vst [vmem:[#allocation47_spill] sm:$0xff] %v17879_v59 }
 0x6a3   : > { %v17881_v5 = vpop.f32.mrf.mxu1  ;;  %v17883_v3 = vpop.f32.mrf.mxu0 }
 0x6a4   : > { %21218 = vst [vmem:[#allocation26_spill] sm:$0xff] %v17881_v5  ;;  %21219 = vst [vmem:[#allocation117_spill] sm:$0xff] %v17883_v3 }
 0x6a5   : > { %v17885_v0 = vpop.f32.mrf.mxu1  ;;  %v17887_v51 = vpop.f32.mrf.mxu0 }
 0x6a6   : > { %21220 = vst [vmem:[#allocation143_spill] sm:$0xff] %v17885_v0  ;;  %21221 = vst [vmem:[#allocation50_spill] sm:$0xff] %v17887_v51 }
 0x6a7   : > { %v17889_v19 = vpop.f32.mrf.mxu1  ;;  %v17891_v30 = vpop.f32.mrf.mxu0 }
 0x6a8   : > { %21222 = vst [vmem:[#allocation108_spill] sm:$0xff] %v17889_v19  ;;  %21223 = vst [vmem:[#allocation107_spill] sm:$0xff] %v17891_v30 }
 0x6a9   : > { %v17893_v50 = vpop.f32.mrf.mxu1  ;;  %v17895_v11 = vpop.f32.mrf.mxu0 }
 0x6aa   : > { %21224 = vst [vmem:[#allocation131_spill] sm:$0xff] %v17893_v50  ;;  %21225 = vst [vmem:[#allocation120_spill] sm:$0xff] %v17895_v11 }
 0x6ab   : > { %v17897_v60 = vpop.f32.mrf.mxu1  ;;  %v17899_v8 = vpop.f32.mrf.mxu0 }
 0x6ac   : > { %21226 = vst [vmem:[#allocation146_spill] sm:$0xff] %v17897_v60  ;;  %21227 = vst [vmem:[#allocation36_spill] sm:$0xff] %v17899_v8 }
 0x6ad   : > { %v17901_v16 = vpop.f32.mrf.mxu1  ;;  %v17903_v35 = vpop.f32.mrf.mxu0 }
 0x6ae   : > { %21228 = vst [vmem:[#allocation16_spill] sm:$0xff] %v17901_v16  ;;  %21229 = vst [vmem:[#allocation66_spill] sm:$0xff] %v17903_v35 }
 0x6af   : > { %v17905_v52 = vpop.f32.mrf.mxu1  ;;  %v17907_v49 = vpop.f32.mrf.mxu0 }
 0x6b0   : > { %21230 = vst [vmem:[#allocation82_spill] sm:$0xff] %v17905_v52  ;;  %21231 = vst [vmem:[#allocation136_spill] sm:$0xff] %v17907_v49 }
 0x6b1   : > { %v17909_v20 = vpop.f32.mrf.mxu1  ;;  %v17911_v19 = vpop.f32.mrf.mxu0 }
 0x6b3   : > { %v17913_v30 = vpop.f32.mrf.mxu1  ;;  %v17915_v50 = vpop.f32.mrf.mxu0 }
 0x6b5   : > { %v17917_v11 = vpop.f32.mrf.mxu1  ;;  %v17919_v60 = vpop.f32.mrf.mxu0 }
 0x6b7   : > { %v17921_v8 = vpop.f32.mrf.mxu1  ;;  %v17923_v16 = vpop.f32.mrf.mxu0 }
 0x6b9   : > { %v17925_v35 = vpop.f32.mrf.mxu1  ;;  %v17927_v52 = vpop.f32.mrf.mxu0 }
 0x6bb   : > { %v17929_v49 = vpop.f32.mrf.mxu1  ;;  %v17931_v51 = vpop.f32.mrf.mxu0 }
 0x6bd   : > { %v17933_v0 = vpop.f32.mrf.mxu1  ;;  %v17935_v42 = vpop.f32.mrf.mxu0 }
 0x6bf   : > { %v17937_v2 = vpop.f32.mrf.mxu1  ;;  %v17939_v3 = vpop.f32.mrf.mxu0 }
 0x6c1   : > { %v17941_v5 = vpop.f32.mrf.mxu1  ;;  %v17943_v59 = vpop.f32.mrf.mxu0 }
 0x6c3   : > { %v17945_v24 = vpop.f32.mrf.mxu1  ;;  %v17947_v58 = vpop.f32.mrf.mxu0 }
 0x6c5   : > { %v17949_v33 = vpop.f32.mrf.mxu1  ;;  %v17951_v56 = vpop.f32.mrf.mxu0 }
 0x6c7   : > { %v17953_v48 = vpop.f32.mrf.mxu1  ;;  %v17955_v13 = vpop.f32.mrf.mxu0 }
 0x6c9   : > { %v17957_v1 = vpop.f32.mrf.mxu1  ;;  %v17959_v31 = vpop.f32.mrf.mxu0 }
 0x6ca   : > { %21232 = vst [vmem:[#allocation147_spill] sm:$0xff] %v17959_v31 }
 0x6cb   : > { %v17961_v63 = vpop.f32.mrf.mxu1  ;;  %v17963_v22 = vpop.f32.mrf.mxu0 }
 0x6cc   : > { %21233 = vst [vmem:[#allocation67_spill] sm:$0xff] %v17961_v63  ;;  %21234 = vst [vmem:[#allocation24_spill] sm:$0xff] %v17963_v22 }
 0x6cd   : > { %v17965_v21 = vpop.f32.mrf.mxu1  ;;  %v17967_v41 = vpop.f32.mrf.mxu0 }
 0x6ce   : > { %21235 = vst [vmem:[#allocation116_spill] sm:$0xff] %v17965_v21  ;;  %21236 = vst [vmem:[#allocation140_spill] sm:$0xff] %v17967_v41 }
 0x6cf   : > { %v17969_v46 = vpop.f32.mrf.mxu1  ;;  %v17971_v17 = vpop.f32.mrf.mxu0 }
 0x6d0   : > { %21237 = vst [vmem:[#allocation46_spill] sm:$0xff] %v17969_v46  ;;  %21238 = vst [vmem:[#allocation17_spill] sm:$0xff] %v17971_v17 }
 0x6d1   : > { %v17973_v27 = vpop.f32.mrf.mxu1  ;;  %v17975_v43 = vpop.f32.mrf.mxu0 }
 0x6d2   : > { %21239 = vst [vmem:[#allocation133_spill] sm:$0xff] %v17973_v27  ;;  %21240 = vst [vmem:[#allocation144_spill] sm:$0xff] %v17975_v43 }
 0x6d3   : > { %v17977_v26 = vpop.f32.mrf.mxu1  ;;  %v17979_v61 = vpop.f32.mrf.mxu0 }
 0x6d4   : > { %21241 = vst [vmem:[#allocation62_spill] sm:$0xff] %v17977_v26  ;;  %21242 = vst [vmem:[#allocation78_spill] sm:$0xff] %v17979_v61 }
 0x6d5   : > { %v17981_v31 = vpop.f32.mrf.mxu1  ;;  %v17983_v63 = vpop.f32.mrf.mxu0 }
 0x6d6   : > { %21243 = vst [vmem:[#allocation132_spill] sm:$0xff] %v17981_v31  ;;  %21244 = vst [vmem:[#allocation141_spill] sm:$0xff] %v17983_v63 }
 0x6d7   : > { %v17985_v22 = vpop.f32.mrf.mxu1  ;;  %v17987_v21 = vpop.f32.mrf.mxu0 }
 0x6d8   : > { %21245 = vst [vmem:[#allocation64_spill] sm:$0xff] %v17985_v22  ;;  %21246 = vst [vmem:[#allocation91_spill] sm:$0xff] %v17987_v21 }
 0x6d9   : > { %v17989_v41 = vpop.f32.mrf.mxu1  ;;  %v17991_v46 = vpop.f32.mrf.mxu0 }
 0x6da   : > { %21247 = vst [vmem:[#allocation134_spill] sm:$0xff] %v17989_v41  ;;  %21248 = vst [vmem:[#allocation142_spill] sm:$0xff] %v17991_v46 }
 0x6db   : > { %v17993_v17 = vpop.f32.mrf.mxu1  ;;  %v17995_v38 = vpop.f32.mrf.mxu0 }
 0x6dc   : > { %21249 = vst [vmem:[#allocation63_spill] sm:$0xff] %v17993_v17  ;;  %21250 = vst [vmem:[#allocation87_spill] sm:$0xff] %v17995_v38 }
 0x6dd   : > { %v17997_v43 = vpop.f32.mrf.mxu1  ;;  %v17999_v26 = vpop.f32.mrf.mxu0 }
 0x6de   : > { %21251 = vst [vmem:[#allocation137_spill] sm:$0xff] %v17997_v43  ;;  %21252 = vst [vmem:[#allocation15_spill] sm:$0xff] %v17999_v26 }
 0x6df   : > { %v18001_v61 = vpop.f32.mrf.mxu1  ;;  %v18003_v31 = vpop.f32.mrf.mxu0 }
 0x6e0   : > { %21253 = vst [vmem:[#allocation65_spill] sm:$0xff] %v18001_v61  ;;  %21254 = vst [vmem:[#allocation14_spill] sm:$0xff] %v18003_v31 }
 0x6e1   : > { %v18005_v63 = vpop.f32.mrf.mxu1  ;;  %v18007_v22 = vpop.f32.mrf.mxu0 }
 0x6e2   : > { %21255 = vst [vmem:[#allocation122_spill] sm:$0xff] %v18005_v63  ;;  %21256 = vst [vmem:[#allocation27_spill] sm:$0xff] %v18007_v22 }
 0x6e3   : > { %v18009_v21 = vpop.f32.mrf.mxu1  ;;  %v18011_v41 = vpop.f32.mrf.mxu0 }
 0x6e4   : > { %21257 = vst [vmem:[#allocation53_spill] sm:$0xff] %v18009_v21  ;;  %21258 = vst [vmem:[#allocation79_spill] sm:$0xff] %v18011_v41 }
 0x6e5   : > { %v18013_v46 = vpop.f32.mrf.mxu1  ;;  %v18015_v17 = vpop.f32.mrf.mxu0 }
 0x6e6   : > { %21259 = vst [vmem:[#allocation139_spill] sm:$0xff] %v18013_v46  ;;  %21260 = vst [vmem:[#allocation112_spill] sm:$0xff] %v18015_v17 }
 0x6e7   : > { %v18017_v38 = vpop.f32.mrf.mxu1  ;;  %v18019_v43 = vpop.f32.mrf.mxu0 }
 0x6e8   : > { %21261 = vst [vmem:[#allocation123_spill] sm:$0xff] %v18017_v38  ;;  %21262 = vst [vmem:[#allocation92_spill] sm:$0xff] %v18019_v43 }
 0x6e9   : > { %v18021_v26 = vpop.f32.mrf.mxu1  ;;  %v18023_v61 = vpop.f32.mrf.mxu0 }
 0x6ea   : > { %21263 = vst [vmem:[#allocation68_spill] sm:$0xff] %v18021_v26  ;;  %21264 = vst [vmem:[#allocation97_spill] sm:$0xff] %v18023_v61 }
 0x6eb   : > { %v18025_v31 = vpop.f32.mrf.mxu1  ;;  %v18027_v63 = vpop.f32.mrf.mxu0 }
 0x6ec   : > { %21265 = vst [vmem:[#allocation54_spill] sm:$0xff] %v18025_v31  ;;  %21266 = vst [vmem:[#allocation94_spill] sm:$0xff] %v18027_v63 }
 0x6ed   : > { %v18029_v22 = vpop.f32.mrf.mxu1  ;;  %v18031_v21 = vpop.f32.mrf.mxu0 }
 0x6ee   : > { %21267 = vst [vmem:[#allocation138_spill] sm:$0xff] %v18029_v22  ;;  %21268 = vst [vmem:[#allocation89_spill] sm:$0xff] %v18031_v21 }
 0x6ef   : > { %v18033_v41 = vpop.f32.mrf.mxu1  ;;  %v18035_v46 = vpop.f32.mrf.mxu0 }
 0x6f0   : > { %21269 = vst [vmem:[#allocation48_spill] sm:$0xff] %v18033_v41  ;;  %21270 = vst [vmem:[#allocation150_spill] sm:$0xff] %v18035_v46  ;;  %v6815_v41 = vadd.f32 %v17909_v20, %v17755_v55 }
 0x6f1   : > { %v18037_v17 = vpop.f32.mrf.mxu1  ;;  %v18039_v38 = vpop.f32.mrf.mxu0 }
 0x6f2   : > { %21271 = vst [vmem:[#allocation118_spill] sm:$0xff] %v18037_v17  ;;  %21272 = vst [vmem:[#allocation86_spill] sm:$0xff] %v18039_v38  ;;  %v6817_v38 = vadd.f32 %v17913_v30, %v17763_v4  ;;  %v6880_v4 = vadd.f32 %v17915_v50, %v17765_v39  ;;  %v6890_v39 = vadd.f32 %v17931_v51, %v17785_v57 }
 0x6f3   : > { %v18041_v43 = vpop.f32.mrf.mxu1  ;;  %v18043_v26 = vpop.f32.mrf.mxu0  ;;  %v6894_v50 = vadd.f32 %v17939_v3, %v17793_v44  ;;  %v6898_v51 = vadd.f32 %v17943_v59, %v17797_v62 }
 0x6f4   : > { %21273 = vst [vmem:[#allocation69_spill] sm:$0xff] %v18041_v43  ;;  %21274 = vst [vmem:[#allocation148_spill] sm:$0xff] %v18043_v26  ;;  %v6878_v26 = vadd.f32 %v17911_v19, %v17757_v40  ;;  %v6888_v40 = vadd.f32 %v17927_v52, %v17777_v23  ;;  %v6819_v23 = vadd.f32 %v17917_v11, %v17767_v34 }
 0x6f5   : > { %v18045_v61 = vpop.f32.mrf.mxu1  ;;  %v18047_v31 = vpop.f32.mrf.mxu0  ;;  %v6831_v34 = vadd.f32 %v17937_v2, %v17791_v37 }
 0x6f6   : > { %21275 = vst [vmem:[#allocation121_spill] sm:$0xff] %v18045_v61  ;;  %21276 = vst [vmem:[#allocation8_spill] sm:$0xff] %v18047_v31 }
 0x6f7   : > { %v18049_v63 = vpop.f32.mrf.mxu1  ;;  %v18051_v22 = vpop.f32.mrf.mxu0 }
 0x6f8   : > { %21277 = vst [vmem:[#allocation51_spill] sm:$0xff] %v18049_v63  ;;  %21278 = vst [vmem:[#allocation152_spill] sm:$0xff] %v18051_v22  ;;  %v6882_v22 = vadd.f32 %v17919_v60, %v17769_v18  ;;  %v6821_v18 = vadd.f32 %v17921_v8, %v17771_v10  ;;  %v6829_v10 = vadd.f32 %v17933_v0, %v17787_v32 }
 0x6f9   : > { %v7439_v46 = vpop.f32.mrf.mxu1  ;;  %v7502_v21 = vpop.f32.mrf.mxu0 }
 0x6fa   : > { %v7783_v17 = vadd.f32 %v7439_v46, %v6815_v41  ;;  %v7785_v55 = vadd.f32 %v7502_v21, %v6878_v26  ;;  %v6825_v46 = vadd.f32 %v17925_v35, %v17775_v15  ;;  %v6827_v26 = vadd.f32 %v17929_v49, %v17783_v7 }
 0x6fb   : > { %v7441_v43 = vpop.f32.mrf.mxu1  ;;  %v7504_v25 = vpop.f32.mrf.mxu0  ;;  %v6884_v49 = vadd.f32 %v17923_v16, %v17773_v53  ;;  %v6835_v53 = vadd.f32 %v17941_v5, %v17795_v9  ;;  %v6839_v9 = vadd.f32 %v17949_v33, %v17805_v28 }
 0x6fc   : > { %7855 = vrot.lane.b32.xlu0 %v7783_v17, %s14233_s25  ;;  %v7784_v31 = vadd.f32 %v7441_v43, %v6817_v38  ;;  %v7786_v38 = vadd.f32 %v7504_v25, %v6880_v4  ;;  %v6837_v4 = vadd.f32 %v17945_v24, %v17801_v14  ;;  %v6841_v14 = vadd.f32 %v17953_v48, %v17809_v47  ;;  %v21280_v47 = vld [vmem:[#allocation35_spill] sm:$0xff]  ;;  %v21281_v48 = vld [vmem:[#allocation144_spill] sm:$0xff] }
 0x6fd   : > { %v7443_v63 = vpop.f32.mrf.mxu1  ;;  %v7506_v61 = vpop.f32.mrf.mxu0 }
 0x6fe   : > { %7859 = vrot.lane.b32.xlu1 %v7784_v31, %s14233_s25  ;;  %v7797_v43 = vadd.f32 %v7506_v61, %v6882_v22  ;;  %v6892_v61 = vadd.f32 %v17935_v42, %v17789_v6  ;;  %v7795_v35 = vadd.f32 %v7443_v63, %v6819_v23  ;;  %v7014_v23 = vadd.f32 %v21281_v48, %v21280_v47  ;;  %v21301_v47 = vld [vmem:[#allocation140_spill] sm:$0xff] }
 0x6ff   : > { %v7445_v20 = vpop.f32.mrf.mxu1  ;;  %v7508_v27 = vpop.f32.mrf.mxu0 }
 0x700   : > { %7863 = vrot.lane.b32.xlu0 %v7785_v55, %s14233_s25  ;;  %v7796_v41 = vadd.f32 %v7445_v20, %v6821_v18  ;;  %v7798_v16 = vadd.f32 %v7508_v27, %v6884_v49  ;;  %v6900_v18 = vadd.f32 %v17947_v58, %v17803_v54  ;;  %v21279_v54 = vld [vmem:[#allocation133_spill] sm:$0xff] }
 0x701   : > { %v7449_v21 = vpop.f32.mrf.mxu1  ;;  %v7512_v31 = vpop.f32.mrf.mxu0  ;;  %v6951_v58 = vadd.f32 %v21279_v54, %v17829_v36 }
 0x702   : > { %v18076_v17 = vadd.f32 %v7449_v21, %v6825_v46  ;;  %v18078_v15 = vadd.f32 %v7512_v31, %v6888_v40  ;;  %7865 = vrot.lane.b32.xlu1 %v7797_v43, %s14233_s25  ;;  %v6902_v46 = vadd.f32 %v17951_v56, %v17807_v45  ;;  %v6904_v21 = vadd.f32 %v17955_v13, %v17811_v12  ;;  %v21285_v12 = vld [vmem:[#allocation78_spill] sm:$0xff] }
 0x703   : > { %v7451_v22 = vpop.f32.mrf.mxu1  ;;  %v7514_v7 = vpop.f32.mrf.mxu0 }
 0x704   : > { %v18087_v57 = vadd.f32 %v7451_v22, %v6827_v26  ;;  %v18089_v25 = vadd.f32 %v7514_v7, %v6890_v39  ;;  %7867 = vrot.lane.b32.xlu0 %v7786_v38, %s14233_s25  ;;  %v6941_v38 = vadd.f32 %v17957_v1, %v17813_v29  ;;  %v21283_v22 = vld [vmem:[#allocation62_spill] sm:$0xff] }
 0x705   : > { %v7453_v52 = vpop.f32.mrf.mxu1  ;;  %v7516_v32 = vpop.f32.mrf.mxu0 }
 0x706   : > { %v18098_v6 = vadd.f32 %v7453_v52, %v6829_v10  ;;  %v18100_v42 = vadd.f32 %v7516_v32, %v6892_v61  ;;  %7861 = vrot.lane.b32.xlu1 %v7796_v41, %s14233_s25  ;;  %v21282_v10 = vld [vmem:[#allocation77_spill] sm:$0xff]  ;;  %v21287_v32 = vld [vmem:[#allocation147_spill] sm:$0xff] }
 0x707   : > { %v7455_v8 = vpop.f32.mrf.mxu1  ;;  %v7518_v11 = vpop.f32.mrf.mxu0  ;;  %v6953_v7 = vadd.f32 %v21283_v22, %v21282_v10  ;;  %v21284_v61 = vld [vmem:[#allocation45_spill] sm:$0xff] }
 0x708   : > { %v18105_v60 = vadd.f32 %v7455_v8, %v6831_v34  ;;  %v18107_v37 = vadd.f32 %v7518_v11, %v6894_v50  ;;  %7857 = vrot.lane.b32.xlu0 %v7795_v35, %s14233_s25  ;;  %v7016_v13 = vadd.f32 %v21285_v12, %v21284_v61  ;;  %v21286_v52 = vld [vmem:[#allocation129_spill] sm:$0xff]  ;;  %v21288_v35 = vld [vmem:[#allocation32_spill] sm:$0xff] }
 0x709   : > { %v7459_v44 = vpop.f32.mrf.mxu1  ;;  %v7522_v63 = vpop.f32.mrf.mxu0  ;;  %v7004_v50 = vadd.f32 %v21287_v32, %v21286_v52  ;;  %v21289_v8 = vld [vmem:[#allocation116_spill] sm:$0xff] }
 0x70a   : > { %v7831_v2 = vadd.f32 %v7459_v44, %v6835_v53  ;;  %7869 = vrot.lane.b32.xlu1 %v7798_v16, %s14233_s25  ;;  %v7833_v19 = vadd.f32 %v7522_v63, %v6898_v51  ;;  %v6945_v11 = vadd.f32 %v21289_v8, %v21288_v35  ;;  %v21290_v53 = vld [vmem:[#allocation128_spill] sm:$0xff] }
 0x70b   : > { %v7461_v3 = vpop.f32.mrf.mxu1  ;;  %v7524_v0 = vpop.f32.mrf.mxu0  ;;  %v21291_v16 = vld [vmem:[#allocation132_spill] sm:$0xff] }
 0x70c   : > { %7951 = vrot.lane.b32.xlu0 %v7831_v2, %s14234_s28  ;;  %v7832_v33 = vadd.f32 %v7461_v3, %v6837_v4  ;;  %v7834_v24 = vadd.f32 %v7524_v0, %v6900_v18  ;;  %v6955_v44 = vadd.f32 %v21291_v16, %v21290_v53  ;;  %v21292_v3 = vld [vmem:[#allocation99_spill] sm:$0xff]  ;;  %v21293_v0 = vld [vmem:[#allocation141_spill] sm:$0xff] }
 0x70d   : > { %v7463_v27 = vpop.f32.mrf.mxu1  ;;  %v7526_v5 = vpop.f32.mrf.mxu0  ;;  %v7018_v51 = vadd.f32 %v21293_v0, %v21292_v3  ;;  %v21307_v53 = vld [vmem:[#allocation17_spill] sm:$0xff] }
 0x70e   : > { %v7843_v30 = vadd.f32 %v7463_v27, %v6839_v9  ;;  %v7845_v59 = vadd.f32 %v7526_v5, %v6902_v46  ;;  %v21294_v5 = vld [vmem:[#allocation74_spill] sm:$0xff] }
 0x70f   : > { %v7465_v55 = vpop.f32.mrf.mxu1  ;;  %v7528_v20 = vpop.f32.mrf.mxu0 }
 0x710   : > { %7953 = vrot.lane.b32.xlu1 %v7843_v30, %s14234_s28  ;;  %7959 = vrot.lane.b32.xlu0 %v7833_v19, %s14234_s28  ;;  %v7844_v26 = vadd.f32 %v7465_v55, %v6841_v14  ;;  %v7846_v34 = vadd.f32 %v7528_v20, %v6904_v21  ;;  %v21295_v19 = vld [vmem:[#allocation64_spill] sm:$0xff]  ;;  %v21296_v55 = vld [vmem:[#allocation30_spill] sm:$0xff]  ;;  %v21297_v20 = vld [vmem:[#allocation91_spill] sm:$0xff] }
 0x711   : > { %v7565_v62 = vpop.f32.mrf.mxu1  ;;  %v7628_v28 = vpop.f32.mrf.mxu0  ;;  %v6957_v30 = vadd.f32 %v21295_v19, %v21294_v5  ;;  %v7020_v4 = vadd.f32 %v21297_v20, %v21296_v55  ;;  %v21312_v20 = vld [vmem:[#allocation127_spill] sm:$0xff] }
 0x712   : > { %v7787_v29 = vadd.f32 %v7565_v62, %v6941_v38 }
 0x713   : > { %v7567_v40 = vpop.f32.mrf.mxu1  ;;  %v18122_v43 = vpop.f32.mrf.mxu0 }
 0x714   : > { %7961 = vrot.lane.b32.xlu1 %v7845_v59, %s14234_s28  ;;  %7955 = vrot.lane.b32.xlu0 %v7832_v33, %s14234_s28  ;;  %v7789_v33 = vadd.f32 %v7628_v28, %v7004_v50 }
 0x715   : > { %v7569_v45 = vpop.f32.mrf.mxu1  ;;  %v7632_v56 = vpop.f32.mrf.mxu0 }
 0x716   : > { %v7799_v59 = vadd.f32 %v7569_v45, %v6945_v11 }
 0x717   : > { %v7571_v31 = vpop.f32.mrf.mxu1  ;;  %v7634_v39 = vpop.f32.mrf.mxu0 }
 0x718   : > { %7957 = vrot.lane.b32.xlu1 %v7844_v26, %s14234_s28  ;;  %7963 = vrot.lane.b32.xlu0 %v7834_v24, %s14234_s28  ;;  %v21298_v24 = vld [vmem:[#allocation114_spill] sm:$0xff]  ;;  %v21299_v26 = vld [vmem:[#allocation67_spill] sm:$0xff] }
 0x719   : > { %v7575_v41 = vpop.f32.mrf.mxu1  ;;  %v7638_v49 = vpop.f32.mrf.mxu0  ;;  %v6943_v21 = vadd.f32 %v21299_v26, %v21298_v24  ;;  %v21315_v26 = vld [vmem:[#allocation63_spill] sm:$0xff] }
 0x71a   : > { %v18144_v1 = vadd.f32 %v7575_v41, %v6951_v58  ;;  %v18146_v36 = vadd.f32 %v7638_v49, %v7014_v23  ;;  %v21300_v58 = vld [vmem:[#allocation76_spill] sm:$0xff] }
 0x71b   : > { %v7577_v63 = vpop.f32.mrf.mxu1  ;;  %v7640_v2 = vpop.f32.mrf.mxu0  ;;  %v7008_v48 = vadd.f32 %v21301_v47, %v21300_v58  ;;  %v7788_v22 = vadd.f32 %v7567_v40, %v6943_v21  ;;  %v21303_v41 = vld [vmem:[#allocation24_spill] sm:$0xff]  ;;  %v21317_v47 = vld [vmem:[#allocation15_spill] sm:$0xff] }
 0x71c   : > { %v18156_v9 = vadd.f32 %v7577_v63, %v6953_v7  ;;  %v18158_v27 = vadd.f32 %v7640_v2, %v7016_v13  ;;  %7965 = vrot.lane.b32.xlu1 %v7846_v34, %s14234_s28  ;;  %7871 = vrot.lane.b32.xlu0 %v7787_v29, %s14233_s25  ;;  %v21302_v13 = vld [vmem:[#allocation70_spill] sm:$0xff]  ;;  %v21316_v58 = vld [vmem:[#allocation100_spill] sm:$0xff] }
 0x71d   : > { %v7579_v46 = vpop.f32.mrf.mxu1  ;;  %v7642_v62 = vpop.f32.mrf.mxu0  ;;  %v7801_v7 = vadd.f32 %v7632_v56, %v7008_v48  ;;  %v7006_v49 = vadd.f32 %v21303_v41, %v21302_v13  ;;  %v21304_v34 = vld [vmem:[#allocation102_spill] sm:$0xff]  ;;  %v21306_v56 = vld [vmem:[#allocation57_spill] sm:$0xff]  ;;  %v7028_v48 = vadd.f32 %v21317_v47, %v21316_v58  ;;  %v21320_v13 = vld [vmem:[#allocation47_spill] sm:$0xff] }
 0x71e   : > { %v18166_v18 = vadd.f32 %v7579_v46, %v6955_v44  ;;  %v18168_v14 = vadd.f32 %v7642_v62, %v7018_v51  ;;  %v21305_v29 = vld [vmem:[#allocation46_spill] sm:$0xff]  ;;  %v7010_v16 = vadd.f32 %v21307_v53, %v21306_v56  ;;  %v21321_v41 = vld [vmem:[#allocation97_spill] sm:$0xff]  ;;  %v21336_v47 = vld [vmem:[#allocation48_spill] sm:$0xff] }
 0x71f   : > { %v7581_v38 = vpop.f32.mrf.mxu1  ;;  %v7644_v54 = vpop.f32.mrf.mxu0  ;;  %v6947_v52 = vadd.f32 %v21305_v29, %v21304_v34  ;;  %v7790_v35 = vadd.f32 %v18122_v43, %v7006_v49  ;;  %v21308_v44 = vld [vmem:[#allocation126_spill] sm:$0xff]  ;;  %v7140_v49 = vadd.f32 %v21321_v41, %v21320_v13 }
 0x720   : > { %v18174_v23 = vadd.f32 %v7581_v38, %v6957_v30  ;;  %v18176_v10 = vadd.f32 %v7644_v54, %v7020_v4  ;;  %7873 = vrot.lane.b32.xlu1 %v7799_v59, %s14233_s25  ;;  %7879 = vrot.lane.b32.xlu0 %v7789_v33, %s14233_s25  ;;  %v21309_v63 = vld [vmem:[#allocation134_spill] sm:$0xff]  ;;  %v7802_v51 = vadd.f32 %v7634_v39, %v7010_v16  ;;  %v21313_v4 = vld [vmem:[#allocation137_spill] sm:$0xff]  ;;  %v21314_v39 = vld [vmem:[#allocation71_spill] sm:$0xff] }
 0x721   : > { %v7585_v28 = vpop.f32.mrf.mxu1  ;;  %v7648_v45 = vpop.f32.mrf.mxu0  ;;  %v7800_v8 = vadd.f32 %v7571_v31, %v6947_v52  ;;  %v6961_v2 = vadd.f32 %v21309_v63, %v21308_v44  ;;  %v21310_v31 = vld [vmem:[#allocation115_spill] sm:$0xff]  ;;  %v21311_v30 = vld [vmem:[#allocation142_spill] sm:$0xff]  ;;  %v6965_v46 = vadd.f32 %v21313_v4, %v21312_v20  ;;  %v6963_v21 = vadd.f32 %v21315_v26, %v21314_v39  ;;  %v21324_v52 = vld [vmem:[#allocation117_spill] sm:$0xff] }
 0x722   : > { %v7024_v55 = vadd.f32 %v21311_v30, %v21310_v31  ;;  %v21323_v34 = vld [vmem:[#allocation54_spill] sm:$0xff]  ;;  %v21328_v31 = vld [vmem:[#allocation72_spill] sm:$0xff]  ;;  %v21329_v30 = vld [vmem:[#allocation65_spill] sm:$0xff] }
 0x723   : > { %v7587_v61 = vpop.f32.mrf.mxu1  ;;  %v7650_v12 = vpop.f32.mrf.mxu0  ;;  %v7835_v5 = vadd.f32 %v7585_v28, %v6961_v2  ;;  %v21318_v28 = vld [vmem:[#allocation20_spill] sm:$0xff]  ;;  %v21326_v2 = vld [vmem:[#allocation105_spill] sm:$0xff]  ;;  %v21330_v20 = vld [vmem:[#allocation143_spill] sm:$0xff] }
 0x724   : > { %7881 = vrot.lane.b32.xlu1 %v7801_v7, %s14233_s25  ;;  %7875 = vrot.lane.b32.xlu0 %v7788_v22, %s14233_s25  ;;  %v7837_v59 = vadd.f32 %v7648_v45, %v7024_v55  ;;  %v21319_v22 = vld [vmem:[#allocation68_spill] sm:$0xff]  ;;  %v21322_v45 = vld [vmem:[#allocation26_spill] sm:$0xff]  ;;  %v7836_v53 = vadd.f32 %v7587_v61, %v6963_v21  ;;  %v6967_v55 = vadd.f32 %v21329_v30, %v21328_v31  ;;  %v21333_v26 = vld [vmem:[#allocation89_spill] sm:$0xff] }
 0x725   : > { %v7589_v32 = vpop.f32.mrf.mxu1  ;;  %v7652_v50 = vpop.f32.mrf.mxu0  ;;  %v7077_v7 = vadd.f32 %v21319_v22, %v21318_v28  ;;  %v7079_v29 = vadd.f32 %v21323_v34, %v21322_v45  ;;  %v21331_v4 = vld [vmem:[#allocation138_spill] sm:$0xff]  ;;  %v21335_v21 = vld [vmem:[#allocation108_spill] sm:$0xff]  ;;  %v21337_v28 = vld [vmem:[#allocation107_spill] sm:$0xff] }
 0x726   : > { %v7847_v24 = vadd.f32 %v7589_v32, %v6965_v46  ;;  %v21325_v32 = vld [vmem:[#allocation94_spill] sm:$0xff]  ;;  %v7849_v16 = vadd.f32 %v7652_v50, %v7028_v48  ;;  %v7081_v46 = vadd.f32 %v21331_v4, %v21330_v20  ;;  %v7083_v48 = vadd.f32 %v21336_v47, %v21335_v21  ;;  %v21347_v30 = vld [vmem:[#allocation27_spill] sm:$0xff]  ;;  %v21348_v20 = vld [vmem:[#allocation60_spill] sm:$0xff] }
 0x727   : > { %v7591_v11 = vpop.f32.mrf.mxu1  ;;  %v7654_v40 = vpop.f32.mrf.mxu0  ;;  %v21332_v39 = vld [vmem:[#allocation50_spill] sm:$0xff]  ;;  %v21349_v4 = vld [vmem:[#allocation139_spill] sm:$0xff]  ;;  %v21353_v47 = vld [vmem:[#allocation112_spill] sm:$0xff] }
 0x728   : > { %7877 = vrot.lane.b32.xlu1 %v7800_v8, %s14233_s25  ;;  %7883 = vrot.lane.b32.xlu0 %v7790_v35, %s14233_s25  ;;  %v7142_v35 = vadd.f32 %v21325_v32, %v21324_v52  ;;  %v7144_v58 = vadd.f32 %v21333_v26, %v21332_v39  ;;  %v21338_v22 = vld [vmem:[#allocation150_spill] sm:$0xff]  ;;  %v7848_v45 = vadd.f32 %v7591_v11, %v6967_v55  ;;  %v21350_v39 = vld [vmem:[#allocation85_spill] sm:$0xff]  ;;  %v21352_v21 = vld [vmem:[#allocation135_spill] sm:$0xff] }
 0x729   : > { %v7691_v3 = vpop.f32.mrf.mxu1  ;;  %v7754_v0 = vpop.f32.mrf.mxu0  ;;  %v21340_v52 = vld [vmem:[#allocation106_spill] sm:$0xff]  ;;  %v21351_v26 = vld [vmem:[#allocation53_spill] sm:$0xff] }
 0x72a   : > { %v21341_v32 = vld [vmem:[#allocation14_spill] sm:$0xff] }
 0x72b   : > { %v18193_v19 = vpop.f32.mrf.mxu1  ;;  %v18195_v43 = vpop.f32.mrf.mxu0 }
 0x72c   : > { %7885 = vrot.lane.b32.xlu1 %v7802_v51, %s14233_s25  ;;  %7967 = vrot.lane.b32.xlu0 %v7835_v5, %s14234_s28  ;;  %v21327_v51 = vld [vmem:[#allocation87_spill] sm:$0xff] }
 0x72d   : > { %v7695_v62 = vpop.f32.mrf.mxu1  ;;  %v7758_v33 = vpop.f32.mrf.mxu0  ;;  %v7026_v5 = vadd.f32 %v21327_v51, %v21326_v2 }
 0x72f   : > { %v7697_v38 = vpop.f32.mrf.mxu1  ;;  %v18205_v54 = vpop.f32.mrf.mxu0 }
 0x730   : > { %7969 = vrot.lane.b32.xlu1 %v7847_v24, %s14234_s28  ;;  %7975 = vrot.lane.b32.xlu0 %v7837_v59, %s14234_s28 }
 0x731   : > { %v7701_v8 = vpop.f32.mrf.mxu1  ;;  %v7764_v56 = vpop.f32.mrf.mxu0 }
 0x732   : > { %v18219_v44 = vadd.f32 %v7701_v8, %v7077_v7  ;;  %v18221_v63 = vadd.f32 %v7764_v56, %v7140_v49  ;;  %v7146_v7 = vadd.f32 %v21338_v22, %v21337_v28  ;;  %v7838_v49 = vadd.f32 %v7650_v12, %v7026_v5  ;;  %v21346_v5 = vld [vmem:[#allocation33_spill] sm:$0xff]  ;;  %v21354_v22 = vld [vmem:[#allocation103_spill] sm:$0xff] }
 0x733   : > { %v7703_v59 = vpop.f32.mrf.mxu1  ;;  %v7766_v24 = vpop.f32.mrf.mxu0  ;;  %v7130_v55 = vadd.f32 %v21347_v30, %v21346_v5  ;;  %v21362_v5 = vld [vmem:[#allocation120_spill] sm:$0xff] }
 0x734   : > { %v18231_v61 = vadd.f32 %v7703_v59, %v7079_v29  ;;  %v18233_v50 = vadd.f32 %v7766_v24, %v7142_v35  ;;  %7977 = vrot.lane.b32.xlu1 %v7849_v16, %s14234_s28  ;;  %7971 = vrot.lane.b32.xlu0 %v7836_v53, %s14234_s28  ;;  %v7030_v35 = vadd.f32 %v21341_v32, %v21340_v52  ;;  %v21342_v53 = vld [vmem:[#allocation130_spill] sm:$0xff]  ;;  %v21364_v30 = vld [vmem:[#allocation16_spill] sm:$0xff] }
 0x735   : > { %v7705_v13 = vpop.f32.mrf.mxu1  ;;  %v7768_v41 = vpop.f32.mrf.mxu0  ;;  %v21343_v16 = vld [vmem:[#allocation122_spill] sm:$0xff]  ;;  %v7793_v59 = vadd.f32 %v7754_v0, %v7130_v55  ;;  %v21357_v0 = vld [vmem:[#allocation123_spill] sm:$0xff]  ;;  %v21365_v55 = vld [vmem:[#allocation121_spill] sm:$0xff] }
 0x736   : > { %21334 = vst [vmem:[#allocation49_spill] sm:$0xff] %v18233_v50  ;;  %v18241_v34 = vadd.f32 %v7705_v13, %v7081_v46  ;;  %v18243_v29 = vadd.f32 %v7768_v41, %v7144_v58  ;;  %v7067_v2 = vadd.f32 %v21343_v16, %v21342_v53  ;;  %v7850_v12 = vadd.f32 %v7654_v40, %v7030_v35  ;;  %v21356_v41 = vld [vmem:[#allocation145_spill] sm:$0xff] }
 0x737   : > { %v7707_v8 = vpop.f32.mrf.mxu1  ;;  %v7770_v56 = vpop.f32.mrf.mxu0  ;;  %v7071_v46 = vadd.f32 %v21349_v4, %v21348_v20  ;;  %v7069_v58 = vadd.f32 %v21351_v26, %v21350_v39  ;;  %v21358_v35 = vld [vmem:[#allocation37_spill] sm:$0xff]  ;;  %v7091_v20 = vadd.f32 %v21365_v55, %v21364_v30 }
 0x738   : > { %21339 = vst [vmem:[#allocation11_spill] sm:$0xff] %v18243_v29  ;;  %v18249_v51 = vadd.f32 %v7707_v8, %v7083_v48  ;;  %v18251_v31 = vadd.f32 %v7770_v56, %v7146_v7  ;;  %7973 = vrot.lane.b32.xlu1 %v7848_v45, %s14234_s28  ;;  %7979 = vrot.lane.b32.xlu0 %v7838_v49, %s14234_s28  ;;  %v21355_v7 = vld [vmem:[#allocation79_spill] sm:$0xff]  ;;  %v21359_v8 = vld [vmem:[#allocation92_spill] sm:$0xff]  ;;  %v21361_v56 = vld [vmem:[#allocation118_spill] sm:$0xff] }
 0x739   : > { %v7791_v11 = vadd.f32 %v7691_v3, %v7067_v2  ;;  %v7803_v24 = vadd.f32 %v7695_v62, %v7071_v46  ;;  %v7134_v48 = vadd.f32 %v21353_v47, %v21352_v21  ;;  %v7792_v40 = vadd.f32 %v18193_v19, %v7069_v58  ;;  %v7711_v28 = vpop.f32.mrf.mxu1  ;;  %v7774_v52 = vpop.f32.mrf.mxu0  ;;  %v21367_v39 = vld [vmem:[#allocation69_spill] sm:$0xff]  ;;  %v21369_v58 = vld [vmem:[#allocation8_spill] sm:$0xff] }
 0x73a   : > { %21344 = vst [vmem:[#allocation119_spill] sm:$0xff] %v18249_v51  ;;  %21345 = vst [vmem:[#allocation12_spill] sm:$0xff] %v18251_v31  ;;  %v7132_v13 = vadd.f32 %v21355_v7, %v21354_v22  ;;  %v7073_v62 = vadd.f32 %v21357_v0, %v21356_v41  ;;  %v7136_v19 = vadd.f32 %v21359_v8, %v21358_v35  ;;  %v21372_v7 = vld [vmem:[#allocation82_spill] sm:$0xff]  ;;  %v21417_v51 = vld [vmem:[#allocation13_spill] sm:$0xff] }
 0x73b   : > { %v7805_v3 = vadd.f32 %v7758_v33, %v7134_v48  ;;  %v7713_v32 = vpop.f32.mrf.mxu1  ;;  %v21360_v33 = vld [vmem:[#allocation131_spill] sm:$0xff] }
 0x73c   : > { %7981 = vrot.lane.b32.xlu1 %v7850_v12, %s14234_s28  ;;  %7887 = vrot.lane.b32.xlu0 %v7791_v11, %s14233_s25  ;;  %v7794_v49 = vadd.f32 %v18195_v43, %v7132_v13  ;;  %v7804_v45 = vadd.f32 %v7697_v38, %v7073_v62  ;;  %v7087_v53 = vadd.f32 %v21361_v56, %v21360_v33  ;;  %v7776_v12 = vpop.f32.mrf.mxu0  ;;  %v21363_v43 = vld [vmem:[#allocation86_spill] sm:$0xff]  ;;  %v21373_v13 = vld [vmem:[#allocation51_spill] sm:$0xff] }
 0x73d   : > { %v7806_v16 = vadd.f32 %v18205_v54, %v7136_v19  ;;  %v7715_v11 = vpop.f32.mrf.mxu1  ;;  %v7150_v38 = vadd.f32 %v21363_v43, %v21362_v5  ;;  %v21368_v54 = vld [vmem:[#allocation66_spill] sm:$0xff]  ;;  %v7093_v41 = vadd.f32 %v21373_v13, %v21372_v7  ;;  %v8096_v19 = vld [vmem:[%s20343_s9 + $0x8] sm:$0xff] }
 0x73e   : > { %v7839_v2 = vadd.f32 %v7711_v28, %v7087_v53  ;;  %v7851_v46 = vadd.f32 %v7715_v11, %v7091_v20  ;;  %v7154_v21 = vadd.f32 %v21369_v58, %v21368_v54  ;;  %v21371_v28 = vld [vmem:[#allocation148_spill] sm:$0xff]  ;;  %v21376_v53 = vld [vmem:[#allocation81_spill] sm:$0xff] }
 0x73f   : > { %v7841_v4 = vadd.f32 %v7774_v52, %v7150_v38  ;;  %v21375_v52 = vld [vmem:[#allocation152_spill] sm:$0xff]  ;;  %vm21377_vm7 = vcmp.lt.s32.totalorder %v21376_v53, 1  ;;  %vm21386_vm13 = vcmp.lt.s32.totalorder %v21376_v53, 127  ;;  %v21450_v53 = vld [vmem:[#allocation43_spill] sm:$0xff] }
 0x740   : > { %7889 = vrot.lane.b32.xlu1 %v7803_v24, %s14233_s25  ;;  %7895 = vrot.lane.b32.xlu0 %v7793_v59, %s14233_s25  ;;  %v7778_v59 = vpop.f32.mrf.mxu0  ;;  %v21366_v24 = vld [vmem:[#allocation146_spill] sm:$0xff]  ;;  %vm21379_vm8 = vmmov %vm21377_vm7  ;;  %v21380_v38 = vld [vmem:[#allocation88_spill] sm:$0xff] }
 0x741   : > { %v7089_v26 = vadd.f32 %v21367_v39, %v21366_v24  ;;  %v7853_v48 = vadd.f32 %v7778_v59, %v7154_v21  ;;  %vm21381_vm9 = vmmov %vm21377_vm7  ;;  %v21382_v59 = vld [vmem:[#allocation19_spill] sm:$0xff] }
 0x742   : > { %vm21383_vm10 = vmmov %vm21377_vm7 }
 0x743   : > { %v7840_v47 = vadd.f32 %v7713_v32, %v7089_v26  ;;  %v8095_v32 = vld [vmem:[%s20343_s9] sm:$0xff]  ;;  %vm21384_vm11 = vmmov %vm21377_vm7 }
 0x744   : > { %7897 = vrot.lane.b32.xlu1 %v7805_v3, %s14233_s25  ;;  %7891 = vrot.lane.b32.xlu0 %v7792_v40, %s14233_s25  ;;  %v7717_v40 = vpop.f32.mrf.mxu1  ;;  %v21370_v3 = vld [vmem:[#allocation36_spill] sm:$0xff]  ;;  %vm21385_vm12 = vmmov %vm21377_vm7 }
 0x745   : > { %v7152_v22 = vadd.f32 %v21371_v28, %v21370_v3  ;;  %v7852_v62 = vadd.f32 %v7717_v40, %v7093_v41  ;;  %vm21389_vm14 = vmmov %vm21386_vm13 }
 0x746   : > { %vm21390_vm15 = vmmov %vm21386_vm13 }
 0x747   : > { %v7842_v0 = vadd.f32 %v7776_v12, %v7152_v22  ;;  %vm21394_vm0 = vmmov %vm21386_vm13 }
 0x748   : > { %7893 = vrot.lane.b32.xlu1 %v7804_v45, %s14233_s25  ;;  %7899 = vrot.lane.b32.xlu0 %v7794_v49, %s14233_s25  ;;  %v7780_v49 = vpop.f32.mrf.mxu0  ;;  %v21374_v45 = vld [vmem:[#allocation136_spill] sm:$0xff]  ;;  %vm21395_vm1 = vmmov %vm21377_vm7 }
 0x749   : > { %v7156_v35 = vadd.f32 %v21375_v52, %v21374_v45  ;;  %vm21398_vm2 = vmmov %vm21395_vm1 }
 0x74a   : > { %vm21399_vm3 = vmmov %vm21394_vm0 }
 0x74b   : > { %v7854_v8 = vadd.f32 %v7780_v49, %v7156_v35  ;;  %vm21402_vm4 = vmmov %vm21394_vm0 }
 0x74c   : > { %7901 = vrot.lane.b32.xlu1 %v7806_v16, %s14233_s25  ;;  %7983 = vrot.lane.b32.xlu0 %v7839_v2, %s14234_s28  ;;  %v21378_v2 = vld [vmem:[#allocation18_spill] sm:$0xff]  ;;  %vm21403_vm5 = vmmov %vm21395_vm1 }
 0x74d   : > { %vm21406_vm6 = vmmov %vm21394_vm0 }
 0x750   : > { %7985 = vrot.lane.b32.xlu1 %v7851_v46, %s14234_s28  ;;  %7991 = vrot.lane.b32.xlu0 %v7841_v4, %s14234_s28 }
 0x754   : > { %7993 = vrot.lane.b32.xlu1 %v7853_v48, %s14234_s28  ;;  %7987 = vrot.lane.b32.xlu0 %v7840_v47, %s14234_s28 }
 0x758   : > { %7989 = vrot.lane.b32.xlu1 %v7852_v62, %s14234_s28  ;;  %7995 = vrot.lane.b32.xlu0 %v7842_v0, %s14234_s28  ;;  %v21387_v62 = vld [vmem:[#allocation90_spill] sm:$0xff] }
 0x75c   : > { %7997 = vrot.lane.b32.xlu1 %v7854_v8, %s14234_s28  ;;  %8099 = vperm.xlu0 %13757, %v8095_v32   ;;  %v21391_v8 = vld [vmem:[#allocation21_spill] sm:$0xff] }
 0x760   : > { %8104 = vperm.xlu1 %13758, %v8096_v19  }
 0x76e   : > { %v18311_v33 = vpop.permute.xlu0 %7855 }
 0x770   : > { %v7860_v56 = vpop.permute.xlu1 %7859 }
 0x771   : > { %v7923_v16 = vsel %vm21377_vm7, %v18311_v33, %v7860_v56  ;;  %vm21407_vm7 = vmmov %vm21395_vm1 }
 0x772   : > { %v7928_v12 = vmul.f32 %v7923_v16, %v21378_v2  ;;  %v7864_v11 = vpop.permute.xlu0 %7863 }
 0x773   : > { %v7921_v5 = vsel %vm21379_vm8, %v7860_v56, %v7864_v11  ;;  %vm21408_vm8 = vmmov %vm21395_vm1 }
 0x774   : > { %v8048_v43 = vadd.f32 %v7928_v12, %v18087_v57  ;;  %v7929_v30 = vmul.f32 %v7921_v5, %v21380_v38  ;;  %v7866_v55 = vpop.permute.xlu1 %7865 }
 0x776   : > { %v8049_v20 = vadd.f32 %v7929_v30, %v18078_v15  ;;  %v7868_v4 = vpop.permute.xlu0 %7867 }
 0x777   : > { %v7919_v46 = vsel %vm21381_vm9, %v7864_v11, %v7868_v4  ;;  %vm21409_vm9 = vmmov %vm21395_vm1 }
 0x778   : > { %v7930_v24 = vmul.f32 %v7919_v46, %v21382_v59  ;;  %v7862_v39 = vpop.permute.xlu1 %7861 }
 0x779   : > { %v7922_v26 = vsel %vm21383_vm10, %v7862_v39, %v7866_v55  ;;  %vm21410_vm10 = vmmov %vm21395_vm1 }
 0x77a   : > { %v18328_v54 = vadd.f32 %v7930_v24, %v18089_v25  ;;  %v7941_v57 = vmul.f32 %v7922_v26, %v21380_v38  ;;  %v18331_v58 = vpop.permute.xlu0 %7857  ;;  %v21396_v38 = vld [vmem:[#allocation9_spill] sm:$0xff] }
 0x77b   : > { %v7924_v15 = vsel %vm21384_vm11, %v18331_v58, %v7862_v39  ;;  %vm21411_vm11 = vmmov %vm21395_vm1 }
 0x77c   : > { %v8061_v21 = vadd.f32 %v7941_v57, %v18100_v42  ;;  %v7940_v47 = vmul.f32 %v7924_v15, %v21378_v2  ;;  %v7870_v48 = vpop.permute.xlu1 %7869 }
 0x77d   : > { %v7920_v40 = vsel %vm21385_vm12, %v7866_v55, %v7870_v48  ;;  %vm21412_vm12 = vmmov %vm21395_vm1 }
 0x77e   : > { %v8060_v3 = vadd.f32 %v7940_v47, %v18105_v60  ;;  %v7942_v25 = vmul.f32 %v7920_v40, %v21382_v59  ;;  %v18342_v28 = vpop.permute.xlu0 %7951 }
 0x780   : > { %v8062_v22 = vadd.f32 %v7942_v25, %v18107_v37 }
 0x782   : > { %v18345_v7 = vpop.permute.xlu1 %7953  ;;  %v7960_v13 = vpop.permute.xlu0 %7959 }
 0x786   : > { %v7962_v41 = vpop.permute.xlu1 %7961  ;;  %v7956_v0 = vpop.permute.xlu0 %7955 }
 0x787   : > { %v8017_v42 = vsel %vm21386_vm13, %v7956_v0, %v7960_v13  ;;  %vm21413_vm13 = vmmov %vm21395_vm1 }
 0x788   : > { %v8024_v49 = vmul.f32 %v8017_v42, %v21387_v62 }
 0x78a   : > { %v18350_v45 = vadd.f32 %v8048_v43, %v8024_v49  ;;  %v7958_v52 = vpop.permute.xlu1 %7957  ;;  %v7964_v60 = vpop.permute.xlu0 %7963 }
 0x78b   : > { %v8018_v35 = vsel %vm21389_vm14, %v7958_v52, %v7962_v41  ;;  %v8015_v37 = vsel %vm21390_vm15, %v7960_v13, %v7964_v60  ;;  %v21400_v13 = vld [vmem:[#allocation83_spill] sm:$0xff]  ;;  %vm21414_vm14 = vmmov %vm21394_vm0 }
 0x78c   : > { %21388 = vst [vmem:[#allocation52_spill] sm:$0xff] %v18350_v45  ;;  %v8036_v32 = vmul.f32 %v8018_v35, %v21387_v62  ;;  %v8025_v19 = vmul.f32 %v8015_v37, %v21391_v8  ;;  %vm21418_vm15 = vmmov %vm21394_vm0 }
 0x78e   : > { %v18358_v56 = vadd.f32 %v8060_v3, %v8036_v32  ;;  %v18360_v16 = vadd.f32 %v8049_v20, %v8025_v19  ;;  %v7966_v2 = vpop.permute.xlu1 %7965  ;;  %v7872_v12 = vpop.permute.xlu0 %7871 }
 0x78f   : > { %v8016_v11 = vsel %vm21394_vm0, %v7962_v41, %v7966_v2  ;;  %v7917_v5 = vsel %vm21395_vm1, %v7868_v4, %v7872_v12  ;;  %vm21419_vm1 = vmmov %vm21394_vm0 }
 0x790   : > { %21392 = vst [vmem:[#allocation93_spill] sm:$0xff] %v18358_v56  ;;  %21393 = vst [vmem:[#allocation124_spill] sm:$0xff] %v18360_v16  ;;  %v8037_v43 = vmul.f32 %v8016_v11, %v21391_v8  ;;  %v7931_v30 = vmul.f32 %v7917_v5, %v21396_v38 }
 0x792   : > { %v18368_v55 = vadd.f32 %v8061_v21, %v8037_v43  ;;  %v18371_v46 = vadd.f32 %v7931_v30, %v18144_v1  ;;  %v7874_v59 = vpop.permute.xlu1 %7873  ;;  %v7880_v20 = vpop.permute.xlu0 %7879 }
 0x793   : > { %v7918_v24 = vsel %vm21398_vm2, %v7870_v48, %v7874_v59  ;;  %vm21420_vm2 = vmmov %vm21394_vm0 }
 0x794   : > { %21397 = vst [vmem:[#allocation39_spill] sm:$0xff] %v18368_v55  ;;  %v7943_v39 = vmul.f32 %v7918_v24, %v21396_v38  ;;  %v21404_v38 = vld [vmem:[#allocation109_spill] sm:$0xff]  ;;  %v21405_v24 = vld [vmem:[#allocation40_spill] sm:$0xff] }
 0x796   : > { %v18377_v26 = vadd.f32 %v7943_v39, %v18166_v18  ;;  %v7882_v4 = vpop.permute.xlu1 %7881  ;;  %v7876_v57 = vpop.permute.xlu0 %7875 }
 0x79a   : > { %v7878_v15 = vpop.permute.xlu1 %7877  ;;  %v7884_v47 = vpop.permute.xlu0 %7883 }
 0x79e   : > { %v7886_v40 = vpop.permute.xlu1 %7885  ;;  %v7968_v21 = vpop.permute.xlu0 %7967 }
 0x7a2   : > { %v7970_v3 = vpop.permute.xlu1 %7969  ;;  %v7976_v25 = vpop.permute.xlu0 %7975 }
 0x7a3   : > { %v8014_v1 = vsel %vm21399_vm3, %v7966_v2, %v7970_v3  ;;  %vm21421_vm3 = vmmov %vm21394_vm0 }
 0x7a4   : > { %v8038_v41 = vmul.f32 %v8014_v1, %v21400_v13  ;;  %v8020_v1 = vsel %vm21406_vm6, %v18345_v7, %v7958_v52  ;;  %v7911_v52 = vsel %vm21411_vm11, %v7880_v20, %v7884_v47  ;;  %vm21423_vm6 = vmmov %vm21403_vm5 }
 0x7a5   : > { %vm21434_vm11 = vmmov %vm21403_vm5 }
 0x7a6   : > { %v18382_v42 = vadd.f32 %v8062_v22, %v8038_v41  ;;  %v7978_v48 = vpop.permute.xlu1 %7977  ;;  %v7972_v62 = vpop.permute.xlu0 %7971  ;;  %v8019_v22 = vsel %vm21402_vm4, %v18342_v28, %v7956_v0  ;;  %v7913_v0 = vsel %vm21407_vm7, %v7876_v57, %v7880_v20  ;;  %v7915_v41 = vsel %vm21408_vm8, %v7872_v12, %v7876_v57  ;;  %v21416_v20 = vld [vmem:[#allocation80_spill] sm:$0xff]  ;;  %vm21422_vm4 = vmmov %vm21394_vm0 }
 0x7a7   : > { %v8023_v39 = vmul.f32 %v8019_v22, %v21405_v24  ;;  %v7916_v22 = vsel %vm21410_vm10, %v7874_v59, %v7878_v15  ;;  %v8013_v57 = vsel %vm21414_vm14, %v7964_v60, %v7968_v21  ;;  %v8035_v59 = vmul.f32 %v8020_v1, %v21405_v24  ;;  %vm21428_vm7 = vmmov %vm21403_vm5 }
 0x7a8   : > { %21401 = vst [vmem:[#allocation55_spill] sm:$0xff] %v18382_v42  ;;  %v7933_v45 = vmul.f32 %v7913_v0, %v21416_v20  ;;  %v7934_v60 = vmul.f32 %v7911_v52, %v21417_v51  ;;  %v8011_v24 = vsel %vm21418_vm15, %v7968_v21, %v7972_v62  ;;  %vm21429_vm8 = vmmov %vm21403_vm5 }
 0x7a9   : > { %vm21431_vm10 = vmmov %vm21403_vm5 }
 0x7aa   : > { %v7974_v49 = vpop.permute.xlu1 %7973  ;;  %v18384_v18 = vpop.permute.xlu0 %7979  ;;  %vm21437_vm14 = vmmov %vm21394_vm0 }
 0x7ab   : > { %v8010_v1 = vsel %vm21419_vm1, %v7974_v49, %v7978_v48  ;;  %vm21438_vm15 = vmmov %vm21394_vm0 }
 0x7ac   : > { %vm21439_vm1 = vmmov %vm21394_vm0 }
 0x7ae   : > { %v18386_v35 = vpop.permute.xlu1 %7981  ;;  %v18388_v37 = vpop.permute.xlu0 %7887 }
 0x7af   : > { %v7909_v21 = vsel %vm21403_vm5, %v7884_v47, %v18388_v37 }
 0x7b2   : > { %v18390_v32 = vpop.permute.xlu1 %7889  ;;  %v18392_v8 = vpop.permute.xlu0 %7895 }
 0x7b6   : > { %v18394_v19 = vpop.permute.xlu1 %7897  ;;  %v7892_v2 = vpop.permute.xlu0 %7891 }
 0x7ba   : > { %v18399_v11 = vpop.permute.xlu1 %7893  ;;  %v18401_v5 = vpop.permute.xlu0 %7899 }
 0x7bb   : > { %v7925_v43 = vsel %vm21403_vm5, %v18401_v5, %v18311_v33  ;;  %v7914_v33 = vsel %vm21409_vm9, %v7878_v15, %v7882_v4  ;;  %v21415_v15 = vld [vmem:[#allocation10_spill] sm:$0xff]  ;;  %vm21430_vm9 = vmmov %vm21403_vm5 }
 0x7bc   : > { %v7927_v30 = vmul.f32 %v7925_v43, %v21404_v38  ;;  %v7932_v16 = vmul.f32 %v7915_v41, %v21415_v15  ;;  %v7944_v31 = vmul.f32 %v7916_v22, %v21415_v15  ;;  %v21425_v22 = vld [vmem:[#allocation22_spill] sm:$0xff]  ;;  %v7905_v15 = vsel %vm21428_vm7, %v7892_v2, %v18392_v8 }
 0x7be   : > { %v8047_v42 = vadd.f32 %v7927_v30, %v18076_v17  ;;  %v18417_v55 = vpop.permute.xlu1 %7901  ;;  %v18419_v56 = vpop.permute.xlu0 %7983  ;;  %v7912_v17 = vsel %vm21413_vm13, %v7882_v4, %v7886_v40  ;;  %vm21436_vm13 = vmmov %vm21394_vm0 }
 0x7bf   : > { %v7926_v12 = vsel %vm21412_vm12, %v18417_v55, %v18331_v58  ;;  %v7945_v58 = vmul.f32 %v7914_v33, %v21416_v20  ;;  %v7907_v20 = vsel %vm21429_vm8, %v18388_v37, %v7892_v2  ;;  %vm21435_vm12 = vmmov %vm21403_vm5 }
 0x7c0   : > { %v18435_v43 = vadd.f32 %v8047_v42, %v8023_v39  ;;  %v7939_v30 = vmul.f32 %v7926_v12, %v21404_v38  ;;  %v7946_v42 = vmul.f32 %v7912_v17, %v21417_v51  ;;  %v8026_v38 = vmul.f32 %v8013_v57, %v21400_v13  ;;  %v21426_v17 = vld [vmem:[#allocation23_spill] sm:$0xff]  ;;  %vm21443_vm5 = vmmov %vm21394_vm0 }
 0x7c1   : > { %v8009_v39 = vsel %vm21394_vm0, %v7972_v62, %v7976_v25  ;;  %v8007_v51 = vsel %vm21421_vm3, %v7976_v25, %v18384_v18  ;;  %v8008_v13 = vsel %vm21422_vm4, %v7978_v48, %v18386_v35  ;;  %v7910_v62 = vsel %vm21423_vm6, %v7886_v40, %v18390_v32  ;;  %vm21441_vm3 = vmmov %vm21394_vm0 }
 0x7c2   : > { %v8059_v50 = vadd.f32 %v7939_v30, %v18098_v6  ;;  %v7986_v4 = vpop.permute.xlu1 %7985  ;;  %v7992_v29 = vpop.permute.xlu0 %7991  ;;  %v8012_v6 = vsel %vm21420_vm2, %v7970_v3, %v7974_v49  ;;  %v8052_v3 = vadd.f32 %v7932_v16, %v18156_v9  ;;  %v21424_v49 = vld [vmem:[#allocation84_spill] sm:$0xff]  ;;  %v8064_v25 = vadd.f32 %v7944_v31, %v18174_v23  ;;  %vm21440_vm2 = vmmov %vm21394_vm0 }
 0x7c3   : > { %v8027_v41 = vmul.f32 %v8011_v24, %v21424_v49  ;;  %v8028_v52 = vmul.f32 %v8009_v39, %v21425_v22  ;;  %v8039_v48 = vmul.f32 %v8012_v6, %v21424_v49  ;;  %v8040_v12 = vmul.f32 %v8010_v1, %v21425_v22  ;;  %v21427_v30 = vld [vmem:[#allocation96_spill] sm:$0xff]  ;;  %v21433_v24 = vld [vmem:[#allocation41_spill] sm:$0xff]  ;;  %vm21442_vm4 = vmmov %vm21394_vm0 }
 0x7c4   : > { %v18455_v0 = vadd.f32 %v8059_v50, %v8035_v59  ;;  %v8053_v50 = vadd.f32 %v7933_v45, %v18146_v36  ;;  %v8029_v57 = vmul.f32 %v8007_v51, %v21426_v17  ;;  %v8041_v40 = vmul.f32 %v8008_v13, %v21426_v17  ;;  %vm21444_vm6 = vmmov %vm21394_vm0  ;;  %v21446_v49 = vld [vmem:[#allocation38_spill] sm:$0xff]  ;;  %v21448_v22 = vld [vmem:[#allocation95_spill] sm:$0xff] }
 0x7c5   : > { %v7935_v9 = vmul.f32 %v7909_v21, %v21427_v30  ;;  %v7947_v36 = vmul.f32 %v7910_v62, %v21427_v30  ;;  %v8065_v45 = vadd.f32 %v7945_v58, %v18168_v14  ;;  %v8054_v16 = vadd.f32 %v7934_v60, %v18158_v27  ;;  %v21445_v62 = vld [vmem:[#allocation111_spill] sm:$0xff] }
 0x7c6   : > { %v7994_v33 = vpop.permute.xlu1 %7993  ;;  %v7988_v47 = vpop.permute.xlu0 %7987  ;;  %v8066_v23 = vadd.f32 %v7946_v42, %v18176_v10  ;;  %v18484_v31 = vadd.f32 %v18328_v54, %v8026_v38  ;;  %v18487_v59 = vadd.f32 %v18371_v46, %v8027_v41  ;;  %v7908_v27 = vsel %vm21430_vm9, %v18390_v32, %v18399_v11  ;;  %v21432_v32 = vld [vmem:[#allocation110_spill] sm:$0xff]  ;;  %v21451_v30 = vld [vmem:[#allocation119_spill] sm:$0xff] }
 0x7c7   : > { %v8076_v10 = vadd.f32 %v8052_v3, %v8028_v52  ;;  %v18500_v54 = vadd.f32 %v18377_v26, %v8039_v48  ;;  %v18502_v46 = vadd.f32 %v8064_v25, %v8040_v12  ;;  %v7906_v58 = vsel %vm21431_vm10, %v18399_v11, %v18394_v19  ;;  %v21449_v48 = vld [vmem:[#allocation28_spill] sm:$0xff] }
 0x7c8   : > { %v8077_v60 = vadd.f32 %v8053_v50, %v8029_v57  ;;  %v18508_v42 = vadd.f32 %v8065_v45, %v8041_v40  ;;  %v8055_v37 = vadd.f32 %v7935_v9, %v18219_v44  ;;  %v8067_v2 = vadd.f32 %v7947_v36, %v18241_v34  ;;  %v21452_v36 = vld [vmem:[#allocation11_spill] sm:$0xff] }
 0x7c9   : > { %v7936_v38 = vmul.f32 %v7907_v20, %v21432_v32  ;;  %v7937_v39 = vmul.f32 %v7905_v15, %v21433_v24  ;;  %v7948_v26 = vmul.f32 %v7908_v27, %v21432_v32  ;;  %v7903_v1 = vsel %vm21434_vm11, %v18392_v8, %v18401_v5  ;;  %v21453_v15 = vld [vmem:[#allocation49_spill] sm:$0xff]  ;;  %v21454_v27 = vld [vmem:[#allocation12_spill] sm:$0xff] }
 0x7ca   : > { %v7990_v14 = vpop.permute.xlu1 %7989  ;;  %v7996_v6 = vpop.permute.xlu0 %7995  ;;  %v7949_v11 = vmul.f32 %v7906_v58, %v21433_v24  ;;  %v7904_v44 = vsel %vm21435_vm12, %v18394_v19, %v18417_v55  ;;  %v8005_v34 = vsel %vm21436_vm13, %v18384_v18, %v18419_v56  ;;  %v8006_v51 = vsel %vm21437_vm14, %v18386_v35, %v7986_v4 }
 0x7cb   : > { %v8001_v8 = vsel %vm21438_vm15, %v7988_v47, %v7992_v29  ;;  %v8003_v5 = vsel %vm21394_vm0, %v18419_v56, %v7988_v47  ;;  %v8002_v55 = vsel %vm21439_vm1, %v7990_v14, %v7994_v33  ;;  %v8004_v19 = vsel %vm21440_vm2, %v7986_v4, %v7990_v14 }
 0x7cc   : > { %v7999_v18 = vsel %vm21441_vm3, %v7992_v29, %v7996_v6  ;;  %v8021_v35 = vsel %vm21442_vm4, %v7996_v6, %v18342_v28  ;;  %v7938_v3 = vmul.f32 %v7903_v1, %v21445_v62  ;;  %v7950_v50 = vmul.f32 %v7904_v44, %v21445_v62  ;;  %v21447_v29 = vld [vmem:[#allocation25_spill] sm:$0xff] }
 0x7cd   : > { %v8030_v4 = vmul.f32 %v8005_v34, %v21446_v49  ;;  %v8042_v41 = vmul.f32 %v8006_v51, %v21446_v49  ;;  %v8031_v25 = vmul.f32 %v8003_v5, %v21447_v29  ;;  %v8032_v52 = vmul.f32 %v8001_v8, %v21448_v22  ;;  %v21455_v34 = vld [vmem:[#allocation52_spill] sm:$0xff] }
 0x7ce   : > { %v7998_v13 = vpop.permute.xlu1 %7997  ;;  %v8043_v28 = vmul.f32 %v8004_v19, %v21447_v29  ;;  %v8033_v12 = vmul.f32 %v7999_v18, %v21449_v48  ;;  %v8056_v57 = vadd.f32 %v7936_v38, %v18231_v61  ;;  %v8057_v40 = vadd.f32 %v7937_v39, %v18221_v63 }
 0x7cf   : > { %v8000_v21 = vsel %vm21443_vm5, %v7994_v33, %v7998_v13  ;;  %v8022_v56 = vsel %vm21444_vm6, %v7998_v13, %v18345_v7  ;;  %v8044_v33 = vmul.f32 %v8002_v55, %v21448_v22  ;;  %v8034_v7 = vmul.f32 %v8021_v35, %v21450_v53 }
 0x7d0   : > { %v8045_v47 = vmul.f32 %v8000_v21, %v21449_v48  ;;  %v8046_v17 = vmul.f32 %v8022_v56, %v21450_v53  ;;  %v8068_v9 = vadd.f32 %v7948_v26, %v21451_v30  ;;  %v8069_v45 = vadd.f32 %v7949_v11, %v21452_v36 }
 0x7d1   : > { %v8058_v20 = vadd.f32 %v7938_v3, %v21453_v15  ;;  %v8070_v14 = vadd.f32 %v7950_v50, %v21454_v27  ;;  %v8078_v58 = vadd.f32 %v8054_v16, %v8030_v4  ;;  %v18568_v32 = vadd.f32 %v8066_v23, %v8042_v41  ;;  %v21456_v16 = vld [vmem:[#allocation124_spill] sm:$0xff]  ;;  %v21457_v3 = vld [vmem:[#allocation93_spill] sm:$0xff]  ;;  %v21458_v27 = vld [vmem:[#allocation39_spill] sm:$0xff] }
 0x7d2   : > { %v8079_v24 = vadd.f32 %v8055_v37, %v8031_v25  ;;  %v8080_v1 = vadd.f32 %v8056_v57, %v8032_v52  ;;  %v18570_v6 = vadd.f32 %v8067_v2, %v8043_v28  ;;  %v18572_v44 = vadd.f32 %v8068_v9, %v8044_v33 }
 0x7d3   : > { %v8081_v61 = vadd.f32 %v8057_v40, %v8033_v12  ;;  %v8082_v38 = vadd.f32 %v8058_v20, %v8034_v7  ;;  %v18574_v63 = vadd.f32 %v8069_v45, %v8045_v47  ;;  %v18576_v39 = vadd.f32 %v8070_v14, %v8046_v17 }
 0x7d7   : > { %v8100_v26 = vpop.permute.xlu0 %8099 }
 0x7d8   : > { %v8107_v11 = vadd.f32 %v8100_v26, %v18435_v43  ;;  %v8108_v51 = vadd.f32 %v8100_v26, %v21455_v34  ;;  %v8109_v23 = vadd.f32 %v8100_v26, %v21456_v16  ;;  %v8110_v37 = vadd.f32 %v8100_v26, %v18484_v31 }
 0x7d9   : > { %v8111_v2 = vadd.f32 %v8100_v26, %v18487_v59  ;;  %v8112_v13 = vadd.f32 %v8100_v26, %v8076_v10  ;;  %v8113_v8 = vadd.f32 %v8100_v26, %v8077_v60  ;;  %v8114_v5 = vadd.f32 %v8100_v26, %v8078_v58  ;;  %v21459_v58 = vld [vmem:[#allocation55_spill] sm:$0xff] }
 0x7da   : > { %v8115_v55 = vadd.f32 %v8100_v26, %v8079_v24  ;;  %v8116_v19 = vadd.f32 %v8100_v26, %v8080_v1  ;;  %v8117_v18 = vadd.f32 %v8100_v26, %v8081_v61  ;;  %v8118_v35 = vadd.f32 %v8100_v26, %v8082_v38 }
 0x7db   : > { %vm8131_vm7 = vcmp.gt.f32.partialorder %v8107_v11, 0.0  ;;  %vm8132_vm8 = vcmp.gt.f32.partialorder %v8108_v51, 0.0  ;;  %vm8133_vm9 = vcmp.gt.f32.partialorder %v8109_v23, 0.0  ;;  %vm8134_vm10 = vcmp.gt.f32.partialorder %v8110_v37, 0.0  ;;  %v8105_v43 = vpop.permute.xlu1 %8104 }
 0x7dc   : > { %vm8135_vm11 = vcmp.gt.f32.partialorder %v8111_v2, 0.0  ;;  %vm8136_vm12 = vcmp.gt.f32.partialorder %v8112_v13, 0.0  ;;  %vm8137_vm13 = vcmp.gt.f32.partialorder %v8113_v8, 0.0  ;;  %vm8138_vm14 = vcmp.gt.f32.partialorder %v8114_v5, 0.0 }
 0x7dd   : > { %vm8139_vm15 = vcmp.gt.f32.partialorder %v8115_v55, 0.0  ;;  %vm8140_vm0 = vcmp.gt.f32.partialorder %v8116_v19, 0.0  ;;  %vm8141_vm1 = vcmp.gt.f32.partialorder %v8117_v18, 0.0  ;;  %vm8142_vm2 = vcmp.gt.f32.partialorder %v8118_v35, 0.0 }
 0x7de   : > { %v8155_v31 = vmul.f32 0.2, %v8107_v11  ;;  %v8156_v59 = vmul.f32 0.2, %v8108_v51  ;;  %v8157_v10 = vmul.f32 0.2, %v8109_v23  ;;  %v18584_v60 = vadd.f32 %v8105_v43, %v18455_v0 }
 0x7df   : > { %v8158_v21 = vmul.f32 0.2, %v8110_v37  ;;  %v8159_v56 = vmul.f32 0.2, %v8111_v2  ;;  %v8160_v62 = vmul.f32 0.2, %v8112_v13  ;;  %v18587_v50 = vadd.f32 %v8105_v43, %v21457_v3 }
 0x7e0   : > { %v8161_v49 = vmul.f32 0.2, %v8113_v8  ;;  %v8162_v4 = vmul.f32 0.2, %v8114_v5  ;;  %v8163_v41 = vmul.f32 0.2, %v8115_v55  ;;  %v8179_v29 = vsel %vm8131_vm7, %v8107_v11, %v8155_v31 }
 0x7e1   : > { %v8164_v25 = vmul.f32 0.2, %v8116_v19  ;;  %v8165_v22 = vmul.f32 0.2, %v8117_v18  ;;  %v8166_v52 = vmul.f32 0.2, %v8118_v35  ;;  %v8180_v28 = vsel %vm8132_vm8, %v8108_v51, %v8156_v59 }
 0x7e2   : > { %v8181_v33 = vsel %vm8133_vm9, %v8109_v23, %v8157_v10  ;;  %v8182_v0 = vsel %vm8134_vm10, %v8110_v37, %v8158_v21  ;;  %v8183_v48 = vsel %vm8135_vm11, %v8111_v2, %v8159_v56  ;;  %v8184_v12 = vsel %vm8136_vm12, %v8112_v13, %v8160_v62 }
 0x7e3   : > { %v8185_v53 = vsel %vm8137_vm13, %v8113_v8, %v8161_v49  ;;  %v8186_v7 = vsel %vm8138_vm14, %v8114_v5, %v8162_v4  ;;  %v8187_v47 = vsel %vm8139_vm15, %v8115_v55, %v8163_v41  ;;  %v8188_v17 = vsel %vm8140_vm0, %v8116_v19, %v8164_v25 }
 0x7e4   : > { %v8189_v57 = vsel %vm8141_vm1, %v8117_v18, %v8165_v22  ;;  %v8190_v40 = vsel %vm8142_vm2, %v8118_v35, %v8166_v52  ;;  %v13503_v30 = vpack.c.bf16 %v8180_v28, %v8179_v29  ;;  %v13504_v9 = vpack.c.bf16 %v8182_v0, %v8181_v33 }
 0x7e5   : > { %v13505_v36 = vpack.c.bf16 %v8184_v12, %v8183_v48  ;;  %v13506_v45 = vpack.c.bf16 %v8186_v7, %v8185_v53  ;;  %v13507_v15 = vpack.c.bf16 %v8188_v17, %v8187_v47  ;;  %v13508_v20 = vpack.c.bf16 %v8190_v40, %v8189_v57 }
 0x7e6   : > { %8275 = vst [vmem:[#allocation2 + $0x1bc] sm:$0xff] %v13503_v30  ;;  %8276 = vst [vmem:[#allocation2 + $0x1c4] sm:$0xff] %v13504_v9  ;;  %v8121_v14 = vadd.f32 %v8105_v43, %v21458_v27  ;;  %v8122_v24 = vadd.f32 %v8105_v43, %v21459_v58  ;;  %v8123_v1 = vadd.f32 %v8105_v43, %v18500_v54  ;;  %vm8143_vm3 = vcmp.gt.f32.partialorder %v18584_v60, 0.0 }
 0x7e7   : > { %v8124_v61 = vadd.f32 %v8105_v43, %v18502_v46  ;;  %8277 = vst [vmem:[#allocation2 + $0x1cc] sm:$0xff] %v13505_v36  ;;  %8278 = vst [vmem:[#allocation2 + $0x1d4] sm:$0xff] %v13506_v45  ;;  %v8125_v38 = vadd.f32 %v8105_v43, %v18508_v42  ;;  %v8126_v26 = vadd.f32 %v8105_v43, %v18568_v32  ;;  %vm8144_vm4 = vcmp.gt.f32.partialorder %v18587_v50, 0.0 }
 0x7e8   : > { %8279 = vst [vmem:[#allocation2 + $0x1dc] sm:$0xff] %v13507_v15  ;;  %8280 = vst [vmem:[#allocation2 + $0x1e4] sm:$0xff] %v13508_v20  ;;  %v8127_v11 = vadd.f32 %v8105_v43, %v18570_v6  ;;  %v8128_v34 = vadd.f32 %v8105_v43, %v18572_v44  ;;  %v8129_v51 = vadd.f32 %v8105_v43, %v18574_v63  ;;  %vm8145_vm5 = vcmp.gt.f32.partialorder %v8121_v14, 0.0 }
 0x7e9   : > { %v8130_v16 = vadd.f32 %v8105_v43, %v18576_v39  ;;  %vm8146_vm6 = vcmp.gt.f32.partialorder %v8122_v24, 0.0  ;;  %vm8147_vm7 = vcmp.gt.f32.partialorder %v8123_v1, 0.0  ;;  %vm8148_vm8 = vcmp.gt.f32.partialorder %v8124_v61, 0.0 }
 0x7ea   : > { %vm8149_vm9 = vcmp.gt.f32.partialorder %v8125_v38, 0.0  ;;  %vm8150_vm10 = vcmp.gt.f32.partialorder %v8126_v26, 0.0  ;;  %vm8151_vm11 = vcmp.gt.f32.partialorder %v8127_v11, 0.0  ;;  %vm8152_vm12 = vcmp.gt.f32.partialorder %v8128_v34, 0.0 }
 0x7eb   : > { %vm8153_vm13 = vcmp.gt.f32.partialorder %v8129_v51, 0.0  ;;  %vm8154_vm14 = vcmp.gt.f32.partialorder %v8130_v16, 0.0  ;;  %v8167_v54 = vmul.f32 0.2, %v18584_v60  ;;  %v8168_v46 = vmul.f32 0.2, %v18587_v50 }
 0x7ec   : > { %v8169_v42 = vmul.f32 0.2, %v8121_v14  ;;  %v8170_v32 = vmul.f32 0.2, %v8122_v24  ;;  %v8171_v6 = vmul.f32 0.2, %v8123_v1 }
 0x7ed   : > { %v8172_v44 = vmul.f32 0.2, %v8124_v61  ;;  %v8173_v63 = vmul.f32 0.2, %v8125_v38  ;;  %v8174_v39 = vmul.f32 0.2, %v8126_v26  ;;  %v8191_v23 = vsel %vm8143_vm3, %v18584_v60, %v8167_v54 }
 0x7ee   : > { %v8175_v37 = vmul.f32 0.2, %v8127_v11  ;;  %v8176_v2 = vmul.f32 0.2, %v8128_v34  ;;  %v8177_v13 = vmul.f32 0.2, %v8129_v51  ;;  %v8192_v8 = vsel %vm8144_vm4, %v18587_v50, %v8168_v46 }
 0x7ef   : > { %v8178_v5 = vmul.f32 0.2, %v8130_v16  ;;  %v8193_v55 = vsel %vm8145_vm5, %v8121_v14, %v8169_v42  ;;  %v8194_v19 = vsel %vm8146_vm6, %v8122_v24, %v8170_v32  ;;  %v8195_v18 = vsel %vm8147_vm7, %v8123_v1, %v8171_v6 }
 0x7f0   : > { %v8196_v35 = vsel %vm8148_vm8, %v8124_v61, %v8172_v44  ;;  %v8197_v43 = vsel %vm8149_vm9, %v8125_v38, %v8173_v63  ;;  %v8198_v31 = vsel %vm8150_vm10, %v8126_v26, %v8174_v39  ;;  %v8199_v59 = vsel %vm8151_vm11, %v8127_v11, %v8175_v37 }
 0x7f1   : > { %v8200_v10 = vsel %vm8152_vm12, %v8128_v34, %v8176_v2  ;;  %v8201_v60 = vsel %vm8153_vm13, %v8129_v51, %v8177_v13  ;;  %v8202_v21 = vsel %vm8154_vm14, %v8130_v16, %v8178_v5  ;;  %v13509_v56 = vpack.c.bf16 %v8192_v8, %v8191_v23 }
 0x7f2   : > { %v13510_v62 = vpack.c.bf16 %v8194_v19, %v8193_v55  ;;  %v13511_v3 = vpack.c.bf16 %v8196_v35, %v8195_v18  ;;  %v13512_v50 = vpack.c.bf16 %v8198_v31, %v8197_v43  ;;  %v13513_v49 = vpack.c.bf16 %v8200_v10, %v8199_v59  ;;  %8289 = sbr.rel (%p12504_p10) target bundleno = 2041 (0x7f9), region = 104 }
 0x7f3   : > { %v13514_v4 = vpack.c.bf16 %v8202_v21, %v8201_v60  ;;  %8281 = vst [vmem:[#allocation2 + $0x204] sm:$0xff] %v13509_v56 }
 0x7f4   : > { %8282 = vst [vmem:[#allocation2 + $0x20c] sm:$0xff] %v13510_v62  ;;  %8283 = vst [vmem:[#allocation2 + $0x214] sm:$0xff] %v13511_v3 }
 0x7f5   : > { %8284 = vst [vmem:[#allocation2 + $0x21c] sm:$0xff] %v13512_v50  ;;  %8285 = vst [vmem:[#allocation2 + $0x224] sm:$0xff] %v13513_v49 }
 0x7f6   : > { %8286 = vst [vmem:[#allocation2 + $0x22c] sm:$0xff] %v13514_v4 }
 0x7f7   : > { %v14239_v41 = vmov 0  }
 0x7f8   : > { %8290 = vst [vmem:[#allocation2 + $0x1bc] sm:$0xff] %v14239_v41  ;;  %8291 = vst [vmem:[#allocation2 + $0x204] sm:$0xff] %v14239_v41 }
 0x7f9 PF: > { %8294 = sbr.rel (%p12516_p12) target bundleno = 2048 (0x800), region = 108 }
 0x7fe   : > { %v14240_v29 = vmov 0  }
 0x7ff   : > { %8295 = vst [vmem:[#allocation2 + $0x1e4] sm:$0xff] %v14240_v29  ;;  %8296 = vst [vmem:[#allocation2 + $0x22c] sm:$0xff] %v14240_v29 }
 0x800 PF: > { %v13887_v25 = vld [vmem:[#allocation2 + $0x1c4] ss:$72 sps:$4 sm:$0xff]   ;;  %v21460_v22 = vmov 0   ;;  %v13892_v33 = vld [vmem:[#allocation2 + $0x1c8] ss:$72 sps:$4 sm:$0xff]   ;;  %v18642_v20 = vld [vmem:[%s20339_s5 + $0x18] sm:$0xff]  }
 0x801   : > { %8647 = vmatprep.mubr.bf16.mxu1 %v21460_v22  ;;  %8710 = vmatprep.mubr.bf16.mxu0 %v21460_v22  ;;  %v13889_v52 = vld [vmem:[#allocation2 + $0x1cc] ss:$72 sps:$4 sm:$0xff]   ;;  %v13891_v28 = vld [vmem:[#allocation2 + $0x1c0] ss:$72 sps:$4 sm:$0xff]   ;;  %v13895_v48 = vld [vmem:[#allocation2 + $0x13c] ss:$72 sps:$4 sm:$0xff]  }
 0x802   : > { %13885 = vset.pattern.permute.xlu0 %v21460_v22  ;;  %13886 = vset.pattern.permute.xlu1 %v21460_v22  ;;  %v13893_v0 = vld [vmem:[#allocation2 + $0x134] ss:$72 sps:$4 sm:$0xff]   ;;  %v13897_v12 = vld [vmem:[#allocation2 + $0x130] ss:$72 sps:$4 sm:$0xff]   ;;  %v13899_v7 = vld [vmem:[#allocation2 + $0xa4] ss:$72 sps:$4 sm:$0xff]  }
 0x803   : > { %8623 = vmatprep.subr.bf16.mxu1 %v13887_v25  ;;  %8686 = vmatprep.subr.bf16.mxu0 %v13889_v52  ;;  %v13898_v53 = vld [vmem:[#allocation2 + $0x138] ss:$72 sps:$4 sm:$0xff]   ;;  %v13901_v47 = vld [vmem:[#allocation2 + $0xac] ss:$72 sps:$4 sm:$0xff]   ;;  %v13904_v57 = vld [vmem:[#allocation2 + $0xa8] ss:$72 sps:$4 sm:$0xff]  }
 0x804   : > { %8624 = vmatpush1.bf16.msra.mxu1 %v13891_v28  ;;  %8687 = vmatpush1.bf16.msra.mxu0 %v13892_v33  ;;  %v13903_v17 = vld [vmem:[#allocation2 + $0xa0] ss:$72 sps:$4 sm:$0xff]   ;;  %v13905_v40 = vld [vmem:[#allocation2 + $0x14] ss:$72 sps:$4 sm:$0xff]   ;;  %v13909_v9 = vld [vmem:[#allocation2 + $0x10] ss:$72 sps:$4 sm:$0xff]  }
 0x805   : > { %8625 = vmatprep.subr.bf16.mxu1 %v13893_v0  ;;  %8688 = vmatprep.subr.bf16.mxu0 %v13895_v48  ;;  %v13907_v30 = vld [vmem:[#allocation2 + $0x1c] ss:$72 sps:$4 sm:$0xff]   ;;  %v13910_v36 = vld [vmem:[#allocation2 + $0x18] ss:$72 sps:$4 sm:$0xff]   ;;  %vm8605_vm15 = vcmask 523264   ;;  %v18664_v44 = vld [vmem:[%s20339_s5 + $0x28] sm:$0xff]  }
 0x806   : > { %v13914_v45 = vld [vmem:[#allocation2 + $0x1d4] ss:$72 sps:$4 sm:$0xff]   ;;  %v13912_v27 = vld [vmem:[#allocation2 + $0x1d0] ss:$72 sps:$4 sm:$0xff]   ;;  %v13920_v58 = vld [vmem:[#allocation2 + $0x144] ss:$72 sps:$4 sm:$0xff]  }
 0x807   : > { %v13917_v15 = vld [vmem:[#allocation2 + $0x1dc] ss:$72 sps:$4 sm:$0xff]   ;;  %v13915_v14 = vld [vmem:[#allocation2 + $0x1d8] ss:$72 sps:$4 sm:$0xff]   ;;  %v13924_v24 = vld [vmem:[#allocation2 + $0x14c] ss:$72 sps:$4 sm:$0xff]  }
 0x808   : > { %8626 = vmatpush1.bf16.msra.mxu1 %v13897_v12  ;;  %8689 = vmatpush1.bf16.msra.mxu0 %v13898_v53  ;;  %v13918_v1 = vld [vmem:[#allocation2 + $0x140] ss:$72 sps:$4 sm:$0xff]   ;;  %v13927_v38 = vld [vmem:[#allocation2 + $0xb4] ss:$72 sps:$4 sm:$0xff]   ;;  %v13925_v34 = vld [vmem:[#allocation2 + $0xb0] ss:$72 sps:$4 sm:$0xff]  }
 0x809   : > { %8627 = vmatprep.subr.bf16.mxu1 %v13899_v7  ;;  %8690 = vmatprep.subr.bf16.mxu0 %v13901_v47  ;;  %v13922_v61 = vld [vmem:[#allocation2 + $0x148] ss:$72 sps:$4 sm:$0xff]   ;;  %v13931_v26 = vld [vmem:[#allocation2 + $0xbc] ss:$72 sps:$4 sm:$0xff]   ;;  %v13929_v51 = vld [vmem:[#allocation2 + $0xb8] ss:$72 sps:$4 sm:$0xff]  }
 0x80a   : > { %v18653_v11 = vld [vmem:[%s20339_s5 + $0x20] sm:$0xff]   ;;  %v13937_v54 = vld [vmem:[#allocation2 + $0x2c] ss:$72 sps:$4 sm:$0xff]   ;;  %v13935_v42 = vld [vmem:[#allocation2 + $0x28] ss:$72 sps:$4 sm:$0xff]  }
 0x80b   : > { %v13934_v16 = vld [vmem:[#allocation2 + $0x24] ss:$72 sps:$4 sm:$0xff]   ;;  %v13932_v46 = vld [vmem:[#allocation2 + $0x20] ss:$72 sps:$4 sm:$0xff]   ;;  %v13946_v23 = vld [vmem:[#allocation2 + $0x154] ss:$72 sps:$4 sm:$0xff]  }
 0x80c   : > { %8628 = vmatpush1.bf16.msra.mxu1 %v13903_v17  ;;  %8691 = vmatpush1.bf16.msra.mxu0 %v13904_v57  ;;  %v13940_v32 = vld [vmem:[#allocation2 + $0x1e4] ss:$72 sps:$4 sm:$0xff]   ;;  %v13943_v6 = vld [vmem:[#allocation2 + $0x1c0] ss:$72 sps:$4 sm:$0xff]   ;;  %v13949_v37 = vld [vmem:[#allocation2 + $0x130] ss:$72 sps:$4 sm:$0xff]  }
 0x80d   : > { %8629 = vmatprep.subr.bf16.mxu1 %v13905_v40  ;;  %8692 = vmatprep.subr.bf16.mxu0 %v13907_v30  ;;  %v13938_v63 = vld [vmem:[#allocation2 + $0x1e0] ss:$72 sps:$4 sm:$0xff]   ;;  %v13941_v39 = vld [vmem:[#allocation2 + $0x1bc] ss:$72 sps:$4 sm:$0xff]   ;;  %v13944_v2 = vld [vmem:[#allocation2 + $0x150] ss:$72 sps:$4 sm:$0xff]  }
 0x80e   : > { %v13947_v13 = vld [vmem:[#allocation2 + $0x12c] ss:$72 sps:$4 sm:$0xff]   ;;  %v13955_v5 = vld [vmem:[#allocation2 + $0xa0] ss:$72 sps:$4 sm:$0xff]   ;;  %v13953_v19 = vld [vmem:[#allocation2 + $0x9c] ss:$72 sps:$4 sm:$0xff]  }
 0x80f   : > { %v13952_v8 = vld [vmem:[#allocation2 + $0xc4] ss:$72 sps:$4 sm:$0xff]   ;;  %v13950_v55 = vld [vmem:[#allocation2 + $0xc0] ss:$72 sps:$4 sm:$0xff]   ;;  %v13958_v18 = vld [vmem:[#allocation2 + $0x34] ss:$72 sps:$4 sm:$0xff]  }
 0x810   : > { %8630 = vmatpush1.bf16.msra.mxu1 %v13909_v9  ;;  %8693 = vmatpush1.bf16.msra.mxu0 %v13910_v36  ;;  %v13961_v35 = vld [vmem:[#allocation2 + $0x10] ss:$72 sps:$4 sm:$0xff]   ;;  %v13959_v31 = vld [vmem:[#allocation2 + $0xc] ss:$72 sps:$4 sm:$0xff]   ;;  %v18699_v60 = vld [vmem:[%s20339_s5] sm:$0xff]  }
 0x811   : > { %8749 = vmatprep.subr.bf16.mxu1 %v13914_v45  ;;  %8812 = vmatprep.subr.bf16.mxu0 %v13917_v15  ;;  %v13956_v43 = vld [vmem:[#allocation2 + $0x30] ss:$72 sps:$4 sm:$0xff]   ;;  %v18701_v21 = vld [vmem:[#allocation2 + $0x1c4] ss:$72 sps:$4 sm:$0xff]   ;;  %v18707_v3 = vld [vmem:[#allocation2 + $0x140] ss:$72 sps:$4 sm:$0xff]  }
 0x812   : > { %v18684_v59 = vld [vmem:[#allocation2 + $0x1c8] ss:$72 sps:$4 sm:$0xff]   ;;  %v18703_v56 = vld [vmem:[#allocation2 + $0x1cc] ss:$72 sps:$4 sm:$0xff]   ;;  %v18705_v62 = vld [vmem:[#allocation2 + $0x138] ss:$72 sps:$4 sm:$0xff]  }
 0x813   : > { %13118 = vmatmul.mubr.msk.bf16.vlgmr.msra.gmra.mxu1 %vm8605_vm15, %v18642_v20  ;;  %13121 = vmatmul.mubr.msk.bf16.vlgmr.msra.gmra.mxu0 %vm8605_vm15, %v18642_v20  ;;  %v18686_v10 = vld [vmem:[#allocation2 + $0x1d0] ss:$72 sps:$4 sm:$0xff]   ;;  %v18715_v50 = vld [vmem:[#allocation2 + $0x134] ss:$72 sps:$4 sm:$0xff]   ;;  %v18730_v29 = vld [vmem:[%s20339_s5 + $0x8] sm:$0xff]  }
 0x814   : > { %8750 = vmatpush1.bf16.msra.mxu1 %v13912_v27  ;;  %8813 = vmatpush1.bf16.msra.mxu0 %v13915_v14  ;;  %v18717_v49 = vld [vmem:[#allocation2 + $0x13c] ss:$72 sps:$4 sm:$0xff]   ;;  %v18721_v4 = vld [vmem:[#allocation2 + $0xa8] ss:$72 sps:$4 sm:$0xff]   ;;  %v18737_v52 = vld [vmem:[#allocation2 + $0xac] ss:$72 sps:$4 sm:$0xff]  }
 0x815   : > { %8751 = vmatprep.subr.bf16.mxu1 %v13920_v58  ;;  %8657 = vmatprep.mubr.bf16.mxu1 %v21460_v22  ;;  %v18723_v41 = vld [vmem:[#allocation2 + $0xb0] ss:$72 sps:$4 sm:$0xff]   ;;  %v18734_v25 = vld [vmem:[#allocation2 + $0xa4] ss:$72 sps:$4 sm:$0xff]   ;;  %v18742_v33 = vld [vmem:[#allocation2 + $0x20] ss:$72 sps:$4 sm:$0xff]  }
 0x816   : > { %8720 = vmatprep.mubr.bf16.mxu0 %v21460_v22  ;;  %8814 = vmatprep.subr.bf16.mxu0 %v13924_v24  ;;  %v18740_v28 = vld [vmem:[#allocation2 + $0x18] ss:$72 sps:$4 sm:$0xff]   ;;  %v18750_v0 = vld [vmem:[#allocation2 + $0x14] ss:$72 sps:$4 sm:$0xff]   ;;  %v18781_v57 = vld [vmem:[#allocation2 + $0x148] ss:$72 sps:$4 sm:$0xff]  }
 0x817   : > { %v18754_v48 = vld [vmem:[#allocation2 + $0x1c] ss:$72 sps:$4 sm:$0xff]   ;;  %v18756_v12 = vld [vmem:[#allocation2 + $0x1d8] ss:$72 sps:$4 sm:$0xff]   ;;  %v18765_v7 = vld [vmem:[%s20339_s5 + $0x10] sm:$0xff]  }
 0x818   : > { %8752 = vmatpush1.bf16.msra.mxu1 %v13918_v1  ;;  %8815 = vmatpush1.bf16.msra.mxu0 %v13922_v61  ;;  %v18760_v53 = vld [vmem:[#allocation2 + $0x1e0] ss:$72 sps:$4 sm:$0xff]   ;;  %v18777_v47 = vld [vmem:[#allocation2 + $0x1d4] ss:$72 sps:$4 sm:$0xff]   ;;  %v18783_v40 = vld [vmem:[#allocation2 + $0x150] ss:$72 sps:$4 sm:$0xff]  }
 0x819   : > { %8753 = vmatprep.subr.bf16.mxu1 %v13927_v38  ;;  %8816 = vmatprep.subr.bf16.mxu0 %v13931_v26  ;;  %v18779_v17 = vld [vmem:[#allocation2 + $0x1dc] ss:$72 sps:$4 sm:$0xff]   ;;  %v18793_v9 = vld [vmem:[#allocation2 + $0x14c] ss:$72 sps:$4 sm:$0xff]   ;;  %v18797_v36 = vld [vmem:[#allocation2 + $0xb8] ss:$72 sps:$4 sm:$0xff]  }
 0x81a   : > { %v18791_v30 = vld [vmem:[#allocation2 + $0x144] ss:$72 sps:$4 sm:$0xff]   ;;  %v18799_v45 = vld [vmem:[#allocation2 + $0xc0] ss:$72 sps:$4 sm:$0xff]   ;;  %v18805_v15 = vld [vmem:[#allocation2 + $0xb4] ss:$72 sps:$4 sm:$0xff]  }
 0x81b   : > { %13119 = vmatmul.mubr.msk.bf16.gmra.mxu1 %vm8605_vm15, %v18653_v11  ;;  %13122 = vmatmul.mubr.msk.bf16.gmra.mxu0 %vm8605_vm15, %v18653_v11  ;;  %v18811_v27 = vld [vmem:[#allocation2 + $0x28] ss:$72 sps:$4 sm:$0xff]   ;;  %v18821_v58 = vld [vmem:[#allocation2 + $0x24] ss:$72 sps:$4 sm:$0xff]   ;;  %v14014_v61 = vld [vmem:[%s20339_s5 + $0x38] sm:$0xff]  }
 0x81c   : > { %8754 = vmatpush1.bf16.msra.mxu1 %v13925_v34  ;;  %8667 = vmatprep.mubr.bf16.mxu1 %v21460_v22  ;;  %v18813_v14 = vld [vmem:[#allocation2 + $0x30] ss:$72 sps:$4 sm:$0xff]   ;;  %v18825_v24 = vld [vmem:[#allocation2 + $0x2c] ss:$72 sps:$4 sm:$0xff]   ;;  %v14015_v26 = vld [vmem:[%s20339_s5 + $0x40] sm:$0xff]  }
 0x81d   : > { %8730 = vmatprep.mubr.bf16.mxu0 %v21460_v22  ;;  %8817 = vmatpush1.bf16.msra.mxu0 %v13929_v51  ;;  %v14013_v1 = vld [vmem:[%s20339_s5 + $0x30] sm:$0xff]   ;;  %v14021_v34 = vld [vmem:[#allocation2 + $0x158] ss:$72 sps:$4 sm:$0xff]  }
 0x81e   : > { %8755 = vmatprep.subr.bf16.mxu1 %v13934_v16  ;;  %8818 = vmatprep.subr.bf16.mxu0 %v13937_v54  ;;  %v14018_v38 = vld [vmem:[#allocation2 + $0x1e8] ss:$72 sps:$4 sm:$0xff]   ;;  %v14019_v51 = vld [vmem:[#allocation2 + $0x154] ss:$72 sps:$4 sm:$0xff]   ;;  %v14022_v54 = vld [vmem:[#allocation2 + $0xc4] ss:$72 sps:$4 sm:$0xff]  }
 0x81f   : > { %v14024_v16 = vld [vmem:[#allocation2 + $0xc8] ss:$72 sps:$4 sm:$0xff]  }
 0x820   : > { %8756 = vmatpush1.bf16.msra.mxu1 %v13932_v46  ;;  %v14027_v46 = vld [vmem:[#allocation2 + $0x38] ss:$72 sps:$4 sm:$0xff]  }
 0x821   : > { %8819 = vmatpush1.bf16.msra.mxu0 %v13935_v42  ;;  %8875 = vmatprep.subr.bf16.mxu1 %v13940_v32  ;;  %v14025_v42 = vld [vmem:[#allocation2 + $0x34] ss:$72 sps:$4 sm:$0xff]  }
 0x822   : > { %9162 = vmatprep.subr.bf16.mxu0 %v13943_v6 }
 0x823   : > { %13120 = vmatmul.mubr.msk.bf16.gmra.mxu1 %vm8605_vm15, %v18664_v44  ;;  %13123 = vmatmul.mubr.msk.bf16.gmra.mxu0 %vm8605_vm15, %v18664_v44 }
 0x824   : > { %8773 = vmatprep.mubr.bf16.mxu1 %v21460_v22  ;;  %8836 = vmatprep.mubr.bf16.mxu0 %v21460_v22 }
 0x82b   : > { %13124 = vmatmul.mubr.msk.bf16.vlgmr.msra.gmra.mxu1 %vm8605_vm15, %v18642_v20  ;;  %13127 = vmatmul.mubr.msk.bf16.vlgmr.msra.gmra.mxu0 %vm8605_vm15, %v18642_v20 }
 0x82c   : > { %8876 = vmatpush1.bf16.msra.mxu1 %v13938_v63  ;;  %9163 = vmatpush1.bf16.msra.mxu0 %v13941_v39 }
 0x82d   : > { %8877 = vmatprep.subr.bf16.mxu1 %v13946_v23  ;;  %8783 = vmatprep.mubr.bf16.mxu1 %v21460_v22 }
 0x82e   : > { %8846 = vmatprep.mubr.bf16.mxu0 %v21460_v22  ;;  %9164 = vmatprep.subr.bf16.mxu0 %v13949_v37 }
 0x830   : > { %8878 = vmatpush1.bf16.msra.mxu1 %v13944_v2  ;;  %9165 = vmatpush1.bf16.msra.mxu0 %v13947_v13 }
 0x831   : > { %8879 = vmatprep.subr.bf16.mxu1 %v13952_v8  ;;  %9166 = vmatprep.subr.bf16.mxu0 %v13955_v5 }
 0x833   : > { %13125 = vmatmul.mubr.msk.bf16.gmra.mxu1 %vm8605_vm15, %v18653_v11  ;;  %13128 = vmatmul.mubr.msk.bf16.gmra.mxu0 %vm8605_vm15, %v18653_v11 }
 0x834   : > { %8880 = vmatpush1.bf16.msra.mxu1 %v13950_v55  ;;  %8793 = vmatprep.mubr.bf16.mxu1 %v21460_v22 }
 0x835   : > { %8856 = vmatprep.mubr.bf16.mxu0 %v21460_v22  ;;  %9167 = vmatpush1.bf16.msra.mxu0 %v13953_v19 }
 0x836   : > { %8881 = vmatprep.subr.bf16.mxu1 %v13958_v18  ;;  %9168 = vmatprep.subr.bf16.mxu0 %v13961_v35 }
 0x838   : > { %8882 = vmatpush1.bf16.msra.mxu1 %v13956_v43 }
 0x839   : > { %9169 = vmatpush1.bf16.msra.mxu0 %v13959_v31  ;;  %9225 = vmatprep.subr.bf16.mxu1 %v18684_v59 }
 0x83a   : > { %9288 = vmatprep.subr.bf16.mxu0 %v18686_v10 }
 0x83b   : > { %13126 = vmatmul.mubr.msk.bf16.gmra.mxu1 %vm8605_vm15, %v18664_v44  ;;  %13129 = vmatmul.mubr.msk.bf16.gmra.mxu0 %vm8605_vm15, %v18664_v44 }
 0x83c   : > { %8899 = vmatprep.mubr.bf16.mxu1 %v21460_v22  ;;  %9186 = vmatprep.mubr.bf16.mxu0 %v21460_v22 }
 0x843   : > { %13130 = vmatmul.mubr.msk.bf16.vlgmr.msra.gmra.mxu1 %vm8605_vm15, %v18642_v20  ;;  %13176 = vmatmul.mubr.msk.bf16.vlgmr.msra.gmra.mxu0 %vm8605_vm15, %v18699_v60  ;;  %v18808_v20 = vld [vmem:[#allocation2 + $0xbc] ss:$72 sps:$4 sm:$0xff]  }
 0x844   : > { %9226 = vmatpush1.bf16.msra.mxu1 %v18701_v21  ;;  %9289 = vmatpush1.bf16.msra.mxu0 %v18703_v56 }
 0x845   : > { %9227 = vmatprep.subr.bf16.mxu1 %v18705_v62  ;;  %8909 = vmatprep.mubr.bf16.mxu1 %v21460_v22 }
 0x846   : > { %9196 = vmatprep.mubr.bf16.mxu0 %v21460_v22  ;;  %9290 = vmatprep.subr.bf16.mxu0 %v18707_v3 }
 0x848   : > { %9228 = vmatpush1.bf16.msra.mxu1 %v18715_v50  ;;  %9291 = vmatpush1.bf16.msra.mxu0 %v18717_v49 }
 0x849   : > { %9229 = vmatprep.subr.bf16.mxu1 %v18721_v4  ;;  %9292 = vmatprep.subr.bf16.mxu0 %v18723_v41 }
 0x84b   : > { %13131 = vmatmul.mubr.msk.bf16.gmra.mxu1 %vm8605_vm15, %v18653_v11  ;;  %13177 = vmatmul.mubr.msk.bf16.gmra.mxu0 %vm8605_vm15, %v18730_v29  ;;  %v14016_v11 = vld [vmem:[#allocation2 + $0x1e4] ss:$72 sps:$4 sm:$0xff]  }
 0x84c   : > { %9230 = vmatpush1.bf16.msra.mxu1 %v18734_v25  ;;  %8919 = vmatprep.mubr.bf16.mxu1 %v21460_v22 }
 0x84d   : > { %9206 = vmatprep.mubr.bf16.mxu0 %v21460_v22  ;;  %9293 = vmatpush1.bf16.msra.mxu0 %v18737_v52 }
 0x84e   : > { %9231 = vmatprep.subr.bf16.mxu1 %v18740_v28  ;;  %9294 = vmatprep.subr.bf16.mxu0 %v18742_v33 }
 0x850   : > { %9232 = vmatpush1.bf16.msra.mxu1 %v18750_v0 }
 0x851   : > { %9295 = vmatpush1.bf16.msra.mxu0 %v18754_v48  ;;  %9351 = vmatprep.subr.bf16.mxu1 %v18756_v12 }
 0x852   : > { %9414 = vmatprep.subr.bf16.mxu0 %v18760_v53 }
 0x853   : > { %13132 = vmatmul.mubr.msk.bf16.gmra.mxu1 %vm8605_vm15, %v18664_v44  ;;  %13178 = vmatmul.mubr.msk.bf16.gmra.mxu0 %vm8605_vm15, %v18765_v7 }
 0x854   : > { %9249 = vmatprep.mubr.bf16.mxu1 %v21460_v22  ;;  %9312 = vmatprep.mubr.bf16.mxu0 %v21460_v22 }
 0x85b   : > { %13179 = vmatmul.mubr.msk.bf16.vlgmr.msra.gmra.mxu1 %vm8605_vm15, %v18699_v60  ;;  %13182 = vmatmul.mubr.msk.bf16.vlgmr.msra.gmra.mxu0 %vm8605_vm15, %v18699_v60 }
 0x85c   : > { %9352 = vmatpush1.bf16.msra.mxu1 %v18777_v47  ;;  %9415 = vmatpush1.bf16.msra.mxu0 %v18779_v17 }
 0x85d   : > { %9353 = vmatprep.subr.bf16.mxu1 %v18781_v57  ;;  %9259 = vmatprep.mubr.bf16.mxu1 %v21460_v22 }
 0x85e   : > { %9322 = vmatprep.mubr.bf16.mxu0 %v21460_v22  ;;  %9416 = vmatprep.subr.bf16.mxu0 %v18783_v40 }
 0x860   : > { %9354 = vmatpush1.bf16.msra.mxu1 %v18791_v30  ;;  %9417 = vmatpush1.bf16.msra.mxu0 %v18793_v9 }
 0x861   : > { %9355 = vmatprep.subr.bf16.mxu1 %v18797_v36  ;;  %9418 = vmatprep.subr.bf16.mxu0 %v18799_v45 }
 0x863   : > { %13180 = vmatmul.mubr.msk.bf16.gmra.mxu1 %vm8605_vm15, %v18730_v29  ;;  %13183 = vmatmul.mubr.msk.bf16.gmra.mxu0 %vm8605_vm15, %v18730_v29 }
 0x864   : > { %9356 = vmatpush1.bf16.msra.mxu1 %v18805_v15  ;;  %9269 = vmatprep.mubr.bf16.mxu1 %v21460_v22 }
 0x865   : > { %9332 = vmatprep.mubr.bf16.mxu0 %v21460_v22  ;;  %9419 = vmatpush1.bf16.msra.mxu0 %v18808_v20 }
 0x866   : > { %9357 = vmatprep.subr.bf16.mxu1 %v18811_v27  ;;  %9420 = vmatprep.subr.bf16.mxu0 %v18813_v14 }
 0x868   : > { %9358 = vmatpush1.bf16.msra.mxu1 %v18821_v58 }
 0x869   : > { %9421 = vmatpush1.bf16.msra.mxu0 %v18825_v24  ;;  %9748 = vmatprep.subr.bf16.mxu1 %v18684_v59 }
 0x86a   : > { %9811 = vmatprep.subr.bf16.mxu0 %v18686_v10 }
 0x86b   : > { %13181 = vmatmul.mubr.msk.bf16.gmra.mxu1 %vm8605_vm15, %v18765_v7  ;;  %13184 = vmatmul.mubr.msk.bf16.gmra.mxu0 %vm8605_vm15, %v18765_v7 }
 0x86c   : > { %9375 = vmatprep.mubr.bf16.mxu1 %v21460_v22  ;;  %9438 = vmatprep.mubr.bf16.mxu0 %v21460_v22 }
 0x873   : > { %13185 = vmatmul.mubr.msk.bf16.vlgmr.msra.gmra.mxu1 %vm8605_vm15, %v18699_v60  ;;  %13188 = vmatmul.mubr.msk.bf16.vlgmr.msra.gmra.mxu0 %vm8605_vm15, %v18699_v60 }
 0x874   : > { %9749 = vmatpush1.bf16.msra.mxu1 %v18701_v21  ;;  %9812 = vmatpush1.bf16.msra.mxu0 %v18703_v56 }
 0x875   : > { %9750 = vmatprep.subr.bf16.mxu1 %v18705_v62  ;;  %9385 = vmatprep.mubr.bf16.mxu1 %v21460_v22 }
 0x876   : > { %9448 = vmatprep.mubr.bf16.mxu0 %v21460_v22  ;;  %9813 = vmatprep.subr.bf16.mxu0 %v18707_v3 }
 0x878   : > { %9751 = vmatpush1.bf16.msra.mxu1 %v18715_v50  ;;  %9814 = vmatpush1.bf16.msra.mxu0 %v18717_v49 }
 0x879   : > { %9752 = vmatprep.subr.bf16.mxu1 %v18721_v4  ;;  %9815 = vmatprep.subr.bf16.mxu0 %v18723_v41 }
 0x87b   : > { %13186 = vmatmul.mubr.msk.bf16.gmra.mxu1 %vm8605_vm15, %v18730_v29  ;;  %13189 = vmatmul.mubr.msk.bf16.gmra.mxu0 %vm8605_vm15, %v18730_v29 }
 0x87c   : > { %9753 = vmatpush1.bf16.msra.mxu1 %v18734_v25  ;;  %9395 = vmatprep.mubr.bf16.mxu1 %v21460_v22 }
 0x87d   : > { %9458 = vmatprep.mubr.bf16.mxu0 %v21460_v22  ;;  %9816 = vmatpush1.bf16.msra.mxu0 %v18737_v52 }
 0x87e   : > { %9754 = vmatprep.subr.bf16.mxu1 %v18740_v28  ;;  %9817 = vmatprep.subr.bf16.mxu0 %v18742_v33 }
 0x880   : > { %9755 = vmatpush1.bf16.msra.mxu1 %v18750_v0 }
 0x881   : > { %9818 = vmatpush1.bf16.msra.mxu0 %v18754_v48  ;;  %9874 = vmatprep.subr.bf16.mxu1 %v18756_v12 }
 0x882   : > { %9937 = vmatprep.subr.bf16.mxu0 %v18760_v53 }
 0x883   : > { %13187 = vmatmul.mubr.msk.bf16.gmra.mxu1 %vm8605_vm15, %v18765_v7  ;;  %13190 = vmatmul.mubr.msk.bf16.gmra.mxu0 %vm8605_vm15, %v18765_v7 }
 0x884   : > { %9772 = vmatprep.mubr.bf16.mxu1 %v21460_v22  ;;  %9835 = vmatprep.mubr.bf16.mxu0 %v21460_v22 }
 0x88b   : > { %13240 = vmatmul.mubr.msk.bf16.vlgmr.msra.gmra.mxu1 %vm8605_vm15, %v14013_v1  ;;  %13243 = vmatmul.mubr.msk.bf16.vlgmr.msra.gmra.mxu0 %vm8605_vm15, %v14013_v1 }
 0x88c   : > { %9782 = vmatprep.mubr.bf16.mxu1 %v21460_v22  ;;  %9845 = vmatprep.mubr.bf16.mxu0 %v21460_v22 }
 0x88d   : > { %9875 = vmatpush1.bf16.msra.mxu1 %v18777_v47  ;;  %9938 = vmatpush1.bf16.msra.mxu0 %v18779_v17 }
 0x88e   : > { %9876 = vmatprep.subr.bf16.mxu1 %v18781_v57  ;;  %9939 = vmatprep.subr.bf16.mxu0 %v18783_v40 }
 0x891   : > { %9877 = vmatpush1.bf16.msra.mxu1 %v18791_v30  ;;  %9940 = vmatpush1.bf16.msra.mxu0 %v18793_v9 }
 0x892   : > { %9878 = vmatprep.subr.bf16.mxu1 %v18797_v36  ;;  %9941 = vmatprep.subr.bf16.mxu0 %v18799_v45 }
 0x893   : > { %13241 = vmatmul.mubr.msk.bf16.gmra.mxu1 %vm8605_vm15, %v14014_v61  ;;  %13244 = vmatmul.mubr.msk.bf16.gmra.mxu0 %vm8605_vm15, %v14014_v61 }
 0x894   : > { %9792 = vmatprep.mubr.bf16.mxu1 %v21460_v22  ;;  %9855 = vmatprep.mubr.bf16.mxu0 %v21460_v22 }
 0x895   : > { %9879 = vmatpush1.bf16.msra.mxu1 %v18805_v15  ;;  %9942 = vmatpush1.bf16.msra.mxu0 %v18808_v20 }
 0x896   : > { %9880 = vmatprep.subr.bf16.mxu1 %v18811_v27  ;;  %9943 = vmatprep.subr.bf16.mxu0 %v18813_v14 }
 0x899   : > { %9881 = vmatpush1.bf16.msra.mxu1 %v18821_v58  ;;  %9944 = vmatpush1.bf16.msra.mxu0 %v18825_v24 }
 0x89a   : > { %10000 = vmatprep.subr.bf16.mxu1 %v14018_v38 }
 0x89b   : > { %13242 = vmatmul.mubr.msk.bf16.gmra.mxu1 %vm8605_vm15, %v14015_v26  ;;  %13245 = vmatmul.mubr.msk.bf16.gmra.mxu0 %vm8605_vm15, %v14015_v26 }
 0x89c   : > { %9898 = vmatprep.mubr.bf16.mxu1 %v21460_v22  ;;  %9961 = vmatprep.mubr.bf16.mxu0 %v21460_v22 }
 0x8a3   : > { %13246 = vmatmul.mubr.msk.bf16.vlgmr.msra.gmra.mxu1 %vm8605_vm15, %v14013_v1  ;;  %13249 = vmatmul.mubr.msk.bf16.vlgmr.msra.gmra.mxu0 %vm8605_vm15, %v14013_v1 }
 0x8a4   : > { %9908 = vmatprep.mubr.bf16.mxu1 %v21460_v22  ;;  %9971 = vmatprep.mubr.bf16.mxu0 %v21460_v22 }
 0x8a5   : > { %10001 = vmatpush1.bf16.msra.mxu1 %v14016_v11 }
 0x8a6   : > { %10002 = vmatprep.subr.bf16.mxu1 %v14021_v34 }
 0x8a9   : > { %10003 = vmatpush1.bf16.msra.mxu1 %v14019_v51 }
 0x8aa   : > { %10004 = vmatprep.subr.bf16.mxu1 %v14024_v16 }
 0x8ab   : > { %13247 = vmatmul.mubr.msk.bf16.gmra.mxu1 %vm8605_vm15, %v14014_v61  ;;  %13250 = vmatmul.mubr.msk.bf16.gmra.mxu0 %vm8605_vm15, %v14014_v61 }
 0x8ac   : > { %9918 = vmatprep.mubr.bf16.mxu1 %v21460_v22  ;;  %9981 = vmatprep.mubr.bf16.mxu0 %v21460_v22 }
 0x8ad   : > { %10005 = vmatpush1.bf16.msra.mxu1 %v14022_v54 }
 0x8ae   : > { %10006 = vmatprep.subr.bf16.mxu1 %v14027_v46 }
 0x8b1   : > { %10007 = vmatpush1.bf16.msra.mxu1 %v14025_v42 }
 0x8b3   : > { %13248 = vmatmul.mubr.msk.bf16.gmra.mxu1 %vm8605_vm15, %v14015_v26  ;;  %13251 = vmatmul.mubr.msk.bf16.gmra.mxu0 %vm8605_vm15, %v14015_v26 }
 0x8b4   : > { %10024 = vmatprep.mubr.bf16.mxu1 %v21460_v22 }
 0x8bb   : > { %13252 = vmatmul.mubr.msk.bf16.vlgmr.msra.gmra.mxu1 %vm8605_vm15, %v14013_v1 }
 0x8bc   : > { %10034 = vmatprep.mubr.bf16.mxu1 %v21460_v22 }
 0x8c3   : > { %13253 = vmatmul.mubr.msk.bf16.gmra.mxu1 %vm8605_vm15, %v14014_v61 }
 0x8c4   : > { %10044 = vmatprep.mubr.bf16.mxu1 %v21460_v22 }
 0x8cb   : > { %13254 = vmatmul.mubr.msk.bf16.gmra.mxu1 %vm8605_vm15, %v14015_v26 }
 0x8d3   : > { %v8649_v32 = vpop.f32.mrf.mxu1  ;;  %v18924_v6 = vpop.f32.mrf.mxu0 }
 0x8d5   : > { %v8651_v44 = vpop.f32.mrf.mxu1  ;;  %v18926_v63 = vpop.f32.mrf.mxu0 }
 0x8d7   : > { %v8653_v39 = vpop.f32.mrf.mxu1  ;;  %v18928_v23 = vpop.f32.mrf.mxu0 }
 0x8d9   : > { %v8655_v37 = vpop.f32.mrf.mxu1  ;;  %v18930_v2 = vpop.f32.mrf.mxu0 }
 0x8db   : > { %v8659_v13 = vpop.f32.mrf.mxu1  ;;  %v18932_v8 = vpop.f32.mrf.mxu0 }
 0x8dd   : > { %v8661_v5 = vpop.f32.mrf.mxu1  ;;  %v18934_v55 = vpop.f32.mrf.mxu0 }
 0x8df   : > { %v8663_v22 = vpop.f32.mrf.mxu1  ;;  %v18936_v19 = vpop.f32.mrf.mxu0 }
 0x8e1   : > { %v8665_v18 = vpop.f32.mrf.mxu1  ;;  %v18938_v35 = vpop.f32.mrf.mxu0 }
 0x8e3   : > { %v8669_v43 = vpop.f32.mrf.mxu1  ;;  %v18940_v31 = vpop.f32.mrf.mxu0 }
 0x8e5   : > { %v8671_v59 = vpop.f32.mrf.mxu1  ;;  %v18942_v10 = vpop.f32.mrf.mxu0 }
 0x8e7   : > { %v8673_v60 = vpop.f32.mrf.mxu1  ;;  %v18944_v21 = vpop.f32.mrf.mxu0 }
 0x8e9   : > { %v8675_v56 = vpop.f32.mrf.mxu1  ;;  %v18946_v62 = vpop.f32.mrf.mxu0 }
 0x8eb   : > { %v8775_v3 = vpop.f32.mrf.mxu1  ;;  %v18948_v50 = vpop.f32.mrf.mxu0 }
 0x8ec   : > { %21461 = vst [vmem:[#allocation149_spill] sm:$0xff] %v18948_v50 }
 0x8ed   : > { %v18950_v49 = vpop.f32.mrf.mxu1  ;;  %v18952_v4 = vpop.f32.mrf.mxu0 }
 0x8ee   : > { %21462 = vst [vmem:[#allocation125_spill] sm:$0xff] %v18952_v4 }
 0x8ef   : > { %v18954_v41 = vpop.f32.mrf.mxu1  ;;  %v18956_v29 = vpop.f32.mrf.mxu0 }
 0x8f0   : > { %21463 = vst [vmem:[#allocation151_spill] sm:$0xff] %v18956_v29 }
 0x8f1   : > { %v18958_v25 = vpop.f32.mrf.mxu1  ;;  %v18960_v52 = vpop.f32.mrf.mxu0 }
 0x8f2   : > { %21464 = vst [vmem:[#allocation58_spill] sm:$0xff] %v18960_v52 }
 0x8f3   : > { %v18962_v28 = vpop.f32.mrf.mxu1  ;;  %v18964_v33 = vpop.f32.mrf.mxu0 }
 0x8f5   : > { %v18966_v0 = vpop.f32.mrf.mxu1  ;;  %v18968_v48 = vpop.f32.mrf.mxu0 }
 0x8f7   : > { %v18970_v12 = vpop.f32.mrf.mxu1  ;;  %v18972_v53 = vpop.f32.mrf.mxu0 }
 0x8f8   : > { %21465 = vst [vmem:[#allocation153_spill] sm:$0xff] %v18972_v53 }
 0x8f9   : > { %v18974_v7 = vpop.f32.mrf.mxu1  ;;  %v18976_v47 = vpop.f32.mrf.mxu0 }
 0x8fa   : > { %21466 = vst [vmem:[#allocation98_spill] sm:$0xff] %v18976_v47 }
 0x8fb   : > { %v18978_v17 = vpop.f32.mrf.mxu1  ;;  %v18980_v57 = vpop.f32.mrf.mxu0 }
 0x8fc   : > { %21467 = vst [vmem:[#allocation42_spill] sm:$0xff] %v18980_v57 }
 0x8fd   : > { %v18982_v40 = vpop.f32.mrf.mxu1  ;;  %v18984_v30 = vpop.f32.mrf.mxu0 }
 0x8fe   : > { %21468 = vst [vmem:[#allocation113_spill] sm:$0xff] %v18984_v30 }
 0x8ff   : > { %v18986_v9 = vpop.f32.mrf.mxu1  ;;  %v18988_v36 = vpop.f32.mrf.mxu0 }
 0x900   : > { %21469 = vst [vmem:[#allocation44_spill] sm:$0xff] %v18988_v36 }
 0x901   : > { %v18990_v45 = vpop.f32.mrf.mxu1  ;;  %v18992_v15 = vpop.f32.mrf.mxu0 }
 0x902   : > { %21470 = vst [vmem:[#allocation61_spill] sm:$0xff] %v18992_v15 }
 0x903   : > { %v18994_v20 = vpop.f32.mrf.mxu1  ;;  %v9188_v27 = vpop.f32.mrf.mxu0 }
 0x904   : > { %v18996_v14 = vadd.f32 %v9188_v27, %v8649_v32 }
 0x905   : > { %v18998_v58 = vpop.f32.mrf.mxu1  ;;  %v9190_v24 = vpop.f32.mrf.mxu0 }
 0x906   : > { %v19000_v1 = vadd.f32 %v9190_v24, %v8651_v44 }
 0x907   : > { %v19002_v61 = vpop.f32.mrf.mxu1  ;;  %v9192_v38 = vpop.f32.mrf.mxu0 }
 0x908   : > { %v19004_v26 = vadd.f32 %v9192_v38, %v8653_v39 }
 0x909   : > { %v19006_v11 = vpop.f32.mrf.mxu1  ;;  %v9194_v34 = vpop.f32.mrf.mxu0 }
 0x90a   : > { %v19008_v51 = vadd.f32 %v9194_v34, %v8655_v37 }
 0x90b   : > { %v19010_v16 = vpop.f32.mrf.mxu1  ;;  %v9198_v54 = vpop.f32.mrf.mxu0 }
 0x90c   : > { %v19012_v46 = vadd.f32 %v9198_v54, %v8659_v13 }
 0x90d   : > { %v19014_v42 = vpop.f32.mrf.mxu1  ;;  %v9200_v32 = vpop.f32.mrf.mxu0 }
 0x90e   : > { %v19016_v44 = vadd.f32 %v9200_v32, %v8661_v5 }
 0x90f   : > { %v19018_v27 = vpop.f32.mrf.mxu1  ;;  %v9202_v24 = vpop.f32.mrf.mxu0 }
 0x910   : > { %v19020_v39 = vadd.f32 %v9202_v24, %v8663_v22 }
 0x911   : > { %v19022_v38 = vpop.f32.mrf.mxu1  ;;  %v9204_v15 = vpop.f32.mrf.mxu0 }
 0x912   : > { %v19024_v37 = vadd.f32 %v9204_v15, %v8665_v18 }
 0x913   : > { %v19026_v34 = vpop.f32.mrf.mxu1  ;;  %v9208_v30 = vpop.f32.mrf.mxu0 }
 0x914   : > { %v19028_v13 = vadd.f32 %v9208_v30, %v8669_v43 }
 0x915   : > { %v19030_v54 = vpop.f32.mrf.mxu1  ;;  %v9210_v36 = vpop.f32.mrf.mxu0 }
 0x916   : > { %v19032_v5 = vadd.f32 %v9210_v36, %v8671_v59 }
 0x917   : > { %v19034_v32 = vpop.f32.mrf.mxu1  ;;  %v9212_v57 = vpop.f32.mrf.mxu0 }
 0x918   : > { %v19036_v22 = vadd.f32 %v9212_v57, %v8673_v60 }
 0x919   : > { %v19038_v24 = vpop.f32.mrf.mxu1  ;;  %v9214_v52 = vpop.f32.mrf.mxu0 }
 0x91a   : > { %v19040_v18 = vadd.f32 %v9214_v52, %v8675_v56 }
 0x91b   : > { %v19042_v15 = vpop.f32.mrf.mxu1  ;;  %v9314_v4 = vpop.f32.mrf.mxu0 }
 0x91c   : > { %v19044_v43 = vadd.f32 %v9314_v4, %v8775_v3 }
 0x91d   : > { %v19046_v30 = vpop.f32.mrf.mxu1  ;;  %v9316_v29 = vpop.f32.mrf.mxu0 }
 0x91e   : > { %v19049_v59 = vadd.f32 %v9316_v29, %v18950_v49 }
 0x91f   : > { %v19051_v36 = vpop.f32.mrf.mxu1  ;;  %v9318_v60 = vpop.f32.mrf.mxu0 }
 0x920   : > { %21471 = vst [vmem:[#allocation31_spill] sm:$0xff] %v19049_v59  ;;  %v19054_v57 = vadd.f32 %v9318_v60, %v18954_v41 }
 0x921   : > { %v19056_v47 = vpop.f32.mrf.mxu1  ;;  %v9320_v56 = vpop.f32.mrf.mxu0 }
 0x922   : > { %21472 = vst [vmem:[#allocation75_spill] sm:$0xff] %v19054_v57  ;;  %v19059_v52 = vadd.f32 %v9320_v56, %v18958_v25 }
 0x923   : > { %v19061_v3 = vpop.f32.mrf.mxu1  ;;  %v9324_v4 = vpop.f32.mrf.mxu0 }
 0x924   : > { %21473 = vst [vmem:[#allocation59_spill] sm:$0xff] %v19059_v52  ;;  %v19064_v53 = vadd.f32 %v9324_v4, %v18962_v28 }
 0x925   : > { %v19066_v49 = vpop.f32.mrf.mxu1  ;;  %v9326_v29 = vpop.f32.mrf.mxu0 }
 0x926   : > { %v19069_v59 = vadd.f32 %v9326_v29, %v18966_v0 }
 0x927   : > { %v19071_v41 = vpop.f32.mrf.mxu1  ;;  %v9328_v60 = vpop.f32.mrf.mxu0 }
 0x928   : > { %21474 = vst [vmem:[#allocation73_spill] sm:$0xff] %v19069_v59  ;;  %v19074_v57 = vadd.f32 %v9328_v60, %v18970_v12 }
 0x929   : > { %v19076_v25 = vpop.f32.mrf.mxu1  ;;  %v9330_v56 = vpop.f32.mrf.mxu0 }
 0x92a   : > { %21475 = vst [vmem:[#allocation101_spill] sm:$0xff] %v19074_v57  ;;  %v19079_v52 = vadd.f32 %v9330_v56, %v18974_v7 }
 0x92b   : > { %v19081_v28 = vpop.f32.mrf.mxu1  ;;  %v9334_v4 = vpop.f32.mrf.mxu0 }
 0x92c   : > { %21476 = vst [vmem:[#allocation34_spill] sm:$0xff] %v19079_v52  ;;  %v19084_v50 = vadd.f32 %v9334_v4, %v18978_v17 }
 0x92d   : > { %v19086_v0 = vpop.f32.mrf.mxu1  ;;  %v9336_v29 = vpop.f32.mrf.mxu0 }
 0x92e   : > { %21477 = vst [vmem:[#allocation29_spill] sm:$0xff] %v19084_v50  ;;  %v19089_v59 = vadd.f32 %v9336_v29, %v18982_v40 }
 0x92f   : > { %v19091_v12 = vpop.f32.mrf.mxu1  ;;  %v9338_v60 = vpop.f32.mrf.mxu0 }
 0x930   : > { %21478 = vst [vmem:[#allocation56_spill] sm:$0xff] %v19089_v59  ;;  %v19094_v57 = vadd.f32 %v9338_v60, %v18986_v9 }
 0x931   : > { %v19096_v7 = vpop.f32.mrf.mxu1  ;;  %v9340_v56 = vpop.f32.mrf.mxu0 }
 0x932   : > { %21479 = vst [vmem:[#allocation104_spill] sm:$0xff] %v19094_v57  ;;  %v19099_v52 = vadd.f32 %v9340_v56, %v18990_v45 }
 0x933   : > { %v19101_v17 = vpop.f32.mrf.mxu1  ;;  %v9440_v4 = vpop.f32.mrf.mxu0 }
 0x934   : > { %21480 = vst [vmem:[#allocation133_spill] sm:$0xff] %v19099_v52  ;;  %v19104_v50 = vadd.f32 %v9440_v4, %v18994_v20 }
 0x935   : > { %v19106_v40 = vpop.f32.mrf.mxu1  ;;  %v9442_v29 = vpop.f32.mrf.mxu0 }
 0x936   : > { %21481 = vst [vmem:[#allocation35_spill] sm:$0xff] %v19104_v50  ;;  %v19109_v59 = vadd.f32 %v9442_v29, %v18998_v58 }
 0x937   : > { %v19111_v9 = vpop.f32.mrf.mxu1  ;;  %v9444_v60 = vpop.f32.mrf.mxu0 }
 0x938   : > { %21482 = vst [vmem:[#allocation144_spill] sm:$0xff] %v19109_v59  ;;  %v19114_v57 = vadd.f32 %v9444_v60, %v19002_v61 }
 0x939   : > { %v19116_v45 = vpop.f32.mrf.mxu1  ;;  %v9446_v56 = vpop.f32.mrf.mxu0 }
 0x93a   : > { %21483 = vst [vmem:[#allocation77_spill] sm:$0xff] %v19114_v57  ;;  %v19119_v52 = vadd.f32 %v9446_v56, %v19006_v11 }
 0x93b   : > { %v19121_v20 = vpop.f32.mrf.mxu1  ;;  %v9450_v4 = vpop.f32.mrf.mxu0 }
 0x93c   : > { %21484 = vst [vmem:[#allocation62_spill] sm:$0xff] %v19119_v52  ;;  %v19124_v50 = vadd.f32 %v9450_v4, %v19010_v16 }
 0x93d   : > { %v19126_v58 = vpop.f32.mrf.mxu1  ;;  %v9452_v29 = vpop.f32.mrf.mxu0 }
 0x93e   : > { %21485 = vst [vmem:[#allocation45_spill] sm:$0xff] %v19124_v50  ;;  %v19129_v59 = vadd.f32 %v9452_v29, %v19014_v42 }
 0x93f   : > { %v19131_v61 = vpop.f32.mrf.mxu1  ;;  %v9454_v60 = vpop.f32.mrf.mxu0 }
 0x940   : > { %21486 = vst [vmem:[#allocation78_spill] sm:$0xff] %v19129_v59  ;;  %v19134_v57 = vadd.f32 %v9454_v60, %v19018_v27 }
 0x941   : > { %v19136_v11 = vpop.f32.mrf.mxu1  ;;  %v9456_v56 = vpop.f32.mrf.mxu0 }
 0x942   : > { %21487 = vst [vmem:[#allocation129_spill] sm:$0xff] %v19134_v57  ;;  %v19139_v52 = vadd.f32 %v9456_v56, %v19022_v38 }
 0x943   : > { %v19141_v16 = vpop.f32.mrf.mxu1  ;;  %v9460_v4 = vpop.f32.mrf.mxu0 }
 0x944   : > { %21488 = vst [vmem:[#allocation147_spill] sm:$0xff] %v19139_v52  ;;  %21489 = vst [vmem:[#allocation32_spill] sm:$0xff] %v19141_v16  ;;  %v19144_v50 = vadd.f32 %v9460_v4, %v19026_v34 }
 0x945   : > { %v19146_v42 = vpop.f32.mrf.mxu1  ;;  %v9462_v29 = vpop.f32.mrf.mxu0 }
 0x946   : > { %21490 = vst [vmem:[#allocation116_spill] sm:$0xff] %v19144_v50  ;;  %21491 = vst [vmem:[#allocation128_spill] sm:$0xff] %v19146_v42  ;;  %v19149_v59 = vadd.f32 %v9462_v29, %v19030_v54  ;;  %v9252_v54 = vadd.f32 %v19042_v15, %v18924_v6  ;;  %v9262_v6 = vadd.f32 %v19061_v3, %v18932_v8 }
 0x947   : > { %v19151_v27 = vpop.f32.mrf.mxu1  ;;  %v9464_v60 = vpop.f32.mrf.mxu0  ;;  %v9266_v8 = vadd.f32 %v19071_v41, %v18936_v19 }
 0x948   : > { %v19154_v57 = vadd.f32 %v9464_v60, %v19034_v32 }
 0x949   : > { %v19156_v38 = vpop.f32.mrf.mxu1  ;;  %v9466_v56 = vpop.f32.mrf.mxu0 }
 0x94a   : > { %21492 = vst [vmem:[#allocation132_spill] sm:$0xff] %v19154_v57  ;;  %v19159_v52 = vadd.f32 %v9466_v56, %v19038_v24  ;;  %v9256_v57 = vadd.f32 %v19051_v36, %v18928_v23 }
 0x94b   : > { %v9774_v34 = vpop.f32.mrf.mxu1  ;;  %v9837_v4 = vpop.f32.mrf.mxu0 }
 0x94c   : > { %21493 = vst [vmem:[#allocation99_spill] sm:$0xff] %v19159_v52  ;;  %v10055_v50 = vadd.f32 %v9774_v34, %v18996_v14  ;;  %v10057_v24 = vadd.f32 %v9837_v4, %v9252_v54  ;;  %v9254_v14 = vadd.f32 %v19046_v30, %v18926_v63 }
 0x94d   : > { %v9776_v42 = vpop.f32.mrf.mxu1  ;;  %v9839_v16 = vpop.f32.mrf.mxu0 }
 0x94e   : > { %10115 = vrot.lane.b32.xlu0 %v10055_v50, %s14233_s25  ;;  %v10056_v32 = vadd.f32 %v9776_v42, %v19000_v1  ;;  %v9264_v42 = vadd.f32 %v19066_v49, %v18934_v55  ;;  %v10058_v23 = vadd.f32 %v9839_v16, %v9254_v14  ;;  %v9258_v55 = vadd.f32 %v19056_v47, %v18930_v2 }
 0x94f   : > { %v9778_v29 = vpop.f32.mrf.mxu1  ;;  %v9841_v60 = vpop.f32.mrf.mxu0  ;;  %v9268_v16 = vadd.f32 %v19076_v25, %v18938_v35 }
 0x950   : > { %10119 = vrot.lane.b32.xlu1 %v10056_v32, %s14233_s25  ;;  %v10067_v15 = vadd.f32 %v9841_v60, %v9256_v57  ;;  %v10065_v54 = vadd.f32 %v9778_v29, %v19004_v26  ;;  %v9272_v29 = vadd.f32 %v19081_v28, %v18940_v31 }
 0x951   : > { %v9780_v56 = vpop.f32.mrf.mxu1  ;;  %v9843_v52 = vpop.f32.mrf.mxu0 }
 0x952   : > { %10123 = vrot.lane.b32.xlu0 %v10057_v24, %s14233_s25  ;;  %v10066_v57 = vadd.f32 %v9780_v56, %v19008_v51  ;;  %v10068_v32 = vadd.f32 %v9843_v52, %v9258_v55 }
 0x953   : > { %v9784_v50 = vpop.f32.mrf.mxu1  ;;  %v9847_v1 = vpop.f32.mrf.mxu0 }
 0x954   : > { %v19177_v36 = vadd.f32 %v9784_v50, %v19012_v46  ;;  %v19179_v34 = vadd.f32 %v9847_v1, %v9262_v6  ;;  %10125 = vrot.lane.b32.xlu1 %v10067_v15, %s14233_s25  ;;  %v9276_v15 = vadd.f32 %v19091_v12, %v18944_v21 }
 0x955   : > { %v9786_v63 = vpop.f32.mrf.mxu1  ;;  %v9849_v30 = vpop.f32.mrf.mxu0 }
 0x956   : > { %v19186_v3 = vadd.f32 %v9786_v63, %v19016_v44  ;;  %v19188_v4 = vadd.f32 %v9849_v30, %v9264_v42  ;;  %10127 = vrot.lane.b32.xlu0 %v10058_v23, %s14233_s25  ;;  %v9274_v23 = vadd.f32 %v19086_v0, %v18942_v10  ;;  %v9390_v10 = vadd.f32 %v19126_v58, %v18968_v48 }
 0x957   : > { %v9788_v46 = vpop.f32.mrf.mxu1  ;;  %v9851_v49 = vpop.f32.mrf.mxu0 }
 0x958   : > { %v19197_v19 = vadd.f32 %v9788_v46, %v19020_v39  ;;  %v19199_v51 = vadd.f32 %v9851_v49, %v9266_v8  ;;  %10121 = vrot.lane.b32.xlu1 %v10066_v57, %s14233_s25  ;;  %v9388_v57 = vadd.f32 %v19121_v20, %v18964_v33 }
 0x959   : > { %v9790_v44 = vpop.f32.mrf.mxu1  ;;  %v9853_v41 = vpop.f32.mrf.mxu0 }
 0x95a   : > { %v19203_v60 = vadd.f32 %v9790_v44, %v19024_v37  ;;  %v19205_v2 = vadd.f32 %v9853_v41, %v9268_v16  ;;  %10117 = vrot.lane.b32.xlu0 %v10065_v54, %s14233_s25  ;;  %v21495_v54 = vld [vmem:[#allocation153_spill] sm:$0xff] }
 0x95b   : > { %v9794_v35 = vpop.f32.mrf.mxu1  ;;  %v9857_v47 = vpop.f32.mrf.mxu0  ;;  %v9392_v44 = vadd.f32 %v19131_v61, %v21495_v54  ;;  %v21496_v41 = vld [vmem:[#allocation73_spill] sm:$0xff] }
 0x95c   : > { %v10095_v26 = vadd.f32 %v9794_v35, %v19028_v13  ;;  %10129 = vrot.lane.b32.xlu1 %v10068_v32, %s14233_s25  ;;  %v10097_v24 = vadd.f32 %v9857_v47, %v9272_v29  ;;  %v21498_v47 = vld [vmem:[#allocation75_spill] sm:$0xff] }
 0x95d   : > { %v9796_v39 = vpop.f32.mrf.mxu1  ;;  %v9859_v25 = vpop.f32.mrf.mxu0 }
 0x95e   : > { %10195 = vrot.lane.b32.xlu0 %v10095_v26, %s14234_s28  ;;  %v10096_v31 = vadd.f32 %v9796_v39, %v19032_v5  ;;  %v10098_v12 = vadd.f32 %v9859_v25, %v9274_v23  ;;  %v9278_v5 = vadd.f32 %v19096_v7, %v18946_v62  ;;  %v21494_v62 = vld [vmem:[#allocation149_spill] sm:$0xff] }
 0x95f   : > { %v9798_v52 = vpop.f32.mrf.mxu1  ;;  %v9861_v37 = vpop.f32.mrf.mxu0  ;;  %v9378_v33 = vadd.f32 %v19101_v17, %v21494_v62  ;;  %v21499_v39 = vld [vmem:[#allocation101_spill] sm:$0xff]  ;;  %v21507_v62 = vld [vmem:[#allocation42_spill] sm:$0xff] }
 0x960   : > { %v10105_v56 = vadd.f32 %v9798_v52, %v19036_v22  ;;  %v10107_v28 = vadd.f32 %v9861_v37, %v9276_v15  ;;  %v21500_v37 = vld [vmem:[#allocation151_spill] sm:$0xff] }
 0x961   : > { %v9800_v14 = vpop.f32.mrf.mxu1  ;;  %v9863_v6 = vpop.f32.mrf.mxu0  ;;  %v21502_v15 = vld [vmem:[#allocation31_spill] sm:$0xff] }
 0x962   : > { %10197 = vrot.lane.b32.xlu1 %v10105_v56, %s14234_s28  ;;  %10203 = vrot.lane.b32.xlu0 %v10097_v24, %s14234_s28  ;;  %v10106_v63 = vadd.f32 %v9800_v14, %v19040_v18  ;;  %v10108_v46 = vadd.f32 %v9863_v6, %v9278_v5  ;;  %v9382_v24 = vadd.f32 %v19111_v9, %v21500_v37  ;;  %v21501_v56 = vld [vmem:[#allocation34_spill] sm:$0xff] }
 0x963   : > { %v9900_v13 = vpop.f32.mrf.mxu1  ;;  %v9963_v50 = vpop.f32.mrf.mxu0  ;;  %v21515_v37 = vld [vmem:[#allocation78_spill] sm:$0xff] }
 0x964   : > { %v10059_v18 = vadd.f32 %v9900_v13, %v19044_v43  ;;  %v10061_v17 = vadd.f32 %v9963_v50, %v9378_v33  ;;  %v21508_v33 = vld [vmem:[#allocation32_spill] sm:$0xff] }
 0x965   : > { %v9902_v1 = vpop.f32.mrf.mxu1  ;;  %v9965_v42 = vpop.f32.mrf.mxu0 }
 0x966   : > { %10205 = vrot.lane.b32.xlu1 %v10107_v28, %s14234_s28  ;;  %10199 = vrot.lane.b32.xlu0 %v10096_v31, %s14234_s28  ;;  %v10060_v13 = vadd.f32 %v9902_v1, %v21502_v15  ;;  %v21503_v28 = vld [vmem:[#allocation125_spill] sm:$0xff] }
 0x967   : > { %v9904_v22 = vpop.f32.mrf.mxu1  ;;  %v9967_v21 = vpop.f32.mrf.mxu0  ;;  %v9380_v23 = vadd.f32 %v19106_v40, %v21503_v28  ;;  %v21506_v40 = vld [vmem:[#allocation29_spill] sm:$0xff] }
 0x968   : > { %v10069_v26 = vadd.f32 %v9904_v22, %v21498_v47  ;;  %v10071_v50 = vadd.f32 %v9967_v21, %v9382_v24 }
 0x969   : > { %v9906_v30 = vpop.f32.mrf.mxu1  ;;  %v9969_v8 = vpop.f32.mrf.mxu0  ;;  %v10062_v22 = vadd.f32 %v9965_v42, %v9380_v23  ;;  %v9398_v42 = vadd.f32 %v21508_v33, %v21507_v62  ;;  %v21518_v23 = vld [vmem:[#allocation61_spill] sm:$0xff]  ;;  %v21525_v33 = vld [vmem:[#allocation116_spill] sm:$0xff] }
 0x96a   : > { %10201 = vrot.lane.b32.xlu1 %v10106_v63, %s14234_s28  ;;  %10207 = vrot.lane.b32.xlu0 %v10098_v12, %s14234_s28  ;;  %v21504_v12 = vld [vmem:[#allocation59_spill] sm:$0xff] }
 0x96b   : > { %v9910_v0 = vpop.f32.mrf.mxu1  ;;  %v9973_v55 = vpop.f32.mrf.mxu0  ;;  %v10070_v63 = vadd.f32 %v9906_v30, %v21504_v12 }
 0x96c   : > { %v19234_v49 = vadd.f32 %v9910_v0, %v19064_v53  ;;  %v19236_v16 = vadd.f32 %v9973_v55, %v9388_v57  ;;  %v21497_v53 = vld [vmem:[#allocation98_spill] sm:$0xff] }
 0x96d   : > { %v9912_v7 = vpop.f32.mrf.mxu1  ;;  %v9975_v20 = vpop.f32.mrf.mxu0  ;;  %v9394_v43 = vadd.f32 %v19136_v11, %v21497_v53 }
 0x96e   : > { %v19243_v48 = vadd.f32 %v9912_v7, %v21496_v41  ;;  %v19245_v58 = vadd.f32 %v9975_v20, %v9390_v10  ;;  %10209 = vrot.lane.b32.xlu1 %v10108_v46, %s14234_s28  ;;  %10131 = vrot.lane.b32.xlu0 %v10059_v18, %s14233_s25  ;;  %v21505_v10 = vld [vmem:[#allocation58_spill] sm:$0xff]  ;;  %v21510_v41 = vld [vmem:[#allocation44_spill] sm:$0xff] }
 0x96f   : > { %v9914_v32 = vpop.f32.mrf.mxu1  ;;  %v9977_v35 = vpop.f32.mrf.mxu0  ;;  %v9384_v0 = vadd.f32 %v19116_v45, %v21505_v10  ;;  %v21509_v45 = vld [vmem:[#allocation104_spill] sm:$0xff] }
 0x970   : > { %v19253_v25 = vadd.f32 %v9914_v32, %v21499_v39  ;;  %v19255_v61 = vadd.f32 %v9977_v35, %v9392_v44  ;;  %v21513_v39 = vld [vmem:[#allocation113_spill] sm:$0xff] }
 0x971   : > { %v9916_v29 = vpop.f32.mrf.mxu1  ;;  %v9979_v52 = vpop.f32.mrf.mxu0  ;;  %v10072_v21 = vadd.f32 %v9969_v8, %v9384_v0  ;;  %v9402_v8 = vadd.f32 %v19151_v27, %v21510_v41 }
 0x972   : > { %v19260_v14 = vadd.f32 %v9916_v29, %v21501_v56  ;;  %v19262_v6 = vadd.f32 %v9979_v52, %v9394_v43  ;;  %10133 = vrot.lane.b32.xlu1 %v10069_v26, %s14233_s25  ;;  %10139 = vrot.lane.b32.xlu0 %v10061_v17, %s14233_s25  ;;  %v21511_v43 = vld [vmem:[#allocation56_spill] sm:$0xff]  ;;  %v21512_v17 = vld [vmem:[#allocation45_spill] sm:$0xff] }
 0x973   : > { %v9920_v11 = vpop.f32.mrf.mxu1  ;;  %v9983_v5 = vpop.f32.mrf.mxu0  ;;  %v21514_v29 = vld [vmem:[#allocation128_spill] sm:$0xff] }
 0x974   : > { %v10099_v55 = vadd.f32 %v9920_v11, %v21506_v40  ;;  %v10101_v7 = vadd.f32 %v9983_v5, %v9398_v42  ;;  %v9400_v52 = vadd.f32 %v21514_v29, %v21513_v39  ;;  %v21516_v11 = vld [vmem:[#allocation133_spill] sm:$0xff]  ;;  %v21521_v5 = vld [vmem:[#allocation35_spill] sm:$0xff] }
 0x975   : > { %v9922_v31 = vpop.f32.mrf.mxu1  ;;  %v9985_v46 = vpop.f32.mrf.mxu0  ;;  %v21523_v40 = vld [vmem:[#allocation77_spill] sm:$0xff] }
 0x976   : > { %10141 = vrot.lane.b32.xlu1 %v10071_v50, %s14233_s25  ;;  %10135 = vrot.lane.b32.xlu0 %v10060_v13, %s14233_s25  ;;  %v10100_v32 = vadd.f32 %v9922_v31, %v21511_v43  ;;  %v10102_v56 = vadd.f32 %v9985_v46, %v9400_v52  ;;  %v21517_v13 = vld [vmem:[#allocation129_spill] sm:$0xff]  ;;  %v21524_v46 = vld [vmem:[#allocation62_spill] sm:$0xff] }
 0x977   : > { %v9924_v9 = vpop.f32.mrf.mxu1  ;;  %v9987_v54 = vpop.f32.mrf.mxu0  ;;  %v21528_v43 = vld [vmem:[#allocation81_spill] sm:$0xff] }
 0x978   : > { %v10109_v20 = vadd.f32 %v9924_v9, %v21509_v45  ;;  %v10111_v35 = vadd.f32 %v9987_v54, %v9402_v8  ;;  %v9404_v9 = vadd.f32 %v19156_v38, %v21518_v23  ;;  %v21526_v45 = vld [vmem:[#allocation132_spill] sm:$0xff]  ;;  %v21527_v54 = vld [vmem:[#allocation99_spill] sm:$0xff]  ;;  %vm21529_vm0 = vcmp.lt.s32.totalorder %v21528_v43, 1  ;;  %v21535_v23 = vld [vmem:[#allocation18_spill] sm:$0xff] }
 0x979   : > { %v9926_v57 = vpop.f32.mrf.mxu1  ;;  %v9989_v31 = vpop.f32.mrf.mxu0  ;;  %vm21531_vm1 = vmmov %vm21529_vm0  ;;  %vm21540_vm7 = vcmp.lt.s32.totalorder %v21528_v43, 127 }
 0x97a   : > { %10137 = vrot.lane.b32.xlu1 %v10070_v63, %s14233_s25  ;;  %10143 = vrot.lane.b32.xlu0 %v10062_v22, %s14233_s25  ;;  %v10110_v15 = vadd.f32 %v9926_v57, %v21516_v11  ;;  %v21519_v22 = vld [vmem:[#allocation147_spill] sm:$0xff]  ;;  %v10112_v63 = vadd.f32 %v9989_v31, %v9404_v9  ;;  %v21522_v57 = vld [vmem:[#allocation144_spill] sm:$0xff]  ;;  %vm21533_vm2 = vmmov %vm21529_vm0 }
 0x97b   : > { %v10026_v1 = vpop.f32.mrf.mxu1  ;;  %vm21534_vm3 = vmmov %vm21529_vm0 }
 0x97c   : > { %v10063_v10 = vadd.f32 %v10026_v1, %v21521_v5  ;;  %vm21536_vm4 = vmmov %vm21529_vm0 }
 0x97d   : > { %v10028_v18 = vpop.f32.mrf.mxu1  ;;  %vm21537_vm5 = vmmov %vm21529_vm0 }
 0x97e   : > { %10145 = vrot.lane.b32.xlu1 %v10072_v21, %s14233_s25  ;;  %10211 = vrot.lane.b32.xlu0 %v10099_v55, %s14234_s28  ;;  %v10064_v21 = vadd.f32 %v10028_v18, %v21522_v57  ;;  %vm21539_vm6 = vmmov %vm21529_vm0 }
 0x97f   : > { %v10030_v30 = vpop.f32.mrf.mxu1  ;;  %vm21541_vm8 = vmmov %vm21540_vm7 }
 0x980   : > { %v10073_v55 = vadd.f32 %v10030_v30, %v21523_v40  ;;  %v10315_v30 = vld [vmem:[%s20344_s10] sm:$0xff]  ;;  %vm21542_vm9 = vmmov %vm21540_vm7 }
 0x981   : > { %v10032_v44 = vpop.f32.mrf.mxu1  ;;  %vm21544_vm10 = vmmov %vm21540_vm7 }
 0x982   : > { %10213 = vrot.lane.b32.xlu1 %v10109_v20, %s14234_s28  ;;  %10219 = vrot.lane.b32.xlu0 %v10101_v7, %s14234_s28  ;;  %v10074_v62 = vadd.f32 %v10032_v44, %v21524_v46  ;;  %vm21545_vm11 = vmmov %vm21540_vm7 }
 0x983   : > { %v10036_v53 = vpop.f32.mrf.mxu1  ;;  %vm21546_vm12 = vmmov %vm21540_vm7 }
 0x984   : > { %v19288_v47 = vadd.f32 %v10036_v53, %v21512_v17  ;;  %vm21547_vm13 = vmmov %vm21529_vm0 }
 0x985   : > { %v10038_v26 = vpop.f32.mrf.mxu1  ;;  %vm21549_vm14 = vmmov %vm21529_vm0 }
 0x986   : > { %v19293_v24 = vadd.f32 %v10038_v26, %v21515_v37  ;;  %10221 = vrot.lane.b32.xlu1 %v10111_v35, %s14234_s28  ;;  %10215 = vrot.lane.b32.xlu0 %v10100_v32, %s14234_s28  ;;  %v21530_v35 = vld [vmem:[#allocation88_spill] sm:$0xff]  ;;  %v21532_v37 = vld [vmem:[#allocation19_spill] sm:$0xff]  ;;  %vm21551_vm15 = vmmov %vm21529_vm0 }
 0x987   : > { %v10040_v27 = vpop.f32.mrf.mxu1 }
 0x988   : > { %v19299_v50 = vadd.f32 %v10040_v27, %v21517_v13 }
 0x989   : > { %v10042_v28 = vpop.f32.mrf.mxu1 }
 0x98a   : > { %v19304_v12 = vadd.f32 %v10042_v28, %v21519_v22  ;;  %10217 = vrot.lane.b32.xlu1 %v10110_v15, %s14234_s28  ;;  %10223 = vrot.lane.b32.xlu0 %v10102_v56, %s14234_s28 }
 0x98b   : > { %v10046_v0 = vpop.f32.mrf.mxu1 }
 0x98c   : > { %21520 = vst [vmem:[#allocation141_spill] sm:$0xff] %v19304_v12  ;;  %v10103_v42 = vadd.f32 %v10046_v0, %v21525_v33 }
 0x98d   : > { %v10048_v38 = vpop.f32.mrf.mxu1 }
 0x98e   : > { %10225 = vrot.lane.b32.xlu1 %v10112_v63, %s14234_s28  ;;  %10147 = vrot.lane.b32.xlu0 %v10063_v10, %s14233_s25  ;;  %v10104_v1 = vadd.f32 %v10048_v38, %v19149_v59  ;;  %v10316_v59 = vld [vmem:[%s20344_s10 + $0x8] sm:$0xff] }
 0x98f   : > { %v10050_v7 = vpop.f32.mrf.mxu1 }
 0x990   : > { %v10113_v18 = vadd.f32 %v10050_v7, %v21526_v45 }
 0x991   : > { %v10052_v20 = vpop.f32.mrf.mxu1 }
 0x992   : > { %10149 = vrot.lane.b32.xlu1 %v10073_v55, %s14233_s25  ;;  %10151 = vrot.lane.b32.xlu0 %v10064_v21, %s14233_s25  ;;  %v10114_v44 = vadd.f32 %v10052_v20, %v21527_v54 }
 0x996   : > { %10153 = vrot.lane.b32.xlu1 %v10074_v62, %s14233_s25  ;;  %10227 = vrot.lane.b32.xlu0 %v10103_v42, %s14234_s28 }
 0x99a   : > { %10229 = vrot.lane.b32.xlu1 %v10113_v18, %s14234_s28  ;;  %10231 = vrot.lane.b32.xlu0 %v10104_v1, %s14234_s28 }
 0x99e   : > { %10233 = vrot.lane.b32.xlu1 %v10114_v44, %s14234_s28  ;;  %10319 = vperm.xlu0 %13885, %v10315_v30  }
 0x9a2   : > { %10324 = vperm.xlu1 %13886, %v10316_v59  }
 0x9c0   : > { %v19331_v41 = vpop.permute.xlu0 %10115 }
 0x9c2   : > { %v10120_v8 = vpop.permute.xlu1 %10119 }
 0x9c4   : > { %v10124_v53 = vpop.permute.xlu0 %10123 }
 0x9c5   : > { %v10169_v32 = vsel %vm21529_vm0, %v10120_v8, %v10124_v53 }
 0x9c6   : > { %v10177_v17 = vmul.f32 %v10169_v32, %v21530_v35  ;;  %v10126_v26 = vpop.permute.xlu1 %10125 }
 0x9c8   : > { %v19337_v39 = vadd.f32 %v10177_v17, %v19179_v34  ;;  %v10128_v29 = vpop.permute.xlu0 %10127 }
 0x9c9   : > { %v10167_v52 = vsel %vm21531_vm1, %v10124_v53, %v10128_v29  ;;  %vm21552_vm1 = vmmov %vm21529_vm0 }
 0x9ca   : > { %v10178_v27 = vmul.f32 %v10167_v52, %v21532_v37  ;;  %v10122_v56 = vpop.permute.xlu1 %10121 }
 0x9cb   : > { %v10170_v11 = vsel %vm21533_vm2, %v10122_v56, %v10126_v26  ;;  %vm21554_vm2 = vmmov %vm21529_vm0 }
 0x9cc   : > { %v19345_v15 = vadd.f32 %v10178_v27, %v19188_v4  ;;  %v10187_v13 = vmul.f32 %v10170_v11, %v21530_v35  ;;  %v19348_v31 = vpop.permute.xlu0 %10117 }
 0x9cd   : > { %v10172_v34 = vsel %vm21534_vm3, %v19348_v31, %v10122_v56  ;;  %vm21555_vm3 = vmmov %vm21529_vm0 }
 0x9ce   : > { %v19354_v28 = vadd.f32 %v10187_v13, %v19199_v51  ;;  %v10186_v9 = vmul.f32 %v10172_v34, %v21535_v23  ;;  %v10130_v22 = vpop.permute.xlu1 %10129 }
 0x9cf   : > { %v10168_v63 = vsel %vm21536_vm4, %v10126_v26, %v10130_v22  ;;  %vm21556_vm4 = vmmov %vm21540_vm7 }
 0x9d0   : > { %v10286_v4 = vadd.f32 %v10186_v9, %v19203_v60  ;;  %v10188_v5 = vmul.f32 %v10168_v63, %v21532_v37  ;;  %v19361_v10 = vpop.permute.xlu0 %10195  ;;  %v21538_v60 = vld [vmem:[#allocation9_spill] sm:$0xff] }
 0x9d2   : > { %v19364_v0 = vadd.f32 %v10188_v5, %v19205_v2 }
 0x9d4   : > { %v19366_v57 = vpop.permute.xlu1 %10197  ;;  %v10204_v21 = vpop.permute.xlu0 %10203 }
 0x9d8   : > { %v10206_v51 = vpop.permute.xlu1 %10205  ;;  %v10200_v40 = vpop.permute.xlu0 %10199 }
 0x9d9   : > { %v10251_v37 = vsel %vm21541_vm8, %v19361_v10, %v10200_v40  ;;  %vm21564_vm8 = vmmov %vm21556_vm4 }
 0x9dc   : > { %v10202_v55 = vpop.permute.xlu1 %10201  ;;  %v10208_v38 = vpop.permute.xlu0 %10207 }
 0x9dd   : > { %v10250_v27 = vsel %vm21542_vm9, %v10202_v55, %v10206_v51  ;;  %v10247_v34 = vsel %vm21544_vm10, %v10204_v21, %v10208_v38  ;;  %vm21566_vm9 = vmmov %vm21556_vm4 }
 0x9de   : > { %vm21567_vm10 = vmmov %vm21556_vm4 }
 0x9e0   : > { %v10210_v46 = vpop.permute.xlu1 %10209  ;;  %v10132_v62 = vpop.permute.xlu0 %10131 }
 0x9e1   : > { %v10165_v33 = vsel %vm21537_vm5, %v10128_v29, %v10132_v62  ;;  %v10249_v29 = vsel %vm21540_vm7, %v10200_v40, %v10204_v21  ;;  %v10248_v9 = vsel %vm21545_vm11, %v10206_v51, %v10210_v46  ;;  %v21548_v40 = vld [vmem:[#allocation40_spill] sm:$0xff]  ;;  %vm21558_vm5 = vmmov %vm21556_vm4 }
 0x9e2   : > { %v10179_v42 = vmul.f32 %v10165_v33, %v21538_v60  ;;  %v19411_v33 = vmul.f32 %v10251_v37, %v21548_v40  ;;  %vm21562_vm7 = vmmov %vm21529_vm0 }
 0x9e3   : > { %vm21568_vm11 = vmmov %vm21529_vm0 }
 0x9e4   : > { %v19372_v7 = vadd.f32 %v10179_v42, %v19234_v49  ;;  %v10134_v1 = vpop.permute.xlu1 %10133  ;;  %v10140_v2 = vpop.permute.xlu0 %10139  ;;  %v10171_v49 = vsel %vm21539_vm6, %v19331_v41, %v10120_v8  ;;  %v21543_v8 = vld [vmem:[#allocation90_spill] sm:$0xff]  ;;  %vm21559_vm6 = vmmov %vm21556_vm4 }
 0x9e5   : > { %v10176_v52 = vmul.f32 %v10171_v49, %v21535_v23  ;;  %v10256_v13 = vmul.f32 %v10249_v29, %v21543_v8  ;;  %v10252_v23 = vsel %vm21546_vm12, %v19366_v57, %v10202_v55  ;;  %v10166_v63 = vsel %vm21547_vm13, %v10130_v22, %v10134_v1  ;;  %v21550_v49 = vld [vmem:[#allocation21_spill] sm:$0xff]  ;;  %vm21570_vm12 = vmmov %vm21556_vm4 }
 0x9e6   : > { %v10266_v42 = vmul.f32 %v10250_v27, %v21543_v8  ;;  %v10257_v29 = vmul.f32 %v10247_v34, %v21550_v49  ;;  %v10267_v51 = vmul.f32 %v10248_v9, %v21550_v49  ;;  %v19425_v37 = vmul.f32 %v10252_v23, %v21548_v40  ;;  %v21553_v8 = vld [vmem:[#allocation10_spill] sm:$0xff]  ;;  %v21557_v23 = vld [vmem:[#allocation80_spill] sm:$0xff]  ;;  %v21560_v40 = vld [vmem:[#allocation13_spill] sm:$0xff] }
 0x9e7   : > { %v10276_v5 = vadd.f32 %v10176_v52, %v19186_v3  ;;  %v10189_v27 = vmul.f32 %v10166_v63, %v21538_v60  ;;  %v21561_v49 = vld [vmem:[#allocation83_spill] sm:$0xff]  ;;  %vm21571_vm13 = vmmov %vm21556_vm4 }
 0x9e8   : > { %v10142_v45 = vpop.permute.xlu1 %10141  ;;  %v10136_v18 = vpop.permute.xlu0 %10135  ;;  %v19439_v9 = vadd.f32 %v10286_v4, %v10266_v42 }
 0x9e9   : > { %v10163_v21 = vsel %vm21549_vm14, %v10132_v62, %v10136_v18  ;;  %v10161_v55 = vsel %vm21551_vm15, %v10136_v18, %v10140_v2  ;;  %v19422_v52 = vadd.f32 %v10276_v5, %v10256_v13  ;;  %v19446_v5 = vadd.f32 %v19337_v39, %v10257_v29  ;;  %vm21572_vm14 = vmmov %vm21529_vm0 }
 0x9ea   : > { %v10180_v34 = vmul.f32 %v10163_v21, %v21553_v8  ;;  %v10181_v60 = vmul.f32 %v10161_v55, %v21557_v23  ;;  %vm21573_vm15 = vmmov %vm21529_vm0 }
 0x9ec   : > { %v10138_v20 = vpop.permute.xlu1 %10137  ;;  %v19374_v30 = vpop.permute.xlu0 %10143  ;;  %v10280_v29 = vadd.f32 %v10180_v34, %v19243_v48 }
 0x9ed   : > { %v10164_v22 = vsel %vm21529_vm0, %v10134_v1, %v10138_v20  ;;  %v10162_v62 = vsel %vm21552_vm1, %v10138_v20, %v10142_v45  ;;  %v10159_v18 = vsel %vm21554_vm2, %v10140_v2, %v19374_v30  ;;  %v19449_v2 = vadd.f32 %v19354_v28, %v10267_v51  ;;  %vm21574_vm1 = vmmov %vm21529_vm0 }
 0x9ee   : > { %v10190_v63 = vmul.f32 %v10164_v22, %v21553_v8  ;;  %v10182_v42 = vmul.f32 %v10159_v18, %v21560_v40  ;;  %v10289_v28 = vadd.f32 %v10189_v27, %v19253_v25  ;;  %v21563_v22 = vld [vmem:[#allocation109_spill] sm:$0xff]  ;;  %vm21576_vm2 = vmmov %vm21556_vm4 }
 0x9f0   : > { %v19376_v54 = vpop.permute.xlu1 %10145  ;;  %v10212_v44 = vpop.permute.xlu0 %10211  ;;  %v10290_v8 = vadd.f32 %v10190_v63, %v19260_v14  ;;  %v10282_v14 = vadd.f32 %v10182_v42, %v19245_v58  ;;  %v21582_v42 = vld [vmem:[#allocation96_spill] sm:$0xff] }
 0x9f1   : > { %v10160_v1 = vsel %vm21555_vm3, %v10142_v45, %v19376_v54  ;;  %v10245_v13 = vsel %vm21556_vm4, %v10208_v38, %v10212_v44  ;;  %v10191_v45 = vmul.f32 %v10162_v62, %v21557_v23  ;;  %v10281_v62 = vadd.f32 %v10181_v60, %v19236_v16  ;;  %v21569_v60 = vld [vmem:[#allocation22_spill] sm:$0xff]  ;;  %vm21577_vm3 = vmmov %vm21576_vm2 }
 0x9f2   : > { %v10192_v21 = vmul.f32 %v10160_v1, %v21560_v40  ;;  %v10258_v55 = vmul.f32 %v10245_v13, %v21561_v49  ;;  %v21565_v1 = vld [vmem:[#allocation84_spill] sm:$0xff]  ;;  %vm21578_vm4 = vmmov %vm21576_vm2 }
 0x9f4   : > { %v10214_v59 = vpop.permute.xlu1 %10213  ;;  %v19378_v53 = vpop.permute.xlu0 %10219  ;;  %v10292_v34 = vadd.f32 %v10192_v21, %v19262_v6 }
 0x9f5   : > { %v10246_v20 = vsel %vm21558_vm5, %v10210_v46, %v10214_v59  ;;  %vm21579_vm5 = vmmov %vm21576_vm2 }
 0x9f6   : > { %v10268_v51 = vmul.f32 %v10246_v20, %v21561_v49  ;;  %v21583_v49 = vld [vmem:[#allocation110_spill] sm:$0xff] }
 0x9f8   : > { %v19380_v32 = vpop.permute.xlu1 %10221  ;;  %v10216_v35 = vpop.permute.xlu0 %10215  ;;  %v19484_v23 = vadd.f32 %v19364_v0, %v10268_v51  ;;  %v21584_v51 = vld [vmem:[#allocation38_spill] sm:$0xff] }
 0x9f9   : > { %v10243_v38 = vsel %vm21559_vm6, %v10212_v44, %v10216_v35  ;;  %v10241_v18 = vsel %vm21564_vm8, %v10216_v35, %v19378_v53  ;;  %v10298_v35 = vadd.f32 %v19345_v15, %v10258_v55  ;;  %vm21580_vm6 = vmmov %vm21576_vm2 }
 0x9fa   : > { %v10259_v13 = vmul.f32 %v10243_v38, %v21565_v1  ;;  %v10260_v63 = vmul.f32 %v10241_v18, %v21569_v60 }
 0x9fc   : > { %v10218_v17 = vpop.permute.xlu1 %10217  ;;  %v19385_v26 = vpop.permute.xlu0 %10223  ;;  %v10299_v6 = vadd.f32 %v19372_v7, %v10259_v13 }
 0x9fd   : > { %v10242_v48 = vsel %vm21566_vm9, %v10218_v17, %v19380_v32  ;;  %v10244_v25 = vsel %vm21567_vm10, %v10214_v59, %v10218_v17 }
 0x9fe   : > { %v10269_v15 = vmul.f32 %v10244_v25, %v21565_v1  ;;  %v21586_v1 = vld [vmem:[#allocation95_spill] sm:$0xff] }
 0xa00   : > { %v19395_v56 = vpop.permute.xlu1 %10225  ;;  %v19397_v11 = vpop.permute.xlu0 %10147 }
 0xa01   : > { %v10240_v58 = vsel %vm21571_vm13, %v19380_v32, %v19395_v56  ;;  %v10157_v0 = vsel %vm21572_vm14, %v19374_v30, %v19397_v11 }
 0xa04   : > { %v10150_v12 = vpop.permute.xlu1 %10149  ;;  %v10152_v3 = vpop.permute.xlu0 %10151 }
 0xa05   : > { %v10155_v32 = vsel %vm21529_vm0, %v19397_v11, %v10152_v3 }
 0xa08   : > { %v10154_v4 = vpop.permute.xlu1 %10153  ;;  %v10228_v46 = vpop.permute.xlu0 %10227 }
 0xa09   : > { %v10174_v39 = vsel %vm21562_vm7, %v10154_v4, %v19348_v31  ;;  %v10291_v31 = vadd.f32 %v10191_v45, %v19255_v61  ;;  %v10173_v61 = vsel %vm21568_vm11, %v10152_v3, %v19331_v41  ;;  %v10270_v41 = vmul.f32 %v10242_v48, %v21569_v60  ;;  %v21575_v45 = vld [vmem:[#allocation23_spill] sm:$0xff]  ;;  %vm21581_vm7 = vmmov %vm21576_vm2 }
 0xa0a   : > { %v10185_v44 = vmul.f32 %v10174_v39, %v21563_v22  ;;  %v10175_v7 = vmul.f32 %v10173_v61, %v21563_v22  ;;  %v10156_v17 = vsel %vm21574_vm1, %v10150_v12, %v10154_v4  ;;  %v10271_v40 = vmul.f32 %v10240_v58, %v21575_v45 }
 0xa0b   : > { %v10237_v30 = vsel %vm21576_vm2, %v19385_v26, %v10228_v46  ;;  %v10194_v55 = vmul.f32 %v10156_v17, %v21583_v49  ;;  %v10300_v39 = vadd.f32 %v10280_v29, %v10260_v63  ;;  %v19540_v48 = vadd.f32 %v10289_v28, %v10269_v15  ;;  %v21587_v63 = vld [vmem:[#allocation141_spill] sm:$0xff] }
 0xa0c   : > { %v10285_v27 = vadd.f32 %v10185_v44, %v19197_v19  ;;  %v10230_v16 = vpop.permute.xlu1 %10229  ;;  %v10239_v19 = vsel %vm21570_vm12, %v19378_v53, %v19385_v26  ;;  %v10232_v59 = vpop.permute.xlu0 %10231  ;;  %v10158_v53 = vsel %vm21573_vm15, %v19376_v54, %v10150_v12  ;;  %v10183_v26 = vmul.f32 %v10157_v0, %v21582_v42  ;;  %v21585_v44 = vld [vmem:[#allocation25_spill] sm:$0xff] }
 0xa0d   : > { %v10261_v38 = vmul.f32 %v10239_v19, %v21575_v45  ;;  %v10238_v54 = vsel %vm21577_vm3, %v19395_v56, %v10230_v16  ;;  %v10235_v11 = vsel %vm21578_vm4, %v10228_v46, %v10232_v59  ;;  %v10253_v12 = vsel %vm21579_vm5, %v10232_v59, %v19361_v10 }
 0xa0e   : > { %v10193_v21 = vmul.f32 %v10158_v53, %v21582_v42  ;;  %v10184_v56 = vmul.f32 %v10155_v32, %v21583_v49  ;;  %v10275_v46 = vadd.f32 %v10175_v7, %v19177_v36  ;;  %v10262_v10 = vmul.f32 %v10237_v30, %v21584_v51 }
 0xa0f   : > { %v10272_v22 = vmul.f32 %v10238_v54, %v21584_v51  ;;  %v10263_v18 = vmul.f32 %v10235_v11, %v21585_v44  ;;  %v10264_v43 = vmul.f32 %v10253_v12, %v21586_v1  ;;  %v19542_v25 = vadd.f32 %v10290_v8, %v10270_v41 }
 0xa10   : > { %v10234_v20 = vpop.permute.xlu1 %10233  ;;  %v19544_v29 = vadd.f32 %v10291_v31, %v10271_v40  ;;  %v10283_v36 = vadd.f32 %v10183_v26, %v19288_v47  ;;  %v10293_v61 = vadd.f32 %v10193_v21, %v19299_v50  ;;  %v10284_v60 = vadd.f32 %v10184_v56, %v19293_v24 }
 0xa11   : > { %v10236_v3 = vsel %vm21580_vm6, %v10230_v16, %v10234_v20  ;;  %v10254_v4 = vsel %vm21581_vm7, %v10234_v20, %v19366_v57  ;;  %v10301_v16 = vadd.f32 %v10281_v62, %v10261_v38  ;;  %v10294_v19 = vadd.f32 %v10194_v55, %v21587_v63 }
 0xa12   : > { %v10273_v57 = vmul.f32 %v10236_v3, %v21585_v44  ;;  %v10274_v13 = vmul.f32 %v10254_v4, %v21586_v1  ;;  %v10295_v58 = vadd.f32 %v10275_v46, %v19411_v33  ;;  %v10305_v0 = vadd.f32 %v10285_v27, %v19425_v37 }
 0xa13   : > { %v10302_v59 = vadd.f32 %v10282_v14, %v10262_v10  ;;  %v19552_v28 = vadd.f32 %v10292_v34, %v10272_v22  ;;  %v10303_v8 = vadd.f32 %v10283_v36, %v10263_v18  ;;  %v10304_v15 = vadd.f32 %v10284_v60, %v10264_v43 }
 0xa14   : > { %v10313_v62 = vadd.f32 %v10293_v61, %v10273_v57  ;;  %v10314_v31 = vadd.f32 %v10294_v19, %v10274_v13 }
 0xa19   : > { %v10320_v41 = vpop.permute.xlu0 %10319 }
 0xa1a   : > { %v10327_v53 = vadd.f32 %v10320_v41, %v10295_v58  ;;  %v10328_v47 = vadd.f32 %v10320_v41, %v19422_v52  ;;  %v10329_v50 = vadd.f32 %v10320_v41, %v19446_v5  ;;  %v10330_v24 = vadd.f32 %v10320_v41, %v10298_v35 }
 0xa1b   : > { %v10331_v32 = vadd.f32 %v10320_v41, %v10299_v6  ;;  %v10332_v7 = vadd.f32 %v10320_v41, %v10300_v39  ;;  %v10333_v17 = vadd.f32 %v10320_v41, %v10301_v16  ;;  %v10334_v33 = vadd.f32 %v10320_v41, %v10302_v59 }
 0xa1c   : > { %v10335_v20 = vadd.f32 %v10320_v41, %v10303_v8  ;;  %v10336_v37 = vadd.f32 %v10320_v41, %v10304_v15  ;;  %vm10347_vm8 = vcmp.gt.f32.partialorder %v10327_v53, 0.0  ;;  %vm10348_vm9 = vcmp.gt.f32.partialorder %v10328_v47, 0.0 }
 0xa1d   : > { %vm10349_vm10 = vcmp.gt.f32.partialorder %v10329_v50, 0.0  ;;  %vm10350_vm11 = vcmp.gt.f32.partialorder %v10330_v24, 0.0  ;;  %vm10351_vm12 = vcmp.gt.f32.partialorder %v10331_v32, 0.0  ;;  %vm10352_vm13 = vcmp.gt.f32.partialorder %v10332_v7, 0.0  ;;  %v10325_v27 = vpop.permute.xlu1 %10324 }
 0xa1e   : > { %vm10353_vm14 = vcmp.gt.f32.partialorder %v10333_v17, 0.0  ;;  %vm10354_vm15 = vcmp.gt.f32.partialorder %v10334_v33, 0.0  ;;  %vm10355_vm0 = vcmp.gt.f32.partialorder %v10335_v20, 0.0  ;;  %vm10356_vm1 = vcmp.gt.f32.partialorder %v10336_v37, 0.0 }
 0xa1f   : > { %v10367_v52 = vmul.f32 0.2, %v10327_v53  ;;  %v10368_v5 = vmul.f32 0.2, %v10328_v47  ;;  %v10369_v14 = vmul.f32 0.2, %v10329_v50  ;;  %v10337_v34 = vadd.f32 %v10325_v27, %v10305_v0 }
 0xa20   : > { %v10370_v35 = vmul.f32 0.2, %v10330_v24  ;;  %v10371_v6 = vmul.f32 0.2, %v10331_v32  ;;  %v10372_v45 = vmul.f32 0.2, %v10332_v7  ;;  %v10338_v38 = vadd.f32 %v10325_v27, %v19439_v9 }
 0xa21   : > { %v10373_v40 = vmul.f32 0.2, %v10333_v17  ;;  %v10374_v30 = vmul.f32 0.2, %v10334_v33  ;;  %v10375_v54 = vmul.f32 0.2, %v10335_v20  ;;  %v10387_v11 = vsel %vm10347_vm8, %v10327_v53, %v10367_v52 }
 0xa22   : > { %v10376_v12 = vmul.f32 0.2, %v10336_v37  ;;  %v10388_v3 = vsel %vm10348_vm9, %v10328_v47, %v10368_v5  ;;  %v10389_v4 = vsel %vm10349_vm10, %v10329_v50, %v10369_v14  ;;  %v10390_v42 = vsel %vm10350_vm11, %v10330_v24, %v10370_v35 }
 0xa23   : > { %v10391_v26 = vsel %vm10351_vm12, %v10331_v32, %v10371_v6  ;;  %v10392_v21 = vsel %vm10352_vm13, %v10332_v7, %v10372_v45  ;;  %v10393_v49 = vsel %vm10353_vm14, %v10333_v17, %v10373_v40  ;;  %v10394_v9 = vsel %vm10354_vm15, %v10334_v33, %v10374_v30 }
 0xa24   : > { %v10395_v56 = vsel %vm10355_vm0, %v10335_v20, %v10375_v54  ;;  %v10396_v55 = vsel %vm10356_vm1, %v10336_v37, %v10376_v12  ;;  %v13515_v39 = vpack.c.bf16 %v10388_v3, %v10387_v11  ;;  %v13516_v46 = vpack.c.bf16 %v10390_v42, %v10389_v4 }
 0xa25   : > { %v13517_v51 = vpack.c.bf16 %v10392_v21, %v10391_v26  ;;  %v13518_v10 = vpack.c.bf16 %v10394_v9, %v10393_v49  ;;  %v13519_v22 = vpack.c.bf16 %v10396_v55, %v10395_v56  ;;  %v10339_v44 = vadd.f32 %v10325_v27, %v19449_v2 }
 0xa26   : > { %10467 = vst [vmem:[#allocation2 + $0x250] sm:$0xff] %v13515_v39  ;;  %10468 = vst [vmem:[#allocation2 + $0x258] sm:$0xff] %v13516_v46  ;;  %v10340_v18 = vadd.f32 %v10325_v27, %v19484_v23  ;;  %v10341_v1 = vadd.f32 %v10325_v27, %v19540_v48  ;;  %v10342_v43 = vadd.f32 %v10325_v27, %v19542_v25  ;;  %vm10357_vm2 = vcmp.gt.f32.partialorder %v10337_v34, 0.0 }
 0xa27   : > { %v10343_v57 = vadd.f32 %v10325_v27, %v19544_v29  ;;  %10469 = vst [vmem:[#allocation2 + $0x260] sm:$0xff] %v13517_v51  ;;  %10470 = vst [vmem:[#allocation2 + $0x268] sm:$0xff] %v13518_v10  ;;  %v10344_v13 = vadd.f32 %v10325_v27, %v19552_v28  ;;  %v10345_v16 = vadd.f32 %v10325_v27, %v10313_v62  ;;  %vm10358_vm3 = vcmp.gt.f32.partialorder %v10338_v38, 0.0 }
 0xa28   : > { %10471 = vst [vmem:[#allocation2 + $0x270] sm:$0xff] %v13519_v22  ;;  %v10346_v36 = vadd.f32 %v10325_v27, %v10314_v31  ;;  %vm10359_vm4 = vcmp.gt.f32.partialorder %v10339_v44, 0.0  ;;  %vm10360_vm5 = vcmp.gt.f32.partialorder %v10340_v18, 0.0  ;;  %vm10361_vm6 = vcmp.gt.f32.partialorder %v10341_v1, 0.0 }
 0xa29   : > { %vm10362_vm7 = vcmp.gt.f32.partialorder %v10342_v43, 0.0  ;;  %vm10363_vm8 = vcmp.gt.f32.partialorder %v10343_v57, 0.0  ;;  %vm10364_vm9 = vcmp.gt.f32.partialorder %v10344_v13, 0.0  ;;  %vm10365_vm10 = vcmp.gt.f32.partialorder %v10345_v16, 0.0 }
 0xa2a   : > { %vm10366_vm11 = vcmp.gt.f32.partialorder %v10346_v36, 0.0  ;;  %v10377_v2 = vmul.f32 0.2, %v10337_v34  ;;  %v10378_v23 = vmul.f32 0.2, %v10338_v38 }
 0xa2b   : > { %v10379_v48 = vmul.f32 0.2, %v10339_v44  ;;  %v10380_v25 = vmul.f32 0.2, %v10340_v18  ;;  %v10381_v29 = vmul.f32 0.2, %v10341_v1 }
 0xa2c   : > { %v10382_v61 = vmul.f32 0.2, %v10342_v43  ;;  %v10383_v60 = vmul.f32 0.2, %v10343_v57  ;;  %v10384_v63 = vmul.f32 0.2, %v10344_v13  ;;  %v10397_v19 = vsel %vm10357_vm2, %v10337_v34, %v10377_v2 }
 0xa2d   : > { %v10385_v58 = vmul.f32 0.2, %v10345_v16  ;;  %v10386_v0 = vmul.f32 0.2, %v10346_v36  ;;  %v10398_v59 = vsel %vm10358_vm3, %v10338_v38, %v10378_v23  ;;  %v10399_v28 = vsel %vm10359_vm4, %v10339_v44, %v10379_v48 }
 0xa2e   : > { %v10400_v8 = vsel %vm10360_vm5, %v10340_v18, %v10380_v25  ;;  %v10401_v15 = vsel %vm10361_vm6, %v10341_v1, %v10381_v29  ;;  %v10402_v62 = vsel %vm10362_vm7, %v10342_v43, %v10382_v61  ;;  %v10403_v31 = vsel %vm10363_vm8, %v10343_v57, %v10383_v60 }
 0xa2f   : > { %v10404_v41 = vsel %vm10364_vm9, %v10344_v13, %v10384_v63  ;;  %v10405_v53 = vsel %vm10365_vm10, %v10345_v16, %v10385_v58  ;;  %v10406_v47 = vsel %vm10366_vm11, %v10346_v36, %v10386_v0  ;;  %v13520_v50 = vpack.c.bf16 %v10398_v59, %v10397_v19  ;;  %10479 = sbr.rel (%p12504_p10) target bundleno = 2614 (0xa36), region = 112 }
 0xa30   : > { %v13521_v24 = vpack.c.bf16 %v10400_v8, %v10399_v28  ;;  %v13522_v32 = vpack.c.bf16 %v10402_v62, %v10401_v15  ;;  %v13523_v7 = vpack.c.bf16 %v10404_v41, %v10403_v31  ;;  %v13524_v17 = vpack.c.bf16 %v10406_v47, %v10405_v53 }
 0xa31   : > { %10472 = vst [vmem:[#allocation2 + $0x298] sm:$0xff] %v13520_v50 }
 0xa32   : > { %10473 = vst [vmem:[#allocation2 + $0x2a0] sm:$0xff] %v13521_v24  ;;  %10474 = vst [vmem:[#allocation2 + $0x2a8] sm:$0xff] %v13522_v32 }
 0xa33   : > { %10475 = vst [vmem:[#allocation2 + $0x2b0] sm:$0xff] %v13523_v7  ;;  %10476 = vst [vmem:[#allocation2 + $0x2b8] sm:$0xff] %v13524_v17 }
 0xa34   : > { %v14241_v33 = vmov 0  }
 0xa35   : > { %10480 = vst [vmem:[#allocation2 + $0x250] sm:$0xf] %v14241_v33  ;;  %10481 = vst [vmem:[#allocation2 + $0x298] sm:$0xf] %v14241_v33 }
 0xa36 PF: > { %10484 = sbr.rel (%p12516_p12) target bundleno = 2621 (0xa3d), region = 116 }
 0xa3b   : > { %v14242_v20 = vmov 0  }
 0xa3c   : > { %10485 = vst [vmem:[#allocation2 + $0x274] sm:$0xf] %v14242_v20  ;;  %10486 = vst [vmem:[#allocation2 + $0x2bc] sm:$0xf] %v14242_v20 }
 0xa3d PF: > { %v14030_v37 = vld [vmem:[#allocation2 + $0x258] ss:$72 sps:$4 sm:$0xff]   ;;  %v21588_v27 = vmov 0   ;;  %v14034_v5 = vld [vmem:[#allocation2 + $0x254] ss:$72 sps:$4 sm:$0xff]   ;;  %vm10795_vm12 = vcmask 654336  }
 0xa3e   : > { %10837 = vmatprep.mubr.bf16.mxu0 %v21588_v27  ;;  %10900 = vmatprep.mubr.bf16.mxu1 %v21588_v27  ;;  %v14032_v52 = vld [vmem:[#allocation2 + $0x260] ss:$72 sps:$4 sm:$0xff]   ;;  %v14035_v14 = vld [vmem:[#allocation2 + $0x25c] ss:$72 sps:$4 sm:$0xff]   ;;  %v14038_v35 = vld [vmem:[#allocation2 + $0x1d0] ss:$72 sps:$4 sm:$0xff]  }
 0xa3f   : > { %14028 = vset.pattern.permute.xlu0 %v21588_v27  ;;  %14029 = vset.pattern.permute.xlu1 %v21588_v27  ;;  %v14036_v34 = vld [vmem:[#allocation2 + $0x1c8] ss:$72 sps:$4 sm:$0xff]   ;;  %v14040_v6 = vld [vmem:[#allocation2 + $0x1c4] ss:$72 sps:$4 sm:$0xff]   ;;  %v14042_v38 = vld [vmem:[#allocation2 + $0x138] ss:$72 sps:$4 sm:$0xff]  }
 0xa40   : > { %10811 = vmatprep.subr.bf16.mxu0 %v14030_v37  ;;  %10874 = vmatprep.subr.bf16.mxu1 %v14032_v52  ;;  %v14041_v45 = vld [vmem:[#allocation2 + $0x1cc] ss:$72 sps:$4 sm:$0xff]   ;;  %v14044_v40 = vld [vmem:[#allocation2 + $0x140] ss:$72 sps:$4 sm:$0xff]   ;;  %v14047_v54 = vld [vmem:[#allocation2 + $0x13c] ss:$72 sps:$4 sm:$0xff]  }
 0xa41   : > { %10812 = vmatpush1.bf16.msra.mxu0 %v14034_v5  ;;  %10875 = vmatpush1.bf16.msra.mxu1 %v14035_v14  ;;  %v14046_v30 = vld [vmem:[#allocation2 + $0x134] ss:$72 sps:$4 sm:$0xff]   ;;  %v14048_v11 = vld [vmem:[#allocation2 + $0xa8] ss:$72 sps:$4 sm:$0xff]   ;;  %v14052_v3 = vld [vmem:[#allocation2 + $0xa4] ss:$72 sps:$4 sm:$0xff]  }
 0xa42   : > { %10813 = vmatprep.subr.bf16.mxu0 %v14036_v34  ;;  %10876 = vmatprep.subr.bf16.mxu1 %v14038_v35  ;;  %v14050_v12 = vld [vmem:[#allocation2 + $0xb0] ss:$72 sps:$4 sm:$0xff]   ;;  %v14053_v4 = vld [vmem:[#allocation2 + $0xac] ss:$72 sps:$4 sm:$0xff]   ;;  %v14056_v26 = vld [vmem:[#allocation2 + $0x20] ss:$72 sps:$4 sm:$0xff]  }
 0xa43   : > { %v14054_v42 = vld [vmem:[#allocation2 + $0x18] ss:$72 sps:$4 sm:$0xff]   ;;  %v14058_v21 = vld [vmem:[#allocation2 + $0x14] ss:$72 sps:$4 sm:$0xff]   ;;  %v14063_v9 = vld [vmem:[#allocation2 + $0x268] ss:$72 sps:$4 sm:$0xff]  }
 0xa44   : > { %v14059_v49 = vld [vmem:[#allocation2 + $0x1c] ss:$72 sps:$4 sm:$0xff]   ;;  %v14066_v56 = vld [vmem:[#allocation2 + $0x270] ss:$72 sps:$4 sm:$0xff]   ;;  %v14064_v46 = vld [vmem:[#allocation2 + $0x26c] ss:$72 sps:$4 sm:$0xff]  }
 0xa45   : > { %10814 = vmatpush1.bf16.msra.mxu0 %v14040_v6  ;;  %10877 = vmatpush1.bf16.msra.mxu1 %v14041_v45  ;;  %v19594_v55 = vld [vmem:[%s20340_s6 + $0x18] sm:$0xff]   ;;  %v14061_v39 = vld [vmem:[#allocation2 + $0x264] ss:$72 sps:$4 sm:$0xff]   ;;  %v14073_v10 = vld [vmem:[#allocation2 + $0x1e0] ss:$72 sps:$4 sm:$0xff]  }
 0xa46   : > { %10815 = vmatprep.subr.bf16.mxu0 %v14042_v38  ;;  %10878 = vmatprep.subr.bf16.mxu1 %v14044_v40  ;;  %v14069_v51 = vld [vmem:[#allocation2 + $0x1d8] ss:$72 sps:$4 sm:$0xff]   ;;  %v14067_v22 = vld [vmem:[#allocation2 + $0x1d4] ss:$72 sps:$4 sm:$0xff]   ;;  %v14076_v18 = vld [vmem:[#allocation2 + $0x148] ss:$72 sps:$4 sm:$0xff]  }
 0xa47   : > { %v14071_v44 = vld [vmem:[#allocation2 + $0x1dc] ss:$72 sps:$4 sm:$0xff]   ;;  %v14079_v1 = vld [vmem:[#allocation2 + $0x150] ss:$72 sps:$4 sm:$0xff]   ;;  %v14077_v13 = vld [vmem:[#allocation2 + $0x14c] ss:$72 sps:$4 sm:$0xff]  }
 0xa48   : > { %v19605_v43 = vld [vmem:[%s20340_s6 + $0x20] sm:$0xff]   ;;  %v14080_v2 = vld [vmem:[#allocation2 + $0xb4] ss:$72 sps:$4 sm:$0xff]   ;;  %v14089_v48 = vld [vmem:[#allocation2 + $0x28] ss:$72 sps:$4 sm:$0xff]  }
 0xa49   : > { %10816 = vmatpush1.bf16.msra.mxu0 %v14046_v30  ;;  %10879 = vmatpush1.bf16.msra.mxu1 %v14047_v54  ;;  %v14074_v57 = vld [vmem:[#allocation2 + $0x144] ss:$72 sps:$4 sm:$0xff]   ;;  %v14082_v16 = vld [vmem:[#allocation2 + $0xb8] ss:$72 sps:$4 sm:$0xff]   ;;  %v14095_v63 = vld [vmem:[#allocation2 + $0x254] ss:$72 sps:$4 sm:$0xff]  }
 0xa4a   : > { %10817 = vmatprep.subr.bf16.mxu0 %v14048_v11  ;;  %10880 = vmatprep.subr.bf16.mxu1 %v14050_v12  ;;  %v14086_v36 = vld [vmem:[#allocation2 + $0xc0] ss:$72 sps:$4 sm:$0xff]   ;;  %v14084_v23 = vld [vmem:[#allocation2 + $0xbc] ss:$72 sps:$4 sm:$0xff]   ;;  %v14092_v25 = vld [vmem:[#allocation2 + $0x30] ss:$72 sps:$4 sm:$0xff]  }
 0xa4b   : > { %v19616_v29 = vld [vmem:[%s20340_s6 + $0x28] sm:$0xff]   ;;  %v19618_v19 = vld [vmem:[#allocation2 + $0x25c] ss:$72 sps:$4 sm:$0xff]   ;;  %v14093_v58 = vld [vmem:[#allocation2 + $0x250] ss:$72 sps:$4 sm:$0xff]  }
 0xa4c   : > { %v14087_v61 = vld [vmem:[#allocation2 + $0x24] ss:$72 sps:$4 sm:$0xff]   ;;  %v19627_v0 = vld [vmem:[#allocation2 + $0x258] ss:$72 sps:$4 sm:$0xff]   ;;  %v19635_v15 = vld [vmem:[#allocation2 + $0x1c8] ss:$72 sps:$4 sm:$0xff]  }
 0xa4d   : > { %10818 = vmatpush1.bf16.msra.mxu0 %v14052_v3  ;;  %10881 = vmatpush1.bf16.msra.mxu1 %v14053_v4  ;;  %v14090_v60 = vld [vmem:[#allocation2 + $0x2c] ss:$72 sps:$4 sm:$0xff]   ;;  %v14099_v8 = vld [vmem:[#allocation2 + $0x1c0] ss:$72 sps:$4 sm:$0xff]   ;;  %v19639_v31 = vld [vmem:[#allocation2 + $0x13c] ss:$72 sps:$4 sm:$0xff]  }
 0xa4e   : > { %10819 = vmatprep.subr.bf16.mxu0 %v14054_v42  ;;  %10882 = vmatprep.subr.bf16.mxu1 %v14056_v26  ;;  %v14101_v59 = vld [vmem:[#allocation2 + $0x1c4] ss:$72 sps:$4 sm:$0xff]   ;;  %v14107_v62 = vld [vmem:[#allocation2 + $0x134] ss:$72 sps:$4 sm:$0xff]   ;;  %v14105_v41 = vld [vmem:[#allocation2 + $0x130] ss:$72 sps:$4 sm:$0xff]  }
 0xa4f   : > { %v19629_v28 = vld [vmem:[#allocation2 + $0x1cc] ss:$72 sps:$4 sm:$0xff]   ;;  %v19644_v53 = vld [vmem:[#allocation2 + $0x138] ss:$72 sps:$4 sm:$0xff]   ;;  %v19654_v32 = vld [vmem:[#allocation2 + $0xa8] ss:$72 sps:$4 sm:$0xff]  }
 0xa50   : > { %v14113_v47 = vld [vmem:[#allocation2 + $0xa4] ss:$72 sps:$4 sm:$0xff]   ;;  %v14111_v24 = vld [vmem:[#allocation2 + $0xa0] ss:$72 sps:$4 sm:$0xff]   ;;  %v14119_v7 = vld [vmem:[#allocation2 + $0x14] ss:$72 sps:$4 sm:$0xff]  }
 0xa51   : > { %10820 = vmatpush1.bf16.msra.mxu0 %v14058_v21  ;;  %10883 = vmatpush1.bf16.msra.mxu1 %v14059_v49  ;;  %v19647_v50 = vld [vmem:[#allocation2 + $0xac] ss:$72 sps:$4 sm:$0xff]   ;;  %v19658_v17 = vld [vmem:[#allocation2 + $0x1c] ss:$72 sps:$4 sm:$0xff]   ;;  %v14117_v33 = vld [vmem:[#allocation2 + $0x10] ss:$72 sps:$4 sm:$0xff]  }
 0xa52   : > { %10937 = vmatprep.subr.bf16.mxu0 %v14063_v9  ;;  %11000 = vmatprep.subr.bf16.mxu1 %v14066_v56  ;;  %v19662_v20 = vld [vmem:[#allocation2 + $0x18] ss:$72 sps:$4 sm:$0xff]   ;;  %v14126_v37 = vld [vmem:[#allocation2 + $0x264] ss:$72 sps:$4 sm:$0xff]   ;;  %v19678_v34 = vld [vmem:[#allocation2 + $0x268] ss:$72 sps:$4 sm:$0xff]  }
 0xa53   : > { %v19665_v52 = vld [vmem:[#allocation2 + $0x26c] ss:$72 sps:$4 sm:$0xff]   ;;  %v14123_v5 = vld [vmem:[%s20340_s6] sm:$0xff]   ;;  %v14130_v45 = vld [vmem:[#allocation2 + $0x1d0] ss:$72 sps:$4 sm:$0xff]  }
 0xa54   : > { %13316 = vmatmul.mubr.msk.bf16.vlgmr.msra.gmra.mxu0 %vm10795_vm12, %v19594_v55  ;;  %13319 = vmatmul.mubr.msk.bf16.vlgmr.msra.gmra.mxu1 %vm10795_vm12, %v19594_v55  ;;  %v14124_v14 = vld [vmem:[#allocation2 + $0x260] ss:$72 sps:$4 sm:$0xff]   ;;  %v14132_v35 = vld [vmem:[#allocation2 + $0x1d4] ss:$72 sps:$4 sm:$0xff]   ;;  %v14139_v40 = vld [vmem:[#allocation2 + $0x144] ss:$72 sps:$4 sm:$0xff]  }
 0xa55   : > { %10938 = vmatpush1.bf16.msra.mxu0 %v14061_v39  ;;  %11001 = vmatpush1.bf16.msra.mxu1 %v14064_v46  ;;  %v19680_v6 = vld [vmem:[#allocation2 + $0x1dc] ss:$72 sps:$4 sm:$0xff]   ;;  %v19685_v38 = vld [vmem:[#allocation2 + $0x1d8] ss:$72 sps:$4 sm:$0xff]   ;;  %v19688_v30 = vld [vmem:[#allocation2 + $0x14c] ss:$72 sps:$4 sm:$0xff]  }
 0xa56   : > { %10939 = vmatprep.subr.bf16.mxu0 %v14069_v51  ;;  %10847 = vmatprep.mubr.bf16.mxu0 %v21588_v27  ;;  %v14133_v54 = vld [vmem:[%s20340_s6 + $0x8] sm:$0xff]   ;;  %v14145_v3 = vld [vmem:[#allocation2 + $0xb4] ss:$72 sps:$4 sm:$0xff]   ;;  %v14143_v42 = vld [vmem:[#allocation2 + $0xb0] ss:$72 sps:$4 sm:$0xff]  }
 0xa57   : > { %10910 = vmatprep.mubr.bf16.mxu1 %v21588_v27  ;;  %11002 = vmatprep.subr.bf16.mxu1 %v14073_v10  ;;  %v14137_v11 = vld [vmem:[#allocation2 + $0x140] ss:$72 sps:$4 sm:$0xff]   ;;  %v19699_v4 = vld [vmem:[#allocation2 + $0xbc] ss:$72 sps:$4 sm:$0xff]   ;;  %v19708_v49 = vld [vmem:[#allocation2 + $0x2c] ss:$72 sps:$4 sm:$0xff]  }
 0xa58   : > { %v19696_v12 = vld [vmem:[#allocation2 + $0x148] ss:$72 sps:$4 sm:$0xff]   ;;  %v19704_v26 = vld [vmem:[#allocation2 + $0xb8] ss:$72 sps:$4 sm:$0xff]   ;;  %v14152_v21 = vld [vmem:[#allocation2 + $0x24] ss:$72 sps:$4 sm:$0xff]  }
 0xa59   : > { %10940 = vmatpush1.bf16.msra.mxu0 %v14067_v22  ;;  %11003 = vmatpush1.bf16.msra.mxu1 %v14071_v44  ;;  %v14146_v9 = vld [vmem:[%s20340_s6 + $0x10] sm:$0xff]   ;;  %v14150_v56 = vld [vmem:[#allocation2 + $0x20] ss:$72 sps:$4 sm:$0xff]   ;;  %v14163_v10 = vld [vmem:[#allocation2 + $0x1e4] ss:$72 sps:$4 sm:$0xff]  }
 0xa5a   : > { %10941 = vmatprep.subr.bf16.mxu0 %v14076_v18  ;;  %11004 = vmatprep.subr.bf16.mxu1 %v14079_v1  ;;  %v14159_v39 = vld [vmem:[#allocation2 + $0x274] ss:$72 sps:$4 sm:$0xff]   ;;  %v14157_v51 = vld [vmem:[#allocation2 + $0x270] ss:$72 sps:$4 sm:$0xff]   ;;  %v14161_v22 = vld [vmem:[#allocation2 + $0x1e0] ss:$72 sps:$4 sm:$0xff]  }
 0xa5b   : > { %v14156_v46 = vld [vmem:[%s20340_s6 + $0x30] sm:$0xff]   ;;  %v14160_v18 = vld [vmem:[%s20340_s6 + $0x38] sm:$0xff]  }
 0xa5c   : > { %13317 = vmatmul.mubr.msk.bf16.gmra.mxu0 %vm10795_vm12, %v19605_v43  ;;  %13320 = vmatmul.mubr.msk.bf16.gmra.mxu1 %vm10795_vm12, %v19605_v43  ;;  %v14166_v44 = vld [vmem:[#allocation2 + $0x154] ss:$72 sps:$4 sm:$0xff]   ;;  %v14164_v1 = vld [vmem:[#allocation2 + $0x150] ss:$72 sps:$4 sm:$0xff]  }
 0xa5d   : > { %10942 = vmatpush1.bf16.msra.mxu0 %v14074_v57  ;;  %11005 = vmatpush1.bf16.msra.mxu1 %v14077_v13  ;;  %v14168_v57 = vld [vmem:[#allocation2 + $0xc0] ss:$72 sps:$4 sm:$0xff]   ;;  %v14173_v13 = vld [vmem:[#allocation2 + $0x34] ss:$72 sps:$4 sm:$0xff]  }
 0xa5e   : > { %10857 = vmatprep.mubr.bf16.mxu0 %v21588_v27  ;;  %10920 = vmatprep.mubr.bf16.mxu1 %v21588_v27 }
 0xa5f   : > { %10943 = vmatprep.subr.bf16.mxu0 %v14082_v16  ;;  %11006 = vmatprep.subr.bf16.mxu1 %v14086_v36  ;;  %v14167_v16 = vld [vmem:[%s20340_s6 + $0x40] sm:$0xff]   ;;  %v14171_v36 = vld [vmem:[#allocation2 + $0x30] ss:$72 sps:$4 sm:$0xff]  }
 0xa61   : > { %10944 = vmatpush1.bf16.msra.mxu0 %v14080_v2  ;;  %11007 = vmatpush1.bf16.msra.mxu1 %v14084_v23 }
 0xa62   : > { %10945 = vmatprep.subr.bf16.mxu0 %v14089_v48  ;;  %11008 = vmatprep.subr.bf16.mxu1 %v14092_v25 }
 0xa64   : > { %13318 = vmatmul.mubr.msk.bf16.gmra.mxu0 %vm10795_vm12, %v19616_v29  ;;  %13321 = vmatmul.mubr.msk.bf16.gmra.mxu1 %vm10795_vm12, %v19616_v29 }
 0xa65   : > { %10946 = vmatpush1.bf16.msra.mxu0 %v14087_v61  ;;  %11009 = vmatpush1.bf16.msra.mxu1 %v14090_v60 }
 0xa66   : > { %10963 = vmatprep.mubr.bf16.mxu0 %v21588_v27  ;;  %11026 = vmatprep.mubr.bf16.mxu1 %v21588_v27 }
 0xa67   : > { %11287 = vmatprep.subr.bf16.mxu0 %v14095_v63  ;;  %11350 = vmatprep.subr.bf16.mxu1 %v19618_v19 }
 0xa6c   : > { %13322 = vmatmul.mubr.msk.bf16.vlgmr.msra.gmra.mxu0 %vm10795_vm12, %v19594_v55  ;;  %13325 = vmatmul.mubr.msk.bf16.vlgmr.msra.gmra.mxu1 %vm10795_vm12, %v19594_v55  ;;  %v19715_v55 = vld [vmem:[#allocation2 + $0x28] ss:$72 sps:$4 sm:$0xff]  }
 0xa6d   : > { %11288 = vmatpush1.bf16.msra.mxu0 %v14093_v58  ;;  %11351 = vmatpush1.bf16.msra.mxu1 %v19627_v0 }
 0xa6e   : > { %11289 = vmatprep.subr.bf16.mxu0 %v14101_v59  ;;  %10973 = vmatprep.mubr.bf16.mxu0 %v21588_v27 }
 0xa6f   : > { %11036 = vmatprep.mubr.bf16.mxu1 %v21588_v27  ;;  %11352 = vmatprep.subr.bf16.mxu1 %v19629_v28 }
 0xa71   : > { %11290 = vmatpush1.bf16.msra.mxu0 %v14099_v8  ;;  %11353 = vmatpush1.bf16.msra.mxu1 %v19635_v15 }
 0xa72   : > { %11291 = vmatprep.subr.bf16.mxu0 %v14107_v62  ;;  %11354 = vmatprep.subr.bf16.mxu1 %v19639_v31 }
 0xa74   : > { %13323 = vmatmul.mubr.msk.bf16.gmra.mxu0 %vm10795_vm12, %v19605_v43  ;;  %13326 = vmatmul.mubr.msk.bf16.gmra.mxu1 %vm10795_vm12, %v19605_v43  ;;  %v14170_v43 = vld [vmem:[#allocation2 + $0xc4] ss:$72 sps:$4 sm:$0xff]  }
 0xa75   : > { %11292 = vmatpush1.bf16.msra.mxu0 %v14105_v41  ;;  %11355 = vmatpush1.bf16.msra.mxu1 %v19644_v53 }
 0xa76   : > { %10983 = vmatprep.mubr.bf16.mxu0 %v21588_v27  ;;  %11046 = vmatprep.mubr.bf16.mxu1 %v21588_v27 }
 0xa77   : > { %11293 = vmatprep.subr.bf16.mxu0 %v14113_v47  ;;  %11356 = vmatprep.subr.bf16.mxu1 %v19647_v50 }
 0xa79   : > { %11294 = vmatpush1.bf16.msra.mxu0 %v14111_v24  ;;  %11357 = vmatpush1.bf16.msra.mxu1 %v19654_v32 }
 0xa7a   : > { %11295 = vmatprep.subr.bf16.mxu0 %v14119_v7  ;;  %11358 = vmatprep.subr.bf16.mxu1 %v19658_v17 }
 0xa7c   : > { %13324 = vmatmul.mubr.msk.bf16.gmra.mxu0 %vm10795_vm12, %v19616_v29  ;;  %13327 = vmatmul.mubr.msk.bf16.gmra.mxu1 %vm10795_vm12, %v19616_v29 }
 0xa7d   : > { %11296 = vmatpush1.bf16.msra.mxu0 %v14117_v33  ;;  %11359 = vmatpush1.bf16.msra.mxu1 %v19662_v20 }
 0xa7e   : > { %11313 = vmatprep.mubr.bf16.mxu0 %v21588_v27  ;;  %11376 = vmatprep.mubr.bf16.mxu1 %v21588_v27 }
 0xa7f   : > { %11413 = vmatprep.subr.bf16.mxu0 %v14126_v37  ;;  %11476 = vmatprep.subr.bf16.mxu1 %v19665_v52 }
 0xa84   : > { %13371 = vmatmul.mubr.msk.bf16.vlgmr.msra.gmra.mxu0 %vm10795_vm12, %v14123_v5  ;;  %13374 = vmatmul.mubr.msk.bf16.vlgmr.msra.gmra.mxu1 %vm10795_vm12, %v14123_v5 }
 0xa85   : > { %11414 = vmatpush1.bf16.msra.mxu0 %v14124_v14  ;;  %11477 = vmatpush1.bf16.msra.mxu1 %v19678_v34 }
 0xa86   : > { %11415 = vmatprep.subr.bf16.mxu0 %v14132_v35  ;;  %11323 = vmatprep.mubr.bf16.mxu0 %v21588_v27 }
 0xa87   : > { %11386 = vmatprep.mubr.bf16.mxu1 %v21588_v27  ;;  %11478 = vmatprep.subr.bf16.mxu1 %v19680_v6 }
 0xa89   : > { %11416 = vmatpush1.bf16.msra.mxu0 %v14130_v45  ;;  %11479 = vmatpush1.bf16.msra.mxu1 %v19685_v38 }
 0xa8a   : > { %11417 = vmatprep.subr.bf16.mxu0 %v14139_v40  ;;  %11480 = vmatprep.subr.bf16.mxu1 %v19688_v30 }
 0xa8c   : > { %13372 = vmatmul.mubr.msk.bf16.gmra.mxu0 %vm10795_vm12, %v14133_v54  ;;  %13375 = vmatmul.mubr.msk.bf16.gmra.mxu1 %vm10795_vm12, %v14133_v54 }
 0xa8d   : > { %11418 = vmatpush1.bf16.msra.mxu0 %v14137_v11  ;;  %11481 = vmatpush1.bf16.msra.mxu1 %v19696_v12 }
 0xa8e   : > { %11333 = vmatprep.mubr.bf16.mxu0 %v21588_v27  ;;  %11396 = vmatprep.mubr.bf16.mxu1 %v21588_v27 }
 0xa8f   : > { %11419 = vmatprep.subr.bf16.mxu0 %v14145_v3  ;;  %11482 = vmatprep.subr.bf16.mxu1 %v19699_v4 }
 0xa91   : > { %11420 = vmatpush1.bf16.msra.mxu0 %v14143_v42  ;;  %11483 = vmatpush1.bf16.msra.mxu1 %v19704_v26 }
 0xa92   : > { %11421 = vmatprep.subr.bf16.mxu0 %v14152_v21  ;;  %11484 = vmatprep.subr.bf16.mxu1 %v19708_v49 }
 0xa94   : > { %13373 = vmatmul.mubr.msk.bf16.gmra.mxu0 %vm10795_vm12, %v14146_v9  ;;  %13376 = vmatmul.mubr.msk.bf16.gmra.mxu1 %vm10795_vm12, %v14146_v9 }
 0xa95   : > { %11422 = vmatpush1.bf16.msra.mxu0 %v14150_v56  ;;  %11485 = vmatpush1.bf16.msra.mxu1 %v19715_v55 }
 0xa96   : > { %11439 = vmatprep.mubr.bf16.mxu0 %v21588_v27  ;;  %11502 = vmatprep.mubr.bf16.mxu1 %v21588_v27 }
 0xa97   : > { %11810 = vmatprep.subr.bf16.mxu0 %v19618_v19  ;;  %11873 = vmatprep.subr.bf16.mxu1 %v14126_v37 }
 0xa9c   : > { %13377 = vmatmul.mubr.msk.bf16.vlgmr.msra.gmra.mxu0 %vm10795_vm12, %v14123_v5  ;;  %13380 = vmatmul.mubr.msk.bf16.vlgmr.msra.gmra.mxu1 %vm10795_vm12, %v14123_v5 }
 0xa9d   : > { %11811 = vmatpush1.bf16.msra.mxu0 %v19627_v0  ;;  %11874 = vmatpush1.bf16.msra.mxu1 %v14124_v14 }
 0xa9e   : > { %11812 = vmatprep.subr.bf16.mxu0 %v19629_v28  ;;  %11449 = vmatprep.mubr.bf16.mxu0 %v21588_v27 }
 0xa9f   : > { %11512 = vmatprep.mubr.bf16.mxu1 %v21588_v27  ;;  %11875 = vmatprep.subr.bf16.mxu1 %v14132_v35 }
 0xaa1   : > { %11813 = vmatpush1.bf16.msra.mxu0 %v19635_v15  ;;  %11876 = vmatpush1.bf16.msra.mxu1 %v14130_v45 }
 0xaa2   : > { %11814 = vmatprep.subr.bf16.mxu0 %v19639_v31  ;;  %11877 = vmatprep.subr.bf16.mxu1 %v14139_v40 }
 0xaa4   : > { %13378 = vmatmul.mubr.msk.bf16.gmra.mxu0 %vm10795_vm12, %v14133_v54  ;;  %13381 = vmatmul.mubr.msk.bf16.gmra.mxu1 %vm10795_vm12, %v14133_v54 }
 0xaa5   : > { %11815 = vmatpush1.bf16.msra.mxu0 %v19644_v53  ;;  %11878 = vmatpush1.bf16.msra.mxu1 %v14137_v11 }
 0xaa6   : > { %11459 = vmatprep.mubr.bf16.mxu0 %v21588_v27  ;;  %11522 = vmatprep.mubr.bf16.mxu1 %v21588_v27 }
 0xaa7   : > { %11816 = vmatprep.subr.bf16.mxu0 %v19647_v50  ;;  %11879 = vmatprep.subr.bf16.mxu1 %v14145_v3 }
 0xaa9   : > { %11817 = vmatpush1.bf16.msra.mxu0 %v19654_v32  ;;  %11880 = vmatpush1.bf16.msra.mxu1 %v14143_v42 }
 0xaaa   : > { %11818 = vmatprep.subr.bf16.mxu0 %v19658_v17  ;;  %11881 = vmatprep.subr.bf16.mxu1 %v14152_v21 }
 0xaac   : > { %13379 = vmatmul.mubr.msk.bf16.gmra.mxu0 %vm10795_vm12, %v14146_v9  ;;  %13382 = vmatmul.mubr.msk.bf16.gmra.mxu1 %vm10795_vm12, %v14146_v9 }
 0xaad   : > { %11819 = vmatpush1.bf16.msra.mxu0 %v19662_v20  ;;  %11882 = vmatpush1.bf16.msra.mxu1 %v14150_v56 }
 0xaae   : > { %11836 = vmatprep.mubr.bf16.mxu0 %v21588_v27  ;;  %11899 = vmatprep.mubr.bf16.mxu1 %v21588_v27 }
 0xaaf   : > { %11936 = vmatprep.subr.bf16.mxu0 %v19665_v52  ;;  %11999 = vmatprep.subr.bf16.mxu1 %v14159_v39 }
 0xab4   : > { %13432 = vmatmul.mubr.msk.bf16.vlgmr.msra.gmra.mxu0 %vm10795_vm12, %v14156_v46  ;;  %13435 = vmatmul.mubr.msk.bf16.vlgmr.msra.gmra.mxu1 %vm10795_vm12, %v14156_v46 }
 0xab5   : > { %11937 = vmatpush1.bf16.msra.mxu0 %v19678_v34  ;;  %12000 = vmatpush1.bf16.msra.mxu1 %v14157_v51 }
 0xab6   : > { %11846 = vmatprep.mubr.bf16.mxu0 %v21588_v27  ;;  %11909 = vmatprep.mubr.bf16.mxu1 %v21588_v27 }
 0xab7   : > { %11938 = vmatprep.subr.bf16.mxu0 %v19680_v6  ;;  %12001 = vmatprep.subr.bf16.mxu1 %v14163_v10 }
 0xab9   : > { %11939 = vmatpush1.bf16.msra.mxu0 %v19685_v38  ;;  %12002 = vmatpush1.bf16.msra.mxu1 %v14161_v22 }
 0xaba   : > { %11940 = vmatprep.subr.bf16.mxu0 %v19688_v30  ;;  %12003 = vmatprep.subr.bf16.mxu1 %v14166_v44 }
 0xabc   : > { %13433 = vmatmul.mubr.msk.bf16.gmra.mxu0 %vm10795_vm12, %v14160_v18  ;;  %13436 = vmatmul.mubr.msk.bf16.gmra.mxu1 %vm10795_vm12, %v14160_v18 }
 0xabd   : > { %11941 = vmatpush1.bf16.msra.mxu0 %v19696_v12  ;;  %12004 = vmatpush1.bf16.msra.mxu1 %v14164_v1 }
 0xabe   : > { %11856 = vmatprep.mubr.bf16.mxu0 %v21588_v27  ;;  %11919 = vmatprep.mubr.bf16.mxu1 %v21588_v27 }
 0xabf   : > { %11942 = vmatprep.subr.bf16.mxu0 %v19699_v4  ;;  %12005 = vmatprep.subr.bf16.mxu1 %v14170_v43 }
 0xac1   : > { %11943 = vmatpush1.bf16.msra.mxu0 %v19704_v26  ;;  %12006 = vmatpush1.bf16.msra.mxu1 %v14168_v57 }
 0xac2   : > { %11944 = vmatprep.subr.bf16.mxu0 %v19708_v49  ;;  %12007 = vmatprep.subr.bf16.mxu1 %v14173_v13 }
 0xac4   : > { %13434 = vmatmul.mubr.msk.bf16.gmra.mxu0 %vm10795_vm12, %v14167_v16  ;;  %13437 = vmatmul.mubr.msk.bf16.gmra.mxu1 %vm10795_vm12, %v14167_v16 }
 0xac5   : > { %11945 = vmatpush1.bf16.msra.mxu0 %v19715_v55  ;;  %12008 = vmatpush1.bf16.msra.mxu1 %v14171_v36 }
 0xac6   : > { %11962 = vmatprep.mubr.bf16.mxu0 %v21588_v27  ;;  %12025 = vmatprep.mubr.bf16.mxu1 %v21588_v27 }
 0xacc   : > { %13438 = vmatmul.mubr.msk.bf16.vlgmr.msra.gmra.mxu0 %vm10795_vm12, %v14156_v46  ;;  %13441 = vmatmul.mubr.msk.bf16.vlgmr.msra.gmra.mxu1 %vm10795_vm12, %v14156_v46 }
 0xacd   : > { %11972 = vmatprep.mubr.bf16.mxu0 %v21588_v27  ;;  %12035 = vmatprep.mubr.bf16.mxu1 %v21588_v27 }
 0xad4   : > { %13439 = vmatmul.mubr.msk.bf16.gmra.mxu0 %vm10795_vm12, %v14160_v18  ;;  %13442 = vmatmul.mubr.msk.bf16.gmra.mxu1 %vm10795_vm12, %v14160_v18 }
 0xad5   : > { %11982 = vmatprep.mubr.bf16.mxu0 %v21588_v27  ;;  %12045 = vmatprep.mubr.bf16.mxu1 %v21588_v27 }
 0xadc   : > { %13440 = vmatmul.mubr.msk.bf16.gmra.mxu0 %vm10795_vm12, %v14167_v16  ;;  %13443 = vmatmul.mubr.msk.bf16.gmra.mxu1 %vm10795_vm12, %v14167_v16 }
 0xb14   : > { %v19786_v2 = vpop.f32.mrf.mxu0  ;;  %v19788_v23 = vpop.f32.mrf.mxu1 }
 0xb16   : > { %v19790_v48 = vpop.f32.mrf.mxu0  ;;  %v19792_v25 = vpop.f32.mrf.mxu1 }
 0xb18   : > { %v19794_v29 = vpop.f32.mrf.mxu0  ;;  %v19796_v61 = vpop.f32.mrf.mxu1 }
 0xb1a   : > { %v19798_v60 = vpop.f32.mrf.mxu0  ;;  %v19800_v63 = vpop.f32.mrf.mxu1 }
 0xb1c   : > { %v10849_v27 = vpop.f32.mrf.mxu0  ;;  %v10912_v19 = vpop.f32.mrf.mxu1 }
 0xb1e   : > { %v10851_v58 = vpop.f32.mrf.mxu0  ;;  %v10914_v0 = vpop.f32.mrf.mxu1 }
 0xb20   : > { %v10853_v59 = vpop.f32.mrf.mxu0  ;;  %v10916_v28 = vpop.f32.mrf.mxu1 }
 0xb22   : > { %v10855_v8 = vpop.f32.mrf.mxu0  ;;  %v10918_v15 = vpop.f32.mrf.mxu1 }
 0xb24   : > { %v19802_v62 = vpop.f32.mrf.mxu0  ;;  %v19804_v31 = vpop.f32.mrf.mxu1 }
 0xb26   : > { %v19806_v41 = vpop.f32.mrf.mxu0  ;;  %v19808_v53 = vpop.f32.mrf.mxu1 }
 0xb28   : > { %v19810_v47 = vpop.f32.mrf.mxu0  ;;  %v19812_v50 = vpop.f32.mrf.mxu1 }
 0xb2a   : > { %v19814_v24 = vpop.f32.mrf.mxu0  ;;  %v19816_v32 = vpop.f32.mrf.mxu1 }
 0xb2c   : > { %v19818_v7 = vpop.f32.mrf.mxu0  ;;  %v19820_v17 = vpop.f32.mrf.mxu1 }
 0xb2d   : > { %21589 = vst [vmem:[#allocation74_spill] sm:$0xff] %v19820_v17 }
 0xb2e   : > { %v19822_v33 = vpop.f32.mrf.mxu0  ;;  %v19824_v20 = vpop.f32.mrf.mxu1 }
 0xb2f   : > { %21590 = vst [vmem:[#allocation64_spill] sm:$0xff] %v19822_v33  ;;  %21591 = vst [vmem:[#allocation30_spill] sm:$0xff] %v19824_v20 }
 0xb30   : > { %v19826_v37 = vpop.f32.mrf.mxu0  ;;  %v19828_v52 = vpop.f32.mrf.mxu1 }
 0xb31   : > { %21592 = vst [vmem:[#allocation91_spill] sm:$0xff] %v19826_v37  ;;  %21593 = vst [vmem:[#allocation114_spill] sm:$0xff] %v19828_v52 }
 0xb32   : > { %v19830_v5 = vpop.f32.mrf.mxu0  ;;  %v19832_v14 = vpop.f32.mrf.mxu1 }
 0xb33   : > { %21594 = vst [vmem:[#allocation67_spill] sm:$0xff] %v19830_v5  ;;  %21595 = vst [vmem:[#allocation76_spill] sm:$0xff] %v19832_v14 }
 0xb34   : > { %v10975_v34 = vpop.f32.mrf.mxu0  ;;  %v11038_v35 = vpop.f32.mrf.mxu1 }
 0xb36   : > { %v10977_v6 = vpop.f32.mrf.mxu0  ;;  %v11040_v45 = vpop.f32.mrf.mxu1 }
 0xb38   : > { %v10979_v38 = vpop.f32.mrf.mxu0  ;;  %v11042_v40 = vpop.f32.mrf.mxu1 }
 0xb3a   : > { %v19834_v30 = vpop.f32.mrf.mxu0  ;;  %v19836_v54 = vpop.f32.mrf.mxu1 }
 0xb3c   : > { %v19838_v11 = vpop.f32.mrf.mxu0  ;;  %v19840_v12 = vpop.f32.mrf.mxu1 }
 0xb3d   : > { %21596 = vst [vmem:[#allocation140_spill] sm:$0xff] %v19838_v11  ;;  %21597 = vst [vmem:[#allocation70_spill] sm:$0xff] %v19840_v12 }
 0xb3e   : > { %v19842_v3 = vpop.f32.mrf.mxu0  ;;  %v19844_v4 = vpop.f32.mrf.mxu1 }
 0xb3f   : > { %21598 = vst [vmem:[#allocation24_spill] sm:$0xff] %v19842_v3  ;;  %21599 = vst [vmem:[#allocation102_spill] sm:$0xff] %v19844_v4 }
 0xb40   : > { %v19846_v42 = vpop.f32.mrf.mxu0  ;;  %v19848_v26 = vpop.f32.mrf.mxu1 }
 0xb41   : > { %21600 = vst [vmem:[#allocation46_spill] sm:$0xff] %v19846_v42  ;;  %21601 = vst [vmem:[#allocation57_spill] sm:$0xff] %v19848_v26 }
 0xb42   : > { %v19850_v21 = vpop.f32.mrf.mxu0  ;;  %v19852_v49 = vpop.f32.mrf.mxu1 }
 0xb43   : > { %21602 = vst [vmem:[#allocation17_spill] sm:$0xff] %v19850_v21  ;;  %21603 = vst [vmem:[#allocation126_spill] sm:$0xff] %v19852_v49 }
 0xb44   : > { %v19854_v9 = vpop.f32.mrf.mxu0  ;;  %v19856_v56 = vpop.f32.mrf.mxu1 }
 0xb46   : > { %v19858_v55 = vpop.f32.mrf.mxu0  ;;  %v19860_v39 = vpop.f32.mrf.mxu1 }
 0xb48   : > { %v19862_v46 = vpop.f32.mrf.mxu0  ;;  %v19864_v51 = vpop.f32.mrf.mxu1 }
 0xb4a   : > { %v19866_v10 = vpop.f32.mrf.mxu0  ;;  %v19868_v22 = vpop.f32.mrf.mxu1 }
 0xb4c   : > { %v11325_v44 = vpop.f32.mrf.mxu0  ;;  %v11388_v18 = vpop.f32.mrf.mxu1 }
 0xb4d   : > { %v19870_v1 = vadd.f32 %v11325_v44, %v10849_v27  ;;  %v19872_v43 = vadd.f32 %v11388_v18, %v10912_v19 }
 0xb4e   : > { %v11327_v57 = vpop.f32.mrf.mxu0  ;;  %v11390_v13 = vpop.f32.mrf.mxu1 }
 0xb4f   : > { %v19874_v16 = vadd.f32 %v11327_v57, %v10851_v58  ;;  %v19876_v36 = vadd.f32 %v11390_v13, %v10914_v0 }
 0xb50   : > { %v11329_v49 = vpop.f32.mrf.mxu0  ;;  %v11392_v21 = vpop.f32.mrf.mxu1 }
 0xb51   : > { %v19878_v4 = vadd.f32 %v11329_v49, %v10853_v59  ;;  %v19880_v26 = vadd.f32 %v11392_v21, %v10916_v28 }
 0xb52   : > { %v11331_v3 = vpop.f32.mrf.mxu0  ;;  %v11394_v42 = vpop.f32.mrf.mxu1 }
 0xb53   : > { %v19882_v12 = vadd.f32 %v11331_v3, %v10855_v8  ;;  %v19884_v27 = vadd.f32 %v11394_v42, %v10918_v15 }
 0xb54   : > { %v19886_v19 = vpop.f32.mrf.mxu0  ;;  %v19888_v44 = vpop.f32.mrf.mxu1 }
 0xb56   : > { %v19890_v58 = vpop.f32.mrf.mxu0  ;;  %v19892_v0 = vpop.f32.mrf.mxu1 }
 0xb58   : > { %v19894_v18 = vpop.f32.mrf.mxu0  ;;  %v19896_v59 = vpop.f32.mrf.mxu1 }
 0xb5a   : > { %v19898_v28 = vpop.f32.mrf.mxu0  ;;  %v19900_v21 = vpop.f32.mrf.mxu1 }
 0xb5c   : > { %v19902_v8 = vpop.f32.mrf.mxu0  ;;  %v19904_v15 = vpop.f32.mrf.mxu1 }
 0xb5d   : > { %21604 = vst [vmem:[#allocation134_spill] sm:$0xff] %v19902_v8  ;;  %21605 = vst [vmem:[#allocation115_spill] sm:$0xff] %v19904_v15 }
 0xb5e   : > { %v19906_v3 = vpop.f32.mrf.mxu0  ;;  %v19908_v42 = vpop.f32.mrf.mxu1 }
 0xb5f   : > { %21606 = vst [vmem:[#allocation142_spill] sm:$0xff] %v19906_v3  ;;  %21607 = vst [vmem:[#allocation127_spill] sm:$0xff] %v19908_v42 }
 0xb60   : > { %v19910_v49 = vpop.f32.mrf.mxu0  ;;  %v19912_v57 = vpop.f32.mrf.mxu1 }
 0xb61   : > { %21608 = vst [vmem:[#allocation137_spill] sm:$0xff] %v19910_v49  ;;  %21609 = vst [vmem:[#allocation71_spill] sm:$0xff] %v19912_v57 }
 0xb62   : > { %v19914_v13 = vpop.f32.mrf.mxu0  ;;  %v19916_v11 = vpop.f32.mrf.mxu1 }
 0xb63   : > { %21610 = vst [vmem:[#allocation63_spill] sm:$0xff] %v19914_v13  ;;  %21611 = vst [vmem:[#allocation100_spill] sm:$0xff] %v19916_v11 }
 0xb64   : > { %v11451_v14 = vpop.f32.mrf.mxu0  ;;  %v11514_v5 = vpop.f32.mrf.mxu1 }
 0xb65   : > { %v19918_v20 = vadd.f32 %v11451_v14, %v10975_v34  ;;  %v19920_v52 = vadd.f32 %v11514_v5, %v11038_v35 }
 0xb66   : > { %v11453_v33 = vpop.f32.mrf.mxu0  ;;  %v11516_v37 = vpop.f32.mrf.mxu1 }
 0xb67   : > { %v19922_v15 = vadd.f32 %v11453_v33, %v10977_v6  ;;  %v19924_v3 = vadd.f32 %v11516_v37, %v11040_v45 }
 0xb68   : > { %v11455_v42 = vpop.f32.mrf.mxu0  ;;  %v11518_v49 = vpop.f32.mrf.mxu1 }
 0xb69   : > { %v19926_v17 = vadd.f32 %v11455_v42, %v10979_v38  ;;  %v19928_v57 = vadd.f32 %v11518_v49, %v11042_v40  ;;  %v11316_v40 = vadd.f32 %v19854_v9, %v19786_v2 }
 0xb6a   : > { %v11457_v13 = vpop.f32.mrf.mxu0  ;;  %v11520_v11 = vpop.f32.mrf.mxu1 }
 0xb6b   : > { %v19931_v8 = vadd.f32 %v11457_v13, %v19834_v30  ;;  %v19934_v5 = vadd.f32 %v11520_v11, %v19836_v54  ;;  %v11318_v11 = vadd.f32 %v19858_v55, %v19790_v48  ;;  %v11381_v48 = vadd.f32 %v19860_v39, %v19792_v25 }
 0xb6c   : > { %v19936_v14 = vpop.f32.mrf.mxu0  ;;  %v19938_v33 = vpop.f32.mrf.mxu1  ;;  %v11320_v25 = vadd.f32 %v19862_v46, %v19794_v29 }
 0xb6e   : > { %v19940_v37 = vpop.f32.mrf.mxu0  ;;  %v19942_v34 = vpop.f32.mrf.mxu1 }
 0xb6f   : > { %21612 = vst [vmem:[#allocation15_spill] sm:$0xff] %v19940_v37  ;;  %21613 = vst [vmem:[#allocation20_spill] sm:$0xff] %v19942_v34  ;;  %v11379_v34 = vadd.f32 %v19856_v56, %v19788_v23 }
 0xb70   : > { %v19944_v35 = vpop.f32.mrf.mxu0  ;;  %v19946_v6 = vpop.f32.mrf.mxu1 }
 0xb71   : > { %21614 = vst [vmem:[#allocation68_spill] sm:$0xff] %v19944_v35  ;;  %21615 = vst [vmem:[#allocation47_spill] sm:$0xff] %v19946_v6 }
 0xb72   : > { %v19948_v45 = vpop.f32.mrf.mxu0  ;;  %v19950_v38 = vpop.f32.mrf.mxu1 }
 0xb73   : > { %21616 = vst [vmem:[#allocation97_spill] sm:$0xff] %v19948_v45  ;;  %21617 = vst [vmem:[#allocation26_spill] sm:$0xff] %v19950_v38  ;;  %v11383_v38 = vadd.f32 %v19864_v51, %v19796_v61 }
 0xb74   : > { %v11838_v30 = vpop.f32.mrf.mxu0  ;;  %v11901_v54 = vpop.f32.mrf.mxu1 }
 0xb75   : > { %v12056_v42 = vadd.f32 %v11838_v30, %v11316_v40  ;;  %v12058_v2 = vadd.f32 %v11901_v54, %v11379_v34  ;;  %v11322_v40 = vadd.f32 %v19866_v10, %v19798_v60 }
 0xb76   : > { %v11840_v49 = vpop.f32.mrf.mxu0  ;;  %v11903_v13 = vpop.f32.mrf.mxu1 }
 0xb77   : > { %12104 = vrot.lane.b32.xlu0 %v12056_v42, %s14233_s25  ;;  %v12057_v6 = vadd.f32 %v11840_v49, %v11318_v11  ;;  %v12059_v30 = vadd.f32 %v11903_v13, %v11381_v48  ;;  %v11399_v13 = vadd.f32 %v19888_v44, %v19804_v31  ;;  %v11338_v48 = vadd.f32 %v19890_v58, %v19806_v41 }
 0xb78   : > { %v11842_v45 = vpop.f32.mrf.mxu0  ;;  %v11905_v37 = vpop.f32.mrf.mxu1 }
 0xb79   : > { %12108 = vrot.lane.b32.xlu1 %v12057_v6, %s14233_s25  ;;  %v12066_v55 = vadd.f32 %v11905_v37, %v11383_v38  ;;  %v12064_v6 = vadd.f32 %v11842_v45, %v11320_v25  ;;  %v11405_v25 = vadd.f32 %v19900_v21, %v19816_v32 }
 0xb7a   : > { %v11844_v9 = vpop.f32.mrf.mxu0  ;;  %v11907_v35 = vpop.f32.mrf.mxu1 }
 0xb7b   : > { %12112 = vrot.lane.b32.xlu0 %v12058_v2, %s14233_s25  ;;  %v12065_v39 = vadd.f32 %v11844_v9, %v11322_v40  ;;  %v11401_v40 = vadd.f32 %v19892_v0, %v19808_v53 }
 0xb7c   : > { %v11848_v23 = vpop.f32.mrf.mxu0  ;;  %v11911_v56 = vpop.f32.mrf.mxu1 }
 0xb7d   : > { %v19968_v11 = vadd.f32 %v11848_v23, %v19870_v1  ;;  %v19971_v61 = vadd.f32 %v11911_v56, %v19872_v43  ;;  %12114 = vrot.lane.b32.xlu1 %v12066_v55, %s14233_s25  ;;  %v11385_v43 = vadd.f32 %v19868_v22, %v19800_v63  ;;  %v11403_v55 = vadd.f32 %v19896_v59, %v19812_v50 }
 0xb7e   : > { %v11850_v51 = vpop.f32.mrf.mxu0  ;;  %v11913_v34 = vpop.f32.mrf.mxu1 }
 0xb7f   : > { %v19977_v37 = vadd.f32 %v11850_v51, %v19874_v16  ;;  %v19980_v60 = vadd.f32 %v11913_v34, %v19876_v36  ;;  %12116 = vrot.lane.b32.xlu0 %v12059_v30, %s14233_s25  ;;  %v11336_v36 = vadd.f32 %v19886_v19, %v19802_v62  ;;  %v12067_v54 = vadd.f32 %v11907_v35, %v11385_v43 }
 0xb80   : > { %v11852_v10 = vpop.f32.mrf.mxu0  ;;  %v11915_v1 = vpop.f32.mrf.mxu1  ;;  %v11340_v62 = vadd.f32 %v19894_v18, %v19810_v47  ;;  %v11342_v30 = vadd.f32 %v19898_v28, %v19814_v24 }
 0xb81   : > { %v19986_v38 = vadd.f32 %v11852_v10, %v19878_v4  ;;  %v19989_v29 = vadd.f32 %v11915_v1, %v19880_v26  ;;  %12110 = vrot.lane.b32.xlu1 %v12065_v39, %s14233_s25  ;;  %v21618_v39 = vld [vmem:[#allocation134_spill] sm:$0xff] }
 0xb82   : > { %v11854_v46 = vpop.f32.mrf.mxu0  ;;  %v11917_v16 = vpop.f32.mrf.mxu1  ;;  %v11442_v10 = vadd.f32 %v21618_v39, %v19818_v7  ;;  %v21621_v7 = vld [vmem:[#allocation91_spill] sm:$0xff] }
 0xb83   : > { %v19995_v42 = vadd.f32 %v11854_v46, %v19882_v12  ;;  %v19998_v63 = vadd.f32 %v11917_v16, %v19884_v27  ;;  %12106 = vrot.lane.b32.xlu0 %v12064_v6, %s14233_s25  ;;  %v21619_v6 = vld [vmem:[#allocation74_spill] sm:$0xff]  ;;  %v21620_v46 = vld [vmem:[#allocation115_spill] sm:$0xff] }
 0xb84   : > { %v11858_v4 = vpop.f32.mrf.mxu0  ;;  %v11921_v22 = vpop.f32.mrf.mxu1  ;;  %v11505_v32 = vadd.f32 %v21620_v46, %v21619_v6  ;;  %v21636_v6 = vld [vmem:[#allocation68_spill] sm:$0xff] }
 0xb85   : > { %v12088_v26 = vadd.f32 %v11858_v4, %v11336_v36  ;;  %12118 = vrot.lane.b32.xlu1 %v12067_v54, %s14233_s25  ;;  %v12090_v19 = vadd.f32 %v11921_v22, %v11399_v13  ;;  %v21622_v36 = vld [vmem:[#allocation137_spill] sm:$0xff] }
 0xb86   : > { %v11860_v45 = vpop.f32.mrf.mxu0  ;;  %v11923_v49 = vpop.f32.mrf.mxu1  ;;  %v11446_v54 = vadd.f32 %v21622_v36, %v21621_v7  ;;  %v21638_v7 = vld [vmem:[#allocation15_spill] sm:$0xff] }
 0xb87   : > { %12168 = vrot.lane.b32.xlu0 %v12088_v26, %s14234_s28  ;;  %v12089_v44 = vadd.f32 %v11860_v45, %v11338_v48  ;;  %v12091_v58 = vadd.f32 %v11923_v49, %v11401_v40  ;;  %v21630_v40 = vld [vmem:[#allocation63_spill] sm:$0xff] }
 0xb88   : > { %v11862_v12 = vpop.f32.mrf.mxu0  ;;  %v11925_v27 = vpop.f32.mrf.mxu1 }
 0xb89   : > { %v12096_v35 = vadd.f32 %v11862_v12, %v11340_v62  ;;  %v12098_v18 = vadd.f32 %v11925_v27, %v11403_v55  ;;  %v21623_v62 = vld [vmem:[#allocation64_spill] sm:$0xff] }
 0xb8a   : > { %v11864_v2 = vpop.f32.mrf.mxu0  ;;  %v11927_v9 = vpop.f32.mrf.mxu1 }
 0xb8b   : > { %12170 = vrot.lane.b32.xlu1 %v12096_v35, %s14234_s28  ;;  %12176 = vrot.lane.b32.xlu0 %v12090_v19, %s14234_s28  ;;  %v12097_v59 = vadd.f32 %v11864_v2, %v11342_v30  ;;  %v12099_v0 = vadd.f32 %v11927_v9, %v11405_v25  ;;  %v21625_v19 = vld [vmem:[#allocation114_spill] sm:$0xff]  ;;  %v21626_v35 = vld [vmem:[#allocation71_spill] sm:$0xff]  ;;  %v21632_v25 = vld [vmem:[#allocation100_spill] sm:$0xff] }
 0xb8c   : > { %v11964_v31 = vpop.f32.mrf.mxu0  ;;  %v12027_v47 = vpop.f32.mrf.mxu1  ;;  %v11509_v2 = vadd.f32 %v21626_v35, %v21625_v19 }
 0xb8d   : > { %v12060_v28 = vadd.f32 %v11964_v31, %v11442_v10  ;;  %v12062_v26 = vadd.f32 %v12027_v47, %v11505_v32  ;;  %v21627_v31 = vld [vmem:[#allocation30_spill] sm:$0xff]  ;;  %v21628_v47 = vld [vmem:[#allocation127_spill] sm:$0xff] }
 0xb8e   : > { %v11966_v23 = vpop.f32.mrf.mxu0  ;;  %v12029_v56 = vpop.f32.mrf.mxu1 }
 0xb8f   : > { %12178 = vrot.lane.b32.xlu1 %v12098_v18, %s14234_s28  ;;  %12172 = vrot.lane.b32.xlu0 %v12089_v44, %s14234_s28  ;;  %v11507_v44 = vadd.f32 %v21628_v47, %v21627_v31  ;;  %v21629_v18 = vld [vmem:[#allocation67_spill] sm:$0xff]  ;;  %v12264_v31 = vld [vmem:[%s20345_s11] sm:$0xff] }
 0xb90   : > { %v11968_v41 = vpop.f32.mrf.mxu0  ;;  %v12031_v50 = vpop.f32.mrf.mxu1  ;;  %v11448_v30 = vadd.f32 %v21630_v40, %v21629_v18 }
 0xb91   : > { %v12068_v45 = vadd.f32 %v11968_v41, %v11446_v54  ;;  %v21640_v54 = vld [vmem:[#allocation47_spill] sm:$0xff] }
 0xb92   : > { %v11970_v51 = vpop.f32.mrf.mxu0  ;;  %v12033_v34 = vpop.f32.mrf.mxu1 }
 0xb93   : > { %12174 = vrot.lane.b32.xlu1 %v12097_v59, %s14234_s28  ;;  %12180 = vrot.lane.b32.xlu0 %v12091_v58, %s14234_s28  ;;  %v21631_v59 = vld [vmem:[#allocation76_spill] sm:$0xff] }
 0xb94   : > { %v11974_v53 = vpop.f32.mrf.mxu0  ;;  %v12037_v24 = vpop.f32.mrf.mxu1  ;;  %v11511_v39 = vadd.f32 %v21632_v25, %v21631_v59 }
 0xb95   : > { %v20026_v1 = vadd.f32 %v11974_v53, %v19918_v20  ;;  %v20029_v43 = vadd.f32 %v12037_v24, %v19920_v52 }
 0xb96   : > { %v11976_v21 = vpop.f32.mrf.mxu0  ;;  %v12039_v16 = vpop.f32.mrf.mxu1  ;;  %v12071_v10 = vadd.f32 %v12033_v34, %v11511_v39  ;;  %v21639_v34 = vld [vmem:[#allocation57_spill] sm:$0xff] }
 0xb97   : > { %v20036_v4 = vadd.f32 %v11976_v21, %v19922_v15  ;;  %v20039_v22 = vadd.f32 %v12039_v16, %v19924_v3  ;;  %12182 = vrot.lane.b32.xlu1 %v12099_v0, %s14234_s28  ;;  %12120 = vrot.lane.b32.xlu0 %v12060_v28, %s14233_s25  ;;  %v21624_v15 = vld [vmem:[#allocation142_spill] sm:$0xff]  ;;  %v21637_v16 = vld [vmem:[#allocation24_spill] sm:$0xff] }
 0xb98   : > { %v11978_v20 = vpop.f32.mrf.mxu0  ;;  %v12041_v52 = vpop.f32.mrf.mxu1  ;;  %v11444_v12 = vadd.f32 %v21624_v15, %v21623_v62  ;;  %v21634_v28 = vld [vmem:[#allocation70_spill] sm:$0xff]  ;;  %v11464_v36 = vadd.f32 %v21638_v7, %v21637_v16  ;;  %v21642_v62 = vld [vmem:[#allocation20_spill] sm:$0xff] }
 0xb99   : > { %v20044_v49 = vadd.f32 %v11978_v20, %v19926_v17  ;;  %v20047_v13 = vadd.f32 %v12041_v52, %v19928_v57  ;;  %v12070_v57 = vadd.f32 %v12031_v50, %v11509_v2  ;;  %v11529_v20 = vadd.f32 %v21640_v54, %v21639_v34 }
 0xb9a   : > { %v11980_v27 = vpop.f32.mrf.mxu0  ;;  %v12043_v3 = vpop.f32.mrf.mxu1  ;;  %v12061_v17 = vadd.f32 %v11966_v23, %v11444_v12  ;;  %v21633_v23 = vld [vmem:[#allocation140_spill] sm:$0xff]  ;;  %v21643_v12 = vld [vmem:[#allocation17_spill] sm:$0xff] }
 0xb9b   : > { %v20054_v9 = vadd.f32 %v11980_v27, %v19931_v8  ;;  %v20057_v48 = vadd.f32 %v12043_v3, %v19934_v5  ;;  %12122 = vrot.lane.b32.xlu1 %v12068_v45, %s14233_s25  ;;  %12128 = vrot.lane.b32.xlu0 %v12062_v26, %s14233_s25  ;;  %v12063_v8 = vadd.f32 %v12029_v56, %v11507_v44  ;;  %v21641_v45 = vld [vmem:[#allocation102_spill] sm:$0xff]  ;;  %v21644_v27 = vld [vmem:[#allocation97_spill] sm:$0xff]  ;;  %v12265_v44 = vld [vmem:[%s20345_s11 + $0x8] sm:$0xff] }
 0xb9c   : > { %v11984_v55 = vpop.f32.mrf.mxu0  ;;  %v12069_v5 = vadd.f32 %v11970_v51, %v11448_v30  ;;  %v12047_v41 = vpop.f32.mrf.mxu1  ;;  %v11462_v50 = vadd.f32 %v19936_v14, %v21633_v23  ;;  %v11525_v56 = vadd.f32 %v19938_v33, %v21634_v28  ;;  %v21635_v51 = vld [vmem:[#allocation46_spill] sm:$0xff]  ;;  %v11527_v15 = vadd.f32 %v21642_v62, %v21641_v45 }
 0xb9d   : > { %v11466_v46 = vadd.f32 %v21636_v6, %v21635_v51  ;;  %v11468_v3 = vadd.f32 %v21644_v27, %v21643_v12 }
 0xb9e   : > { %v11986_v58 = vpop.f32.mrf.mxu0  ;;  %v12092_v53 = vadd.f32 %v11984_v55, %v11462_v50  ;;  %v12049_v24 = vpop.f32.mrf.mxu1  ;;  %v12094_v32 = vadd.f32 %v12047_v41, %v11525_v56 }
 0xb9f   : > { %12130 = vrot.lane.b32.xlu1 %v12070_v57, %s14233_s25  ;;  %12124 = vrot.lane.b32.xlu0 %v12061_v17, %s14233_s25  ;;  %v12093_v33 = vadd.f32 %v11986_v58, %v11464_v36  ;;  %v12095_v19 = vadd.f32 %v12049_v24, %v11527_v15  ;;  %v21645_v17 = vld [vmem:[#allocation126_spill] sm:$0xff]  ;;  %v21655_v15 = vld [vmem:[#allocation19_spill] sm:$0xff] }
 0xba0   : > { %v11988_v0 = vpop.f32.mrf.mxu0  ;;  %v12051_v21 = vpop.f32.mrf.mxu1  ;;  %v21646_v57 = vld [vmem:[#allocation26_spill] sm:$0xff] }
 0xba1   : > { %v12100_v14 = vadd.f32 %v11988_v0, %v11466_v46  ;;  %v12102_v52 = vadd.f32 %v12051_v21, %v11529_v20  ;;  %v11531_v55 = vadd.f32 %v21646_v57, %v21645_v17  ;;  %v21647_v21 = vld [vmem:[#allocation81_spill] sm:$0xff] }
 0xba2   : > { %v11990_v26 = vpop.f32.mrf.mxu0  ;;  %v12053_v2 = vpop.f32.mrf.mxu1  ;;  %vm21648_vm13 = vcmp.lt.s32.totalorder %v21647_v21, 1  ;;  %vm21657_vm3 = vcmp.lt.s32.totalorder %v21647_v21, 127 }
 0xba3   : > { %12126 = vrot.lane.b32.xlu1 %v12069_v5, %s14233_s25  ;;  %12132 = vrot.lane.b32.xlu0 %v12063_v8, %s14233_s25  ;;  %v12101_v35 = vadd.f32 %v11990_v26, %v11468_v3  ;;  %v12103_v47 = vadd.f32 %v12053_v2, %v11531_v55  ;;  %vm21649_vm14 = vmmov %vm21648_vm13  ;;  %v21653_v26 = vld [vmem:[#allocation88_spill] sm:$0xff] }
 0xba4   : > { %vm21650_vm15 = vmmov %vm21648_vm13 }
 0xba5   : > { %vm21651_vm0 = vmmov %vm21648_vm13 }
 0xba6   : > { %vm21654_vm1 = vmmov %vm21651_vm0 }
 0xba7   : > { %12134 = vrot.lane.b32.xlu1 %v12071_v10, %s14233_s25  ;;  %12184 = vrot.lane.b32.xlu0 %v12092_v53, %s14234_s28  ;;  %vm21656_vm2 = vmmov %vm21651_vm0 }
 0xba8   : > { %vm21658_vm4 = vmmov %vm21657_vm3 }
 0xba9   : > { %vm21659_vm5 = vmmov %vm21657_vm3 }
 0xbaa   : > { %vm21660_vm6 = vmmov %vm21657_vm3 }
 0xbab   : > { %12186 = vrot.lane.b32.xlu1 %v12100_v14, %s14234_s28  ;;  %12192 = vrot.lane.b32.xlu0 %v12094_v32, %s14234_s28  ;;  %vm21661_vm7 = vmmov %vm21651_vm0 }
 0xbac   : > { %vm21662_vm8 = vmmov %vm21651_vm0 }
 0xbad   : > { %vm21663_vm9 = vmmov %vm21657_vm3 }
 0xbae   : > { %vm21665_vm10 = vmmov %vm21651_vm0 }
 0xbaf   : > { %12194 = vrot.lane.b32.xlu1 %v12102_v52, %s14234_s28  ;;  %12188 = vrot.lane.b32.xlu0 %v12093_v33, %s14234_s28  ;;  %v21652_v33 = vld [vmem:[#allocation18_spill] sm:$0xff]  ;;  %vm21666_vm11 = vmmov %vm21651_vm0 }
 0xbb0   : > { %vm21667_vm12 = vmmov %vm21657_vm3 }
 0xbb3   : > { %12190 = vrot.lane.b32.xlu1 %v12101_v35, %s14234_s28  ;;  %12196 = vrot.lane.b32.xlu0 %v12095_v19, %s14234_s28 }
 0xbb7   : > { %12198 = vrot.lane.b32.xlu1 %v12103_v47, %s14234_s28  ;;  %12268 = vperm.xlu0 %14028, %v12264_v31   ;;  %s13446_s28 = sshll.u32 (%p14354_p5), %s14216_s24, 5 }
 0xbbb   : > { %12273 = vperm.xlu1 %14029, %v12265_v44  }
 0xbe9   : > { %v20102_v18 = vpop.permute.xlu0 %12104 }
 0xbeb   : > { %v12109_v40 = vpop.permute.xlu1 %12108 }
 0xbec   : > { %v12148_v16 = vsel %vm21648_vm13, %v20102_v18, %v12109_v40  ;;  %vm21673_vm13 = vmmov %vm21651_vm0 }
 0xbed   : > { %v12113_v30 = vpop.permute.xlu0 %12112  ;;  %v12153_v52 = vmul.f32 %v12148_v16, %v21652_v33 }
 0xbee   : > { %v12146_v7 = vsel %vm21649_vm14, %v12109_v40, %v12113_v30  ;;  %vm21674_vm14 = vmmov %vm21651_vm0 }
 0xbef   : > { %v12115_v8 = vpop.permute.xlu1 %12114  ;;  %v12154_v45 = vmul.f32 %v12146_v7, %v21653_v26  ;;  %v12233_v2 = vadd.f32 %v12153_v52, %v19977_v37 }
 0xbf1   : > { %v12117_v5 = vpop.permute.xlu0 %12116  ;;  %v12234_v17 = vadd.f32 %v12154_v45, %v19971_v61 }
 0xbf2   : > { %v12144_v36 = vsel %vm21650_vm15, %v12113_v30, %v12117_v5  ;;  %vm21675_vm15 = vmmov %vm21651_vm0 }
 0xbf3   : > { %v12111_v41 = vpop.permute.xlu1 %12110  ;;  %v12155_v12 = vmul.f32 %v12144_v36, %v21655_v15 }
 0xbf4   : > { %v12147_v34 = vsel %vm21651_vm0, %v12111_v41, %v12115_v8 }
 0xbf5   : > { %v20104_v58 = vpop.permute.xlu0 %12106  ;;  %v12162_v27 = vmul.f32 %v12147_v34, %v21653_v26  ;;  %v20151_v61 = vadd.f32 %v12155_v12, %v19980_v60  ;;  %v21669_v26 = vld [vmem:[#allocation9_spill] sm:$0xff] }
 0xbf6   : > { %v12149_v62 = vsel %vm21654_vm1, %v20104_v58, %v12111_v41  ;;  %vm21676_vm1 = vmmov %vm21651_vm0 }
 0xbf7   : > { %v12119_v59 = vpop.permute.xlu1 %12118  ;;  %v12161_v57 = vmul.f32 %v12149_v62, %v21652_v33  ;;  %v12242_v40 = vadd.f32 %v12162_v27, %v19989_v29 }
 0xbf8   : > { %v12145_v3 = vsel %vm21656_vm2, %v12115_v8, %v12119_v59  ;;  %vm21678_vm2 = vmmov %vm21651_vm0 }
 0xbf9   : > { %v20106_v25 = vpop.permute.xlu0 %12168  ;;  %v12163_v31 = vmul.f32 %v12145_v3, %v21655_v15  ;;  %v12241_v33 = vadd.f32 %v12161_v57, %v19995_v42  ;;  %v21671_v15 = vld [vmem:[#allocation10_spill] sm:$0xff] }
 0xbfb   : > { %v12243_v52 = vadd.f32 %v12163_v31, %v19998_v63 }
 0xbfd   : > { %v20108_v39 = vpop.permute.xlu1 %12170  ;;  %v12177_v23 = vpop.permute.xlu0 %12176 }
 0xc01   : > { %v12179_v50 = vpop.permute.xlu1 %12178  ;;  %v12173_v10 = vpop.permute.xlu0 %12172 }
 0xc02   : > { %v12210_v55 = vsel %vm21657_vm3, %v12173_v10, %v12177_v23  ;;  %v12212_v41 = vsel %vm21663_vm9, %v20106_v25, %v12173_v10  ;;  %vm21685_vm9 = vmmov %vm21657_vm3 }
 0xc05   : > { %v12175_v53 = vpop.permute.xlu1 %12174  ;;  %v20110_v24 = vpop.permute.xlu0 %12180 }
 0xc06   : > { %v12211_v47 = vsel %vm21658_vm4, %v12175_v53, %v12179_v50  ;;  %v12208_v44 = vsel %vm21659_vm5, %v12177_v23, %v20110_v24  ;;  %v21664_v23 = vld [vmem:[#allocation90_spill] sm:$0xff]  ;;  %v12213_v29 = vsel %vm21667_vm12, %v20108_v39, %v12175_v53  ;;  %v21672_v53 = vld [vmem:[#allocation80_spill] sm:$0xff]  ;;  %vm21679_vm4 = vmmov %vm21657_vm3 }
 0xc07   : > { %v12217_v16 = vmul.f32 %v12210_v55, %v21664_v23  ;;  %vm21681_vm5 = vmmov %vm21657_vm3 }
 0xc08   : > { %vm21693_vm12 = vmmov %vm21657_vm3 }
 0xc09   : > { %v20112_v0 = vpop.permute.xlu1 %12182  ;;  %v12121_v28 = vpop.permute.xlu0 %12120  ;;  %v20182_v55 = vadd.f32 %v12233_v2, %v12217_v16 }
 0xc0a   : > { %v12209_v37 = vsel %vm21660_vm6, %v12179_v50, %v20112_v0  ;;  %v12142_v30 = vsel %vm21661_vm7, %v12117_v5, %v12121_v28  ;;  %v12225_v5 = vmul.f32 %v12211_v47, %v21664_v23  ;;  %vm21682_vm6 = vmmov %vm21657_vm3 }
 0xc0b   : > { %v12156_v45 = vmul.f32 %v12142_v30, %v21669_v26  ;;  %vm21683_vm7 = vmmov %vm21657_vm3 }
 0xc0c   : > { %v20190_v47 = vadd.f32 %v12241_v33, %v12225_v5  ;;  %v21689_v33 = vld [vmem:[#allocation22_spill] sm:$0xff] }
 0xc0d   : > { %v12123_v56 = vpop.permute.xlu1 %12122  ;;  %v12129_v51 = vpop.permute.xlu0 %12128  ;;  %v12236_v2 = vadd.f32 %v12156_v45, %v20026_v1 }
 0xc0e   : > { %v12143_v8 = vsel %vm21662_vm8, %v12119_v59, %v12123_v56  ;;  %v21668_v59 = vld [vmem:[#allocation21_spill] sm:$0xff]  ;;  %vm21684_vm8 = vmmov %vm21657_vm3 }
 0xc0f   : > { %v12218_v36 = vmul.f32 %v12208_v44, %v21668_v59  ;;  %v12226_v34 = vmul.f32 %v12209_v37, %v21668_v59  ;;  %v21687_v59 = vld [vmem:[#allocation83_spill] sm:$0xff] }
 0xc11   : > { %v20114_v6 = vpop.permute.xlu1 %12130  ;;  %v12125_v46 = vpop.permute.xlu0 %12124  ;;  %v12250_v44 = vadd.f32 %v12234_v17, %v12218_v36  ;;  %v20192_v37 = vadd.f32 %v12242_v40, %v12226_v34  ;;  %v21688_v34 = vld [vmem:[#allocation84_spill] sm:$0xff] }
 0xc12   : > { %v12138_v50 = vsel %vm21665_vm10, %v12125_v46, %v12129_v51  ;;  %v12140_v60 = vsel %vm21666_vm11, %v12121_v28, %v12125_v46  ;;  %v12164_v28 = vmul.f32 %v12143_v8, %v21669_v26  ;;  %v21670_v46 = vld [vmem:[#allocation40_spill] sm:$0xff]  ;;  %v21677_v8 = vld [vmem:[#allocation109_spill] sm:$0xff]  ;;  %vm21686_vm10 = vmmov %vm21657_vm3 }
 0xc13   : > { %v12216_v62 = vmul.f32 %v12212_v41, %v21670_v46  ;;  %v12157_v12 = vmul.f32 %v12140_v60, %v21671_v15  ;;  %v12158_v27 = vmul.f32 %v12138_v50, %v21672_v53  ;;  %v12224_v42 = vmul.f32 %v12213_v29, %v21670_v46  ;;  %v21691_v46 = vld [vmem:[#allocation38_spill] sm:$0xff]  ;;  %vm21692_vm11 = vmmov %vm21657_vm3 }
 0xc14   : > { %v12244_v30 = vadd.f32 %v12164_v28, %v20044_v49 }
 0xc15   : > { %v12127_v32 = vpop.permute.xlu1 %12126  ;;  %v12133_v14 = vpop.permute.xlu0 %12132  ;;  %v12238_v23 = vadd.f32 %v12158_v27, %v20029_v43 }
 0xc16   : > { %v12150_v3 = vsel %vm21673_vm13, %v12133_v14, %v20102_v18  ;;  %v12141_v63 = vsel %vm21674_vm14, %v12123_v56, %v12127_v32  ;;  %v12139_v18 = vsel %vm21651_vm0, %v12127_v32, %v20114_v6  ;;  %v12136_v56 = vsel %vm21676_vm1, %v12129_v51, %v12133_v14 }
 0xc17   : > { %v12152_v41 = vmul.f32 %v12150_v3, %v21677_v8  ;;  %v12165_v17 = vmul.f32 %v12141_v63, %v21671_v15  ;;  %v12166_v32 = vmul.f32 %v12139_v18, %v21672_v53 }
 0xc19   : > { %v12135_v54 = vpop.permute.xlu1 %12134  ;;  %v20125_v20 = vpop.permute.xlu0 %12184 }
 0xc1a   : > { %v12151_v57 = vsel %vm21675_vm15, %v12135_v54, %v20104_v58  ;;  %v12237_v58 = vadd.f32 %v12157_v12, %v20036_v4  ;;  %v12137_v1 = vsel %vm21678_vm2, %v20114_v6, %v12135_v54  ;;  %v12206_v49 = vsel %vm21657_vm3, %v20110_v24, %v20125_v20  ;;  %v21680_v4 = vld [vmem:[#allocation13_spill] sm:$0xff] }
 0xc1b   : > { %v12160_v40 = vmul.f32 %v12151_v57, %v21677_v8  ;;  %v12159_v51 = vmul.f32 %v12136_v56, %v21680_v4  ;;  %v12232_v54 = vadd.f32 %v12152_v41, %v19968_v11  ;;  %v12167_v5 = vmul.f32 %v12137_v1, %v21680_v4  ;;  %v12293_v8 = vld [vmem:[%s14381_s26 + $0x8] sm:$0xff]  ;;  %v12294_v41 = vld [vmem:[%s14381_s26 + $0x10] sm:$0xff] }
 0xc1c   : > { %v12219_v36 = vmul.f32 %v12206_v49, %v21687_v59  ;;  %v12245_v11 = vadd.f32 %v12165_v17, %v20054_v9  ;;  %v12246_v12 = vadd.f32 %v12166_v32, %v20047_v13  ;;  %v12295_v17 = vld [vmem:[%s14381_s26 + $0x18] sm:$0xff] }
 0xc1d   : > { %v12187_v19 = vpop.permute.xlu1 %12186  ;;  %v12193_v35 = vpop.permute.xlu0 %12192  ;;  %v12239_v9 = vadd.f32 %v12159_v51, %v20039_v22  ;;  %v12248_v53 = vadd.f32 %v12232_v54, %v12216_v62  ;;  %v12247_v3 = vadd.f32 %v12167_v5, %v20057_v48  ;;  %v12292_v48 = vld [vmem:[%s14381_s26] sm:$0xff]  ;;  %v12299_v32 = vld [vmem:[%s14381_s26 + $0x38] sm:$0xff] }
 0xc1e   : > { %v12207_v43 = vsel %vm21679_vm4, %v20112_v0, %v12187_v19  ;;  %v12251_v57 = vadd.f32 %v20151_v61, %v12219_v36  ;;  %v12296_v61 = vld [vmem:[%s14381_s26 + $0x20] sm:$0xff] }
 0xc21   : > { %v12195_v7 = vpop.permute.xlu1 %12194  ;;  %v12189_v10 = vpop.permute.xlu0 %12188 }
 0xc22   : > { %v12202_v14 = vsel %vm21681_vm5, %v12189_v10, %v12193_v35  ;;  %v12204_v50 = vsel %vm21682_vm6, %v20125_v20, %v12189_v10  ;;  %v12240_v20 = vadd.f32 %v12160_v40, %v19986_v38  ;;  %v12297_v40 = vld [vmem:[%s14381_s26 + $0x28] sm:$0xff] }
 0xc23   : > { %v12220_v10 = vmul.f32 %v12204_v50, %v21688_v34  ;;  %v12221_v26 = vmul.f32 %v12202_v14, %v21689_v33 }
 0xc24   : > { %v12256_v63 = vadd.f32 %v12240_v20, %v12224_v42 }
 0xc25   : > { %v12191_v31 = vpop.permute.xlu1 %12190  ;;  %v12197_v16 = vpop.permute.xlu0 %12196  ;;  %v12253_v13 = vadd.f32 %v12237_v58, %v12221_v26  ;;  %v12302_v26 = vld [vmem:[%s14381_s26 + $0x90] sm:$0xff] }
 0xc26   : > { %v12205_v6 = vsel %vm21683_vm7, %v12187_v19, %v12191_v31  ;;  %v12203_v24 = vsel %vm21684_vm8, %v12191_v31, %v12195_v7  ;;  %v12200_v0 = vsel %vm21685_vm9, %v12193_v35, %v12197_v16  ;;  %v12214_v60 = vsel %vm21686_vm10, %v12197_v16, %v20106_v25  ;;  %v21690_v25 = vld [vmem:[#allocation23_spill] sm:$0xff]  ;;  %v12298_v16 = vld [vmem:[%s14381_s26 + $0x30] sm:$0xff] }
 0xc27   : > { %v12227_v19 = vmul.f32 %v12207_v43, %v21687_v59  ;;  %v12228_v35 = vmul.f32 %v12205_v6, %v21688_v34  ;;  %v12229_v45 = vmul.f32 %v12203_v24, %v21689_v33  ;;  %v12222_v28 = vmul.f32 %v12200_v0, %v21690_v25  ;;  %v12301_v33 = vld [vmem:[%s14381_s26 + $0x88] sm:$0xff] }
 0xc28   : > { %v12223_v15 = vmul.f32 %v12214_v60, %v21691_v46  ;;  %v12252_v31 = vadd.f32 %v12236_v2, %v12220_v10  ;;  %v12300_v10 = vld [vmem:[%s14381_s26 + $0x80] sm:$0xff] }
 0xc29   : > { %v12199_v29 = vpop.permute.xlu1 %12198  ;;  %v12260_v18 = vadd.f32 %v12244_v30, %v12228_v35  ;;  %v12261_v62 = vadd.f32 %v12245_v11, %v12229_v45  ;;  %v12254_v21 = vadd.f32 %v12238_v23, %v12222_v28  ;;  %v12304_v28 = vld [vmem:[%s14381_s26 + $0xa0] sm:$0xff] }
 0xc2a   : > { %v12201_v38 = vsel %vm21692_vm11, %v12195_v7, %v12199_v29  ;;  %v12215_v27 = vsel %vm21693_vm12, %v12199_v29, %v20108_v39  ;;  %v12259_v7 = vadd.f32 %v12243_v52, %v12227_v19  ;;  %v12255_v39 = vadd.f32 %v12239_v9, %v12223_v15 }
 0xc2b   : > { %v12230_v22 = vmul.f32 %v12201_v38, %v21690_v25  ;;  %v12231_v56 = vmul.f32 %v12215_v27, %v21691_v46  ;;  %v12303_v25 = vld [vmem:[%s14381_s26 + $0x98] sm:$0xff]  ;;  %v12305_v46 = vld [vmem:[%s14381_s26 + $0xa8] sm:$0xff] }
 0xc2c   : > { %v12307_v27 = vld [vmem:[%s14381_s26 + $0xb8] sm:$0xff] }
 0xc2d   : > { %v12262_v4 = vadd.f32 %v12246_v12, %v12230_v22  ;;  %v12263_v6 = vadd.f32 %v12247_v3, %v12231_v56 }
 0xc32   : > { %v12269_v42 = vpop.permute.xlu0 %12268 }
 0xc33   : > { %v12276_v52 = vadd.f32 %v12269_v42, %v12248_v53  ;;  %v12277_v2 = vadd.f32 %v12269_v42, %v20182_v55  ;;  %v12278_v30 = vadd.f32 %v12269_v42, %v12250_v44  ;;  %v12279_v58 = vadd.f32 %v12269_v42, %v12251_v57  ;;  %v12306_v53 = vld [vmem:[%s14381_s26 + $0xb0] sm:$0xff]  ;;  %s13445_s26 = sshll.u32 (%p14354_p5), %s14212_s23, 3 }
 0xc34   : > { %v12280_v1 = vadd.f32 %v12269_v42, %v12252_v31  ;;  %v12281_v49 = vadd.f32 %v12269_v42, %v12253_v13  ;;  %v12282_v23 = vadd.f32 %v12269_v42, %v12254_v21  ;;  %v12283_v43 = vadd.f32 %v12269_v42, %v12255_v39  ;;  %s12365_s14 = sadd.s32 (%p14354_p5), %s13446_s28, %s13445_s26 }
 0xc35   : > { %v12308_v51 = vmul.f32 0.2, %v12276_v52  ;;  %v12309_v14 = vmul.f32 0.2, %v12277_v2  ;;  %v12310_v50 = vmul.f32 0.2, %v12278_v30 }
 0xc36   : > { %v12311_v54 = vmul.f32 0.2, %v12279_v58  ;;  %v12312_v24 = vmul.f32 0.2, %v12280_v1  ;;  %v12313_v55 = vmul.f32 0.2, %v12281_v49  ;;  %v12274_v44 = vpop.permute.xlu1 %12273 }
 0xc37   : > { %v12314_v0 = vmul.f32 0.2, %v12282_v23  ;;  %v12315_v60 = vmul.f32 0.2, %v12283_v43  ;;  %v12324_v29 = vadd.f32 %v12308_v51, %v12292_v48  ;;  %v12325_v5 = vadd.f32 %v12309_v14, %v12293_v8  ;;  %s13447_s19 = sshll.u32 (%p14354_p5), %s12365_s14, 3 }
 0xc38   : > { %v12326_v20 = vadd.f32 %v12310_v50, %v12294_v41  ;;  %v12327_v59 = vadd.f32 %v12311_v54, %v12295_v17  ;;  %v12328_v36 = vadd.f32 %v12312_v24, %v12296_v61  ;;  %v12329_v19 = vadd.f32 %v12313_v55, %v12297_v40  ;;  %s12367_s15 = scalar_lea.vmem (%p14354_p5), %s20346_s12, %s13447_s19 }
 0xc39   : > { %v12330_v11 = vadd.f32 %v12314_v0, %v12298_v16  ;;  %v12331_v34 = vadd.f32 %v12315_v60, %v12299_v32  ;;  %12340 = vst [vmem:[%s14400_s21] sm:$0xff] %v12324_v29  ;;  %12341 = vst [vmem:[%s14400_s21 + $0x8] sm:$0xff] %v12325_v5  ;;  %v12284_v35 = vadd.f32 %v12274_v44, %v12256_v63 }
 0xc3a   : > { %v12285_v45 = vadd.f32 %v12274_v44, %v20190_v47  ;;  %12342 = vst [vmem:[%s14400_s21 + $0x10] sm:$0xff] %v12326_v20  ;;  %12343 = vst [vmem:[%s14400_s21 + $0x18] sm:$0xff] %v12327_v59  ;;  %v12286_v15 = vadd.f32 %v12274_v44, %v20192_v37  ;;  %v12287_v38 = vadd.f32 %v12274_v44, %v12259_v7 }
 0xc3b   : > { %12344 = vst [vmem:[%s14400_s21 + $0x20] sm:$0xff] %v12328_v36  ;;  %12345 = vst [vmem:[%s14400_s21 + $0x28] sm:$0xff] %v12329_v19  ;;  %v12288_v12 = vadd.f32 %v12274_v44, %v12260_v18  ;;  %v12289_v9 = vadd.f32 %v12274_v44, %v12261_v62  ;;  %v12290_v3 = vadd.f32 %v12274_v44, %v12262_v4  ;;  %v12316_v57 = vmul.f32 0.2, %v12284_v35 }
 0xc3c   : > { %12346 = vst [vmem:[%s14400_s21 + $0x30] sm:$0xff] %v12330_v11  ;;  %12347 = vst [vmem:[%s14400_s21 + $0x38] sm:$0xff] %v12331_v34  ;;  %v12291_v63 = vadd.f32 %v12274_v44, %v12263_v6  ;;  %v12317_v47 = vmul.f32 0.2, %v12285_v45  ;;  %v12318_v31 = vmul.f32 0.2, %v12286_v15 }
 0xc3d   : > { %v12319_v13 = vmul.f32 0.2, %v12287_v38  ;;  %v12320_v22 = vmul.f32 0.2, %v12288_v12  ;;  %v12321_v37 = vmul.f32 0.2, %v12289_v9  ;;  %v12332_v62 = vadd.f32 %v12316_v57, %v12300_v10 }
 0xc3e   : > { %v12322_v7 = vmul.f32 0.2, %v12290_v3  ;;  %v12323_v18 = vmul.f32 0.2, %v12291_v63  ;;  %v12333_v21 = vadd.f32 %v12317_v47, %v12301_v33  ;;  %v12334_v39 = vadd.f32 %v12318_v31, %v12302_v26 }
 0xc3f   : > { %v12335_v56 = vadd.f32 %v12319_v13, %v12303_v25  ;;  %v12336_v48 = vadd.f32 %v12320_v22, %v12304_v28  ;;  %v12337_v8 = vadd.f32 %v12321_v37, %v12305_v46  ;;  %12348 = vst [vmem:[%s14400_s21 + $0x40] sm:$0xff] %v12332_v62  ;;  %12362 = sbr.rel (!%p14354_p5) target bundleno = 3148 (0xc4c), region = 120 }
 0xc40   : > { %v12338_v42 = vadd.f32 %v12322_v7, %v12306_v53  ;;  %v12339_v41 = vadd.f32 %v12323_v18, %v12307_v27  ;;  %12349 = vst [vmem:[%s14400_s21 + $0x48] sm:$0xff] %v12333_v21  ;;  %12350 = vst [vmem:[%s14400_s21 + $0x50] sm:$0xff] %v12334_v39  ;;  %v12380_v17 = vld [vmem:[%s14400_s21] sm:$0xff] (%p14354_p5)  ;;  %v12382_v61 = vld [vmem:[%s14400_s21 + $0x8] sm:$0xff] (%p14354_p5) }
 0xc41   : > { %12351 = vst [vmem:[%s14400_s21 + $0x58] sm:$0xff] %v12335_v56  ;;  %12352 = vst [vmem:[%s14400_s21 + $0x60] sm:$0xff] %v12336_v48  ;;  %v12384_v52 = vld [vmem:[%s14400_s21 + $0x10] sm:$0xff] (%p14354_p5)  ;;  %v12386_v2 = vld [vmem:[%s14400_s21 + $0x18] sm:$0xff] (%p14354_p5) }
 0xc42   : > { %12353 = vst [vmem:[%s14400_s21 + $0x68] sm:$0xff] %v12337_v8  ;;  %12354 = vst [vmem:[%s14400_s21 + $0x70] sm:$0xff] %v12338_v42  ;;  %v12388_v30 = vld [vmem:[%s14400_s21 + $0x20] sm:$0xff] (%p14354_p5)  ;;  %v12390_v58 = vld [vmem:[%s14400_s21 + $0x28] sm:$0xff] (%p14354_p5) }
 0xc43   : > { %12355 = vst [vmem:[%s14400_s21 + $0x78] sm:$0xff] %v12339_v41  ;;  %v12392_v40 = vld [vmem:[%s14400_s21 + $0x30] sm:$0xff] (%p14354_p5)  ;;  %v12394_v16 = vld [vmem:[%s14400_s21 + $0x38] sm:$0xff] (%p14354_p5)  ;;  %12381 = vst [vmem:[%s12367_s15] sm:$0xff] (%p14354_p5), %v12380_v17 }
 0xc44   : > { %12383 = vst [vmem:[%s12367_s15 + $0x8] sm:$0xff] %v12382_v61  ;;  %12385 = vst [vmem:[%s12367_s15 + $0x10] sm:$0xff] %v12384_v52 }
 0xc45   : > { %12387 = vst [vmem:[%s12367_s15 + $0x18] sm:$0xff] %v12386_v2  ;;  %12389 = vst [vmem:[%s12367_s15 + $0x20] sm:$0xff] %v12388_v30 }
 0xc46   : > { %v12396_v32 = vld [vmem:[%s14400_s21 + $0x40] sm:$0xff]  ;;  %12391 = vst [vmem:[%s12367_s15 + $0x28] sm:$0xff] %v12390_v58  ;;  %12393 = vst [vmem:[%s12367_s15 + $0x30] sm:$0xff] %v12392_v40 }
 0xc47   : > { %v12398_v1 = vld [vmem:[%s14400_s21 + $0x48] sm:$0xff]  ;;  %v12400_v49 = vld [vmem:[%s14400_s21 + $0x50] sm:$0xff]  ;;  %12395 = vst [vmem:[%s12367_s15 + $0x38] sm:$0xff] %v12394_v16  ;;  %12397 = vst [vmem:[%s12367_s15 + $0x80] sm:$0xff] %v12396_v32 }
 0xc48   : > { %v12402_v23 = vld [vmem:[%s14400_s21 + $0x58] sm:$0xff]  ;;  %12399 = vst [vmem:[%s12367_s15 + $0x88] sm:$0xff] %v12398_v1  ;;  %12401 = vst [vmem:[%s12367_s15 + $0x90] sm:$0xff] %v12400_v49  ;;  %v12404_v43 = vld [vmem:[%s14400_s21 + $0x60] sm:$0xff] }
 0xc49   : > { %12403 = vst [vmem:[%s12367_s15 + $0x98] sm:$0xff] %v12402_v23  ;;  %v12406_v4 = vld [vmem:[%s14400_s21 + $0x68] sm:$0xff]  ;;  %v12408_v51 = vld [vmem:[%s14400_s21 + $0x70] sm:$0xff]  ;;  %12405 = vst [vmem:[%s12367_s15 + $0xa0] sm:$0xff] %v12404_v43 }
 0xc4a   : > { %12407 = vst [vmem:[%s12367_s15 + $0xa8] sm:$0xff] %v12406_v4  ;;  %12409 = vst [vmem:[%s12367_s15 + $0xb0] sm:$0xff] %v12408_v51  ;;  %v12410_v14 = vld [vmem:[%s14400_s21 + $0x78] sm:$0xff] }
 0xc4b   : > { %12411 = vst [vmem:[%s12367_s15 + $0xb8] sm:$0xff] %v12410_v14 }
 0xc4c PF: > { %s22_s27 = sadd.s32 1, %s14228_s27   ;;  %s21694_s23 = sld [smem:[#allocation4_spill]] }
 0xc4d   : > { %p19_p0 = scmp.ge.s32.totalorder %s22_s27, 6   ;;  %s21695_s24 = sld [smem:[#allocation5_spill]] }
 0xc4e   : > { %s21696_s25 = sld [smem:[#allocation6_spill]]  ;;  %s21698_s21 = smov %s14208_s22 }
 0xc4f   : > { %s21697_s26 = sld [smem:[#allocation7_spill]]  ;;  %s21699_s22 = smov %s14365_s18 }
 0xc50   :  { %21 = sbr.rel (!%p19_p0) target bundleno = 4 (0x4), region = 185 }

</bundles_post_ra>
